<compile_context>
chip_gen: v6e
topology: v6e:2x2x1
jax: 0.10.0
libtpu: 0.0.40
codegen_flags: <defaults>
</compile_context>

<pallas_src>
import numpy as np

import jax
import jax.numpy as jnp
from jax.experimental import pallas as pl
from jax.experimental.pallas import tpu as pltpu

MATMUL_DTYPE = jnp.bfloat16           # MXU input dtype (accumulation stays f32)
VMEM_LIMIT_BYTES = 32 * 1024 * 1024   # safe scoped-VMEM limit on v5e/v6e/v7x
BN_EPS = 1e-5
KSIZE = 4                             # all convs are k=4, stride=2, padding=1
NTAPS = KSIZE * KSIZE


def _round_up(v, m):
    return -(-v // m) * m


# ----------------------------------------------------------------------------
# Fused Pallas kernel: one batch element per grid step, everything in VMEM.
# ----------------------------------------------------------------------------
def _unet_fused_kernel(a1t_ref, w1t_ref, b1_ref,
                       s2t_ref, w2t_ref, b2_ref,
                       s3t_ref, w3t_ref, b3_ref,
                       s4t_ref, w4t_ref, b4_ref,
                       out_ref):
    """Activations are (channels, pixels).  Each conv / transposed conv is
    sum_t  W_t^T @ (H @ S_t^T)  with constant 0/1 per-tap selection matrices;
    BN scale is pre-folded into W_t, so the epilogue is shift + activation."""
    f32 = jnp.float32

    def tap_gemm_layer(h, s_ref, w_ref, b_ref):
        c_out, m_out = w_ref.shape[1], s_ref.shape[2]
        acc = jnp.zeros((c_out, m_out), f32)
        for t in range(s_ref.shape[0]):           # static unroll over the 16 taps
            # gather tap t's source pixels (exact 0/1 selection, stays on the MXU)
            g = jnp.dot(h, s_ref[t], preferred_element_type=f32).astype(MATMUL_DTYPE)
            acc = acc + jnp.dot(w_ref[t], g, preferred_element_type=f32)
        return acc + b_ref[...]

    # enc1: Conv(3->64, k4 s2 p1) as a single im2col GEMM (patch matrix from wrapper)
    h = jnp.dot(w1t_ref[...], a1t_ref[...], preferred_element_type=f32) + b1_ref[...]
    h = jnp.maximum(h, 0.0).astype(MATMUL_DTYPE)
    # enc2: Conv(64->128) + BN + ReLU
    h = jnp.maximum(tap_gemm_layer(h, s2t_ref, w2t_ref, b2_ref), 0.0).astype(MATMUL_DTYPE)
    # dec2: ConvTranspose(128->64) + BN + ReLU
    h = jnp.maximum(tap_gemm_layer(h, s3t_ref, w3t_ref, b3_ref), 0.0).astype(MATMUL_DTYPE)
    # dec1: ConvTranspose(64->3) + Tanh  (channels on sublanes, pixels lane-dense)
    out_ref[...] = jnp.tanh(tap_gemm_layer(h, s4t_ref, w4t_ref, b4_ref)).astype(out_ref.dtype)


# ----------------------------------------------------------------------------
# One-time parameter prep (hoisted out of the forward path)
# ----------------------------------------------------------------------------
def _conv_selections_T(hi, wi):
    """S_t^T for Conv2d(k=4,s=2,p=1): (16, hi*wi, (hi//2)*(wi//2)) 0/1 matrices.
    Input pixel (2*oh+kh-1, 2*ow+kw-1) feeds output pixel (oh, ow) at tap (kh,kw)."""
    ho, wo = hi // 2, wi // 2
    mats = []
    for kh in range(KSIZE):
        for kw in range(KSIZE):
            s = np.zeros((hi * wi, ho * wo), np.float32)
            for oh in range(ho):
                ih = 2 * oh + kh - 1
                if not 0 <= ih < hi:
                    continue
                for ow in range(wo):
                    iw = 2 * ow + kw - 1
                    if 0 <= iw < wi:
                        s[ih * wi + iw, oh * wo + ow] = 1.0
            mats.append(s)
    return np.stack(mats)


def _convT_selections_T(hi, wi):
    """S_t^T for ConvTranspose2d(k=4,s=2,p=1): (16, hi*wi, 2hi*2wi) 0/1 matrices.
    out[oh,ow] += in[ih,iw]*w[kh,kw] where ih=(oh+1-kh)/2, iw=(ow+1-kw)/2 (exact)."""
    ho, wo = 2 * hi, 2 * wi
    mats = []
    for kh in range(KSIZE):
        for kw in range(KSIZE):
            s = np.zeros((hi * wi, ho * wo), np.float32)
            for oh in range(ho):
                dh = oh + 1 - kh
                if dh % 2 != 0 or not 0 <= dh // 2 < hi:
                    continue
                ih = dh // 2
                for ow in range(wo):
                    dw = ow + 1 - kw
                    if dw % 2 == 0 and 0 <= dw // 2 < wi:
                        s[ih * wi + dw // 2, oh * wo + ow] = 1.0
            mats.append(s)
    return np.stack(mats)


def prepare_params(params, height, width):
    """Fold BN (eval) into bf16 weights, build per-tap weight stacks + selections."""
    assert height % 4 == 0 and width % 4 == 0
    h1, w1 = height // 2, width // 2          # enc1 output spatial
    h2, w2 = height // 4, width // 4          # enc2 output spatial

    def fold(p):
        s = p["gamma"] / jnp.sqrt(p["var"] + BN_EPS)
        return s, (p["b"] - p["mean"]) * s + p["beta"]

    # enc1: im2col GEMM weight, K ordered (kh, kw, padded c_in); scale folded in.
    p = params["enc1"]
    s1, t1 = fold(p)
    c_in = p["w"].shape[1]
    c_in_p = _round_up(c_in, 8)
    wm = jnp.transpose(p["w"], (2, 3, 1, 0))                         # (4,4,Cin,64)
    wm = jnp.pad(wm, ((0, 0), (0, 0), (0, c_in_p - c_in), (0, 0)))   # (4,4,Cin_p,64)
    wm = wm.reshape(NTAPS * c_in_p, -1)                              # (K, 64)
    w1t = (s1[:, None] * wm.T).astype(MATMUL_DTYPE)                  # (64, K)
    b1 = t1[:, None].astype(jnp.float32)

    # enc2: Conv2d weight (128, 64, 4, 4) -> per-tap W_t^T = scale * w[:,:,kh,kw]
    p = params["enc2"]
    s2, t2 = fold(p)
    w2t = jnp.stack([s2[:, None] * p["w"][:, :, kh, kw]
                     for kh in range(KSIZE) for kw in range(KSIZE)]).astype(MATMUL_DTYPE)
    b2 = t2[:, None].astype(jnp.float32)

    # dec2: ConvTranspose2d weight (128, 64, 4, 4) -> W_t^T = scale * w[:,:,kh,kw].T
    p = params["dec2"]
    s3, t3 = fold(p)
    w3t = jnp.stack([s3[:, None] * p["w"][:, :, kh, kw].T
                     for kh in range(KSIZE) for kw in range(KSIZE)]).astype(MATMUL_DTYPE)
    b3 = t3[:, None].astype(jnp.float32)

    # dec1: ConvTranspose2d weight (64, 3, 4, 4), no BN; pad C_out 3 -> 8 sublanes.
    p = params["dec1"]
    c_out = p["w"].shape[1]
    c_out_p = _round_up(c_out, 8)
    w4t = jnp.stack([jnp.pad(p["w"][:, :, kh, kw].T, ((0, c_out_p - c_out), (0, 0)))
                     for kh in range(KSIZE) for kw in range(KSIZE)]).astype(MATMUL_DTYPE)
    b4 = jnp.pad(p["b"], (0, c_out_p - c_out))[:, None].astype(jnp.float32)

    return {
        "w1t": w1t, "b1": b1,
        "s2t": jnp.asarray(_conv_selections_T(h1, w1), MATMUL_DTYPE), "w2t": w2t, "b2": b2,
        "s3t": jnp.asarray(_convT_selections_T(h2, w2), MATMUL_DTYPE), "w3t": w3t, "b3": b3,
        "s4t": jnp.asarray(_convT_selections_T(h1, w1), MATMUL_DTYPE), "w4t": w4t, "b4": b4,
    }


# ----------------------------------------------------------------------------
# Forward (matches UNetAE.forward; BatchNorm in eval mode)
# ----------------------------------------------------------------------------
@jax.jit
def unet_ae_forward(prepped, x_nchw):
    batch, c_in, height, width = x_nchw.shape
    ho, wo = height // 2, width // 2
    c_in_p = prepped["w1t"].shape[1] // NTAPS
    c_out_p = prepped["w4t"].shape[1]
    m_out = height * width

    # First-layer patch matrix (built from the tiny raw 3-channel input only).
    # TODO(synk): for large inputs build this inside the kernel from shifted VMEM reads.
    xh = jnp.transpose(x_nchw, (0, 2, 3, 1))                         # NHWC
    xh = jnp.pad(xh, ((0, 0), (1, 1), (1, 1), (0, c_in_p - c_in)))
    taps = [xh[:, kh:kh + 2 * ho:2, kw:kw + 2 * wo:2, :]
            for kh in range(KSIZE) for kw in range(KSIZE)]
    a1 = jnp.stack(taps, axis=3).reshape(batch, ho * wo, NTAPS * c_in_p)
    a1t = jnp.transpose(a1, (0, 2, 1)).astype(MATMUL_DTYPE)          # (B, K, ho*wo)

    p = prepped
    operands = (a1t, p["w1t"], p["b1"], p["s2t"], p["w2t"], p["b2"],
                p["s3t"], p["w3t"], p["b3"], p["s4t"], p["w4t"], p["b4"])

    def shared(arr):
        if arr.ndim == 2:
            return pl.BlockSpec(arr.shape, lambda b: (0, 0))
        return pl.BlockSpec(arr.shape, lambda b: (0, 0, 0))

    in_specs = [pl.BlockSpec((None,) + a1t.shape[1:], lambda b: (b, 0, 0))]
    in_specs += [shared(op) for op in operands[1:]]
    out_specs = pl.BlockSpec((None, c_out_p, m_out), lambda b: (b, 0, 0))

    # Advisory cost estimate.
    c1, k1, m1 = p["w1t"].shape[0], p["w1t"].shape[1], ho * wo
    c2, m2 = p["w2t"].shape[1], p["s2t"].shape[2]
    c3, m3 = p["w3t"].shape[1], p["s3t"].shape[2]

    def tap_layer_flops(ci, mi, co, mo):
        return NTAPS * (2 * ci * mi * mo + 2 * co * ci * mo)

    flops = batch * (2 * c1 * k1 * m1
                     + tap_layer_flops(c1, m1, c2, m2)
                     + tap_layer_flops(c2, m2, c3, m3)
                     + tap_layer_flops(c3, m3, c_out_p, m_out))
    bytes_accessed = sum(int(op.size) * op.dtype.itemsize for op in operands) \
        + batch * c_out_p * m_out * 4

    out = pl.pallas_call(
        _unet_fused_kernel,
        out_shape=jax.ShapeDtypeStruct((batch, c_out_p, m_out), jnp.float32),
        grid=(batch,),
        in_specs=in_specs,
        out_specs=out_specs,
        compiler_params=pltpu.CompilerParams(
            dimension_semantics=("parallel",),
            vmem_limit_bytes=VMEM_LIMIT_BYTES),
        cost_estimate=pl.CostEstimate(flops=flops,
                                      transcendentals=batch * c_out_p * m_out,
                                      bytes_accessed=bytes_accessed),
    )(*operands)

    # Autoencoder: C_out == C_in.  Drop padded channels; columns are oh*W + ow.
    return out[:, :c_in, :].reshape(batch, c_in, height, width)


# ----------------------------------------------------------------------------
# Deterministic parameter init (shapes from UNetAE.__init__) and f32 reference
# ----------------------------------------------------------------------------
def init_params(key):
    def conv_block(key, c_in, c_out, bn=True, transpose=False):
        ks = jax.random.split(key, 6)
        wshape = (c_in, c_out, 4, 4) if transpose else (c_out, c_in, 4, 4)
        p = {"w": 0.05 * jax.random.normal(ks[0], wshape, jnp.float32),
             "b": 0.01 * jax.random.normal(ks[1], (c_out,), jnp.float32)}
        if bn:
            p.update({
                "gamma": 1.0 + 0.01 * jax.random.normal(ks[2], (c_out,), jnp.float32),
                "beta": 0.01 * jax.random.normal(ks[3], (c_out,), jnp.float32),
                "mean": 0.01 * jax.random.normal(ks[4], (c_out,), jnp.float32),
                "var": 1.0 + 0.1 * jnp.abs(jax.random.normal(ks[5], (c_out,), jnp.float32)),
            })
        return p

    k1, k2, k3, k4 = jax.random.split(key, 4)
    return {"enc1": conv_block(k1, 3, 64, bn=True, transpose=False),
            "enc2": conv_block(k2, 64, 128, bn=True, transpose=False),
            "dec2": conv_block(k3, 128, 64, bn=True, transpose=True),
            "dec1": conv_block(k4, 64, 3, bn=False, transpose=True)}


def reference_forward(params, x):
    """Pure-JAX float32 reference (BatchNorm in eval mode) for validation."""
    dn = ("NCHW", "OIHW", "NCHW")
    hi = jax.lax.Precision.HIGHEST

    def bn(y, p):
        s = p["gamma"] / jnp.sqrt(p["var"] + BN_EPS)
        return (y - p["mean"][None, :, None, None]) * s[None, :, None, None] \
            + p["beta"][None, :, None, None]

    def conv(y, p):
        out = jax.lax.conv_general_dilated(y, p["w"], (2, 2), [(1, 1), (1, 1)],
                                           dimension_numbers=dn, precision=hi)
        return out + p["b"][None, :, None, None]

    def convT(y, p):  # ConvTranspose2d(k=4,s=2,p=1) == dilated conv with flipped kernel
        w = jnp.transpose(jnp.flip(p["w"], (2, 3)), (1, 0, 2, 3))
        out = jax.lax.conv_general_dilated(y, w, (1, 1), [(2, 2), (2, 2)],
                                           lhs_dilation=(2, 2),
                                           dimension_numbers=dn, precision=hi)
        return out + p["b"][None, :, None, None]

    e1 = jnp.maximum(bn(conv(x, params["enc1"]), params["enc1"]), 0.0)
    e2 = jnp.maximum(bn(conv(e1, params["enc2"]), params["enc2"]), 0.0)
    d2 = jnp.maximum(bn(convT(e2, params["dec2"]), params["dec2"]), 0.0)
    return jnp.tanh(convT(d2, params["dec1"]))


if __name__ == "__main__":
    key_x, key_p = jax.random.split(jax.random.PRNGKey(0))
    x = jax.random.normal(key_x, (2, 3, 16, 16), jnp.float32)        # NCHW
    params = init_params(key_p)

    prepped = prepare_params(params, 16, 16)                         # one-time prep
    y = unet_ae_forward(prepped, x)
    jax.block_until_ready(y)

    assert y.shape == (2, 3, 16, 16), y.shape
    assert bool(jnp.all(jnp.isfinite(y)))
    assert bool(jnp.all(jnp.abs(y) <= 1.0 + 1e-6))                   # tanh range

    # Validate the fused bf16 kernel (incl. the ConvTranspose decomposition)
    # against the pure-JAX float32 reference.
    y_ref = reference_forward(params, x)
    err = float(jnp.max(jnp.abs(y - y_ref)))
    assert err < 5e-2, f"max abs error vs f32 reference: {err}"

    print("KERNEL_OK")
</pallas_src>

<mosaic_0001>
module attributes {stable_mosaic.version = 11 : i64} {
  func.func @_unet_fused_kernel(%arg0: i32, %arg1: memref<1x128x64xbf16, #tpu.memory_space<vmem>>, %arg2: memref<64x128xbf16, #tpu.memory_space<vmem>>, %arg3: memref<64x1xf32, #tpu.memory_space<vmem>>, %arg4: memref<16x64x16xbf16, #tpu.memory_space<vmem>>, %arg5: memref<16x128x64xbf16, #tpu.memory_space<vmem>>, %arg6: memref<128x1xf32, #tpu.memory_space<vmem>>, %arg7: memref<16x16x64xbf16, #tpu.memory_space<vmem>>, %arg8: memref<16x64x128xbf16, #tpu.memory_space<vmem>>, %arg9: memref<64x1xf32, #tpu.memory_space<vmem>>, %arg10: memref<16x64x256xbf16, #tpu.memory_space<vmem>>, %arg11: memref<16x8x64xbf16, #tpu.memory_space<vmem>>, %arg12: memref<8x1xf32, #tpu.memory_space<vmem>>, %arg13: memref<1x8x256xf32, #tpu.memory_space<vmem>>) attributes {dimension_semantics = [#tpu.dimension_semantics<parallel>], iteration_bounds = array<i64: 2>, scalar_prefetch = 0 : i64, scratch_operands = 0 : i64, tpu.core_type = #tpu.core_type<tc>, window_params = [{transform_indices = @transform_0, window_bounds = array<i64: 1, 128, 64>}, {pipeline_mode = #tpu.pipeline_mode<synchronous>, transform_indices = @transform_1, window_bounds = array<i64: 64, 128>}, {pipeline_mode = #tpu.pipeline_mode<synchronous>, transform_indices = @transform_2, window_bounds = array<i64: 64, 1>}, {pipeline_mode = #tpu.pipeline_mode<synchronous>, transform_indices = @transform_3, window_bounds = array<i64: 16, 64, 16>}, {pipeline_mode = #tpu.pipeline_mode<synchronous>, transform_indices = @transform_4, window_bounds = array<i64: 16, 128, 64>}, {pipeline_mode = #tpu.pipeline_mode<synchronous>, transform_indices = @transform_5, window_bounds = array<i64: 128, 1>}, {pipeline_mode = #tpu.pipeline_mode<synchronous>, transform_indices = @transform_6, window_bounds = array<i64: 16, 16, 64>}, {pipeline_mode = #tpu.pipeline_mode<synchronous>, transform_indices = @transform_7, window_bounds = array<i64: 16, 64, 128>}, {pipeline_mode = #tpu.pipeline_mode<synchronous>, transform_indices = @transform_8, window_bounds = array<i64: 64, 1>}, {pipeline_mode = #tpu.pipeline_mode<synchronous>, transform_indices = @transform_9, window_bounds = array<i64: 16, 64, 256>}, {pipeline_mode = #tpu.pipeline_mode<synchronous>, transform_indices = @transform_10, window_bounds = array<i64: 16, 8, 64>}, {pipeline_mode = #tpu.pipeline_mode<synchronous>, transform_indices = @transform_11, window_bounds = array<i64: 8, 1>}, {transform_indices = @transform_12, window_bounds = array<i64: 1, 8, 256>}]} {
    %c0 = arith.constant 0 : index
    %c0_0 = arith.constant 0 : index
    %0 = vector.load %arg2[%c0, %c0_0] : memref<64x128xbf16, #tpu.memory_space<vmem>>, vector<64x128xbf16>
    %c0_1 = arith.constant 0 : index
    %c0_2 = arith.constant 0 : index
    %c0_3 = arith.constant 0 : index
    %1 = vector.load %arg1[%c0_1, %c0_2, %c0_3] : memref<1x128x64xbf16, #tpu.memory_space<vmem>>, vector<1x128x64xbf16>
    %2 = vector.shape_cast %1 : vector<1x128x64xbf16> to vector<128x64xbf16>
    %cst = arith.constant dense<0.000000e+00> : vector<64x64xf32>
    %3 = tpu.matmul %0, %2, %cst {dimension_numbers = #tpu.dot_dimension_numbers<[1], [0], [0], [1], [0, 0, 1, 1], [], []>} : vector<64x128xbf16>, vector<128x64xbf16>, vector<64x64xf32> -> vector<64x64xf32>
    %c0_4 = arith.constant 0 : index
    %c0_5 = arith.constant 0 : index
    %4 = vector.load %arg3[%c0_4, %c0_5] : memref<64x1xf32, #tpu.memory_space<vmem>>, vector<64x1xf32>
    %5 = vector.broadcast %4 : vector<64x1xf32> to vector<64x64xf32>
    %6 = arith.addf %3, %5 : vector<64x64xf32>
    %cst_6 = arith.constant 0.000000e+00 : f32
    %7 = vector.broadcast %cst_6 : f32 to vector<64x64xf32>
    %8 = arith.maximumf %6, %7 : vector<64x64xf32>
    %9 = arith.truncf %8 : vector<64x64xf32> to vector<64x64xbf16>
    %cst_7 = arith.constant 0.000000e+00 : f32
    %10 = vector.broadcast %cst_7 : f32 to vector<128x16xf32>
    %c0_8 = arith.constant 0 : index
    %c0_9 = arith.constant 0 : index
    %c0_10 = arith.constant 0 : index
    %11 = vector.load %arg4[%c0_8, %c0_9, %c0_10] : memref<16x64x16xbf16, #tpu.memory_space<vmem>>, vector<1x64x16xbf16>
    %12 = vector.shape_cast %11 : vector<1x64x16xbf16> to vector<64x16xbf16>
    %cst_11 = arith.constant dense<0.000000e+00> : vector<64x16xf32>
    %13 = tpu.matmul %9, %12, %cst_11 {dimension_numbers = #tpu.dot_dimension_numbers<[1], [0], [0], [1], [0, 0, 1, 1], [], []>} : vector<64x64xbf16>, vector<64x16xbf16>, vector<64x16xf32> -> vector<64x16xf32>
    %14 = arith.truncf %13 : vector<64x16xf32> to vector<64x16xbf16>
    %c0_12 = arith.constant 0 : index
    %c0_13 = arith.constant 0 : index
    %c0_14 = arith.constant 0 : index
    %15 = vector.load %arg5[%c0_12, %c0_13, %c0_14] : memref<16x128x64xbf16, #tpu.memory_space<vmem>>, vector<1x128x64xbf16>
    %16 = vector.shape_cast %15 : vector<1x128x64xbf16> to vector<128x64xbf16>
    %cst_15 = arith.constant dense<0.000000e+00> : vector<128x16xf32>
    %17 = tpu.matmul %16, %14, %cst_15 {dimension_numbers = #tpu.dot_dimension_numbers<[1], [0], [0], [1], [0, 0, 1, 1], [], []>} : vector<128x64xbf16>, vector<64x16xbf16>, vector<128x16xf32> -> vector<128x16xf32>
    %18 = arith.addf %10, %17 : vector<128x16xf32>
    %c1 = arith.constant 1 : index
    %c0_16 = arith.constant 0 : index
    %c0_17 = arith.constant 0 : index
    %19 = vector.load %arg4[%c1, %c0_16, %c0_17] : memref<16x64x16xbf16, #tpu.memory_space<vmem>>, vector<1x64x16xbf16>
    %20 = vector.shape_cast %19 : vector<1x64x16xbf16> to vector<64x16xbf16>
    %cst_18 = arith.constant dense<0.000000e+00> : vector<64x16xf32>
    %21 = tpu.matmul %9, %20, %cst_18 {dimension_numbers = #tpu.dot_dimension_numbers<[1], [0], [0], [1], [0, 0, 1, 1], [], []>} : vector<64x64xbf16>, vector<64x16xbf16>, vector<64x16xf32> -> vector<64x16xf32>
    %22 = arith.truncf %21 : vector<64x16xf32> to vector<64x16xbf16>
    %c1_19 = arith.constant 1 : index
    %c0_20 = arith.constant 0 : index
    %c0_21 = arith.constant 0 : index
    %23 = vector.load %arg5[%c1_19, %c0_20, %c0_21] : memref<16x128x64xbf16, #tpu.memory_space<vmem>>, vector<1x128x64xbf16>
    %24 = vector.shape_cast %23 : vector<1x128x64xbf16> to vector<128x64xbf16>
    %cst_22 = arith.constant dense<0.000000e+00> : vector<128x16xf32>
    %25 = tpu.matmul %24, %22, %cst_22 {dimension_numbers = #tpu.dot_dimension_numbers<[1], [0], [0], [1], [0, 0, 1, 1], [], []>} : vector<128x64xbf16>, vector<64x16xbf16>, vector<128x16xf32> -> vector<128x16xf32>
    %26 = arith.addf %18, %25 : vector<128x16xf32>
    %c2 = arith.constant 2 : index
    %c0_23 = arith.constant 0 : index
    %c0_24 = arith.constant 0 : index
    %27 = vector.load %arg4[%c2, %c0_23, %c0_24] : memref<16x64x16xbf16, #tpu.memory_space<vmem>>, vector<1x64x16xbf16>
    %28 = vector.shape_cast %27 : vector<1x64x16xbf16> to vector<64x16xbf16>
    %cst_25 = arith.constant dense<0.000000e+00> : vector<64x16xf32>
    %29 = tpu.matmul %9, %28, %cst_25 {dimension_numbers = #tpu.dot_dimension_numbers<[1], [0], [0], [1], [0, 0, 1, 1], [], []>} : vector<64x64xbf16>, vector<64x16xbf16>, vector<64x16xf32> -> vector<64x16xf32>
    %30 = arith.truncf %29 : vector<64x16xf32> to vector<64x16xbf16>
    %c2_26 = arith.constant 2 : index
    %c0_27 = arith.constant 0 : index
    %c0_28 = arith.constant 0 : index
    %31 = vector.load %arg5[%c2_26, %c0_27, %c0_28] : memref<16x128x64xbf16, #tpu.memory_space<vmem>>, vector<1x128x64xbf16>
    %32 = vector.shape_cast %31 : vector<1x128x64xbf16> to vector<128x64xbf16>
    %cst_29 = arith.constant dense<0.000000e+00> : vector<128x16xf32>
    %33 = tpu.matmul %32, %30, %cst_29 {dimension_numbers = #tpu.dot_dimension_numbers<[1], [0], [0], [1], [0, 0, 1, 1], [], []>} : vector<128x64xbf16>, vector<64x16xbf16>, vector<128x16xf32> -> vector<128x16xf32>
    %34 = arith.addf %26, %33 : vector<128x16xf32>
    %c3 = arith.constant 3 : index
    %c0_30 = arith.constant 0 : index
    %c0_31 = arith.constant 0 : index
    %35 = vector.load %arg4[%c3, %c0_30, %c0_31] : memref<16x64x16xbf16, #tpu.memory_space<vmem>>, vector<1x64x16xbf16>
    %36 = vector.shape_cast %35 : vector<1x64x16xbf16> to vector<64x16xbf16>
    %cst_32 = arith.constant dense<0.000000e+00> : vector<64x16xf32>
    %37 = tpu.matmul %9, %36, %cst_32 {dimension_numbers = #tpu.dot_dimension_numbers<[1], [0], [0], [1], [0, 0, 1, 1], [], []>} : vector<64x64xbf16>, vector<64x16xbf16>, vector<64x16xf32> -> vector<64x16xf32>
    %38 = arith.truncf %37 : vector<64x16xf32> to vector<64x16xbf16>
    %c3_33 = arith.constant 3 : index
    %c0_34 = arith.constant 0 : index
    %c0_35 = arith.constant 0 : index
    %39 = vector.load %arg5[%c3_33, %c0_34, %c0_35] : memref<16x128x64xbf16, #tpu.memory_space<vmem>>, vector<1x128x64xbf16>
    %40 = vector.shape_cast %39 : vector<1x128x64xbf16> to vector<128x64xbf16>
    %cst_36 = arith.constant dense<0.000000e+00> : vector<128x16xf32>
    %41 = tpu.matmul %40, %38, %cst_36 {dimension_numbers = #tpu.dot_dimension_numbers<[1], [0], [0], [1], [0, 0, 1, 1], [], []>} : vector<128x64xbf16>, vector<64x16xbf16>, vector<128x16xf32> -> vector<128x16xf32>
    %42 = arith.addf %34, %41 : vector<128x16xf32>
    %c4 = arith.constant 4 : index
    %c0_37 = arith.constant 0 : index
    %c0_38 = arith.constant 0 : index
    %43 = vector.load %arg4[%c4, %c0_37, %c0_38] : memref<16x64x16xbf16, #tpu.memory_space<vmem>>, vector<1x64x16xbf16>
    %44 = vector.shape_cast %43 : vector<1x64x16xbf16> to vector<64x16xbf16>
    %cst_39 = arith.constant dense<0.000000e+00> : vector<64x16xf32>
    %45 = tpu.matmul %9, %44, %cst_39 {dimension_numbers = #tpu.dot_dimension_numbers<[1], [0], [0], [1], [0, 0, 1, 1], [], []>} : vector<64x64xbf16>, vector<64x16xbf16>, vector<64x16xf32> -> vector<64x16xf32>
    %46 = arith.truncf %45 : vector<64x16xf32> to vector<64x16xbf16>
    %c4_40 = arith.constant 4 : index
    %c0_41 = arith.constant 0 : index
    %c0_42 = arith.constant 0 : index
    %47 = vector.load %arg5[%c4_40, %c0_41, %c0_42] : memref<16x128x64xbf16, #tpu.memory_space<vmem>>, vector<1x128x64xbf16>
    %48 = vector.shape_cast %47 : vector<1x128x64xbf16> to vector<128x64xbf16>
    %cst_43 = arith.constant dense<0.000000e+00> : vector<128x16xf32>
    %49 = tpu.matmul %48, %46, %cst_43 {dimension_numbers = #tpu.dot_dimension_numbers<[1], [0], [0], [1], [0, 0, 1, 1], [], []>} : vector<128x64xbf16>, vector<64x16xbf16>, vector<128x16xf32> -> vector<128x16xf32>
    %50 = arith.addf %42, %49 : vector<128x16xf32>
    %c5 = arith.constant 5 : index
    %c0_44 = arith.constant 0 : index
    %c0_45 = arith.constant 0 : index
    %51 = vector.load %arg4[%c5, %c0_44, %c0_45] : memref<16x64x16xbf16, #tpu.memory_space<vmem>>, vector<1x64x16xbf16>
    %52 = vector.shape_cast %51 : vector<1x64x16xbf16> to vector<64x16xbf16>
    %cst_46 = arith.constant dense<0.000000e+00> : vector<64x16xf32>
    %53 = tpu.matmul %9, %52, %cst_46 {dimension_numbers = #tpu.dot_dimension_numbers<[1], [0], [0], [1], [0, 0, 1, 1], [], []>} : vector<64x64xbf16>, vector<64x16xbf16>, vector<64x16xf32> -> vector<64x16xf32>
    %54 = arith.truncf %53 : vector<64x16xf32> to vector<64x16xbf16>
    %c5_47 = arith.constant 5 : index
    %c0_48 = arith.constant 0 : index
    %c0_49 = arith.constant 0 : index
    %55 = vector.load %arg5[%c5_47, %c0_48, %c0_49] : memref<16x128x64xbf16, #tpu.memory_space<vmem>>, vector<1x128x64xbf16>
    %56 = vector.shape_cast %55 : vector<1x128x64xbf16> to vector<128x64xbf16>
    %cst_50 = arith.constant dense<0.000000e+00> : vector<128x16xf32>
    %57 = tpu.matmul %56, %54, %cst_50 {dimension_numbers = #tpu.dot_dimension_numbers<[1], [0], [0], [1], [0, 0, 1, 1], [], []>} : vector<128x64xbf16>, vector<64x16xbf16>, vector<128x16xf32> -> vector<128x16xf32>
    %58 = arith.addf %50, %57 : vector<128x16xf32>
    %c6 = arith.constant 6 : index
    %c0_51 = arith.constant 0 : index
    %c0_52 = arith.constant 0 : index
    %59 = vector.load %arg4[%c6, %c0_51, %c0_52] : memref<16x64x16xbf16, #tpu.memory_space<vmem>>, vector<1x64x16xbf16>
    %60 = vector.shape_cast %59 : vector<1x64x16xbf16> to vector<64x16xbf16>
    %cst_53 = arith.constant dense<0.000000e+00> : vector<64x16xf32>
    %61 = tpu.matmul %9, %60, %cst_53 {dimension_numbers = #tpu.dot_dimension_numbers<[1], [0], [0], [1], [0, 0, 1, 1], [], []>} : vector<64x64xbf16>, vector<64x16xbf16>, vector<64x16xf32> -> vector<64x16xf32>
    %62 = arith.truncf %61 : vector<64x16xf32> to vector<64x16xbf16>
    %c6_54 = arith.constant 6 : index
    %c0_55 = arith.constant 0 : index
    %c0_56 = arith.constant 0 : index
    %63 = vector.load %arg5[%c6_54, %c0_55, %c0_56] : memref<16x128x64xbf16, #tpu.memory_space<vmem>>, vector<1x128x64xbf16>
    %64 = vector.shape_cast %63 : vector<1x128x64xbf16> to vector<128x64xbf16>
    %cst_57 = arith.constant dense<0.000000e+00> : vector<128x16xf32>
    %65 = tpu.matmul %64, %62, %cst_57 {dimension_numbers = #tpu.dot_dimension_numbers<[1], [0], [0], [1], [0, 0, 1, 1], [], []>} : vector<128x64xbf16>, vector<64x16xbf16>, vector<128x16xf32> -> vector<128x16xf32>
    %66 = arith.addf %58, %65 : vector<128x16xf32>
    %c7 = arith.constant 7 : index
    %c0_58 = arith.constant 0 : index
    %c0_59 = arith.constant 0 : index
    %67 = vector.load %arg4[%c7, %c0_58, %c0_59] : memref<16x64x16xbf16, #tpu.memory_space<vmem>>, vector<1x64x16xbf16>
    %68 = vector.shape_cast %67 : vector<1x64x16xbf16> to vector<64x16xbf16>
    %cst_60 = arith.constant dense<0.000000e+00> : vector<64x16xf32>
    %69 = tpu.matmul %9, %68, %cst_60 {dimension_numbers = #tpu.dot_dimension_numbers<[1], [0], [0], [1], [0, 0, 1, 1], [], []>} : vector<64x64xbf16>, vector<64x16xbf16>, vector<64x16xf32> -> vector<64x16xf32>
    %70 = arith.truncf %69 : vector<64x16xf32> to vector<64x16xbf16>
    %c7_61 = arith.constant 7 : index
    %c0_62 = arith.constant 0 : index
    %c0_63 = arith.constant 0 : index
    %71 = vector.load %arg5[%c7_61, %c0_62, %c0_63] : memref<16x128x64xbf16, #tpu.memory_space<vmem>>, vector<1x128x64xbf16>
    %72 = vector.shape_cast %71 : vector<1x128x64xbf16> to vector<128x64xbf16>
    %cst_64 = arith.constant dense<0.000000e+00> : vector<128x16xf32>
    %73 = tpu.matmul %72, %70, %cst_64 {dimension_numbers = #tpu.dot_dimension_numbers<[1], [0], [0], [1], [0, 0, 1, 1], [], []>} : vector<128x64xbf16>, vector<64x16xbf16>, vector<128x16xf32> -> vector<128x16xf32>
    %74 = arith.addf %66, %73 : vector<128x16xf32>
    %c8 = arith.constant 8 : index
    %c0_65 = arith.constant 0 : index
    %c0_66 = arith.constant 0 : index
    %75 = vector.load %arg4[%c8, %c0_65, %c0_66] : memref<16x64x16xbf16, #tpu.memory_space<vmem>>, vector<1x64x16xbf16>
    %76 = vector.shape_cast %75 : vector<1x64x16xbf16> to vector<64x16xbf16>
    %cst_67 = arith.constant dense<0.000000e+00> : vector<64x16xf32>
    %77 = tpu.matmul %9, %76, %cst_67 {dimension_numbers = #tpu.dot_dimension_numbers<[1], [0], [0], [1], [0, 0, 1, 1], [], []>} : vector<64x64xbf16>, vector<64x16xbf16>, vector<64x16xf32> -> vector<64x16xf32>
    %78 = arith.truncf %77 : vector<64x16xf32> to vector<64x16xbf16>
    %c8_68 = arith.constant 8 : index
    %c0_69 = arith.constant 0 : index
    %c0_70 = arith.constant 0 : index
    %79 = vector.load %arg5[%c8_68, %c0_69, %c0_70] : memref<16x128x64xbf16, #tpu.memory_space<vmem>>, vector<1x128x64xbf16>
    %80 = vector.shape_cast %79 : vector<1x128x64xbf16> to vector<128x64xbf16>
    %cst_71 = arith.constant dense<0.000000e+00> : vector<128x16xf32>
    %81 = tpu.matmul %80, %78, %cst_71 {dimension_numbers = #tpu.dot_dimension_numbers<[1], [0], [0], [1], [0, 0, 1, 1], [], []>} : vector<128x64xbf16>, vector<64x16xbf16>, vector<128x16xf32> -> vector<128x16xf32>
    %82 = arith.addf %74, %81 : vector<128x16xf32>
    %c9 = arith.constant 9 : index
    %c0_72 = arith.constant 0 : index
    %c0_73 = arith.constant 0 : index
    %83 = vector.load %arg4[%c9, %c0_72, %c0_73] : memref<16x64x16xbf16, #tpu.memory_space<vmem>>, vector<1x64x16xbf16>
    %84 = vector.shape_cast %83 : vector<1x64x16xbf16> to vector<64x16xbf16>
    %cst_74 = arith.constant dense<0.000000e+00> : vector<64x16xf32>
    %85 = tpu.matmul %9, %84, %cst_74 {dimension_numbers = #tpu.dot_dimension_numbers<[1], [0], [0], [1], [0, 0, 1, 1], [], []>} : vector<64x64xbf16>, vector<64x16xbf16>, vector<64x16xf32> -> vector<64x16xf32>
    %86 = arith.truncf %85 : vector<64x16xf32> to vector<64x16xbf16>
    %c9_75 = arith.constant 9 : index
    %c0_76 = arith.constant 0 : index
    %c0_77 = arith.constant 0 : index
    %87 = vector.load %arg5[%c9_75, %c0_76, %c0_77] : memref<16x128x64xbf16, #tpu.memory_space<vmem>>, vector<1x128x64xbf16>
    %88 = vector.shape_cast %87 : vector<1x128x64xbf16> to vector<128x64xbf16>
    %cst_78 = arith.constant dense<0.000000e+00> : vector<128x16xf32>
    %89 = tpu.matmul %88, %86, %cst_78 {dimension_numbers = #tpu.dot_dimension_numbers<[1], [0], [0], [1], [0, 0, 1, 1], [], []>} : vector<128x64xbf16>, vector<64x16xbf16>, vector<128x16xf32> -> vector<128x16xf32>
    %90 = arith.addf %82, %89 : vector<128x16xf32>
    %c10 = arith.constant 10 : index
    %c0_79 = arith.constant 0 : index
    %c0_80 = arith.constant 0 : index
    %91 = vector.load %arg4[%c10, %c0_79, %c0_80] : memref<16x64x16xbf16, #tpu.memory_space<vmem>>, vector<1x64x16xbf16>
    %92 = vector.shape_cast %91 : vector<1x64x16xbf16> to vector<64x16xbf16>
    %cst_81 = arith.constant dense<0.000000e+00> : vector<64x16xf32>
    %93 = tpu.matmul %9, %92, %cst_81 {dimension_numbers = #tpu.dot_dimension_numbers<[1], [0], [0], [1], [0, 0, 1, 1], [], []>} : vector<64x64xbf16>, vector<64x16xbf16>, vector<64x16xf32> -> vector<64x16xf32>
    %94 = arith.truncf %93 : vector<64x16xf32> to vector<64x16xbf16>
    %c10_82 = arith.constant 10 : index
    %c0_83 = arith.constant 0 : index
    %c0_84 = arith.constant 0 : index
    %95 = vector.load %arg5[%c10_82, %c0_83, %c0_84] : memref<16x128x64xbf16, #tpu.memory_space<vmem>>, vector<1x128x64xbf16>
    %96 = vector.shape_cast %95 : vector<1x128x64xbf16> to vector<128x64xbf16>
    %cst_85 = arith.constant dense<0.000000e+00> : vector<128x16xf32>
    %97 = tpu.matmul %96, %94, %cst_85 {dimension_numbers = #tpu.dot_dimension_numbers<[1], [0], [0], [1], [0, 0, 1, 1], [], []>} : vector<128x64xbf16>, vector<64x16xbf16>, vector<128x16xf32> -> vector<128x16xf32>
    %98 = arith.addf %90, %97 : vector<128x16xf32>
    %c11 = arith.constant 11 : index
    %c0_86 = arith.constant 0 : index
    %c0_87 = arith.constant 0 : index
    %99 = vector.load %arg4[%c11, %c0_86, %c0_87] : memref<16x64x16xbf16, #tpu.memory_space<vmem>>, vector<1x64x16xbf16>
    %100 = vector.shape_cast %99 : vector<1x64x16xbf16> to vector<64x16xbf16>
    %cst_88 = arith.constant dense<0.000000e+00> : vector<64x16xf32>
    %101 = tpu.matmul %9, %100, %cst_88 {dimension_numbers = #tpu.dot_dimension_numbers<[1], [0], [0], [1], [0, 0, 1, 1], [], []>} : vector<64x64xbf16>, vector<64x16xbf16>, vector<64x16xf32> -> vector<64x16xf32>
    %102 = arith.truncf %101 : vector<64x16xf32> to vector<64x16xbf16>
    %c11_89 = arith.constant 11 : index
    %c0_90 = arith.constant 0 : index
    %c0_91 = arith.constant 0 : index
    %103 = vector.load %arg5[%c11_89, %c0_90, %c0_91] : memref<16x128x64xbf16, #tpu.memory_space<vmem>>, vector<1x128x64xbf16>
    %104 = vector.shape_cast %103 : vector<1x128x64xbf16> to vector<128x64xbf16>
    %cst_92 = arith.constant dense<0.000000e+00> : vector<128x16xf32>
    %105 = tpu.matmul %104, %102, %cst_92 {dimension_numbers = #tpu.dot_dimension_numbers<[1], [0], [0], [1], [0, 0, 1, 1], [], []>} : vector<128x64xbf16>, vector<64x16xbf16>, vector<128x16xf32> -> vector<128x16xf32>
    %106 = arith.addf %98, %105 : vector<128x16xf32>
    %c12 = arith.constant 12 : index
    %c0_93 = arith.constant 0 : index
    %c0_94 = arith.constant 0 : index
    %107 = vector.load %arg4[%c12, %c0_93, %c0_94] : memref<16x64x16xbf16, #tpu.memory_space<vmem>>, vector<1x64x16xbf16>
    %108 = vector.shape_cast %107 : vector<1x64x16xbf16> to vector<64x16xbf16>
    %cst_95 = arith.constant dense<0.000000e+00> : vector<64x16xf32>
    %109 = tpu.matmul %9, %108, %cst_95 {dimension_numbers = #tpu.dot_dimension_numbers<[1], [0], [0], [1], [0, 0, 1, 1], [], []>} : vector<64x64xbf16>, vector<64x16xbf16>, vector<64x16xf32> -> vector<64x16xf32>
    %110 = arith.truncf %109 : vector<64x16xf32> to vector<64x16xbf16>
    %c12_96 = arith.constant 12 : index
    %c0_97 = arith.constant 0 : index
    %c0_98 = arith.constant 0 : index
    %111 = vector.load %arg5[%c12_96, %c0_97, %c0_98] : memref<16x128x64xbf16, #tpu.memory_space<vmem>>, vector<1x128x64xbf16>
    %112 = vector.shape_cast %111 : vector<1x128x64xbf16> to vector<128x64xbf16>
    %cst_99 = arith.constant dense<0.000000e+00> : vector<128x16xf32>
    %113 = tpu.matmul %112, %110, %cst_99 {dimension_numbers = #tpu.dot_dimension_numbers<[1], [0], [0], [1], [0, 0, 1, 1], [], []>} : vector<128x64xbf16>, vector<64x16xbf16>, vector<128x16xf32> -> vector<128x16xf32>
    %114 = arith.addf %106, %113 : vector<128x16xf32>
    %c13 = arith.constant 13 : index
    %c0_100 = arith.constant 0 : index
    %c0_101 = arith.constant 0 : index
    %115 = vector.load %arg4[%c13, %c0_100, %c0_101] : memref<16x64x16xbf16, #tpu.memory_space<vmem>>, vector<1x64x16xbf16>
    %116 = vector.shape_cast %115 : vector<1x64x16xbf16> to vector<64x16xbf16>
    %cst_102 = arith.constant dense<0.000000e+00> : vector<64x16xf32>
    %117 = tpu.matmul %9, %116, %cst_102 {dimension_numbers = #tpu.dot_dimension_numbers<[1], [0], [0], [1], [0, 0, 1, 1], [], []>} : vector<64x64xbf16>, vector<64x16xbf16>, vector<64x16xf32> -> vector<64x16xf32>
    %118 = arith.truncf %117 : vector<64x16xf32> to vector<64x16xbf16>
    %c13_103 = arith.constant 13 : index
    %c0_104 = arith.constant 0 : index
    %c0_105 = arith.constant 0 : index
    %119 = vector.load %arg5[%c13_103, %c0_104, %c0_105] : memref<16x128x64xbf16, #tpu.memory_space<vmem>>, vector<1x128x64xbf16>
    %120 = vector.shape_cast %119 : vector<1x128x64xbf16> to vector<128x64xbf16>
    %cst_106 = arith.constant dense<0.000000e+00> : vector<128x16xf32>
    %121 = tpu.matmul %120, %118, %cst_106 {dimension_numbers = #tpu.dot_dimension_numbers<[1], [0], [0], [1], [0, 0, 1, 1], [], []>} : vector<128x64xbf16>, vector<64x16xbf16>, vector<128x16xf32> -> vector<128x16xf32>
    %122 = arith.addf %114, %121 : vector<128x16xf32>
    %c14 = arith.constant 14 : index
    %c0_107 = arith.constant 0 : index
    %c0_108 = arith.constant 0 : index
    %123 = vector.load %arg4[%c14, %c0_107, %c0_108] : memref<16x64x16xbf16, #tpu.memory_space<vmem>>, vector<1x64x16xbf16>
    %124 = vector.shape_cast %123 : vector<1x64x16xbf16> to vector<64x16xbf16>
    %cst_109 = arith.constant dense<0.000000e+00> : vector<64x16xf32>
    %125 = tpu.matmul %9, %124, %cst_109 {dimension_numbers = #tpu.dot_dimension_numbers<[1], [0], [0], [1], [0, 0, 1, 1], [], []>} : vector<64x64xbf16>, vector<64x16xbf16>, vector<64x16xf32> -> vector<64x16xf32>
    %126 = arith.truncf %125 : vector<64x16xf32> to vector<64x16xbf16>
    %c14_110 = arith.constant 14 : index
    %c0_111 = arith.constant 0 : index
    %c0_112 = arith.constant 0 : index
    %127 = vector.load %arg5[%c14_110, %c0_111, %c0_112] : memref<16x128x64xbf16, #tpu.memory_space<vmem>>, vector<1x128x64xbf16>
    %128 = vector.shape_cast %127 : vector<1x128x64xbf16> to vector<128x64xbf16>
    %cst_113 = arith.constant dense<0.000000e+00> : vector<128x16xf32>
    %129 = tpu.matmul %128, %126, %cst_113 {dimension_numbers = #tpu.dot_dimension_numbers<[1], [0], [0], [1], [0, 0, 1, 1], [], []>} : vector<128x64xbf16>, vector<64x16xbf16>, vector<128x16xf32> -> vector<128x16xf32>
    %130 = arith.addf %122, %129 : vector<128x16xf32>
    %c15 = arith.constant 15 : index
    %c0_114 = arith.constant 0 : index
    %c0_115 = arith.constant 0 : index
    %131 = vector.load %arg4[%c15, %c0_114, %c0_115] : memref<16x64x16xbf16, #tpu.memory_space<vmem>>, vector<1x64x16xbf16>
    %132 = vector.shape_cast %131 : vector<1x64x16xbf16> to vector<64x16xbf16>
    %cst_116 = arith.constant dense<0.000000e+00> : vector<64x16xf32>
    %133 = tpu.matmul %9, %132, %cst_116 {dimension_numbers = #tpu.dot_dimension_numbers<[1], [0], [0], [1], [0, 0, 1, 1], [], []>} : vector<64x64xbf16>, vector<64x16xbf16>, vector<64x16xf32> -> vector<64x16xf32>
    %134 = arith.truncf %133 : vector<64x16xf32> to vector<64x16xbf16>
    %c15_117 = arith.constant 15 : index
    %c0_118 = arith.constant 0 : index
    %c0_119 = arith.constant 0 : index
    %135 = vector.load %arg5[%c15_117, %c0_118, %c0_119] : memref<16x128x64xbf16, #tpu.memory_space<vmem>>, vector<1x128x64xbf16>
    %136 = vector.shape_cast %135 : vector<1x128x64xbf16> to vector<128x64xbf16>
    %cst_120 = arith.constant dense<0.000000e+00> : vector<128x16xf32>
    %137 = tpu.matmul %136, %134, %cst_120 {dimension_numbers = #tpu.dot_dimension_numbers<[1], [0], [0], [1], [0, 0, 1, 1], [], []>} : vector<128x64xbf16>, vector<64x16xbf16>, vector<128x16xf32> -> vector<128x16xf32>
    %138 = arith.addf %130, %137 : vector<128x16xf32>
    %c0_121 = arith.constant 0 : index
    %c0_122 = arith.constant 0 : index
    %139 = vector.load %arg6[%c0_121, %c0_122] : memref<128x1xf32, #tpu.memory_space<vmem>>, vector<128x1xf32>
    %140 = vector.broadcast %139 : vector<128x1xf32> to vector<128x16xf32>
    %141 = arith.addf %138, %140 : vector<128x16xf32>
    %cst_123 = arith.constant 0.000000e+00 : f32
    %142 = vector.broadcast %cst_123 : f32 to vector<128x16xf32>
    %143 = arith.maximumf %141, %142 : vector<128x16xf32>
    %144 = arith.truncf %143 : vector<128x16xf32> to vector<128x16xbf16>
    %cst_124 = arith.constant 0.000000e+00 : f32
    %145 = vector.broadcast %cst_124 : f32 to vector<64x64xf32>
    %c0_125 = arith.constant 0 : index
    %c0_126 = arith.constant 0 : index
    %c0_127 = arith.constant 0 : index
    %146 = vector.load %arg7[%c0_125, %c0_126, %c0_127] : memref<16x16x64xbf16, #tpu.memory_space<vmem>>, vector<1x16x64xbf16>
    %147 = vector.shape_cast %146 : vector<1x16x64xbf16> to vector<16x64xbf16>
    %cst_128 = arith.constant dense<0.000000e+00> : vector<128x64xf32>
    %148 = tpu.matmul %144, %147, %cst_128 {dimension_numbers = #tpu.dot_dimension_numbers<[1], [0], [0], [1], [0, 0, 1, 1], [], []>} : vector<128x16xbf16>, vector<16x64xbf16>, vector<128x64xf32> -> vector<128x64xf32>
    %149 = arith.truncf %148 : vector<128x64xf32> to vector<128x64xbf16>
    %c0_129 = arith.constant 0 : index
    %c0_130 = arith.constant 0 : index
    %c0_131 = arith.constant 0 : index
    %150 = vector.load %arg8[%c0_129, %c0_130, %c0_131] : memref<16x64x128xbf16, #tpu.memory_space<vmem>>, vector<1x64x128xbf16>
    %151 = vector.shape_cast %150 : vector<1x64x128xbf16> to vector<64x128xbf16>
    %cst_132 = arith.constant dense<0.000000e+00> : vector<64x64xf32>
    %152 = tpu.matmul %151, %149, %cst_132 {dimension_numbers = #tpu.dot_dimension_numbers<[1], [0], [0], [1], [0, 0, 1, 1], [], []>} : vector<64x128xbf16>, vector<128x64xbf16>, vector<64x64xf32> -> vector<64x64xf32>
    %153 = arith.addf %145, %152 : vector<64x64xf32>
    %c1_133 = arith.constant 1 : index
    %c0_134 = arith.constant 0 : index
    %c0_135 = arith.constant 0 : index
    %154 = vector.load %arg7[%c1_133, %c0_134, %c0_135] : memref<16x16x64xbf16, #tpu.memory_space<vmem>>, vector<1x16x64xbf16>
    %155 = vector.shape_cast %154 : vector<1x16x64xbf16> to vector<16x64xbf16>
    %cst_136 = arith.constant dense<0.000000e+00> : vector<128x64xf32>
    %156 = tpu.matmul %144, %155, %cst_136 {dimension_numbers = #tpu.dot_dimension_numbers<[1], [0], [0], [1], [0, 0, 1, 1], [], []>} : vector<128x16xbf16>, vector<16x64xbf16>, vector<128x64xf32> -> vector<128x64xf32>
    %157 = arith.truncf %156 : vector<128x64xf32> to vector<128x64xbf16>
    %c1_137 = arith.constant 1 : index
    %c0_138 = arith.constant 0 : index
    %c0_139 = arith.constant 0 : index
    %158 = vector.load %arg8[%c1_137, %c0_138, %c0_139] : memref<16x64x128xbf16, #tpu.memory_space<vmem>>, vector<1x64x128xbf16>
    %159 = vector.shape_cast %158 : vector<1x64x128xbf16> to vector<64x128xbf16>
    %cst_140 = arith.constant dense<0.000000e+00> : vector<64x64xf32>
    %160 = tpu.matmul %159, %157, %cst_140 {dimension_numbers = #tpu.dot_dimension_numbers<[1], [0], [0], [1], [0, 0, 1, 1], [], []>} : vector<64x128xbf16>, vector<128x64xbf16>, vector<64x64xf32> -> vector<64x64xf32>
    %161 = arith.addf %153, %160 : vector<64x64xf32>
    %c2_141 = arith.constant 2 : index
    %c0_142 = arith.constant 0 : index
    %c0_143 = arith.constant 0 : index
    %162 = vector.load %arg7[%c2_141, %c0_142, %c0_143] : memref<16x16x64xbf16, #tpu.memory_space<vmem>>, vector<1x16x64xbf16>
    %163 = vector.shape_cast %162 : vector<1x16x64xbf16> to vector<16x64xbf16>
    %cst_144 = arith.constant dense<0.000000e+00> : vector<128x64xf32>
    %164 = tpu.matmul %144, %163, %cst_144 {dimension_numbers = #tpu.dot_dimension_numbers<[1], [0], [0], [1], [0, 0, 1, 1], [], []>} : vector<128x16xbf16>, vector<16x64xbf16>, vector<128x64xf32> -> vector<128x64xf32>
    %165 = arith.truncf %164 : vector<128x64xf32> to vector<128x64xbf16>
    %c2_145 = arith.constant 2 : index
    %c0_146 = arith.constant 0 : index
    %c0_147 = arith.constant 0 : index
    %166 = vector.load %arg8[%c2_145, %c0_146, %c0_147] : memref<16x64x128xbf16, #tpu.memory_space<vmem>>, vector<1x64x128xbf16>
    %167 = vector.shape_cast %166 : vector<1x64x128xbf16> to vector<64x128xbf16>
    %cst_148 = arith.constant dense<0.000000e+00> : vector<64x64xf32>
    %168 = tpu.matmul %167, %165, %cst_148 {dimension_numbers = #tpu.dot_dimension_numbers<[1], [0], [0], [1], [0, 0, 1, 1], [], []>} : vector<64x128xbf16>, vector<128x64xbf16>, vector<64x64xf32> -> vector<64x64xf32>
    %169 = arith.addf %161, %168 : vector<64x64xf32>
    %c3_149 = arith.constant 3 : index
    %c0_150 = arith.constant 0 : index
    %c0_151 = arith.constant 0 : index
    %170 = vector.load %arg7[%c3_149, %c0_150, %c0_151] : memref<16x16x64xbf16, #tpu.memory_space<vmem>>, vector<1x16x64xbf16>
    %171 = vector.shape_cast %170 : vector<1x16x64xbf16> to vector<16x64xbf16>
    %cst_152 = arith.constant dense<0.000000e+00> : vector<128x64xf32>
    %172 = tpu.matmul %144, %171, %cst_152 {dimension_numbers = #tpu.dot_dimension_numbers<[1], [0], [0], [1], [0, 0, 1, 1], [], []>} : vector<128x16xbf16>, vector<16x64xbf16>, vector<128x64xf32> -> vector<128x64xf32>
    %173 = arith.truncf %172 : vector<128x64xf32> to vector<128x64xbf16>
    %c3_153 = arith.constant 3 : index
    %c0_154 = arith.constant 0 : index
    %c0_155 = arith.constant 0 : index
    %174 = vector.load %arg8[%c3_153, %c0_154, %c0_155] : memref<16x64x128xbf16, #tpu.memory_space<vmem>>, vector<1x64x128xbf16>
    %175 = vector.shape_cast %174 : vector<1x64x128xbf16> to vector<64x128xbf16>
    %cst_156 = arith.constant dense<0.000000e+00> : vector<64x64xf32>
    %176 = tpu.matmul %175, %173, %cst_156 {dimension_numbers = #tpu.dot_dimension_numbers<[1], [0], [0], [1], [0, 0, 1, 1], [], []>} : vector<64x128xbf16>, vector<128x64xbf16>, vector<64x64xf32> -> vector<64x64xf32>
    %177 = arith.addf %169, %176 : vector<64x64xf32>
    %c4_157 = arith.constant 4 : index
    %c0_158 = arith.constant 0 : index
    %c0_159 = arith.constant 0 : index
    %178 = vector.load %arg7[%c4_157, %c0_158, %c0_159] : memref<16x16x64xbf16, #tpu.memory_space<vmem>>, vector<1x16x64xbf16>
    %179 = vector.shape_cast %178 : vector<1x16x64xbf16> to vector<16x64xbf16>
    %cst_160 = arith.constant dense<0.000000e+00> : vector<128x64xf32>
    %180 = tpu.matmul %144, %179, %cst_160 {dimension_numbers = #tpu.dot_dimension_numbers<[1], [0], [0], [1], [0, 0, 1, 1], [], []>} : vector<128x16xbf16>, vector<16x64xbf16>, vector<128x64xf32> -> vector<128x64xf32>
    %181 = arith.truncf %180 : vector<128x64xf32> to vector<128x64xbf16>
    %c4_161 = arith.constant 4 : index
    %c0_162 = arith.constant 0 : index
    %c0_163 = arith.constant 0 : index
    %182 = vector.load %arg8[%c4_161, %c0_162, %c0_163] : memref<16x64x128xbf16, #tpu.memory_space<vmem>>, vector<1x64x128xbf16>
    %183 = vector.shape_cast %182 : vector<1x64x128xbf16> to vector<64x128xbf16>
    %cst_164 = arith.constant dense<0.000000e+00> : vector<64x64xf32>
    %184 = tpu.matmul %183, %181, %cst_164 {dimension_numbers = #tpu.dot_dimension_numbers<[1], [0], [0], [1], [0, 0, 1, 1], [], []>} : vector<64x128xbf16>, vector<128x64xbf16>, vector<64x64xf32> -> vector<64x64xf32>
    %185 = arith.addf %177, %184 : vector<64x64xf32>
    %c5_165 = arith.constant 5 : index
    %c0_166 = arith.constant 0 : index
    %c0_167 = arith.constant 0 : index
    %186 = vector.load %arg7[%c5_165, %c0_166, %c0_167] : memref<16x16x64xbf16, #tpu.memory_space<vmem>>, vector<1x16x64xbf16>
    %187 = vector.shape_cast %186 : vector<1x16x64xbf16> to vector<16x64xbf16>
    %cst_168 = arith.constant dense<0.000000e+00> : vector<128x64xf32>
    %188 = tpu.matmul %144, %187, %cst_168 {dimension_numbers = #tpu.dot_dimension_numbers<[1], [0], [0], [1], [0, 0, 1, 1], [], []>} : vector<128x16xbf16>, vector<16x64xbf16>, vector<128x64xf32> -> vector<128x64xf32>
    %189 = arith.truncf %188 : vector<128x64xf32> to vector<128x64xbf16>
    %c5_169 = arith.constant 5 : index
    %c0_170 = arith.constant 0 : index
    %c0_171 = arith.constant 0 : index
    %190 = vector.load %arg8[%c5_169, %c0_170, %c0_171] : memref<16x64x128xbf16, #tpu.memory_space<vmem>>, vector<1x64x128xbf16>
    %191 = vector.shape_cast %190 : vector<1x64x128xbf16> to vector<64x128xbf16>
    %cst_172 = arith.constant dense<0.000000e+00> : vector<64x64xf32>
    %192 = tpu.matmul %191, %189, %cst_172 {dimension_numbers = #tpu.dot_dimension_numbers<[1], [0], [0], [1], [0, 0, 1, 1], [], []>} : vector<64x128xbf16>, vector<128x64xbf16>, vector<64x64xf32> -> vector<64x64xf32>
    %193 = arith.addf %185, %192 : vector<64x64xf32>
    %c6_173 = arith.constant 6 : index
    %c0_174 = arith.constant 0 : index
    %c0_175 = arith.constant 0 : index
    %194 = vector.load %arg7[%c6_173, %c0_174, %c0_175] : memref<16x16x64xbf16, #tpu.memory_space<vmem>>, vector<1x16x64xbf16>
    %195 = vector.shape_cast %194 : vector<1x16x64xbf16> to vector<16x64xbf16>
    %cst_176 = arith.constant dense<0.000000e+00> : vector<128x64xf32>
    %196 = tpu.matmul %144, %195, %cst_176 {dimension_numbers = #tpu.dot_dimension_numbers<[1], [0], [0], [1], [0, 0, 1, 1], [], []>} : vector<128x16xbf16>, vector<16x64xbf16>, vector<128x64xf32> -> vector<128x64xf32>
    %197 = arith.truncf %196 : vector<128x64xf32> to vector<128x64xbf16>
    %c6_177 = arith.constant 6 : index
    %c0_178 = arith.constant 0 : index
    %c0_179 = arith.constant 0 : index
    %198 = vector.load %arg8[%c6_177, %c0_178, %c0_179] : memref<16x64x128xbf16, #tpu.memory_space<vmem>>, vector<1x64x128xbf16>
    %199 = vector.shape_cast %198 : vector<1x64x128xbf16> to vector<64x128xbf16>
    %cst_180 = arith.constant dense<0.000000e+00> : vector<64x64xf32>
    %200 = tpu.matmul %199, %197, %cst_180 {dimension_numbers = #tpu.dot_dimension_numbers<[1], [0], [0], [1], [0, 0, 1, 1], [], []>} : vector<64x128xbf16>, vector<128x64xbf16>, vector<64x64xf32> -> vector<64x64xf32>
    %201 = arith.addf %193, %200 : vector<64x64xf32>
    %c7_181 = arith.constant 7 : index
    %c0_182 = arith.constant 0 : index
    %c0_183 = arith.constant 0 : index
    %202 = vector.load %arg7[%c7_181, %c0_182, %c0_183] : memref<16x16x64xbf16, #tpu.memory_space<vmem>>, vector<1x16x64xbf16>
    %203 = vector.shape_cast %202 : vector<1x16x64xbf16> to vector<16x64xbf16>
    %cst_184 = arith.constant dense<0.000000e+00> : vector<128x64xf32>
    %204 = tpu.matmul %144, %203, %cst_184 {dimension_numbers = #tpu.dot_dimension_numbers<[1], [0], [0], [1], [0, 0, 1, 1], [], []>} : vector<128x16xbf16>, vector<16x64xbf16>, vector<128x64xf32> -> vector<128x64xf32>
    %205 = arith.truncf %204 : vector<128x64xf32> to vector<128x64xbf16>
    %c7_185 = arith.constant 7 : index
    %c0_186 = arith.constant 0 : index
    %c0_187 = arith.constant 0 : index
    %206 = vector.load %arg8[%c7_185, %c0_186, %c0_187] : memref<16x64x128xbf16, #tpu.memory_space<vmem>>, vector<1x64x128xbf16>
    %207 = vector.shape_cast %206 : vector<1x64x128xbf16> to vector<64x128xbf16>
    %cst_188 = arith.constant dense<0.000000e+00> : vector<64x64xf32>
    %208 = tpu.matmul %207, %205, %cst_188 {dimension_numbers = #tpu.dot_dimension_numbers<[1], [0], [0], [1], [0, 0, 1, 1], [], []>} : vector<64x128xbf16>, vector<128x64xbf16>, vector<64x64xf32> -> vector<64x64xf32>
    %209 = arith.addf %201, %208 : vector<64x64xf32>
    %c8_189 = arith.constant 8 : index
    %c0_190 = arith.constant 0 : index
    %c0_191 = arith.constant 0 : index
    %210 = vector.load %arg7[%c8_189, %c0_190, %c0_191] : memref<16x16x64xbf16, #tpu.memory_space<vmem>>, vector<1x16x64xbf16>
    %211 = vector.shape_cast %210 : vector<1x16x64xbf16> to vector<16x64xbf16>
    %cst_192 = arith.constant dense<0.000000e+00> : vector<128x64xf32>
    %212 = tpu.matmul %144, %211, %cst_192 {dimension_numbers = #tpu.dot_dimension_numbers<[1], [0], [0], [1], [0, 0, 1, 1], [], []>} : vector<128x16xbf16>, vector<16x64xbf16>, vector<128x64xf32> -> vector<128x64xf32>
    %213 = arith.truncf %212 : vector<128x64xf32> to vector<128x64xbf16>
    %c8_193 = arith.constant 8 : index
    %c0_194 = arith.constant 0 : index
    %c0_195 = arith.constant 0 : index
    %214 = vector.load %arg8[%c8_193, %c0_194, %c0_195] : memref<16x64x128xbf16, #tpu.memory_space<vmem>>, vector<1x64x128xbf16>
    %215 = vector.shape_cast %214 : vector<1x64x128xbf16> to vector<64x128xbf16>
    %cst_196 = arith.constant dense<0.000000e+00> : vector<64x64xf32>
    %216 = tpu.matmul %215, %213, %cst_196 {dimension_numbers = #tpu.dot_dimension_numbers<[1], [0], [0], [1], [0, 0, 1, 1], [], []>} : vector<64x128xbf16>, vector<128x64xbf16>, vector<64x64xf32> -> vector<64x64xf32>
    %217 = arith.addf %209, %216 : vector<64x64xf32>
    %c9_197 = arith.constant 9 : index
    %c0_198 = arith.constant 0 : index
    %c0_199 = arith.constant 0 : index
    %218 = vector.load %arg7[%c9_197, %c0_198, %c0_199] : memref<16x16x64xbf16, #tpu.memory_space<vmem>>, vector<1x16x64xbf16>
    %219 = vector.shape_cast %218 : vector<1x16x64xbf16> to vector<16x64xbf16>
    %cst_200 = arith.constant dense<0.000000e+00> : vector<128x64xf32>
    %220 = tpu.matmul %144, %219, %cst_200 {dimension_numbers = #tpu.dot_dimension_numbers<[1], [0], [0], [1], [0, 0, 1, 1], [], []>} : vector<128x16xbf16>, vector<16x64xbf16>, vector<128x64xf32> -> vector<128x64xf32>
    %221 = arith.truncf %220 : vector<128x64xf32> to vector<128x64xbf16>
    %c9_201 = arith.constant 9 : index
    %c0_202 = arith.constant 0 : index
    %c0_203 = arith.constant 0 : index
    %222 = vector.load %arg8[%c9_201, %c0_202, %c0_203] : memref<16x64x128xbf16, #tpu.memory_space<vmem>>, vector<1x64x128xbf16>
    %223 = vector.shape_cast %222 : vector<1x64x128xbf16> to vector<64x128xbf16>
    %cst_204 = arith.constant dense<0.000000e+00> : vector<64x64xf32>
    %224 = tpu.matmul %223, %221, %cst_204 {dimension_numbers = #tpu.dot_dimension_numbers<[1], [0], [0], [1], [0, 0, 1, 1], [], []>} : vector<64x128xbf16>, vector<128x64xbf16>, vector<64x64xf32> -> vector<64x64xf32>
    %225 = arith.addf %217, %224 : vector<64x64xf32>
    %c10_205 = arith.constant 10 : index
    %c0_206 = arith.constant 0 : index
    %c0_207 = arith.constant 0 : index
    %226 = vector.load %arg7[%c10_205, %c0_206, %c0_207] : memref<16x16x64xbf16, #tpu.memory_space<vmem>>, vector<1x16x64xbf16>
    %227 = vector.shape_cast %226 : vector<1x16x64xbf16> to vector<16x64xbf16>
    %cst_208 = arith.constant dense<0.000000e+00> : vector<128x64xf32>
    %228 = tpu.matmul %144, %227, %cst_208 {dimension_numbers = #tpu.dot_dimension_numbers<[1], [0], [0], [1], [0, 0, 1, 1], [], []>} : vector<128x16xbf16>, vector<16x64xbf16>, vector<128x64xf32> -> vector<128x64xf32>
    %229 = arith.truncf %228 : vector<128x64xf32> to vector<128x64xbf16>
    %c10_209 = arith.constant 10 : index
    %c0_210 = arith.constant 0 : index
    %c0_211 = arith.constant 0 : index
    %230 = vector.load %arg8[%c10_209, %c0_210, %c0_211] : memref<16x64x128xbf16, #tpu.memory_space<vmem>>, vector<1x64x128xbf16>
    %231 = vector.shape_cast %230 : vector<1x64x128xbf16> to vector<64x128xbf16>
    %cst_212 = arith.constant dense<0.000000e+00> : vector<64x64xf32>
    %232 = tpu.matmul %231, %229, %cst_212 {dimension_numbers = #tpu.dot_dimension_numbers<[1], [0], [0], [1], [0, 0, 1, 1], [], []>} : vector<64x128xbf16>, vector<128x64xbf16>, vector<64x64xf32> -> vector<64x64xf32>
    %233 = arith.addf %225, %232 : vector<64x64xf32>
    %c11_213 = arith.constant 11 : index
    %c0_214 = arith.constant 0 : index
    %c0_215 = arith.constant 0 : index
    %234 = vector.load %arg7[%c11_213, %c0_214, %c0_215] : memref<16x16x64xbf16, #tpu.memory_space<vmem>>, vector<1x16x64xbf16>
    %235 = vector.shape_cast %234 : vector<1x16x64xbf16> to vector<16x64xbf16>
    %cst_216 = arith.constant dense<0.000000e+00> : vector<128x64xf32>
    %236 = tpu.matmul %144, %235, %cst_216 {dimension_numbers = #tpu.dot_dimension_numbers<[1], [0], [0], [1], [0, 0, 1, 1], [], []>} : vector<128x16xbf16>, vector<16x64xbf16>, vector<128x64xf32> -> vector<128x64xf32>
    %237 = arith.truncf %236 : vector<128x64xf32> to vector<128x64xbf16>
    %c11_217 = arith.constant 11 : index
    %c0_218 = arith.constant 0 : index
    %c0_219 = arith.constant 0 : index
    %238 = vector.load %arg8[%c11_217, %c0_218, %c0_219] : memref<16x64x128xbf16, #tpu.memory_space<vmem>>, vector<1x64x128xbf16>
    %239 = vector.shape_cast %238 : vector<1x64x128xbf16> to vector<64x128xbf16>
    %cst_220 = arith.constant dense<0.000000e+00> : vector<64x64xf32>
    %240 = tpu.matmul %239, %237, %cst_220 {dimension_numbers = #tpu.dot_dimension_numbers<[1], [0], [0], [1], [0, 0, 1, 1], [], []>} : vector<64x128xbf16>, vector<128x64xbf16>, vector<64x64xf32> -> vector<64x64xf32>
    %241 = arith.addf %233, %240 : vector<64x64xf32>
    %c12_221 = arith.constant 12 : index
    %c0_222 = arith.constant 0 : index
    %c0_223 = arith.constant 0 : index
    %242 = vector.load %arg7[%c12_221, %c0_222, %c0_223] : memref<16x16x64xbf16, #tpu.memory_space<vmem>>, vector<1x16x64xbf16>
    %243 = vector.shape_cast %242 : vector<1x16x64xbf16> to vector<16x64xbf16>
    %cst_224 = arith.constant dense<0.000000e+00> : vector<128x64xf32>
    %244 = tpu.matmul %144, %243, %cst_224 {dimension_numbers = #tpu.dot_dimension_numbers<[1], [0], [0], [1], [0, 0, 1, 1], [], []>} : vector<128x16xbf16>, vector<16x64xbf16>, vector<128x64xf32> -> vector<128x64xf32>
    %245 = arith.truncf %244 : vector<128x64xf32> to vector<128x64xbf16>
    %c12_225 = arith.constant 12 : index
    %c0_226 = arith.constant 0 : index
    %c0_227 = arith.constant 0 : index
    %246 = vector.load %arg8[%c12_225, %c0_226, %c0_227] : memref<16x64x128xbf16, #tpu.memory_space<vmem>>, vector<1x64x128xbf16>
    %247 = vector.shape_cast %246 : vector<1x64x128xbf16> to vector<64x128xbf16>
    %cst_228 = arith.constant dense<0.000000e+00> : vector<64x64xf32>
    %248 = tpu.matmul %247, %245, %cst_228 {dimension_numbers = #tpu.dot_dimension_numbers<[1], [0], [0], [1], [0, 0, 1, 1], [], []>} : vector<64x128xbf16>, vector<128x64xbf16>, vector<64x64xf32> -> vector<64x64xf32>
    %249 = arith.addf %241, %248 : vector<64x64xf32>
    %c13_229 = arith.constant 13 : index
    %c0_230 = arith.constant 0 : index
    %c0_231 = arith.constant 0 : index
    %250 = vector.load %arg7[%c13_229, %c0_230, %c0_231] : memref<16x16x64xbf16, #tpu.memory_space<vmem>>, vector<1x16x64xbf16>
    %251 = vector.shape_cast %250 : vector<1x16x64xbf16> to vector<16x64xbf16>
    %cst_232 = arith.constant dense<0.000000e+00> : vector<128x64xf32>
    %252 = tpu.matmul %144, %251, %cst_232 {dimension_numbers = #tpu.dot_dimension_numbers<[1], [0], [0], [1], [0, 0, 1, 1], [], []>} : vector<128x16xbf16>, vector<16x64xbf16>, vector<128x64xf32> -> vector<128x64xf32>
    %253 = arith.truncf %252 : vector<128x64xf32> to vector<128x64xbf16>
    %c13_233 = arith.constant 13 : index
    %c0_234 = arith.constant 0 : index
    %c0_235 = arith.constant 0 : index
    %254 = vector.load %arg8[%c13_233, %c0_234, %c0_235] : memref<16x64x128xbf16, #tpu.memory_space<vmem>>, vector<1x64x128xbf16>
    %255 = vector.shape_cast %254 : vector<1x64x128xbf16> to vector<64x128xbf16>
    %cst_236 = arith.constant dense<0.000000e+00> : vector<64x64xf32>
    %256 = tpu.matmul %255, %253, %cst_236 {dimension_numbers = #tpu.dot_dimension_numbers<[1], [0], [0], [1], [0, 0, 1, 1], [], []>} : vector<64x128xbf16>, vector<128x64xbf16>, vector<64x64xf32> -> vector<64x64xf32>
    %257 = arith.addf %249, %256 : vector<64x64xf32>
    %c14_237 = arith.constant 14 : index
    %c0_238 = arith.constant 0 : index
    %c0_239 = arith.constant 0 : index
    %258 = vector.load %arg7[%c14_237, %c0_238, %c0_239] : memref<16x16x64xbf16, #tpu.memory_space<vmem>>, vector<1x16x64xbf16>
    %259 = vector.shape_cast %258 : vector<1x16x64xbf16> to vector<16x64xbf16>
    %cst_240 = arith.constant dense<0.000000e+00> : vector<128x64xf32>
    %260 = tpu.matmul %144, %259, %cst_240 {dimension_numbers = #tpu.dot_dimension_numbers<[1], [0], [0], [1], [0, 0, 1, 1], [], []>} : vector<128x16xbf16>, vector<16x64xbf16>, vector<128x64xf32> -> vector<128x64xf32>
    %261 = arith.truncf %260 : vector<128x64xf32> to vector<128x64xbf16>
    %c14_241 = arith.constant 14 : index
    %c0_242 = arith.constant 0 : index
    %c0_243 = arith.constant 0 : index
    %262 = vector.load %arg8[%c14_241, %c0_242, %c0_243] : memref<16x64x128xbf16, #tpu.memory_space<vmem>>, vector<1x64x128xbf16>
    %263 = vector.shape_cast %262 : vector<1x64x128xbf16> to vector<64x128xbf16>
    %cst_244 = arith.constant dense<0.000000e+00> : vector<64x64xf32>
    %264 = tpu.matmul %263, %261, %cst_244 {dimension_numbers = #tpu.dot_dimension_numbers<[1], [0], [0], [1], [0, 0, 1, 1], [], []>} : vector<64x128xbf16>, vector<128x64xbf16>, vector<64x64xf32> -> vector<64x64xf32>
    %265 = arith.addf %257, %264 : vector<64x64xf32>
    %c15_245 = arith.constant 15 : index
    %c0_246 = arith.constant 0 : index
    %c0_247 = arith.constant 0 : index
    %266 = vector.load %arg7[%c15_245, %c0_246, %c0_247] : memref<16x16x64xbf16, #tpu.memory_space<vmem>>, vector<1x16x64xbf16>
    %267 = vector.shape_cast %266 : vector<1x16x64xbf16> to vector<16x64xbf16>
    %cst_248 = arith.constant dense<0.000000e+00> : vector<128x64xf32>
    %268 = tpu.matmul %144, %267, %cst_248 {dimension_numbers = #tpu.dot_dimension_numbers<[1], [0], [0], [1], [0, 0, 1, 1], [], []>} : vector<128x16xbf16>, vector<16x64xbf16>, vector<128x64xf32> -> vector<128x64xf32>
    %269 = arith.truncf %268 : vector<128x64xf32> to vector<128x64xbf16>
    %c15_249 = arith.constant 15 : index
    %c0_250 = arith.constant 0 : index
    %c0_251 = arith.constant 0 : index
    %270 = vector.load %arg8[%c15_249, %c0_250, %c0_251] : memref<16x64x128xbf16, #tpu.memory_space<vmem>>, vector<1x64x128xbf16>
    %271 = vector.shape_cast %270 : vector<1x64x128xbf16> to vector<64x128xbf16>
    %cst_252 = arith.constant dense<0.000000e+00> : vector<64x64xf32>
    %272 = tpu.matmul %271, %269, %cst_252 {dimension_numbers = #tpu.dot_dimension_numbers<[1], [0], [0], [1], [0, 0, 1, 1], [], []>} : vector<64x128xbf16>, vector<128x64xbf16>, vector<64x64xf32> -> vector<64x64xf32>
    %273 = arith.addf %265, %272 : vector<64x64xf32>
    %c0_253 = arith.constant 0 : index
    %c0_254 = arith.constant 0 : index
    %274 = vector.load %arg9[%c0_253, %c0_254] : memref<64x1xf32, #tpu.memory_space<vmem>>, vector<64x1xf32>
    %275 = vector.broadcast %274 : vector<64x1xf32> to vector<64x64xf32>
    %276 = arith.addf %273, %275 : vector<64x64xf32>
    %cst_255 = arith.constant 0.000000e+00 : f32
    %277 = vector.broadcast %cst_255 : f32 to vector<64x64xf32>
    %278 = arith.maximumf %276, %277 : vector<64x64xf32>
    %279 = arith.truncf %278 : vector<64x64xf32> to vector<64x64xbf16>
    %cst_256 = arith.constant 0.000000e+00 : f32
    %280 = vector.broadcast %cst_256 : f32 to vector<8x256xf32>
    %c0_257 = arith.constant 0 : index
    %c0_258 = arith.constant 0 : index
    %c0_259 = arith.constant 0 : index
    %281 = vector.load %arg10[%c0_257, %c0_258, %c0_259] : memref<16x64x256xbf16, #tpu.memory_space<vmem>>, vector<1x64x256xbf16>
    %282 = vector.shape_cast %281 : vector<1x64x256xbf16> to vector<64x256xbf16>
    %cst_260 = arith.constant dense<0.000000e+00> : vector<64x256xf32>
    %283 = tpu.matmul %279, %282, %cst_260 {dimension_numbers = #tpu.dot_dimension_numbers<[1], [0], [0], [1], [0, 0, 1, 1], [], []>} : vector<64x64xbf16>, vector<64x256xbf16>, vector<64x256xf32> -> vector<64x256xf32>
    %284 = arith.truncf %283 : vector<64x256xf32> to vector<64x256xbf16>
    %c0_261 = arith.constant 0 : index
    %c0_262 = arith.constant 0 : index
    %c0_263 = arith.constant 0 : index
    %285 = vector.load %arg11[%c0_261, %c0_262, %c0_263] : memref<16x8x64xbf16, #tpu.memory_space<vmem>>, vector<1x8x64xbf16>
    %286 = vector.shape_cast %285 : vector<1x8x64xbf16> to vector<8x64xbf16>
    %cst_264 = arith.constant dense<0.000000e+00> : vector<8x256xf32>
    %287 = tpu.matmul %286, %284, %cst_264 {dimension_numbers = #tpu.dot_dimension_numbers<[1], [0], [0], [1], [0, 0, 1, 1], [], []>} : vector<8x64xbf16>, vector<64x256xbf16>, vector<8x256xf32> -> vector<8x256xf32>
    %288 = arith.addf %280, %287 : vector<8x256xf32>
    %c1_265 = arith.constant 1 : index
    %c0_266 = arith.constant 0 : index
    %c0_267 = arith.constant 0 : index
    %289 = vector.load %arg10[%c1_265, %c0_266, %c0_267] : memref<16x64x256xbf16, #tpu.memory_space<vmem>>, vector<1x64x256xbf16>
    %290 = vector.shape_cast %289 : vector<1x64x256xbf16> to vector<64x256xbf16>
    %cst_268 = arith.constant dense<0.000000e+00> : vector<64x256xf32>
    %291 = tpu.matmul %279, %290, %cst_268 {dimension_numbers = #tpu.dot_dimension_numbers<[1], [0], [0], [1], [0, 0, 1, 1], [], []>} : vector<64x64xbf16>, vector<64x256xbf16>, vector<64x256xf32> -> vector<64x256xf32>
    %292 = arith.truncf %291 : vector<64x256xf32> to vector<64x256xbf16>
    %c1_269 = arith.constant 1 : index
    %c0_270 = arith.constant 0 : index
    %c0_271 = arith.constant 0 : index
    %293 = vector.load %arg11[%c1_269, %c0_270, %c0_271] : memref<16x8x64xbf16, #tpu.memory_space<vmem>>, vector<1x8x64xbf16>
    %294 = vector.shape_cast %293 : vector<1x8x64xbf16> to vector<8x64xbf16>
    %cst_272 = arith.constant dense<0.000000e+00> : vector<8x256xf32>
    %295 = tpu.matmul %294, %292, %cst_272 {dimension_numbers = #tpu.dot_dimension_numbers<[1], [0], [0], [1], [0, 0, 1, 1], [], []>} : vector<8x64xbf16>, vector<64x256xbf16>, vector<8x256xf32> -> vector<8x256xf32>
    %296 = arith.addf %288, %295 : vector<8x256xf32>
    %c2_273 = arith.constant 2 : index
    %c0_274 = arith.constant 0 : index
    %c0_275 = arith.constant 0 : index
    %297 = vector.load %arg10[%c2_273, %c0_274, %c0_275] : memref<16x64x256xbf16, #tpu.memory_space<vmem>>, vector<1x64x256xbf16>
    %298 = vector.shape_cast %297 : vector<1x64x256xbf16> to vector<64x256xbf16>
    %cst_276 = arith.constant dense<0.000000e+00> : vector<64x256xf32>
    %299 = tpu.matmul %279, %298, %cst_276 {dimension_numbers = #tpu.dot_dimension_numbers<[1], [0], [0], [1], [0, 0, 1, 1], [], []>} : vector<64x64xbf16>, vector<64x256xbf16>, vector<64x256xf32> -> vector<64x256xf32>
    %300 = arith.truncf %299 : vector<64x256xf32> to vector<64x256xbf16>
    %c2_277 = arith.constant 2 : index
    %c0_278 = arith.constant 0 : index
    %c0_279 = arith.constant 0 : index
    %301 = vector.load %arg11[%c2_277, %c0_278, %c0_279] : memref<16x8x64xbf16, #tpu.memory_space<vmem>>, vector<1x8x64xbf16>
    %302 = vector.shape_cast %301 : vector<1x8x64xbf16> to vector<8x64xbf16>
    %cst_280 = arith.constant dense<0.000000e+00> : vector<8x256xf32>
    %303 = tpu.matmul %302, %300, %cst_280 {dimension_numbers = #tpu.dot_dimension_numbers<[1], [0], [0], [1], [0, 0, 1, 1], [], []>} : vector<8x64xbf16>, vector<64x256xbf16>, vector<8x256xf32> -> vector<8x256xf32>
    %304 = arith.addf %296, %303 : vector<8x256xf32>
    %c3_281 = arith.constant 3 : index
    %c0_282 = arith.constant 0 : index
    %c0_283 = arith.constant 0 : index
    %305 = vector.load %arg10[%c3_281, %c0_282, %c0_283] : memref<16x64x256xbf16, #tpu.memory_space<vmem>>, vector<1x64x256xbf16>
    %306 = vector.shape_cast %305 : vector<1x64x256xbf16> to vector<64x256xbf16>
    %cst_284 = arith.constant dense<0.000000e+00> : vector<64x256xf32>
    %307 = tpu.matmul %279, %306, %cst_284 {dimension_numbers = #tpu.dot_dimension_numbers<[1], [0], [0], [1], [0, 0, 1, 1], [], []>} : vector<64x64xbf16>, vector<64x256xbf16>, vector<64x256xf32> -> vector<64x256xf32>
    %308 = arith.truncf %307 : vector<64x256xf32> to vector<64x256xbf16>
    %c3_285 = arith.constant 3 : index
    %c0_286 = arith.constant 0 : index
    %c0_287 = arith.constant 0 : index
    %309 = vector.load %arg11[%c3_285, %c0_286, %c0_287] : memref<16x8x64xbf16, #tpu.memory_space<vmem>>, vector<1x8x64xbf16>
    %310 = vector.shape_cast %309 : vector<1x8x64xbf16> to vector<8x64xbf16>
    %cst_288 = arith.constant dense<0.000000e+00> : vector<8x256xf32>
    %311 = tpu.matmul %310, %308, %cst_288 {dimension_numbers = #tpu.dot_dimension_numbers<[1], [0], [0], [1], [0, 0, 1, 1], [], []>} : vector<8x64xbf16>, vector<64x256xbf16>, vector<8x256xf32> -> vector<8x256xf32>
    %312 = arith.addf %304, %311 : vector<8x256xf32>
    %c4_289 = arith.constant 4 : index
    %c0_290 = arith.constant 0 : index
    %c0_291 = arith.constant 0 : index
    %313 = vector.load %arg10[%c4_289, %c0_290, %c0_291] : memref<16x64x256xbf16, #tpu.memory_space<vmem>>, vector<1x64x256xbf16>
    %314 = vector.shape_cast %313 : vector<1x64x256xbf16> to vector<64x256xbf16>
    %cst_292 = arith.constant dense<0.000000e+00> : vector<64x256xf32>
    %315 = tpu.matmul %279, %314, %cst_292 {dimension_numbers = #tpu.dot_dimension_numbers<[1], [0], [0], [1], [0, 0, 1, 1], [], []>} : vector<64x64xbf16>, vector<64x256xbf16>, vector<64x256xf32> -> vector<64x256xf32>
    %316 = arith.truncf %315 : vector<64x256xf32> to vector<64x256xbf16>
    %c4_293 = arith.constant 4 : index
    %c0_294 = arith.constant 0 : index
    %c0_295 = arith.constant 0 : index
    %317 = vector.load %arg11[%c4_293, %c0_294, %c0_295] : memref<16x8x64xbf16, #tpu.memory_space<vmem>>, vector<1x8x64xbf16>
    %318 = vector.shape_cast %317 : vector<1x8x64xbf16> to vector<8x64xbf16>
    %cst_296 = arith.constant dense<0.000000e+00> : vector<8x256xf32>
    %319 = tpu.matmul %318, %316, %cst_296 {dimension_numbers = #tpu.dot_dimension_numbers<[1], [0], [0], [1], [0, 0, 1, 1], [], []>} : vector<8x64xbf16>, vector<64x256xbf16>, vector<8x256xf32> -> vector<8x256xf32>
    %320 = arith.addf %312, %319 : vector<8x256xf32>
    %c5_297 = arith.constant 5 : index
    %c0_298 = arith.constant 0 : index
    %c0_299 = arith.constant 0 : index
    %321 = vector.load %arg10[%c5_297, %c0_298, %c0_299] : memref<16x64x256xbf16, #tpu.memory_space<vmem>>, vector<1x64x256xbf16>
    %322 = vector.shape_cast %321 : vector<1x64x256xbf16> to vector<64x256xbf16>
    %cst_300 = arith.constant dense<0.000000e+00> : vector<64x256xf32>
    %323 = tpu.matmul %279, %322, %cst_300 {dimension_numbers = #tpu.dot_dimension_numbers<[1], [0], [0], [1], [0, 0, 1, 1], [], []>} : vector<64x64xbf16>, vector<64x256xbf16>, vector<64x256xf32> -> vector<64x256xf32>
    %324 = arith.truncf %323 : vector<64x256xf32> to vector<64x256xbf16>
    %c5_301 = arith.constant 5 : index
    %c0_302 = arith.constant 0 : index
    %c0_303 = arith.constant 0 : index
    %325 = vector.load %arg11[%c5_301, %c0_302, %c0_303] : memref<16x8x64xbf16, #tpu.memory_space<vmem>>, vector<1x8x64xbf16>
    %326 = vector.shape_cast %325 : vector<1x8x64xbf16> to vector<8x64xbf16>
    %cst_304 = arith.constant dense<0.000000e+00> : vector<8x256xf32>
    %327 = tpu.matmul %326, %324, %cst_304 {dimension_numbers = #tpu.dot_dimension_numbers<[1], [0], [0], [1], [0, 0, 1, 1], [], []>} : vector<8x64xbf16>, vector<64x256xbf16>, vector<8x256xf32> -> vector<8x256xf32>
    %328 = arith.addf %320, %327 : vector<8x256xf32>
    %c6_305 = arith.constant 6 : index
    %c0_306 = arith.constant 0 : index
    %c0_307 = arith.constant 0 : index
    %329 = vector.load %arg10[%c6_305, %c0_306, %c0_307] : memref<16x64x256xbf16, #tpu.memory_space<vmem>>, vector<1x64x256xbf16>
    %330 = vector.shape_cast %329 : vector<1x64x256xbf16> to vector<64x256xbf16>
    %cst_308 = arith.constant dense<0.000000e+00> : vector<64x256xf32>
    %331 = tpu.matmul %279, %330, %cst_308 {dimension_numbers = #tpu.dot_dimension_numbers<[1], [0], [0], [1], [0, 0, 1, 1], [], []>} : vector<64x64xbf16>, vector<64x256xbf16>, vector<64x256xf32> -> vector<64x256xf32>
    %332 = arith.truncf %331 : vector<64x256xf32> to vector<64x256xbf16>
    %c6_309 = arith.constant 6 : index
    %c0_310 = arith.constant 0 : index
    %c0_311 = arith.constant 0 : index
    %333 = vector.load %arg11[%c6_309, %c0_310, %c0_311] : memref<16x8x64xbf16, #tpu.memory_space<vmem>>, vector<1x8x64xbf16>
    %334 = vector.shape_cast %333 : vector<1x8x64xbf16> to vector<8x64xbf16>
    %cst_312 = arith.constant dense<0.000000e+00> : vector<8x256xf32>
    %335 = tpu.matmul %334, %332, %cst_312 {dimension_numbers = #tpu.dot_dimension_numbers<[1], [0], [0], [1], [0, 0, 1, 1], [], []>} : vector<8x64xbf16>, vector<64x256xbf16>, vector<8x256xf32> -> vector<8x256xf32>
    %336 = arith.addf %328, %335 : vector<8x256xf32>
    %c7_313 = arith.constant 7 : index
    %c0_314 = arith.constant 0 : index
    %c0_315 = arith.constant 0 : index
    %337 = vector.load %arg10[%c7_313, %c0_314, %c0_315] : memref<16x64x256xbf16, #tpu.memory_space<vmem>>, vector<1x64x256xbf16>
    %338 = vector.shape_cast %337 : vector<1x64x256xbf16> to vector<64x256xbf16>
    %cst_316 = arith.constant dense<0.000000e+00> : vector<64x256xf32>
    %339 = tpu.matmul %279, %338, %cst_316 {dimension_numbers = #tpu.dot_dimension_numbers<[1], [0], [0], [1], [0, 0, 1, 1], [], []>} : vector<64x64xbf16>, vector<64x256xbf16>, vector<64x256xf32> -> vector<64x256xf32>
    %340 = arith.truncf %339 : vector<64x256xf32> to vector<64x256xbf16>
    %c7_317 = arith.constant 7 : index
    %c0_318 = arith.constant 0 : index
    %c0_319 = arith.constant 0 : index
    %341 = vector.load %arg11[%c7_317, %c0_318, %c0_319] : memref<16x8x64xbf16, #tpu.memory_space<vmem>>, vector<1x8x64xbf16>
    %342 = vector.shape_cast %341 : vector<1x8x64xbf16> to vector<8x64xbf16>
    %cst_320 = arith.constant dense<0.000000e+00> : vector<8x256xf32>
    %343 = tpu.matmul %342, %340, %cst_320 {dimension_numbers = #tpu.dot_dimension_numbers<[1], [0], [0], [1], [0, 0, 1, 1], [], []>} : vector<8x64xbf16>, vector<64x256xbf16>, vector<8x256xf32> -> vector<8x256xf32>
    %344 = arith.addf %336, %343 : vector<8x256xf32>
    %c8_321 = arith.constant 8 : index
    %c0_322 = arith.constant 0 : index
    %c0_323 = arith.constant 0 : index
    %345 = vector.load %arg10[%c8_321, %c0_322, %c0_323] : memref<16x64x256xbf16, #tpu.memory_space<vmem>>, vector<1x64x256xbf16>
    %346 = vector.shape_cast %345 : vector<1x64x256xbf16> to vector<64x256xbf16>
    %cst_324 = arith.constant dense<0.000000e+00> : vector<64x256xf32>
    %347 = tpu.matmul %279, %346, %cst_324 {dimension_numbers = #tpu.dot_dimension_numbers<[1], [0], [0], [1], [0, 0, 1, 1], [], []>} : vector<64x64xbf16>, vector<64x256xbf16>, vector<64x256xf32> -> vector<64x256xf32>
    %348 = arith.truncf %347 : vector<64x256xf32> to vector<64x256xbf16>
    %c8_325 = arith.constant 8 : index
    %c0_326 = arith.constant 0 : index
    %c0_327 = arith.constant 0 : index
    %349 = vector.load %arg11[%c8_325, %c0_326, %c0_327] : memref<16x8x64xbf16, #tpu.memory_space<vmem>>, vector<1x8x64xbf16>
    %350 = vector.shape_cast %349 : vector<1x8x64xbf16> to vector<8x64xbf16>
    %cst_328 = arith.constant dense<0.000000e+00> : vector<8x256xf32>
    %351 = tpu.matmul %350, %348, %cst_328 {dimension_numbers = #tpu.dot_dimension_numbers<[1], [0], [0], [1], [0, 0, 1, 1], [], []>} : vector<8x64xbf16>, vector<64x256xbf16>, vector<8x256xf32> -> vector<8x256xf32>
    %352 = arith.addf %344, %351 : vector<8x256xf32>
    %c9_329 = arith.constant 9 : index
    %c0_330 = arith.constant 0 : index
    %c0_331 = arith.constant 0 : index
    %353 = vector.load %arg10[%c9_329, %c0_330, %c0_331] : memref<16x64x256xbf16, #tpu.memory_space<vmem>>, vector<1x64x256xbf16>
    %354 = vector.shape_cast %353 : vector<1x64x256xbf16> to vector<64x256xbf16>
    %cst_332 = arith.constant dense<0.000000e+00> : vector<64x256xf32>
    %355 = tpu.matmul %279, %354, %cst_332 {dimension_numbers = #tpu.dot_dimension_numbers<[1], [0], [0], [1], [0, 0, 1, 1], [], []>} : vector<64x64xbf16>, vector<64x256xbf16>, vector<64x256xf32> -> vector<64x256xf32>
    %356 = arith.truncf %355 : vector<64x256xf32> to vector<64x256xbf16>
    %c9_333 = arith.constant 9 : index
    %c0_334 = arith.constant 0 : index
    %c0_335 = arith.constant 0 : index
    %357 = vector.load %arg11[%c9_333, %c0_334, %c0_335] : memref<16x8x64xbf16, #tpu.memory_space<vmem>>, vector<1x8x64xbf16>
    %358 = vector.shape_cast %357 : vector<1x8x64xbf16> to vector<8x64xbf16>
    %cst_336 = arith.constant dense<0.000000e+00> : vector<8x256xf32>
    %359 = tpu.matmul %358, %356, %cst_336 {dimension_numbers = #tpu.dot_dimension_numbers<[1], [0], [0], [1], [0, 0, 1, 1], [], []>} : vector<8x64xbf16>, vector<64x256xbf16>, vector<8x256xf32> -> vector<8x256xf32>
    %360 = arith.addf %352, %359 : vector<8x256xf32>
    %c10_337 = arith.constant 10 : index
    %c0_338 = arith.constant 0 : index
    %c0_339 = arith.constant 0 : index
    %361 = vector.load %arg10[%c10_337, %c0_338, %c0_339] : memref<16x64x256xbf16, #tpu.memory_space<vmem>>, vector<1x64x256xbf16>
    %362 = vector.shape_cast %361 : vector<1x64x256xbf16> to vector<64x256xbf16>
    %cst_340 = arith.constant dense<0.000000e+00> : vector<64x256xf32>
    %363 = tpu.matmul %279, %362, %cst_340 {dimension_numbers = #tpu.dot_dimension_numbers<[1], [0], [0], [1], [0, 0, 1, 1], [], []>} : vector<64x64xbf16>, vector<64x256xbf16>, vector<64x256xf32> -> vector<64x256xf32>
    %364 = arith.truncf %363 : vector<64x256xf32> to vector<64x256xbf16>
    %c10_341 = arith.constant 10 : index
    %c0_342 = arith.constant 0 : index
    %c0_343 = arith.constant 0 : index
    %365 = vector.load %arg11[%c10_341, %c0_342, %c0_343] : memref<16x8x64xbf16, #tpu.memory_space<vmem>>, vector<1x8x64xbf16>
    %366 = vector.shape_cast %365 : vector<1x8x64xbf16> to vector<8x64xbf16>
    %cst_344 = arith.constant dense<0.000000e+00> : vector<8x256xf32>
    %367 = tpu.matmul %366, %364, %cst_344 {dimension_numbers = #tpu.dot_dimension_numbers<[1], [0], [0], [1], [0, 0, 1, 1], [], []>} : vector<8x64xbf16>, vector<64x256xbf16>, vector<8x256xf32> -> vector<8x256xf32>
    %368 = arith.addf %360, %367 : vector<8x256xf32>
    %c11_345 = arith.constant 11 : index
    %c0_346 = arith.constant 0 : index
    %c0_347 = arith.constant 0 : index
    %369 = vector.load %arg10[%c11_345, %c0_346, %c0_347] : memref<16x64x256xbf16, #tpu.memory_space<vmem>>, vector<1x64x256xbf16>
    %370 = vector.shape_cast %369 : vector<1x64x256xbf16> to vector<64x256xbf16>
    %cst_348 = arith.constant dense<0.000000e+00> : vector<64x256xf32>
    %371 = tpu.matmul %279, %370, %cst_348 {dimension_numbers = #tpu.dot_dimension_numbers<[1], [0], [0], [1], [0, 0, 1, 1], [], []>} : vector<64x64xbf16>, vector<64x256xbf16>, vector<64x256xf32> -> vector<64x256xf32>
    %372 = arith.truncf %371 : vector<64x256xf32> to vector<64x256xbf16>
    %c11_349 = arith.constant 11 : index
    %c0_350 = arith.constant 0 : index
    %c0_351 = arith.constant 0 : index
    %373 = vector.load %arg11[%c11_349, %c0_350, %c0_351] : memref<16x8x64xbf16, #tpu.memory_space<vmem>>, vector<1x8x64xbf16>
    %374 = vector.shape_cast %373 : vector<1x8x64xbf16> to vector<8x64xbf16>
    %cst_352 = arith.constant dense<0.000000e+00> : vector<8x256xf32>
    %375 = tpu.matmul %374, %372, %cst_352 {dimension_numbers = #tpu.dot_dimension_numbers<[1], [0], [0], [1], [0, 0, 1, 1], [], []>} : vector<8x64xbf16>, vector<64x256xbf16>, vector<8x256xf32> -> vector<8x256xf32>
    %376 = arith.addf %368, %375 : vector<8x256xf32>
    %c12_353 = arith.constant 12 : index
    %c0_354 = arith.constant 0 : index
    %c0_355 = arith.constant 0 : index
    %377 = vector.load %arg10[%c12_353, %c0_354, %c0_355] : memref<16x64x256xbf16, #tpu.memory_space<vmem>>, vector<1x64x256xbf16>
    %378 = vector.shape_cast %377 : vector<1x64x256xbf16> to vector<64x256xbf16>
    %cst_356 = arith.constant dense<0.000000e+00> : vector<64x256xf32>
    %379 = tpu.matmul %279, %378, %cst_356 {dimension_numbers = #tpu.dot_dimension_numbers<[1], [0], [0], [1], [0, 0, 1, 1], [], []>} : vector<64x64xbf16>, vector<64x256xbf16>, vector<64x256xf32> -> vector<64x256xf32>
    %380 = arith.truncf %379 : vector<64x256xf32> to vector<64x256xbf16>
    %c12_357 = arith.constant 12 : index
    %c0_358 = arith.constant 0 : index
    %c0_359 = arith.constant 0 : index
    %381 = vector.load %arg11[%c12_357, %c0_358, %c0_359] : memref<16x8x64xbf16, #tpu.memory_space<vmem>>, vector<1x8x64xbf16>
    %382 = vector.shape_cast %381 : vector<1x8x64xbf16> to vector<8x64xbf16>
    %cst_360 = arith.constant dense<0.000000e+00> : vector<8x256xf32>
    %383 = tpu.matmul %382, %380, %cst_360 {dimension_numbers = #tpu.dot_dimension_numbers<[1], [0], [0], [1], [0, 0, 1, 1], [], []>} : vector<8x64xbf16>, vector<64x256xbf16>, vector<8x256xf32> -> vector<8x256xf32>
    %384 = arith.addf %376, %383 : vector<8x256xf32>
    %c13_361 = arith.constant 13 : index
    %c0_362 = arith.constant 0 : index
    %c0_363 = arith.constant 0 : index
    %385 = vector.load %arg10[%c13_361, %c0_362, %c0_363] : memref<16x64x256xbf16, #tpu.memory_space<vmem>>, vector<1x64x256xbf16>
    %386 = vector.shape_cast %385 : vector<1x64x256xbf16> to vector<64x256xbf16>
    %cst_364 = arith.constant dense<0.000000e+00> : vector<64x256xf32>
    %387 = tpu.matmul %279, %386, %cst_364 {dimension_numbers = #tpu.dot_dimension_numbers<[1], [0], [0], [1], [0, 0, 1, 1], [], []>} : vector<64x64xbf16>, vector<64x256xbf16>, vector<64x256xf32> -> vector<64x256xf32>
    %388 = arith.truncf %387 : vector<64x256xf32> to vector<64x256xbf16>
    %c13_365 = arith.constant 13 : index
    %c0_366 = arith.constant 0 : index
    %c0_367 = arith.constant 0 : index
    %389 = vector.load %arg11[%c13_365, %c0_366, %c0_367] : memref<16x8x64xbf16, #tpu.memory_space<vmem>>, vector<1x8x64xbf16>
    %390 = vector.shape_cast %389 : vector<1x8x64xbf16> to vector<8x64xbf16>
    %cst_368 = arith.constant dense<0.000000e+00> : vector<8x256xf32>
    %391 = tpu.matmul %390, %388, %cst_368 {dimension_numbers = #tpu.dot_dimension_numbers<[1], [0], [0], [1], [0, 0, 1, 1], [], []>} : vector<8x64xbf16>, vector<64x256xbf16>, vector<8x256xf32> -> vector<8x256xf32>
    %392 = arith.addf %384, %391 : vector<8x256xf32>
    %c14_369 = arith.constant 14 : index
    %c0_370 = arith.constant 0 : index
    %c0_371 = arith.constant 0 : index
    %393 = vector.load %arg10[%c14_369, %c0_370, %c0_371] : memref<16x64x256xbf16, #tpu.memory_space<vmem>>, vector<1x64x256xbf16>
    %394 = vector.shape_cast %393 : vector<1x64x256xbf16> to vector<64x256xbf16>
    %cst_372 = arith.constant dense<0.000000e+00> : vector<64x256xf32>
    %395 = tpu.matmul %279, %394, %cst_372 {dimension_numbers = #tpu.dot_dimension_numbers<[1], [0], [0], [1], [0, 0, 1, 1], [], []>} : vector<64x64xbf16>, vector<64x256xbf16>, vector<64x256xf32> -> vector<64x256xf32>
    %396 = arith.truncf %395 : vector<64x256xf32> to vector<64x256xbf16>
    %c14_373 = arith.constant 14 : index
    %c0_374 = arith.constant 0 : index
    %c0_375 = arith.constant 0 : index
    %397 = vector.load %arg11[%c14_373, %c0_374, %c0_375] : memref<16x8x64xbf16, #tpu.memory_space<vmem>>, vector<1x8x64xbf16>
    %398 = vector.shape_cast %397 : vector<1x8x64xbf16> to vector<8x64xbf16>
    %cst_376 = arith.constant dense<0.000000e+00> : vector<8x256xf32>
    %399 = tpu.matmul %398, %396, %cst_376 {dimension_numbers = #tpu.dot_dimension_numbers<[1], [0], [0], [1], [0, 0, 1, 1], [], []>} : vector<8x64xbf16>, vector<64x256xbf16>, vector<8x256xf32> -> vector<8x256xf32>
    %400 = arith.addf %392, %399 : vector<8x256xf32>
    %c15_377 = arith.constant 15 : index
    %c0_378 = arith.constant 0 : index
    %c0_379 = arith.constant 0 : index
    %401 = vector.load %arg10[%c15_377, %c0_378, %c0_379] : memref<16x64x256xbf16, #tpu.memory_space<vmem>>, vector<1x64x256xbf16>
    %402 = vector.shape_cast %401 : vector<1x64x256xbf16> to vector<64x256xbf16>
    %cst_380 = arith.constant dense<0.000000e+00> : vector<64x256xf32>
    %403 = tpu.matmul %279, %402, %cst_380 {dimension_numbers = #tpu.dot_dimension_numbers<[1], [0], [0], [1], [0, 0, 1, 1], [], []>} : vector<64x64xbf16>, vector<64x256xbf16>, vector<64x256xf32> -> vector<64x256xf32>
    %404 = arith.truncf %403 : vector<64x256xf32> to vector<64x256xbf16>
    %c15_381 = arith.constant 15 : index
    %c0_382 = arith.constant 0 : index
    %c0_383 = arith.constant 0 : index
    %405 = vector.load %arg11[%c15_381, %c0_382, %c0_383] : memref<16x8x64xbf16, #tpu.memory_space<vmem>>, vector<1x8x64xbf16>
    %406 = vector.shape_cast %405 : vector<1x8x64xbf16> to vector<8x64xbf16>
    %cst_384 = arith.constant dense<0.000000e+00> : vector<8x256xf32>
    %407 = tpu.matmul %406, %404, %cst_384 {dimension_numbers = #tpu.dot_dimension_numbers<[1], [0], [0], [1], [0, 0, 1, 1], [], []>} : vector<8x64xbf16>, vector<64x256xbf16>, vector<8x256xf32> -> vector<8x256xf32>
    %408 = arith.addf %400, %407 : vector<8x256xf32>
    %c0_385 = arith.constant 0 : index
    %c0_386 = arith.constant 0 : index
    %409 = vector.load %arg12[%c0_385, %c0_386] : memref<8x1xf32, #tpu.memory_space<vmem>>, vector<8x1xf32>
    %410 = vector.broadcast %409 : vector<8x1xf32> to vector<8x256xf32>
    %411 = arith.addf %408, %410 : vector<8x256xf32>
    %412 = math.tanh %411 : vector<8x256xf32>
    %c0_387 = arith.constant 0 : index
    %c0_388 = arith.constant 0 : index
    %c0_389 = arith.constant 0 : index
    %413 = vector.load %arg13[%c0_387, %c0_388, %c0_389] : memref<1x8x256xf32, #tpu.memory_space<vmem>>, vector<1x8x256xf32>
    %414 = vector.shape_cast %413 : vector<1x8x256xf32> to vector<8x256xf32>
    %415 = vector.shape_cast %412 : vector<8x256xf32> to vector<1x8x256xf32>
    tpu.vector_store %arg13[%c0_387, %c0_388, %c0_389], %415 {strides = array<i32>} : memref<1x8x256xf32, #tpu.memory_space<vmem>>, vector<1x8x256xf32>,
    return
  }
  func.func @transform_0(%arg0: i32) -> (i32, i32, i32) {
    %c0_i32 = arith.constant 0 : i32
    %c0_i32_0 = arith.constant 0 : i32
    %c0_i32_1 = arith.constant 0 : i32
    return %arg0, %c0_i32, %c0_i32_0 : i32, i32, i32
  }
  func.func @transform_1(%arg0: i32) -> (i32, i32) {
    %c0_i32 = arith.constant 0 : i32
    %c0_i32_0 = arith.constant 0 : i32
    %c0_i32_1 = arith.constant 0 : i32
    return %c0_i32, %c0_i32_0 : i32, i32
  }
  func.func @transform_2(%arg0: i32) -> (i32, i32) {
    %c0_i32 = arith.constant 0 : i32
    %c0_i32_0 = arith.constant 0 : i32
    %c0_i32_1 = arith.constant 0 : i32
    return %c0_i32, %c0_i32_0 : i32, i32
  }
  func.func @transform_3(%arg0: i32) -> (i32, i32, i32) {
    %c0_i32 = arith.constant 0 : i32
    %c0_i32_0 = arith.constant 0 : i32
    %c0_i32_1 = arith.constant 0 : i32
    %c0_i32_2 = arith.constant 0 : i32
    return %c0_i32, %c0_i32_0, %c0_i32_1 : i32, i32, i32
  }
  func.func @transform_4(%arg0: i32) -> (i32, i32, i32) {
    %c0_i32 = arith.constant 0 : i32
    %c0_i32_0 = arith.constant 0 : i32
    %c0_i32_1 = arith.constant 0 : i32
    %c0_i32_2 = arith.constant 0 : i32
    return %c0_i32, %c0_i32_0, %c0_i32_1 : i32, i32, i32
  }
  func.func @transform_5(%arg0: i32) -> (i32, i32) {
    %c0_i32 = arith.constant 0 : i32
    %c0_i32_0 = arith.constant 0 : i32
    %c0_i32_1 = arith.constant 0 : i32
    return %c0_i32, %c0_i32_0 : i32, i32
  }
  func.func @transform_6(%arg0: i32) -> (i32, i32, i32) {
    %c0_i32 = arith.constant 0 : i32
    %c0_i32_0 = arith.constant 0 : i32
    %c0_i32_1 = arith.constant 0 : i32
    %c0_i32_2 = arith.constant 0 : i32
    return %c0_i32, %c0_i32_0, %c0_i32_1 : i32, i32, i32
  }
  func.func @transform_7(%arg0: i32) -> (i32, i32, i32) {
    %c0_i32 = arith.constant 0 : i32
    %c0_i32_0 = arith.constant 0 : i32
    %c0_i32_1 = arith.constant 0 : i32
    %c0_i32_2 = arith.constant 0 : i32
    return %c0_i32, %c0_i32_0, %c0_i32_1 : i32, i32, i32
  }
  func.func @transform_8(%arg0: i32) -> (i32, i32) {
    %c0_i32 = arith.constant 0 : i32
    %c0_i32_0 = arith.constant 0 : i32
    %c0_i32_1 = arith.constant 0 : i32
    return %c0_i32, %c0_i32_0 : i32, i32
  }
  func.func @transform_9(%arg0: i32) -> (i32, i32, i32) {
    %c0_i32 = arith.constant 0 : i32
    %c0_i32_0 = arith.constant 0 : i32
    %c0_i32_1 = arith.constant 0 : i32
    %c0_i32_2 = arith.constant 0 : i32
    return %c0_i32, %c0_i32_0, %c0_i32_1 : i32, i32, i32
  }
  func.func @transform_10(%arg0: i32) -> (i32, i32, i32) {
    %c0_i32 = arith.constant 0 : i32
    %c0_i32_0 = arith.constant 0 : i32
    %c0_i32_1 = arith.constant 0 : i32
    %c0_i32_2 = arith.constant 0 : i32
    return %c0_i32, %c0_i32_0, %c0_i32_1 : i32, i32, i32
  }
  func.func @transform_11(%arg0: i32) -> (i32, i32) {
    %c0_i32 = arith.constant 0 : i32
    %c0_i32_0 = arith.constant 0 : i32
    %c0_i32_1 = arith.constant 0 : i32
    return %c0_i32, %c0_i32_0 : i32, i32
  }
  func.func @transform_12(%arg0: i32) -> (i32, i32, i32) {
    %c0_i32 = arith.constant 0 : i32
    %c0_i32_0 = arith.constant 0 : i32
    %c0_i32_1 = arith.constant 0 : i32
    return %arg0, %c0_i32, %c0_i32_0 : i32, i32, i32
  }
}

</mosaic_0001>

<bundles_post_ra>
// kernel: unet_ae_forward.1
= control target key start
LH: loop header
LB: loop body
LE: loop exit
PB: predicated region body
PF: predicated region fallthrough
CT: control target
= control target key end

     0   :  { %s16042_s21 = smov 0   ;;  %s19093_s0 = inlined_call_operand.vmem [shape: bf16[2,128,64], index: 0, kind: input, shape index: {}]   ;;  %s19094_s1 = inlined_call_operand.vmem [shape: bf16[64,128], index: 1, kind: input, shape index: {}]   ;;  %s19095_s2 = inlined_call_operand.vmem [shape: f32[64,1], index: 2, kind: input, shape index: {}]   ;;  %s19096_s3 = inlined_call_operand.vmem [shape: bf16[16,64,16], index: 3, kind: input, shape index: {}]   ;;  %s19097_s4 = inlined_call_operand.vmem [shape: bf16[16,128,64], index: 4, kind: input, shape index: {}]   ;;  %s19098_s5 = inlined_call_operand.vmem [shape: f32[128,1], index: 5, kind: input, shape index: {}]   ;;  %s19099_s6 = inlined_call_operand.vmem [shape: bf16[16,16,64], index: 6, kind: input, shape index: {}]   ;;  %s19100_s7 = inlined_call_operand.vmem [shape: bf16[16,64,128], index: 7, kind: input, shape index: {}]   ;;  %s19101_s8 = inlined_call_operand.vmem [shape: f32[64,1], index: 8, kind: input, shape index: {}]   ;;  %s19102_s9 = inlined_call_operand.vmem [shape: bf16[16,64,256], index: 9, kind: input, shape index: {}]   ;;  %s19103_s10 = inlined_call_operand.vmem [shape: bf16[16,8,64], index: 10, kind: input, shape index: {}]   ;;  %s19104_s11 = inlined_call_operand.vmem [shape: f32[8,1], index: 11, kind: input, shape index: {}]   ;;  %s19105_s12 = inlined_call_operand.vmem [shape: f32[2,8,256], index: 12, kind: output, shape index: {}]  }
   0x1 LB: > { %s12003_s22 = sadd.s32 4294967295, %s15974_s21   ;;  %p12007_p0 = scmp.ge.s32.totalorder %s15974_s21, 1  ;;  %s15974_s21 = sphi %s16042_s21, %s22_s21  }
   0x2   : > { %p362_p1 = scmp.lt.s32.totalorder %s15974_s21, 3 }
   0x4   : > { %p363_p2 = pnand %p12007_p0, %p362_p1 }
   0x6   : > { %366 = sbr.rel (%p363_p2) target bundleno = 8692 (0x21f4), region = 68 }
   0xb   : > { %p404_p3 = scmp.lt.s32.totalorder %s12003_s22, 1  ;;  %v15496_v0 = vld [vmem:[%s19094_s1] sm:$0xff]   ;;  %v19106_v1 = vmov 0   ;;  %v440_v3 = vld [vmem:[%s19095_s2 + $0x8] sm:$0xff]  ;;  %v441_v4 = vld [vmem:[%s19095_s2 + $0x10] sm:$0xff]  ;;  %vm668_vm0 = vcmask 523264  }
   0xc   : > { %14157 = vmatprep.mubr.bf16.mxu0 %v15496_v0  ;;  %15486 = vset.pattern.permute.xlu0 %v19106_v1  ;;  %v439_v2 = vld [vmem:[%s19095_s2] sm:$0xff]  ;;  %v442_v5 = vld [vmem:[%s19095_s2 + $0x18] sm:$0xff]  ;;  %v445_v10 = vld [vmem:[%s19095_s2 + $0x30] sm:$0xff]  ;;  %vm5495_vm1 = vcmask 130048  }
   0xd   : > { %s19184_s22 = smov (!%p404_p3, %s12003_s22), 1  ;;  %449 = vperm.xlu0 %15486, %v439_v2   ;;  %15487 = vset.pattern.permute.xlu1 %v19106_v1  ;;  %v443_v8 = vld [vmem:[%s19095_s2 + $0x20] sm:$0xff]  ;;  %v444_v12 = vld [vmem:[%s19095_s2 + $0x28] sm:$0xff]  ;;  %v446_v14 = vld [vmem:[%s19095_s2 + $0x38] sm:$0xff] }
   0xe   : > { %s13471_s27 = sshll.u32 %s19184_s22, 6  ;;  %459 = vperm.xlu1 %15487, %v441_v4   ;;  %v5351_v13 = vld [vmem:[%s19098_s5] sm:$0xff]  ;;  %v5353_v16 = vld [vmem:[%s19098_s5 + $0x10] sm:$0xff]  ;;  %v5352_v17 = vld [vmem:[%s19098_s5 + $0x8] sm:$0xff]  ;;  %s13472_s20 = sshll.u32 %s19184_s22, 4 }
   0xf   : > { %s16070_s16 = scalar_lea.vmem %s19093_s0, %s13471_s27  ;;  %v5355_v19 = vld [vmem:[%s19098_s5 + $0x20] sm:$0xff]  ;;  %v5354_v20 = vld [vmem:[%s19098_s5 + $0x18] sm:$0xff]  ;;  %v5357_v22 = vld [vmem:[%s19098_s5 + $0x30] sm:$0xff]  ;;  %s413_s25 = scalar_lea.vmem %s19105_s12, %s13472_s20 }
  0x10   : > { %v15488_v6 = vld [vmem:[%s16070_s16 + $0x38] sm:$0xff]   ;;  %v15489_v7 = vld [vmem:[%s16070_s16 + $0x30] sm:$0xff]   ;;  %v15490_v9 = vld [vmem:[%s16070_s16 + $0x28] sm:$0xff]  }
  0x11   : > { %454 = vperm.xlu0 %15486, %v440_v3   ;;  %14141 = vmatprep.subr.bf16.mxu0 %v15488_v6  ;;  %v15491_v11 = vld [vmem:[%s16070_s16 + $0x20] sm:$0xff]   ;;  %v15492_v15 = vld [vmem:[%s16070_s16 + $0x18] sm:$0xff]   ;;  %v15493_v18 = vld [vmem:[%s16070_s16 + $0x10] sm:$0xff]  }
  0x12   : > { %14142 = vmatpush3.bf16.msra.mxu0 %v15488_v6  ;;  %464 = vperm.xlu1 %15487, %v442_v5   ;;  %v15494_v21 = vld [vmem:[%s16070_s16 + $0x8] sm:$0xff]   ;;  %v15495_v24 = vld [vmem:[%s16070_s16] sm:$0xff]   ;;  %v5358_v26 = vld [vmem:[%s19098_s5 + $0x38] sm:$0xff] }
  0x13   : > { %14143 = vmatprep.subr.bf16.mxu0 %v15489_v7  ;;  %v5356_v23 = vld [vmem:[%s19098_s5 + $0x28] sm:$0xff]  ;;  %v5359_v25 = vld [vmem:[%s19098_s5 + $0x40] sm:$0xff]  ;;  %v5361_v28 = vld [vmem:[%s19098_s5 + $0x50] sm:$0xff] }
  0x14   : > { %v15497_v27 = vld [vmem:[%s19094_s1 + $0x8] sm:$0xff]   ;;  %v15498_v30 = vld [vmem:[%s19094_s1 + $0x10] sm:$0xff]   ;;  %v5363_v31 = vld [vmem:[%s19098_s5 + $0x60] sm:$0xff] }
  0x15   : > { %469 = vperm.xlu0 %15486, %v443_v8   ;;  %v5360_v29 = vld [vmem:[%s19098_s5 + $0x48] sm:$0xff]  ;;  %v5362_v32 = vld [vmem:[%s19098_s5 + $0x58] sm:$0xff]  ;;  %v5365_v34 = vld [vmem:[%s19098_s5 + $0x70] sm:$0xff] }
  0x16   : > { %14144 = vmatpush3.bf16.msra.mxu0 %v15489_v7  ;;  %474 = vperm.xlu1 %15487, %v444_v12   ;;  %v15499_v33 = vld [vmem:[%s19094_s1 + $0x18] sm:$0xff]   ;;  %v5364_v35 = vld [vmem:[%s19098_s5 + $0x68] sm:$0xff]  ;;  %v9014_v36 = vld [vmem:[%s19101_s8] sm:$0xff] }
  0x17   : > { %14145 = vmatprep.subr.bf16.mxu0 %v15490_v9  ;;  %v5366_v37 = vld [vmem:[%s19098_s5 + $0x78] sm:$0xff]  ;;  %v9016_v38 = vld [vmem:[%s19101_s8 + $0x10] sm:$0xff]  ;;  %v9015_v39 = vld [vmem:[%s19101_s8 + $0x8] sm:$0xff] }
  0x18   : > { %v9018_v40 = vld [vmem:[%s19101_s8 + $0x20] sm:$0xff]  ;;  %v9017_v41 = vld [vmem:[%s19101_s8 + $0x18] sm:$0xff]  ;;  %v9020_v43 = vld [vmem:[%s19101_s8 + $0x30] sm:$0xff] }
  0x19   : > { %479 = vperm.xlu0 %15486, %v445_v10   ;;  %v15500_v42 = vld [vmem:[%s19096_s3 + $0x18] sm:$0xff]   ;;  %v9019_v44 = vld [vmem:[%s19101_s8 + $0x28] sm:$0xff]  ;;  %v11936_v45 = vld [vmem:[%s19104_s11] sm:$0xff] }
  0x1a   : > { %14146 = vmatpush3.bf16.msra.mxu0 %v15490_v9  ;;  %484 = vperm.xlu1 %15487, %v446_v14   ;;  %v9021_v46 = vld [vmem:[%s19101_s8 + $0x38] sm:$0xff]  ;;  %v15501_v47 = vld [vmem:[%s19096_s3 + $0x10] sm:$0xff]   ;;  %v15502_v48 = vld [vmem:[%s19096_s3 + $0x8] sm:$0xff]  }
  0x1b   : > { %14147 = vmatprep.subr.bf16.mxu0 %v15491_v11  ;;  %14165 = vmatprep.subr.bf16.mxu1 %v15500_v42  ;;  %v15503_v49 = vld [vmem:[%s19096_s3] sm:$0xff]   ;;  %v15504_v50 = vld [vmem:[%s19096_s3 + $0x38] sm:$0xff]   ;;  %v15505_v8 = vld [vmem:[%s19096_s3 + $0x30] sm:$0xff]  }
  0x1c   : > { %14166 = vmatpush3.bf16.msra.mxu1 %v15500_v42 }
  0x1d   : > { %5369 = vperm.xlu0 %15486, %v5351_v13   ;;  %14167 = vmatprep.subr.bf16.mxu1 %v15501_v47 }
  0x1e   : > { %14148 = vmatpush3.bf16.msra.mxu0 %v15491_v11  ;;  %5374 = vperm.xlu1 %15487, %v5352_v17  }
  0x1f   : > { %14149 = vmatprep.subr.bf16.mxu0 %v15492_v15 }
  0x20   : > { %14168 = vmatpush3.bf16.msra.mxu1 %v15501_v47  ;;  %v15511_v47 = vld [vmem:[%s19097_s4 + $0x8] sm:$0xff]  }
  0x21   : > { %5379 = vperm.xlu0 %15486, %v5353_v16   ;;  %14169 = vmatprep.subr.bf16.mxu1 %v15502_v48 }
  0x22   : > { %14150 = vmatpush3.bf16.msra.mxu0 %v15492_v15  ;;  %5384 = vperm.xlu1 %15487, %v5354_v20  }
  0x23   : > { %14151 = vmatprep.subr.bf16.mxu0 %v15493_v18 }
  0x24   : > { %14170 = vmatpush3.bf16.msra.mxu1 %v15502_v48 }
  0x25   : > { %5389 = vperm.xlu0 %15486, %v5355_v19   ;;  %14171 = vmatprep.subr.bf16.mxu1 %v15503_v49 }
  0x26   : > { %14152 = vmatpush3.bf16.msra.mxu0 %v15493_v18  ;;  %5394 = vperm.xlu1 %15487, %v5356_v23   ;;  %v15506_v18 = vld [vmem:[%s19096_s3 + $0x28] sm:$0xff]  }
  0x27   : > { %14153 = vmatprep.subr.bf16.mxu0 %v15494_v21 }
  0x28   : > { %14172 = vmatpush3.bf16.msra.mxu1 %v15503_v49  ;;  %v15513_v49 = vld [vmem:[%s19097_s4 + $0x10] sm:$0xff]  }
  0x29   : > { %5399 = vperm.xlu0 %15486, %v5357_v22   ;;  %14181 = vmatprep.subr.bf16.mxu1 %v15504_v50 }
  0x2a   : > { %14154 = vmatpush3.bf16.msra.mxu0 %v15494_v21  ;;  %5404 = vperm.xlu1 %15487, %v5358_v26   ;;  %v15507_v26 = vld [vmem:[%s19096_s3 + $0x20] sm:$0xff]  }
  0x2b   : > { %14155 = vmatprep.subr.bf16.mxu0 %v15495_v24 }
  0x2d   : > { %5409 = vperm.xlu0 %15486, %v5359_v25  }
  0x2e   : > { %14156 = vmatpush3.bf16.msra.mxu0 %v15495_v24  ;;  %5414 = vperm.xlu1 %15487, %v5360_v29  }
  0x31   : > { %5419 = vperm.xlu0 %15486, %v5361_v28   ;;  %14158 = vmatmul.mubr.bf16.vlgmr.msra.gmra.mxu0 %v15497_v27  ;;  %v15508_v27 = vld [vmem:[%s19097_s4 + $0x40] sm:$0xff]  }
  0x32   : > { %14161 = vmatprep.mubr.bf16.mxu0 %v15498_v30  ;;  %5424 = vperm.xlu1 %15487, %v5362_v32   ;;  %v15509_v28 = vld [vmem:[%s19097_s4] sm:$0xff]  }
  0x35   : > { %5429 = vperm.xlu0 %15486, %v5363_v31  }
  0x36   : > { %5434 = vperm.xlu1 %15487, %v5364_v35  }
  0x39   : > { %5439 = vperm.xlu0 %15486, %v5365_v34   ;;  %14162 = vmatmul.mubr.bf16.gmra.mxu0 %v15499_v33 }
  0x3a   : > { %5444 = vperm.xlu1 %15487, %v5366_v37   ;;  %14205 = vmatprep.mubr.msk.bf16.mxu0 %vm668_vm0, %v15508_v27 }
  0x3d   : > { %9024 = vperm.xlu0 %15486, %v9014_v36  }
  0x3e   : > { %9029 = vperm.xlu1 %15487, %v9015_v39  }
  0x41   : > { %9034 = vperm.xlu0 %15486, %v9016_v38  }
  0x42   : > { %9039 = vperm.xlu1 %15487, %v9017_v41  }
  0x45   : > { %9044 = vperm.xlu0 %15486, %v9018_v40  }
  0x46   : > { %9049 = vperm.xlu1 %15487, %v9019_v44  }
  0x49   : > { %9054 = vperm.xlu0 %15486, %v9020_v43  }
  0x4a   : > { %9059 = vperm.xlu1 %15487, %v9021_v46  }
  0x4d   : > { %11939 = vperm.xlu0 %15486, %v11936_v45  }
  0x88   : > { %v450_v52 = vpop.permute.xlu0 %449 }
  0x89   : > { %v460_v51 = vpop.permute.xlu1 %459 }
  0x8c   : > { %v455_v55 = vpop.permute.xlu0 %454 }
  0x8d   : > { %v465_v53 = vpop.permute.xlu1 %464 }
  0x90   : > { %v470_v63 = vpop.permute.xlu0 %469 }
  0x91   : > { %v475_v60 = vpop.permute.xlu1 %474 }
  0x94   : > { %v480_v13 = vpop.permute.xlu0 %479 }
  0x95   : > { %v485_v10 = vpop.permute.xlu1 %484 }
  0xf1   : > { %v14159_v54 = vpop.f32.mrf.mxu0 }
  0xf2   : > { %v602_v61 = vadd.f32 %v14159_v54, %v460_v51  ;;  %v15515_v54 = vld [vmem:[%s19097_s4 + $0x18] sm:$0xff]  }
  0xf3   : > { %v593_v56 = vpop.f32.mrf.mxu0 }
  0xf4   : > { %v594_v58 = vadd.f32 %v593_v56, %v450_v52  ;;  %v626_v6 = vmax.f32 %v602_v61, 0.0  ;;  %v15521_v61 = vld [vmem:[%s19096_s3 + $0x50] sm:$0xff]  }
  0xf5   : > { %v14160_v57 = vpop.f32.mrf.mxu0 }
  0xf6   : > { %v605_v59 = vadd.f32 %v14160_v57, %v465_v53  ;;  %v624_v4 = vmax.f32 %v594_v58, 0.0  ;;  %v15520_v57 = vld [vmem:[%s19096_s3 + $0x58] sm:$0xff]   ;;  %v15510_v58 = vld [vmem:[%s19097_s4 + $0x48] sm:$0xff]  }
  0xf7   : > { %v596_v62 = vpop.f32.mrf.mxu0 }
  0xf8   : > { %v597_v0 = vadd.f32 %v596_v62, %v455_v55  ;;  %v627_v2 = vmax.f32 %v605_v59, 0.0  ;;  %v15517_v55 = vld [vmem:[%s19097_s4 + $0x20] sm:$0xff]   ;;  %v15519_v59 = vld [vmem:[%s19097_s4 + $0x28] sm:$0xff]   ;;  %v15523_v62 = vld [vmem:[%s19097_s4 + $0x30] sm:$0xff]  }
  0xf9   : > { %v14163_v3 = vpop.f32.mrf.mxu0 }
  0xfa   : > { %v625_v5 = vmax.f32 %v597_v0, 0.0  ;;  %v16199_v11 = vpack.c.bf16 %v627_v2, %v626_v6  ;;  %v618_v16 = vadd.f32 %v14163_v3, %v480_v13  ;;  %v15514_v0 = vld [vmem:[%s19097_s4 + $0x58] sm:$0xff]   ;;  %v15516_v3 = vld [vmem:[%s19097_s4 + $0x60] sm:$0xff]   ;;  %v15518_v6 = vld [vmem:[%s19097_s4 + $0x68] sm:$0xff]  }
  0xfb   : > { %v609_v7 = vpop.f32.mrf.mxu0  ;;  %v15525_v2 = vld [vmem:[%s19097_s4 + $0x38] sm:$0xff]   ;;  %v15531_v13 = vld [vmem:[%s19096_s3 + $0x60] sm:$0xff]  }
  0xfc   : > { %v16197_v9 = vpack.c.bf16 %v625_v5, %v624_v4  ;;  %v610_v14 = vadd.f32 %v609_v7, %v470_v63  ;;  %v630_v23 = vmax.f32 %v618_v16, 0.0  ;;  %v15526_v63 = vld [vmem:[%s19096_s3 + $0x48] sm:$0xff]   ;;  %v15527_v4 = vld [vmem:[%s19096_s3 + $0x40] sm:$0xff]   ;;  %v15528_v5 = vld [vmem:[%s19096_s3 + $0x78] sm:$0xff]  }
  0xfd   : > { %v14164_v12 = vpop.f32.mrf.mxu0  ;;  %v15522_v7 = vld [vmem:[%s19097_s4 + $0x70] sm:$0xff]  }
  0xfe   : > { %v621_v15 = vadd.f32 %v14164_v12, %v485_v10  ;;  %14173 = vmatprep.mubr.msk.bf16.mxu1 %vm668_vm0, %v16197_v9  ;;  %v628_v21 = vmax.f32 %v610_v14, 0.0  ;;  %v15529_v10 = vld [vmem:[%s19096_s3 + $0x70] sm:$0xff]   ;;  %v15530_v12 = vld [vmem:[%s19096_s3 + $0x68] sm:$0xff]   ;;  %v15532_v14 = vld [vmem:[%s19097_s4 + $0x80] sm:$0xff]  }
  0xff   : > { %v612_v17 = vpop.f32.mrf.mxu0  ;;  %14174 = vmatmul.mubr.msk.bf16.vlgmr.msra.gmra.mxu1 %vm668_vm0, %v16199_v11 }
 0x100   : > { %v613_v19 = vadd.f32 %v612_v17, %v475_v60  ;;  %14182 = vmatpush3.bf16.msra.mxu1 %v15504_v50  ;;  %v631_v20 = vmax.f32 %v621_v15, 0.0  ;;  %v15512_v60 = vld [vmem:[%s19097_s4 + $0x50] sm:$0xff]   ;;  %v15537_v15 = vld [vmem:[%s19097_s4 + $0xc0] sm:$0xff]  }
 0x101   : > { %14183 = vmatprep.subr.bf16.mxu1 %v15505_v8 }
 0x102   : > { %v629_v22 = vmax.f32 %v613_v19, 0.0  ;;  %v16210_v25 = vpack.c.bf16 %v631_v20, %v630_v23 }
 0x104   : > { %v16208_v24 = vpack.c.bf16 %v629_v22, %v628_v21  ;;  %14184 = vmatpush3.bf16.msra.mxu1 %v15505_v8  ;;  %v15524_v8 = vld [vmem:[%s19097_s4 + $0x78] sm:$0xff]  }
 0x105   : > { %14185 = vmatprep.subr.bf16.mxu1 %v15506_v18 }
 0x106   : > { %14177 = vmatprep.mubr.msk.bf16.mxu1 %vm668_vm0, %v16208_v24 }
 0x107   : > { %14178 = vmatmul.mubr.msk.bf16.gmra.mxu1 %vm668_vm0, %v16210_v25 }
 0x108   : > { %14186 = vmatpush3.bf16.msra.mxu1 %v15506_v18  ;;  %14189 = vmatprep.mubr.msk.bf16.mxu1 %vm668_vm0, %v16197_v9 }
 0x109   : > { %14187 = vmatprep.subr.bf16.mxu1 %v15507_v26 }
 0x10c   : > { %14188 = vmatpush3.bf16.msra.mxu1 %v15507_v26 }
 0x10f   : > { %14190 = vmatmul.mubr.msk.bf16.vlgmr.msra.gmra.mxu1 %vm668_vm0, %v16199_v11 }
 0x110   : > { %14193 = vmatprep.mubr.msk.bf16.mxu1 %vm668_vm0, %v16208_v24 }
 0x117   : > { %14194 = vmatmul.mubr.msk.bf16.gmra.mxu1 %vm668_vm0, %v16210_v25 }
 0x118   : > { %14229 = vmatprep.mubr.msk.bf16.mxu1 %vm668_vm0, %v15509_v28 }
 0x1bf   : > { %v14175_v29 = vpop.f32.mrf.mxu1 }
 0x1c1   : > { %v715_v30 = vpop.f32.mrf.mxu1 }
 0x1c3   : > { %v14176_v31 = vpop.f32.mrf.mxu1 }
 0x1c4   : > { %v747_v41 = vpack.c.bf16 %v14176_v31, %v14175_v29 }
 0x1c5   : > { %v718_v32 = vpop.f32.mrf.mxu1 }
 0x1c6   : > { %v746_v44 = vpack.c.bf16 %v718_v32, %v715_v30 }
 0x1c7   : > { %v14179_v33 = vpop.f32.mrf.mxu1 }
 0x1c9   : > { %v731_v34 = vpop.f32.mrf.mxu1 }
 0x1cb   : > { %v14180_v35 = vpop.f32.mrf.mxu1 }
 0x1cc   : > { %v749_v36 = vpack.c.bf16 %v14180_v35, %v14179_v33 }
 0x1cd   : > { %v734_v37 = vpop.f32.mrf.mxu1 }
 0x1ce   : > { %v748_v38 = vpack.c.bf16 %v734_v37, %v731_v34  ;;  %14221 = vmatprep.subr.bf16.mxu1 %v749_v36 }
 0x1cf   : > { %v14191_v39 = vpop.f32.mrf.mxu1  ;;  %14222 = vmatpush3.bf16.msra.mxu1 %v749_v36 }
 0x1d0   : > { %14223 = vmatprep.subr.bf16.mxu1 %v748_v38 }
 0x1d1   : > { %v833_v40 = vpop.f32.mrf.mxu1 }
 0x1d3   : > { %v14192_v42 = vpop.f32.mrf.mxu1  ;;  %14224 = vmatpush3.bf16.msra.mxu1 %v748_v38 }
 0x1d4   : > { %14225 = vmatprep.subr.bf16.mxu1 %v747_v41  ;;  %v865_v53 = vpack.c.bf16 %v14192_v42, %v14191_v39 }
 0x1d5   : > { %v836_v43 = vpop.f32.mrf.mxu1 }
 0x1d6   : > { %v864_v56 = vpack.c.bf16 %v836_v43, %v833_v40 }
 0x1d7   : > { %v14195_v45 = vpop.f32.mrf.mxu1  ;;  %14226 = vmatpush3.bf16.msra.mxu1 %v747_v41 }
 0x1d8   : > { %14227 = vmatprep.subr.bf16.mxu1 %v746_v44 }
 0x1d9   : > { %v849_v46 = vpop.f32.mrf.mxu1 }
 0x1db   : > { %v14196_v48 = vpop.f32.mrf.mxu1  ;;  %14228 = vmatpush3.bf16.msra.mxu1 %v746_v44 }
 0x1dc   : > { %v867_v50 = vpack.c.bf16 %v14196_v48, %v14195_v45 }
 0x1dd   : > { %v852_v51 = vpop.f32.mrf.mxu1 }
 0x1de   : > { %v866_v52 = vpack.c.bf16 %v852_v51, %v849_v46  ;;  %14197 = vmatprep.subr.bf16.mxu0 %v867_v50  ;;  %14230 = vmatmul.mubr.msk.bf16.vlgmr.msra.gmra.mxu1 %vm668_vm0, %v15511_v47 }
 0x1df   : > { %14198 = vmatpush3.bf16.msra.mxu0 %v867_v50  ;;  %14233 = vmatprep.mubr.msk.bf16.mxu1 %vm668_vm0, %v15513_v49 }
 0x1e0   : > { %14199 = vmatprep.subr.bf16.mxu0 %v866_v52 }
 0x1e3   : > { %14200 = vmatpush3.bf16.msra.mxu0 %v866_v52 }
 0x1e4   : > { %14201 = vmatprep.subr.bf16.mxu0 %v865_v53 }
 0x1e6   : > { %14234 = vmatmul.mubr.msk.bf16.gmra.mxu1 %vm668_vm0, %v15515_v54 }
 0x1e7   : > { %14202 = vmatpush3.bf16.msra.mxu0 %v865_v53  ;;  %14237 = vmatprep.mubr.msk.bf16.mxu1 %vm668_vm0, %v15517_v55 }
 0x1e8   : > { %14203 = vmatprep.subr.bf16.mxu0 %v864_v56 }
 0x1eb   : > { %14204 = vmatpush3.bf16.msra.mxu0 %v864_v56 }
 0x1ec   : > { %14245 = vmatprep.subr.bf16.mxu0 %v15520_v57 }
 0x1ee   : > { %14206 = vmatmul.mubr.msk.bf16.vlgmr.msra.gmra.mxu0 %vm668_vm0, %v15510_v58  ;;  %14238 = vmatmul.mubr.msk.bf16.gmra.mxu1 %vm668_vm0, %v15519_v59 }
 0x1ef   : > { %14209 = vmatprep.mubr.msk.bf16.mxu0 %vm668_vm0, %v15512_v60  ;;  %14246 = vmatpush3.bf16.msra.mxu0 %v15520_v57 }
 0x1f0   : > { %14247 = vmatprep.subr.bf16.mxu0 %v15521_v61  ;;  %14241 = vmatprep.mubr.msk.bf16.mxu1 %vm668_vm0, %v15523_v62 }
 0x1f3   : > { %14248 = vmatpush3.bf16.msra.mxu0 %v15521_v61 }
 0x1f4   : > { %14249 = vmatprep.subr.bf16.mxu0 %v15526_v63 }
 0x1f6   : > { %14210 = vmatmul.mubr.msk.bf16.gmra.mxu0 %vm668_vm0, %v15514_v0  ;;  %14242 = vmatmul.mubr.msk.bf16.gmra.mxu1 %vm668_vm0, %v15525_v2 }
 0x1f7   : > { %14213 = vmatprep.mubr.msk.bf16.mxu0 %vm668_vm0, %v15516_v3  ;;  %14250 = vmatpush3.bf16.msra.mxu0 %v15526_v63 }
 0x1f8   : > { %14251 = vmatprep.subr.bf16.mxu0 %v15527_v4  ;;  %14269 = vmatprep.mubr.msk.bf16.mxu1 %vm668_vm0, %v15532_v14 }
 0x1fb   : > { %14252 = vmatpush3.bf16.msra.mxu0 %v15527_v4 }
 0x1fc   : > { %14285 = vmatprep.subr.bf16.mxu0 %v15528_v5 }
 0x1fe   : > { %14214 = vmatmul.mubr.msk.bf16.gmra.mxu0 %vm668_vm0, %v15518_v6 }
 0x1ff   : > { %14217 = vmatprep.mubr.msk.bf16.mxu0 %vm668_vm0, %v15522_v7 }
 0x206   : > { %14218 = vmatmul.mubr.msk.bf16.gmra.mxu0 %vm668_vm0, %v15524_v8 }
 0x207   : > { %14253 = vmatprep.mubr.msk.bf16.mxu0 %vm668_vm0, %v16197_v9 }
 0x20e   : > { %14254 = vmatmul.mubr.msk.bf16.vlgmr.msra.gmra.mxu0 %vm668_vm0, %v16199_v11 }
 0x20f   : > { %14257 = vmatprep.mubr.msk.bf16.mxu0 %vm668_vm0, %v16208_v24  ;;  %14286 = vmatpush3.bf16.msra.mxu0 %v15528_v5 }
 0x210   : > { %14287 = vmatprep.subr.bf16.mxu0 %v15529_v10 }
 0x213   : > { %14288 = vmatpush3.bf16.msra.mxu0 %v15529_v10 }
 0x214   : > { %14289 = vmatprep.subr.bf16.mxu0 %v15530_v12 }
 0x216   : > { %14258 = vmatmul.mubr.msk.bf16.gmra.mxu0 %vm668_vm0, %v16210_v25 }
 0x217   : > { %14290 = vmatpush3.bf16.msra.mxu0 %v15530_v12  ;;  %14293 = vmatprep.mubr.msk.bf16.mxu0 %vm668_vm0, %v16197_v9 }
 0x218   : > { %14291 = vmatprep.subr.bf16.mxu0 %v15531_v13 }
 0x21b   : > { %14292 = vmatpush3.bf16.msra.mxu0 %v15531_v13 }
 0x21e   : > { %14294 = vmatmul.mubr.msk.bf16.vlgmr.msra.gmra.mxu0 %vm668_vm0, %v16199_v11 }
 0x21f   : > { %14297 = vmatprep.mubr.msk.bf16.mxu0 %vm668_vm0, %v16208_v24 }
 0x226   : > { %14298 = vmatmul.mubr.msk.bf16.gmra.mxu0 %vm668_vm0, %v16210_v25 }
 0x227   : > { %14309 = vmatprep.mubr.msk.bf16.mxu0 %vm668_vm0, %v15537_v15 }
 0x29e   : > { %v14231_v16 = vpop.f32.mrf.mxu1 }
 0x2a0   : > { %v1144_v17 = vpop.f32.mrf.mxu1 }
 0x2a2   : > { %v14232_v18 = vpop.f32.mrf.mxu1 }
 0x2a4   : > { %v16339_v19 = vpop.f32.mrf.mxu1 }
 0x2a6   : > { %v14235_v20 = vpop.f32.mrf.mxu1 }
 0x2a8   : > { %v1160_v21 = vpop.f32.mrf.mxu1 }
 0x2aa   : > { %v14236_v22 = vpop.f32.mrf.mxu1 }
 0x2ac   : > { %v16341_v23 = vpop.f32.mrf.mxu1 }
 0x2ae   : > { %v14207_v26 = vpop.f32.mrf.mxu0  ;;  %v14239_v29 = vpop.f32.mrf.mxu1 }
 0x2af   : > { %v16343_v27 = vadd.f32 %v14231_v16, %v14207_v26 }
 0x2b0   : > { %v983_v28 = vpop.f32.mrf.mxu0  ;;  %v1176_v34 = vpop.f32.mrf.mxu1 }
 0x2b1   : > { %v16345_v30 = vadd.f32 %v1144_v17, %v983_v28  ;;  %v15540_v17 = vld [vmem:[%s19096_s3 + $0x98] sm:$0xff]  }
 0x2b2   : > { %v14208_v31 = vpop.f32.mrf.mxu0  ;;  %v14240_v38 = vpop.f32.mrf.mxu1 }
 0x2b3   : > { %v16347_v32 = vadd.f32 %v14232_v18, %v14208_v31 }
 0x2b4   : > { %v16349_v33 = vpop.f32.mrf.mxu0  ;;  %v16359_v43 = vpop.f32.mrf.mxu1 }
 0x2b6   : > { %v14211_v35 = vpop.f32.mrf.mxu0  ;;  %v14243_v47 = vpop.f32.mrf.mxu1 }
 0x2b7   : > { %v16351_v36 = vadd.f32 %v14235_v20, %v14211_v35  ;;  %v15533_v20 = vld [vmem:[%s19097_s4 + $0x88] sm:$0xff]  }
 0x2b8   : > { %v999_v37 = vpop.f32.mrf.mxu0  ;;  %v1192_v52 = vpop.f32.mrf.mxu1 }
 0x2b9   : > { %v16353_v39 = vadd.f32 %v1160_v21, %v999_v37  ;;  %v15535_v37 = vld [vmem:[%s19097_s4 + $0x98] sm:$0xff]  }
 0x2ba   : > { %v14212_v40 = vpop.f32.mrf.mxu0  ;;  %v14244_v56 = vpop.f32.mrf.mxu1 }
 0x2bb   : > { %v16355_v41 = vadd.f32 %v14236_v22, %v14212_v40  ;;  %v15534_v22 = vld [vmem:[%s19097_s4 + $0x90] sm:$0xff]   ;;  %v15547_v40 = vld [vmem:[%s19096_s3 + $0x80] sm:$0xff]  }
 0x2bc   : > { %v16357_v42 = vpop.f32.mrf.mxu0 }
 0x2be   : > { %v14215_v44 = vpop.f32.mrf.mxu0 }
 0x2bf   : > { %v16361_v45 = vadd.f32 %v14239_v29, %v14215_v44  ;;  %v15541_v29 = vld [vmem:[%s19096_s3 + $0x90] sm:$0xff]  }
 0x2c0   : > { %v1015_v46 = vpop.f32.mrf.mxu0 }
 0x2c1   : > { %v16363_v48 = vadd.f32 %v1176_v34, %v1015_v46  ;;  %v15546_v34 = vld [vmem:[%s19096_s3 + $0x88] sm:$0xff]   ;;  %v15550_v46 = vld [vmem:[%s19096_s3 + $0xb8] sm:$0xff]  }
 0x2c2   : > { %v14216_v49 = vpop.f32.mrf.mxu0 }
 0x2c3   : > { %v16365_v50 = vadd.f32 %v14240_v38, %v14216_v49  ;;  %v15536_v38 = vld [vmem:[%s19097_s4 + $0xa0] sm:$0xff]   ;;  %v15539_v49 = vld [vmem:[%s19097_s4 + $0xc8] sm:$0xff]  }
 0x2c4   : > { %v16367_v51 = vpop.f32.mrf.mxu0 }
 0x2c6   : > { %v14219_v53 = vpop.f32.mrf.mxu0 }
 0x2c7   : > { %v16369_v54 = vadd.f32 %v14243_v47, %v14219_v53  ;;  %v15538_v47 = vld [vmem:[%s19097_s4 + $0xa8] sm:$0xff]   ;;  %v15543_v53 = vld [vmem:[%s19097_s4 + $0xd0] sm:$0xff]  }
 0x2c8   : > { %v1031_v55 = vpop.f32.mrf.mxu0 }
 0x2c9   : > { %v16371_v57 = vadd.f32 %v1192_v52, %v1031_v55  ;;  %v15542_v52 = vld [vmem:[%s19097_s4 + $0xb0] sm:$0xff]  }
 0x2ca   : > { %v14220_v58 = vpop.f32.mrf.mxu0  ;;  %v15551_v55 = vld [vmem:[%s19096_s3 + $0xb0] sm:$0xff]  }
 0x2cb   : > { %v16373_v59 = vadd.f32 %v14244_v56, %v14220_v58  ;;  %v15554_v56 = vld [vmem:[%s19096_s3 + $0xa8] sm:$0xff]   ;;  %v15544_v58 = vld [vmem:[%s19097_s4 + $0xb8] sm:$0xff]  }
 0x2cc   : > { %v16375_v60 = vpop.f32.mrf.mxu0 }
 0x2ce   : > { %v14255_v61 = vpop.f32.mrf.mxu0 }
 0x2d0   : > { %v1274_v62 = vpop.f32.mrf.mxu0 }
 0x2d2   : > { %v14256_v63 = vpop.f32.mrf.mxu0 }
 0x2d3   : > { %v1306_v12 = vpack.c.bf16 %v14256_v63, %v14255_v61  ;;  %v15545_v61 = vld [vmem:[%s19097_s4 + $0xd8] sm:$0xff]   ;;  %v15555_v63 = vld [vmem:[%s19096_s3 + $0xa0] sm:$0xff]  }
 0x2d4   : > { %v1277_v0 = vpop.f32.mrf.mxu0 }
 0x2d5   : > { %v1305_v15 = vpack.c.bf16 %v1277_v0, %v1274_v62  ;;  %v15548_v62 = vld [vmem:[%s19097_s4 + $0xe0] sm:$0xff]   ;;  %v15549_v0 = vld [vmem:[%s19097_s4 + $0xe8] sm:$0xff]  }
 0x2d6   : > { %v14259_v2 = vpop.f32.mrf.mxu0 }
 0x2d8   : > { %v1290_v3 = vpop.f32.mrf.mxu0 }
 0x2da   : > { %v14260_v4 = vpop.f32.mrf.mxu0 }
 0x2db   : > { %v1308_v5 = vpack.c.bf16 %v14260_v4, %v14259_v2  ;;  %v15552_v2 = vld [vmem:[%s19097_s4 + $0xf0] sm:$0xff]   ;;  %v15556_v4 = vld [vmem:[%s19097_s4 + $0x100] sm:$0xff]  }
 0x2dc   : > { %v1293_v6 = vpop.f32.mrf.mxu0 }
 0x2dd   : > { %v1307_v7 = vpack.c.bf16 %v1293_v6, %v1290_v3  ;;  %14261 = vmatprep.subr.bf16.mxu1 %v1308_v5  ;;  %v15553_v3 = vld [vmem:[%s19097_s4 + $0xf8] sm:$0xff]   ;;  %v16481_v6 = vpop.f32.mrf.mxu1 }
 0x2de   : > { %14262 = vmatpush3.bf16.msra.mxu1 %v1308_v5  ;;  %v14295_v8 = vpop.f32.mrf.mxu0  ;;  %v15561_v5 = vld [vmem:[%s19097_s4 + $0x140] sm:$0xff]  }
 0x2df   : > { %14263 = vmatprep.subr.bf16.mxu1 %v1307_v7 }
 0x2e0   : > { %v1570_v10 = vpop.f32.mrf.mxu0 }
 0x2e2   : > { %14264 = vmatpush3.bf16.msra.mxu1 %v1307_v7  ;;  %v14296_v13 = vpop.f32.mrf.mxu0 }
 0x2e3   : > { %14265 = vmatprep.subr.bf16.mxu1 %v1306_v12  ;;  %v1602_v35 = vpack.c.bf16 %v14296_v13, %v14295_v8 }
 0x2e4   : > { %v1573_v14 = vpop.f32.mrf.mxu0 }
 0x2e5   : > { %v1601_v44 = vpack.c.bf16 %v1573_v14, %v1570_v10 }
 0x2e6   : > { %14266 = vmatpush3.bf16.msra.mxu1 %v1306_v12  ;;  %v14299_v16 = vpop.f32.mrf.mxu0 }
 0x2e7   : > { %14267 = vmatprep.subr.bf16.mxu1 %v1305_v15 }
 0x2e8   : > { %v1586_v18 = vpop.f32.mrf.mxu0 }
 0x2ea   : > { %14268 = vmatpush3.bf16.msra.mxu1 %v1305_v15  ;;  %v14300_v21 = vpop.f32.mrf.mxu0 }
 0x2eb   : > { %v1604_v26 = vpack.c.bf16 %v14300_v21, %v14299_v16  ;;  %14325 = vmatprep.subr.bf16.mxu1 %v15540_v17 }
 0x2ec   : > { %v1589_v28 = vpop.f32.mrf.mxu0 }
 0x2ed   : > { %v1603_v31 = vpack.c.bf16 %v1589_v28, %v1586_v18  ;;  %14270 = vmatmul.mubr.msk.bf16.vlgmr.msra.gmra.mxu1 %vm668_vm0, %v15533_v20  ;;  %14301 = vmatprep.subr.bf16.mxu0 %v1604_v26 }
 0x2ee   : > { %14302 = vmatpush3.bf16.msra.mxu0 %v1604_v26  ;;  %14273 = vmatprep.mubr.msk.bf16.mxu1 %vm668_vm0, %v15534_v22 }
 0x2ef   : > { %14303 = vmatprep.subr.bf16.mxu0 %v1603_v31  ;;  %14326 = vmatpush3.bf16.msra.mxu1 %v15540_v17 }
 0x2f0   : > { %14327 = vmatprep.subr.bf16.mxu1 %v15541_v29 }
 0x2f2   : > { %14304 = vmatpush3.bf16.msra.mxu0 %v1603_v31 }
 0x2f3   : > { %14305 = vmatprep.subr.bf16.mxu0 %v1602_v35  ;;  %14328 = vmatpush3.bf16.msra.mxu1 %v15541_v29 }
 0x2f4   : > { %14329 = vmatprep.subr.bf16.mxu1 %v15546_v34 }
 0x2f5   : > { %14274 = vmatmul.mubr.msk.bf16.gmra.mxu1 %vm668_vm0, %v15535_v37 }
 0x2f6   : > { %14306 = vmatpush3.bf16.msra.mxu0 %v1602_v35  ;;  %14277 = vmatprep.mubr.msk.bf16.mxu1 %vm668_vm0, %v15536_v38 }
 0x2f7   : > { %14307 = vmatprep.subr.bf16.mxu0 %v1601_v44  ;;  %14330 = vmatpush3.bf16.msra.mxu1 %v15546_v34 }
 0x2f8   : > { %14331 = vmatprep.subr.bf16.mxu1 %v15547_v40 }
 0x2fa   : > { %14308 = vmatpush3.bf16.msra.mxu0 %v1601_v44 }
 0x2fb   : > { %14332 = vmatpush3.bf16.msra.mxu1 %v15547_v40  ;;  %14365 = vmatprep.subr.bf16.mxu0 %v15550_v46 }
 0x2fd   : > { %14278 = vmatmul.mubr.msk.bf16.gmra.mxu1 %vm668_vm0, %v15538_v47  ;;  %14310 = vmatmul.mubr.msk.bf16.vlgmr.msra.gmra.mxu0 %vm668_vm0, %v15539_v49 }
 0x2fe   : > { %14281 = vmatprep.mubr.msk.bf16.mxu1 %vm668_vm0, %v15542_v52  ;;  %14313 = vmatprep.mubr.msk.bf16.mxu0 %vm668_vm0, %v15543_v53 }
 0x2ff   : > { %14366 = vmatpush3.bf16.msra.mxu0 %v15550_v46 }
 0x300   : > { %14367 = vmatprep.subr.bf16.mxu0 %v15551_v55 }
 0x303   : > { %14368 = vmatpush3.bf16.msra.mxu0 %v15551_v55 }
 0x304   : > { %14369 = vmatprep.subr.bf16.mxu0 %v15554_v56 }
 0x305   : > { %14282 = vmatmul.mubr.msk.bf16.gmra.mxu1 %vm668_vm0, %v15544_v58  ;;  %14314 = vmatmul.mubr.msk.bf16.gmra.mxu0 %vm668_vm0, %v15545_v61 }
 0x306   : > { %14333 = vmatprep.mubr.msk.bf16.mxu1 %vm668_vm0, %v16197_v9  ;;  %14317 = vmatprep.mubr.msk.bf16.mxu0 %vm668_vm0, %v15548_v62 }
 0x307   : > { %14370 = vmatpush3.bf16.msra.mxu0 %v15554_v56 }
 0x308   : > { %14371 = vmatprep.subr.bf16.mxu0 %v15555_v63 }
 0x30b   : > { %14372 = vmatpush3.bf16.msra.mxu0 %v15555_v63 }
 0x30d   : > { %14318 = vmatmul.mubr.msk.bf16.gmra.mxu0 %vm668_vm0, %v15549_v0  ;;  %14334 = vmatmul.mubr.msk.bf16.vlgmr.msra.gmra.mxu1 %vm668_vm0, %v16199_v11 }
 0x30e   : > { %14337 = vmatprep.mubr.msk.bf16.mxu1 %vm668_vm0, %v16208_v24  ;;  %14321 = vmatprep.mubr.msk.bf16.mxu0 %vm668_vm0, %v15552_v2 }
 0x315   : > { %14322 = vmatmul.mubr.msk.bf16.gmra.mxu0 %vm668_vm0, %v15553_v3  ;;  %14338 = vmatmul.mubr.msk.bf16.gmra.mxu1 %vm668_vm0, %v16210_v25 }
 0x316   : > { %14373 = vmatprep.mubr.msk.bf16.mxu0 %vm668_vm0, %v16197_v9  ;;  %14349 = vmatprep.mubr.msk.bf16.mxu1 %vm668_vm0, %v15556_v4 }
 0x31d   : > { %14374 = vmatmul.mubr.msk.bf16.vlgmr.msra.gmra.mxu0 %vm668_vm0, %v16199_v11 }
 0x31e   : > { %14377 = vmatprep.mubr.msk.bf16.mxu0 %vm668_vm0, %v16208_v24 }
 0x325   : > { %14378 = vmatmul.mubr.msk.bf16.gmra.mxu0 %vm668_vm0, %v16210_v25 }
 0x326   : > { %14389 = vmatprep.mubr.msk.bf16.mxu0 %vm668_vm0, %v15561_v5 }
 0x3ad   : > { %v14271_v7 = vpop.f32.mrf.mxu1 }
 0x3ae   : > { %v1489_v8 = vadd.f32 %v14271_v7, %v16343_v27 }
 0x3af   : > { %v1424_v10 = vpop.f32.mrf.mxu1 }
 0x3b0   : > { %v1487_v12 = vadd.f32 %v1424_v10, %v16345_v30 }
 0x3b1   : > { %v14272_v13 = vpop.f32.mrf.mxu1 }
 0x3b2   : > { %v1490_v14 = vadd.f32 %v14272_v13, %v16347_v32 }
 0x3b3   : > { %v16486_v15 = vpop.f32.mrf.mxu1 }
 0x3b5   : > { %v14275_v16 = vpop.f32.mrf.mxu1 }
 0x3b6   : > { %v1493_v17 = vadd.f32 %v14275_v16, %v16351_v36 }
 0x3b7   : > { %v1440_v18 = vpop.f32.mrf.mxu1 }
 0x3b8   : > { %v1491_v20 = vadd.f32 %v1440_v18, %v16353_v39 }
 0x3b9   : > { %v14276_v21 = vpop.f32.mrf.mxu1 }
 0x3ba   : > { %v1494_v22 = vadd.f32 %v14276_v21, %v16355_v41 }
 0x3bb   : > { %v16491_v26 = vpop.f32.mrf.mxu1 }
 0x3bd   : > { %v14279_v27 = vpop.f32.mrf.mxu1  ;;  %v14311_v28 = vpop.f32.mrf.mxu0 }
 0x3be   : > { %v1497_v30 = vadd.f32 %v14279_v27, %v16361_v45  ;;  %v16494_v29 = vadd.f32 %v14311_v28, %v1489_v8 }
 0x3bf   : > { %v1456_v32 = vpop.f32.mrf.mxu1  ;;  %v1720_v31 = vpop.f32.mrf.mxu0 }
 0x3c0   : > { %v1495_v34 = vadd.f32 %v1456_v32, %v16363_v48  ;;  %v16497_v35 = vadd.f32 %v1720_v31, %v1487_v12 }
 0x3c1   : > { %v14280_v36 = vpop.f32.mrf.mxu1  ;;  %v14312_v37 = vpop.f32.mrf.mxu0 }
 0x3c2   : > { %v1498_v39 = vadd.f32 %v14280_v36, %v16365_v50  ;;  %v16500_v38 = vadd.f32 %v14312_v37, %v1490_v14 }
 0x3c3   : > { %v16502_v41 = vpop.f32.mrf.mxu1  ;;  %v16504_v40 = vpop.f32.mrf.mxu0 }
 0x3c5   : > { %v14283_v44 = vpop.f32.mrf.mxu1  ;;  %v14315_v45 = vpop.f32.mrf.mxu0 }
 0x3c6   : > { %v1501_v46 = vadd.f32 %v14283_v44, %v16369_v54  ;;  %v16507_v47 = vadd.f32 %v14315_v45, %v1493_v17  ;;  %v15564_v45 = vld [vmem:[%s19096_s3 + $0xd8] sm:$0xff]  }
 0x3c7   : > { %v1472_v49 = vpop.f32.mrf.mxu1  ;;  %v1736_v48 = vpop.f32.mrf.mxu0 }
 0x3c8   : > { %v1499_v52 = vadd.f32 %v1472_v49, %v16371_v57  ;;  %v16510_v53 = vadd.f32 %v1736_v48, %v1491_v20  ;;  %v15557_v49 = vld [vmem:[%s19097_s4 + $0x108] sm:$0xff]  }
 0x3c9   : > { %v14284_v55 = vpop.f32.mrf.mxu1  ;;  %v14316_v50 = vpop.f32.mrf.mxu0 }
 0x3ca   : > { %v1502_v56 = vadd.f32 %v14284_v55, %v16373_v59  ;;  %v16513_v58 = vadd.f32 %v14316_v50, %v1494_v22 }
 0x3cb   : > { %v16515_v61 = vpop.f32.mrf.mxu1  ;;  %v16517_v62 = vpop.f32.mrf.mxu0 }
 0x3cc   : > { %19108 = vst [vmem:[#allocation2_spill] sm:$0xff] %v16515_v61 }
 0x3cd   : > { %v14319_v63 = vpop.f32.mrf.mxu0  ;;  %v14335_v54 = vpop.f32.mrf.mxu1 }
 0x3ce   : > { %v16519_v0 = vadd.f32 %v14319_v63, %v1497_v30 }
 0x3cf   : > { %v1752_v2 = vpop.f32.mrf.mxu0  ;;  %v1866_v3 = vpop.f32.mrf.mxu1 }
 0x3d0   : > { %v16521_v4 = vadd.f32 %v1752_v2, %v1495_v34 }
 0x3d1   : > { %v14320_v57 = vpop.f32.mrf.mxu0  ;;  %v14336_v5 = vpop.f32.mrf.mxu1 }
 0x3d2   : > { %v16523_v7 = vadd.f32 %v14320_v57, %v1498_v39  ;;  %v1898_v34 = vpack.c.bf16 %v14336_v5, %v14335_v54  ;;  %v15570_v54 = vld [vmem:[%s19096_s3 + $0xc8] sm:$0xff]   ;;  %v15560_v57 = vld [vmem:[%s19097_s4 + $0x120] sm:$0xff]  }
 0x3d3   : > { %v16525_v8 = vpop.f32.mrf.mxu0  ;;  %v1869_v59 = vpop.f32.mrf.mxu1  ;;  %v15571_v5 = vld [vmem:[%s19096_s3 + $0xc0] sm:$0xff]  }
 0x3d4   : > { %v1897_v39 = vpack.c.bf16 %v1869_v59, %v1866_v3  ;;  %v15559_v3 = vld [vmem:[%s19097_s4 + $0x118] sm:$0xff]  }
 0x3d5   : > { %v14323_v10 = vpop.f32.mrf.mxu0  ;;  %v14339_v12 = vpop.f32.mrf.mxu1 }
 0x3d6   : > { %v16527_v13 = vadd.f32 %v14323_v10, %v1501_v46  ;;  %v15574_v10 = vld [vmem:[%s19096_s3 + $0xf8] sm:$0xff]  }
 0x3d7   : > { %v1768_v14 = vpop.f32.mrf.mxu0  ;;  %v1882_v16 = vpop.f32.mrf.mxu1 }
 0x3d8   : > { %v16529_v17 = vadd.f32 %v1768_v14, %v1499_v52  ;;  %v15558_v52 = vld [vmem:[%s19097_s4 + $0x110] sm:$0xff]   ;;  %v15563_v14 = vld [vmem:[%s19097_s4 + $0x148] sm:$0xff]  }
 0x3d9   : > { %v14324_v18 = vpop.f32.mrf.mxu0  ;;  %v14340_v20 = vpop.f32.mrf.mxu1 }
 0x3da   : > { %v16531_v21 = vadd.f32 %v14324_v18, %v1502_v56  ;;  %v1900_v22 = vpack.c.bf16 %v14340_v20, %v14339_v12  ;;  %v15565_v56 = vld [vmem:[%s19096_s3 + $0xd0] sm:$0xff]   ;;  %v15562_v12 = vld [vmem:[%s19097_s4 + $0x128] sm:$0xff]  }
 0x3db   : > { %v16533_v27 = vpop.f32.mrf.mxu0  ;;  %v1885_v28 = vpop.f32.mrf.mxu1  ;;  %v15567_v18 = vld [vmem:[%s19097_s4 + $0x150] sm:$0xff]  }
 0x3dc   : > { %19109 = vst [vmem:[#allocation3_spill] sm:$0xff] %v16533_v27  ;;  %v1899_v30 = vpack.c.bf16 %v1885_v28, %v1882_v16  ;;  %14341 = vmatprep.subr.bf16.mxu1 %v1900_v22  ;;  %v15566_v16 = vld [vmem:[%s19097_s4 + $0x130] sm:$0xff]   ;;  %v15568_v28 = vld [vmem:[%s19097_s4 + $0x138] sm:$0xff]  }
 0x3dd   : > { %14342 = vmatpush3.bf16.msra.mxu1 %v1900_v22  ;;  %v14375_v32 = vpop.f32.mrf.mxu0  ;;  %v15575_v20 = vld [vmem:[%s19096_s3 + $0xf0] sm:$0xff]   ;;  %v15578_v22 = vld [vmem:[%s19096_s3 + $0xe8] sm:$0xff]  }
 0x3de   : > { %14343 = vmatprep.subr.bf16.mxu1 %v1899_v30 }
 0x3df   : > { %v2162_v31 = vpop.f32.mrf.mxu0 }
 0x3e1   : > { %14344 = vmatpush3.bf16.msra.mxu1 %v1899_v30  ;;  %v14376_v36 = vpop.f32.mrf.mxu0  ;;  %v15569_v30 = vld [vmem:[%s19097_s4 + $0x158] sm:$0xff]  }
 0x3e2   : > { %14345 = vmatprep.subr.bf16.mxu1 %v1898_v34  ;;  %v2194_v2 = vpack.c.bf16 %v14376_v36, %v14375_v32  ;;  %v15572_v32 = vld [vmem:[%s19097_s4 + $0x160] sm:$0xff]   ;;  %v15576_v36 = vld [vmem:[%s19097_s4 + $0x170] sm:$0xff]  }
 0x3e3   : > { %v2165_v37 = vpop.f32.mrf.mxu0 }
 0x3e4   : > { %v2193_v59 = vpack.c.bf16 %v2165_v37, %v2162_v31  ;;  %v15579_v31 = vld [vmem:[%s19096_s3 + $0xe0] sm:$0xff]   ;;  %v15577_v37 = vld [vmem:[%s19097_s4 + $0x178] sm:$0xff]  }
 0x3e5   : > { %14346 = vmatpush3.bf16.msra.mxu1 %v1898_v34  ;;  %v14379_v44 = vpop.f32.mrf.mxu0  ;;  %v15573_v34 = vld [vmem:[%s19097_s4 + $0x168] sm:$0xff]  }
 0x3e6   : > { %14347 = vmatprep.subr.bf16.mxu1 %v1897_v39 }
 0x3e7   : > { %v2178_v46 = vpop.f32.mrf.mxu0 }
 0x3e9   : > { %14348 = vmatpush3.bf16.msra.mxu1 %v1897_v39  ;;  %v14380_v48 = vpop.f32.mrf.mxu0  ;;  %v15580_v39 = vld [vmem:[%s19097_s4 + $0x180] sm:$0xff]  }
 0x3ea   : > { %v2196_v55 = vpack.c.bf16 %v14380_v48, %v14379_v44  ;;  %14405 = vmatprep.subr.bf16.mxu1 %v15564_v45  ;;  %v15585_v44 = vld [vmem:[%s19097_s4 + $0x1c0] sm:$0xff]  }
 0x3eb   : > { %v2181_v50 = vpop.f32.mrf.mxu0 }
 0x3ec   : > { %v2195_v63 = vpack.c.bf16 %v2181_v50, %v2178_v46  ;;  %14350 = vmatmul.mubr.msk.bf16.vlgmr.msra.gmra.mxu1 %vm668_vm0, %v15557_v49  ;;  %14381 = vmatprep.subr.bf16.mxu0 %v2196_v55 }
 0x3ed   : > { %14382 = vmatpush3.bf16.msra.mxu0 %v2196_v55  ;;  %14353 = vmatprep.mubr.msk.bf16.mxu1 %vm668_vm0, %v15558_v52 }
 0x3ee   : > { %14383 = vmatprep.subr.bf16.mxu0 %v2195_v63  ;;  %14406 = vmatpush3.bf16.msra.mxu1 %v15564_v45 }
 0x3ef   : > { %14407 = vmatprep.subr.bf16.mxu1 %v15565_v56 }
 0x3f1   : > { %14384 = vmatpush3.bf16.msra.mxu0 %v2195_v63 }
 0x3f2   : > { %14385 = vmatprep.subr.bf16.mxu0 %v2194_v2  ;;  %14408 = vmatpush3.bf16.msra.mxu1 %v15565_v56 }
 0x3f3   : > { %14409 = vmatprep.subr.bf16.mxu1 %v15570_v54 }
 0x3f4   : > { %14354 = vmatmul.mubr.msk.bf16.gmra.mxu1 %vm668_vm0, %v15559_v3 }
 0x3f5   : > { %14386 = vmatpush3.bf16.msra.mxu0 %v2194_v2  ;;  %14357 = vmatprep.mubr.msk.bf16.mxu1 %vm668_vm0, %v15560_v57 }
 0x3f6   : > { %14387 = vmatprep.subr.bf16.mxu0 %v2193_v59  ;;  %14410 = vmatpush3.bf16.msra.mxu1 %v15570_v54 }
 0x3f7   : > { %14411 = vmatprep.subr.bf16.mxu1 %v15571_v5 }
 0x3f9   : > { %14388 = vmatpush3.bf16.msra.mxu0 %v2193_v59 }
 0x3fa   : > { %14412 = vmatpush3.bf16.msra.mxu1 %v15571_v5  ;;  %14445 = vmatprep.subr.bf16.mxu0 %v15574_v10 }
 0x3fc   : > { %14358 = vmatmul.mubr.msk.bf16.gmra.mxu1 %vm668_vm0, %v15562_v12  ;;  %14390 = vmatmul.mubr.msk.bf16.vlgmr.msra.gmra.mxu0 %vm668_vm0, %v15563_v14 }
 0x3fd   : > { %14361 = vmatprep.mubr.msk.bf16.mxu1 %vm668_vm0, %v15566_v16  ;;  %14393 = vmatprep.mubr.msk.bf16.mxu0 %vm668_vm0, %v15567_v18 }
 0x3fe   : > { %14446 = vmatpush3.bf16.msra.mxu0 %v15574_v10 }
 0x3ff   : > { %14447 = vmatprep.subr.bf16.mxu0 %v15575_v20 }
 0x402   : > { %14448 = vmatpush3.bf16.msra.mxu0 %v15575_v20 }
 0x403   : > { %14449 = vmatprep.subr.bf16.mxu0 %v15578_v22 }
 0x404   : > { %14362 = vmatmul.mubr.msk.bf16.gmra.mxu1 %vm668_vm0, %v15568_v28  ;;  %14394 = vmatmul.mubr.msk.bf16.gmra.mxu0 %vm668_vm0, %v15569_v30 }
 0x405   : > { %14413 = vmatprep.mubr.msk.bf16.mxu1 %vm668_vm0, %v16197_v9  ;;  %14397 = vmatprep.mubr.msk.bf16.mxu0 %vm668_vm0, %v15572_v32 }
 0x406   : > { %14450 = vmatpush3.bf16.msra.mxu0 %v15578_v22 }
 0x407   : > { %14451 = vmatprep.subr.bf16.mxu0 %v15579_v31 }
 0x40a   : > { %14452 = vmatpush3.bf16.msra.mxu0 %v15579_v31 }
 0x40c   : > { %14398 = vmatmul.mubr.msk.bf16.gmra.mxu0 %vm668_vm0, %v15573_v34  ;;  %14414 = vmatmul.mubr.msk.bf16.vlgmr.msra.gmra.mxu1 %vm668_vm0, %v16199_v11 }
 0x40d   : > { %14417 = vmatprep.mubr.msk.bf16.mxu1 %vm668_vm0, %v16208_v24  ;;  %14401 = vmatprep.mubr.msk.bf16.mxu0 %vm668_vm0, %v15576_v36 }
 0x414   : > { %14402 = vmatmul.mubr.msk.bf16.gmra.mxu0 %vm668_vm0, %v15577_v37  ;;  %14418 = vmatmul.mubr.msk.bf16.gmra.mxu1 %vm668_vm0, %v16210_v25 }
 0x415   : > { %14453 = vmatprep.mubr.msk.bf16.mxu0 %vm668_vm0, %v16197_v9  ;;  %14429 = vmatprep.mubr.msk.bf16.mxu1 %vm668_vm0, %v15580_v39 }
 0x41c   : > { %14454 = vmatmul.mubr.msk.bf16.vlgmr.msra.gmra.mxu0 %vm668_vm0, %v16199_v11 }
 0x41d   : > { %14457 = vmatprep.mubr.msk.bf16.mxu0 %vm668_vm0, %v16208_v24 }
 0x424   : > { %14458 = vmatmul.mubr.msk.bf16.gmra.mxu0 %vm668_vm0, %v16210_v25 }
 0x425   : > { %14469 = vmatprep.mubr.msk.bf16.mxu0 %vm668_vm0, %v15585_v44 }
 0x4ac   : > { %v14351_v45 = vpop.f32.mrf.mxu1 }
 0x4ad   : > { %v2081_v46 = vadd.f32 %v14351_v45, %v16494_v29 }
 0x4ae   : > { %v2016_v49 = vpop.f32.mrf.mxu1 }
 0x4af   : > { %v2079_v48 = vadd.f32 %v2016_v49, %v16497_v35 }
 0x4b0   : > { %v14352_v52 = vpop.f32.mrf.mxu1 }
 0x4b1   : > { %v2082_v55 = vadd.f32 %v14352_v52, %v16500_v38 }
 0x4b2   : > { %v16642_v50 = vpop.f32.mrf.mxu1 }
 0x4b4   : > { %v14355_v56 = vpop.f32.mrf.mxu1 }
 0x4b5   : > { %v2085_v63 = vadd.f32 %v14355_v56, %v16507_v47 }
 0x4b6   : > { %v2032_v54 = vpop.f32.mrf.mxu1 }
 0x4b7   : > { %v2083_v2 = vadd.f32 %v2032_v54, %v16510_v53 }
 0x4b8   : > { %v14356_v3 = vpop.f32.mrf.mxu1 }
 0x4b9   : > { %v2086_v57 = vadd.f32 %v14356_v3, %v16513_v58 }
 0x4ba   : > { %v16647_v5 = vpop.f32.mrf.mxu1 }
 0x4bc   : > { %v14359_v29 = vpop.f32.mrf.mxu1  ;;  %v14391_v59 = vpop.f32.mrf.mxu0 }
 0x4bd   : > { %v2089_v35 = vadd.f32 %v14359_v29, %v16519_v0  ;;  %v16650_v10 = vadd.f32 %v14391_v59, %v2081_v46 }
 0x4be   : > { %v2048_v38 = vpop.f32.mrf.mxu1  ;;  %v2312_v12 = vpop.f32.mrf.mxu0 }
 0x4bf   : > { %v2087_v14 = vadd.f32 %v2048_v38, %v16521_v4  ;;  %v16653_v16 = vadd.f32 %v2312_v12, %v2079_v48 }
 0x4c0   : > { %v14360_v47 = vpop.f32.mrf.mxu1  ;;  %v14392_v18 = vpop.f32.mrf.mxu0 }
 0x4c1   : > { %v2090_v53 = vadd.f32 %v14360_v47, %v16523_v7  ;;  %v16656_v20 = vadd.f32 %v14392_v18, %v2082_v55 }
 0x4c2   : > { %v16658_v58 = vpop.f32.mrf.mxu1  ;;  %v16660_v22 = vpop.f32.mrf.mxu0 }
 0x4c4   : > { %v14363_v28 = vpop.f32.mrf.mxu1  ;;  %v14395_v0 = vpop.f32.mrf.mxu0 }
 0x4c5   : > { %v2093_v30 = vadd.f32 %v14363_v28, %v16527_v13  ;;  %v16663_v32 = vadd.f32 %v14395_v0, %v2085_v63 }
 0x4c6   : > { %v2064_v31 = vpop.f32.mrf.mxu1  ;;  %v2328_v4 = vpop.f32.mrf.mxu0 }
 0x4c7   : > { %v2091_v34 = vadd.f32 %v2064_v31, %v16529_v17  ;;  %v16666_v36 = vadd.f32 %v2328_v4, %v2083_v2 }
 0x4c8   : > { %v14364_v37 = vpop.f32.mrf.mxu1  ;;  %v14396_v7 = vpop.f32.mrf.mxu0 }
 0x4c9   : > { %v2094_v39 = vadd.f32 %v14364_v37, %v16531_v21  ;;  %v16669_v44 = vadd.f32 %v14396_v7, %v2086_v57 }
 0x4ca   : > { %v16671_v45 = vpop.f32.mrf.mxu1  ;;  %v16673_v46 = vpop.f32.mrf.mxu0 }
 0x4cb   : > { %19110 = vst [vmem:[#allocation4_spill] sm:$0xff] %v16671_v45 }
 0x4cc   : > { %v14399_v49 = vpop.f32.mrf.mxu0  ;;  %v14415_v13 = vpop.f32.mrf.mxu1 }
 0x4cd   : > { %v16675_v48 = vadd.f32 %v14399_v49, %v2089_v35 }
 0x4ce   : > { %v2344_v52 = vpop.f32.mrf.mxu0  ;;  %v2458_v55 = vpop.f32.mrf.mxu1 }
 0x4cf   : > { %v16677_v56 = vadd.f32 %v2344_v52, %v2087_v14 }
 0x4d0   : > { %v14400_v17 = vpop.f32.mrf.mxu0  ;;  %v14416_v63 = vpop.f32.mrf.mxu1 }
 0x4d1   : > { %v16679_v54 = vadd.f32 %v14400_v17, %v2090_v53  ;;  %v15581_v17 = vld [vmem:[%s19097_s4 + $0x188] sm:$0xff]  }
 0x4d2   : > { %v16681_v2 = vpop.f32.mrf.mxu0  ;;  %v2461_v21 = vpop.f32.mrf.mxu1 }
 0x4d3   : > { %19111 = vst [vmem:[#allocation5_spill] sm:$0xff] %v16681_v2  ;;  %v2489_v7 = vpack.c.bf16 %v2461_v21, %v2458_v55  ;;  %v15589_v21 = vld [vmem:[%s19096_s3 + $0x110] sm:$0xff]  }
 0x4d4   : > { %v14403_v3 = vpop.f32.mrf.mxu0  ;;  %v14419_v57 = vpop.f32.mrf.mxu1 }
 0x4d5   : > { %v16683_v29 = vadd.f32 %v14403_v3, %v2093_v30  ;;  %v2490_v30 = vpack.c.bf16 %v14416_v63, %v14415_v13  ;;  %v15582_v13 = vld [vmem:[%s19097_s4 + $0x190] sm:$0xff]  }
 0x4d6   : > { %v2360_v59 = vpop.f32.mrf.mxu0  ;;  %v2474_v38 = vpop.f32.mrf.mxu1 }
 0x4d7   : > { %v16685_v12 = vadd.f32 %v2360_v59, %v2091_v34  ;;  %v15594_v59 = vld [vmem:[%s19096_s3 + $0x108] sm:$0xff]  }
 0x4d8   : > { %v14404_v35 = vpop.f32.mrf.mxu0  ;;  %v14420_v47 = vpop.f32.mrf.mxu1 }
 0x4d9   : > { %v16687_v18 = vadd.f32 %v14404_v35, %v2094_v39  ;;  %v2492_v14 = vpack.c.bf16 %v14420_v47, %v14419_v57  ;;  %v15588_v39 = vld [vmem:[%s19096_s3 + $0x118] sm:$0xff]   ;;  %v15584_v47 = vld [vmem:[%s19097_s4 + $0x1a0] sm:$0xff]  }
 0x4da   : > { %v16689_v28 = vpop.f32.mrf.mxu0  ;;  %v2477_v53 = vpop.f32.mrf.mxu1  ;;  %v15583_v35 = vld [vmem:[%s19097_s4 + $0x198] sm:$0xff]  }
 0x4db   : > { %19112 = vst [vmem:[#allocation6_spill] sm:$0xff] %v16689_v28  ;;  %v2491_v0 = vpack.c.bf16 %v2477_v53, %v2474_v38  ;;  %14421 = vmatprep.subr.bf16.mxu1 %v2492_v14 }
 0x4dc   : > { %14422 = vmatpush3.bf16.msra.mxu1 %v2492_v14  ;;  %v14455_v31 = vpop.f32.mrf.mxu0  ;;  %v15595_v14 = vld [vmem:[%s19096_s3 + $0x100] sm:$0xff]  }
 0x4dd   : > { %14423 = vmatprep.subr.bf16.mxu1 %v2491_v0 }
 0x4de   : > { %v2754_v4 = vpop.f32.mrf.mxu0 }
 0x4e0   : > { %14424 = vmatpush3.bf16.msra.mxu1 %v2491_v0  ;;  %v14456_v37 = vpop.f32.mrf.mxu0  ;;  %v15598_v0 = vld [vmem:[%s19096_s3 + $0x138] sm:$0xff]  }
 0x4e1   : > { %14425 = vmatprep.subr.bf16.mxu1 %v2490_v30  ;;  %v2786_v38 = vpack.c.bf16 %v14456_v37, %v14455_v31  ;;  %v15586_v31 = vld [vmem:[%s19097_s4 + $0x1a8] sm:$0xff]   ;;  %v15591_v37 = vld [vmem:[%s19097_s4 + $0x1d0] sm:$0xff]  }
 0x4e2   : > { %v2757_v34 = vpop.f32.mrf.mxu0 }
 0x4e3   : > { %v2785_v53 = vpack.c.bf16 %v2757_v34, %v2754_v4  ;;  %v15587_v4 = vld [vmem:[%s19097_s4 + $0x1c8] sm:$0xff]   ;;  %v15599_v34 = vld [vmem:[%s19096_s3 + $0x130] sm:$0xff]  }
 0x4e4   : > { %14426 = vmatpush3.bf16.msra.mxu1 %v2490_v30  ;;  %v14459_v49 = vpop.f32.mrf.mxu0  ;;  %v15590_v30 = vld [vmem:[%s19097_s4 + $0x1b0] sm:$0xff]  }
 0x4e5   : > { %14427 = vmatprep.subr.bf16.mxu1 %v2489_v7 }
 0x4e6   : > { %v2770_v52 = vpop.f32.mrf.mxu0 }
 0x4e8   : > { %14428 = vmatpush3.bf16.msra.mxu1 %v2489_v7  ;;  %v14460_v3 = vpop.f32.mrf.mxu0  ;;  %v15602_v7 = vld [vmem:[%s19096_s3 + $0x128] sm:$0xff]  }
 0x4e9   : > { %v2788_v63 = vpack.c.bf16 %v14460_v3, %v14459_v49  ;;  %14485 = vmatprep.subr.bf16.mxu1 %v15588_v39  ;;  %v15592_v49 = vld [vmem:[%s19097_s4 + $0x1b8] sm:$0xff]   ;;  %v15597_v3 = vld [vmem:[%s19097_s4 + $0x1e8] sm:$0xff]  }
 0x4ea   : > { %v2773_v55 = vpop.f32.mrf.mxu0 }
 0x4eb   : > { %v2787_v57 = vpack.c.bf16 %v2773_v55, %v2770_v52  ;;  %14430 = vmatmul.mubr.msk.bf16.vlgmr.msra.gmra.mxu1 %vm668_vm0, %v15581_v17  ;;  %14461 = vmatprep.subr.bf16.mxu0 %v2788_v63  ;;  %v15596_v52 = vld [vmem:[%s19097_s4 + $0x1e0] sm:$0xff]  }
 0x4ec   : > { %14462 = vmatpush3.bf16.msra.mxu0 %v2788_v63  ;;  %14433 = vmatprep.mubr.msk.bf16.mxu1 %vm668_vm0, %v15582_v13  ;;  %v15603_v17 = vld [vmem:[%s19096_s3 + $0x120] sm:$0xff]   ;;  %v15600_v13 = vld [vmem:[%s19097_s4 + $0x1f0] sm:$0xff]   ;;  %v15601_v63 = vld [vmem:[%s19097_s4 + $0x1f8] sm:$0xff]  }
 0x4ed   : > { %14463 = vmatprep.subr.bf16.mxu0 %v2787_v57  ;;  %14486 = vmatpush3.bf16.msra.mxu1 %v15588_v39  ;;  %v15593_v39 = vld [vmem:[%s19097_s4 + $0x1d8] sm:$0xff]   ;;  %v15604_v55 = vld [vmem:[%s19097_s4 + $0x200] sm:$0xff]  }
 0x4ee   : > { %14487 = vmatprep.subr.bf16.mxu1 %v15589_v21 }
 0x4f0   : > { %14464 = vmatpush3.bf16.msra.mxu0 %v2787_v57 }
 0x4f1   : > { %14465 = vmatprep.subr.bf16.mxu0 %v2786_v38  ;;  %14488 = vmatpush3.bf16.msra.mxu1 %v15589_v21  ;;  %v15609_v21 = vld [vmem:[%s19097_s4 + $0x240] sm:$0xff]  }
 0x4f2   : > { %14489 = vmatprep.subr.bf16.mxu1 %v15594_v59 }
 0x4f3   : > { %14434 = vmatmul.mubr.msk.bf16.gmra.mxu1 %vm668_vm0, %v15583_v35 }
 0x4f4   : > { %14466 = vmatpush3.bf16.msra.mxu0 %v2786_v38  ;;  %14437 = vmatprep.mubr.msk.bf16.mxu1 %vm668_vm0, %v15584_v47 }
 0x4f5   : > { %14467 = vmatprep.subr.bf16.mxu0 %v2785_v53  ;;  %14490 = vmatpush3.bf16.msra.mxu1 %v15594_v59 }
 0x4f6   : > { %14491 = vmatprep.subr.bf16.mxu1 %v15595_v14 }
 0x4f8   : > { %14468 = vmatpush3.bf16.msra.mxu0 %v2785_v53 }
 0x4f9   : > { %14492 = vmatpush3.bf16.msra.mxu1 %v15595_v14  ;;  %14525 = vmatprep.subr.bf16.mxu0 %v15598_v0 }
 0x4fb   : > { %14438 = vmatmul.mubr.msk.bf16.gmra.mxu1 %vm668_vm0, %v15586_v31  ;;  %14470 = vmatmul.mubr.msk.bf16.vlgmr.msra.gmra.mxu0 %vm668_vm0, %v15587_v4 }
 0x4fc   : > { %14441 = vmatprep.mubr.msk.bf16.mxu1 %vm668_vm0, %v15590_v30  ;;  %14473 = vmatprep.mubr.msk.bf16.mxu0 %vm668_vm0, %v15591_v37 }
 0x4fd   : > { %14526 = vmatpush3.bf16.msra.mxu0 %v15598_v0 }
 0x4fe   : > { %14527 = vmatprep.subr.bf16.mxu0 %v15599_v34 }
 0x501   : > { %14528 = vmatpush3.bf16.msra.mxu0 %v15599_v34 }
 0x502   : > { %14529 = vmatprep.subr.bf16.mxu0 %v15602_v7 }
 0x503   : > { %14442 = vmatmul.mubr.msk.bf16.gmra.mxu1 %vm668_vm0, %v15592_v49  ;;  %14474 = vmatmul.mubr.msk.bf16.gmra.mxu0 %vm668_vm0, %v15593_v39 }
 0x504   : > { %14493 = vmatprep.mubr.msk.bf16.mxu1 %vm668_vm0, %v16197_v9  ;;  %14477 = vmatprep.mubr.msk.bf16.mxu0 %vm668_vm0, %v15596_v52 }
 0x505   : > { %14530 = vmatpush3.bf16.msra.mxu0 %v15602_v7 }
 0x506   : > { %14531 = vmatprep.subr.bf16.mxu0 %v15603_v17 }
 0x509   : > { %14532 = vmatpush3.bf16.msra.mxu0 %v15603_v17 }
 0x50b   : > { %14478 = vmatmul.mubr.msk.bf16.gmra.mxu0 %vm668_vm0, %v15597_v3  ;;  %14494 = vmatmul.mubr.msk.bf16.vlgmr.msra.gmra.mxu1 %vm668_vm0, %v16199_v11 }
 0x50c   : > { %14497 = vmatprep.mubr.msk.bf16.mxu1 %vm668_vm0, %v16208_v24  ;;  %14481 = vmatprep.mubr.msk.bf16.mxu0 %vm668_vm0, %v15600_v13 }
 0x513   : > { %14482 = vmatmul.mubr.msk.bf16.gmra.mxu0 %vm668_vm0, %v15601_v63  ;;  %14498 = vmatmul.mubr.msk.bf16.gmra.mxu1 %vm668_vm0, %v16210_v25 }
 0x514   : > { %14533 = vmatprep.mubr.msk.bf16.mxu0 %vm668_vm0, %v16197_v9  ;;  %14509 = vmatprep.mubr.msk.bf16.mxu1 %vm668_vm0, %v15604_v55 }
 0x51b   : > { %14534 = vmatmul.mubr.msk.bf16.vlgmr.msra.gmra.mxu0 %vm668_vm0, %v16199_v11 }
 0x51c   : > { %14537 = vmatprep.mubr.msk.bf16.mxu0 %vm668_vm0, %v16208_v24 }
 0x523   : > { %14538 = vmatmul.mubr.msk.bf16.gmra.mxu0 %vm668_vm0, %v16210_v25 }
 0x524   : > { %14549 = vmatprep.mubr.msk.bf16.mxu0 %vm668_vm0, %v15609_v21 }
 0x5ab   : > { %v14431_v57 = vpop.f32.mrf.mxu1 }
 0x5ac   : > { %v2673_v59 = vadd.f32 %v14431_v57, %v16650_v10 }
 0x5ad   : > { %v2608_v38 = vpop.f32.mrf.mxu1 }
 0x5ae   : > { %v2671_v35 = vadd.f32 %v2608_v38, %v16653_v16 }
 0x5af   : > { %v14432_v47 = vpop.f32.mrf.mxu1 }
 0x5b0   : > { %v2674_v14 = vadd.f32 %v14432_v47, %v16656_v20 }
 0x5b1   : > { %v16798_v53 = vpop.f32.mrf.mxu1 }
 0x5b3   : > { %v14435_v0 = vpop.f32.mrf.mxu1 }
 0x5b4   : > { %v2677_v31 = vadd.f32 %v14435_v0, %v16663_v32 }
 0x5b5   : > { %v2624_v4 = vpop.f32.mrf.mxu1 }
 0x5b6   : > { %v2675_v30 = vadd.f32 %v2624_v4, %v16666_v36 }
 0x5b7   : > { %v14436_v37 = vpop.f32.mrf.mxu1 }
 0x5b8   : > { %v2678_v34 = vadd.f32 %v14436_v37, %v16669_v44 }
 0x5b9   : > { %v16803_v7 = vpop.f32.mrf.mxu1 }
 0x5bb   : > { %v14439_v10 = vpop.f32.mrf.mxu1  ;;  %v14471_v49 = vpop.f32.mrf.mxu0 }
 0x5bc   : > { %v2681_v16 = vadd.f32 %v14439_v10, %v16675_v48  ;;  %v16806_v39 = vadd.f32 %v14471_v49, %v2673_v59 }
 0x5bd   : > { %v2640_v20 = vpop.f32.mrf.mxu1  ;;  %v2904_v52 = vpop.f32.mrf.mxu0 }
 0x5be   : > { %v2679_v17 = vadd.f32 %v2640_v20, %v16677_v56  ;;  %v16809_v3 = vadd.f32 %v2904_v52, %v2671_v35 }
 0x5bf   : > { %v14440_v32 = vpop.f32.mrf.mxu1  ;;  %v14472_v13 = vpop.f32.mrf.mxu0 }
 0x5c0   : > { %v2682_v36 = vadd.f32 %v14440_v32, %v16679_v54  ;;  %v16812_v63 = vadd.f32 %v14472_v13, %v2674_v14 }
 0x5c1   : > { %v16814_v44 = vpop.f32.mrf.mxu1  ;;  %v16816_v55 = vpop.f32.mrf.mxu0 }
 0x5c2   : > { %19113 = vst [vmem:[#allocation7_spill] sm:$0xff] %v16814_v44 }
 0x5c3   : > { %v14443_v21 = vpop.f32.mrf.mxu1  ;;  %v14475_v48 = vpop.f32.mrf.mxu0 }
 0x5c4   : > { %v2685_v57 = vadd.f32 %v14443_v21, %v16683_v29  ;;  %v16819_v59 = vadd.f32 %v14475_v48, %v2677_v31 }
 0x5c5   : > { %v2656_v38 = vpop.f32.mrf.mxu1  ;;  %v2920_v56 = vpop.f32.mrf.mxu0 }
 0x5c6   : > { %v2683_v35 = vadd.f32 %v2656_v38, %v16685_v12  ;;  %v16822_v47 = vadd.f32 %v2920_v56, %v2675_v30 }
 0x5c7   : > { %v14444_v0 = vpop.f32.mrf.mxu1  ;;  %v14476_v54 = vpop.f32.mrf.mxu0 }
 0x5c8   : > { %v2686_v14 = vadd.f32 %v14444_v0, %v16687_v18  ;;  %v16825_v4 = vadd.f32 %v14476_v54, %v2678_v34 }
 0x5c9   : > { %v16827_v37 = vpop.f32.mrf.mxu1  ;;  %v16829_v10 = vpop.f32.mrf.mxu0 }
 0x5ca   : > { %19114 = vst [vmem:[#allocation8_spill] sm:$0xff] %v16827_v37 }
 0x5cb   : > { %v14479_v49 = vpop.f32.mrf.mxu0  ;;  %v14495_v29 = vpop.f32.mrf.mxu1 }
 0x5cc   : > { %v16831_v31 = vadd.f32 %v14479_v49, %v2681_v16 }
 0x5cd   : > { %v2936_v20 = vpop.f32.mrf.mxu0  ;;  %v3050_v52 = vpop.f32.mrf.mxu1 }
 0x5ce   : > { %v16833_v32 = vadd.f32 %v2936_v20, %v2679_v17 }
 0x5cf   : > { %v14480_v12 = vpop.f32.mrf.mxu0  ;;  %v14496_v30 = vpop.f32.mrf.mxu1 }
 0x5d0   : > { %v16835_v13 = vadd.f32 %v14480_v12, %v2682_v36 }
 0x5d1   : > { %v16837_v21 = vpop.f32.mrf.mxu0  ;;  %v3053_v18 = vpop.f32.mrf.mxu1 }
 0x5d2   : > { %19115 = vst [vmem:[#allocation9_spill] sm:$0xff] %v16837_v21 }
 0x5d3   : > { %v14483_v34 = vpop.f32.mrf.mxu0  ;;  %v14499_v48 = vpop.f32.mrf.mxu1 }
 0x5d4   : > { %v16839_v38 = vadd.f32 %v14483_v34, %v2685_v57  ;;  %v3082_v57 = vpack.c.bf16 %v14496_v30, %v14495_v29  ;;  %v15606_v29 = vld [vmem:[%s19097_s4 + $0x210] sm:$0xff]  }
 0x5d5   : > { %v2952_v56 = vpop.f32.mrf.mxu0  ;;  %v3066_v0 = vpop.f32.mrf.mxu1 }
 0x5d6   : > { %v16841_v54 = vadd.f32 %v2952_v56, %v2683_v35  ;;  %v3081_v56 = vpack.c.bf16 %v3053_v18, %v3050_v52  ;;  %v15613_v18 = vld [vmem:[%s19096_s3 + $0x150] sm:$0xff]  }
 0x5d7   : > { %v14484_v16 = vpop.f32.mrf.mxu0  ;;  %v14500_v49 = vpop.f32.mrf.mxu1 }
 0x5d8   : > { %v16843_v1 = vadd.f32 %v14484_v16, %v2686_v14  ;;  %v3084_v17 = vpack.c.bf16 %v14500_v49, %v14499_v48  ;;  %v15612_v14 = vld [vmem:[%s19096_s3 + $0x158] sm:$0xff]  }
 0x5d9   : > { %v16845_v20 = vpop.f32.mrf.mxu0  ;;  %v3069_v36 = vpop.f32.mrf.mxu1 }
 0x5da   : > { %19116 = vst [vmem:[#allocation10_spill] sm:$0xff] %v16845_v20  ;;  %v3083_v12 = vpack.c.bf16 %v3069_v36, %v3066_v0  ;;  %14501 = vmatprep.subr.bf16.mxu1 %v3084_v17  ;;  %v15605_v0 = vld [vmem:[%s19097_s4 + $0x208] sm:$0xff]   ;;  %v15607_v36 = vld [vmem:[%s19097_s4 + $0x218] sm:$0xff]  }
 0x5db   : > { %14502 = vmatpush3.bf16.msra.mxu1 %v3084_v17  ;;  %v14535_v37 = vpop.f32.mrf.mxu0 }
 0x5dc   : > { %14503 = vmatprep.subr.bf16.mxu1 %v3083_v12 }
 0x5dd   : > { %v3346_v28 = vpop.f32.mrf.mxu0 }
 0x5df   : > { %14504 = vmatpush3.bf16.msra.mxu1 %v3083_v12  ;;  %v14536_v34 = vpop.f32.mrf.mxu0  ;;  %v15608_v12 = vld [vmem:[%s19097_s4 + $0x220] sm:$0xff]  }
 0x5e0   : > { %14505 = vmatprep.subr.bf16.mxu1 %v3082_v57  ;;  %v3378_v17 = vpack.c.bf16 %v14536_v34, %v14535_v37  ;;  %v15622_v37 = vld [vmem:[%s19096_s3 + $0x178] sm:$0xff]   ;;  %v15610_v34 = vld [vmem:[%s19097_s4 + $0x228] sm:$0xff]  }
 0x5e1   : > { %v3349_v35 = vpop.f32.mrf.mxu0 }
 0x5e3   : > { %14506 = vmatpush3.bf16.msra.mxu1 %v3082_v57  ;;  %v14539_v45 = vpop.f32.mrf.mxu0  ;;  %v15619_v57 = vld [vmem:[%s19096_s3 + $0x140] sm:$0xff]  }
 0x5e4   : > { %14507 = vmatprep.subr.bf16.mxu1 %v3081_v56 }
 0x5e5   : > { %v3362_v48 = vpop.f32.mrf.mxu0 }
 0x5e7   : > { %14508 = vmatpush3.bf16.msra.mxu1 %v3081_v56  ;;  %v14540_v16 = vpop.f32.mrf.mxu0  ;;  %v3377_v56 = vpack.c.bf16 %v3349_v35, %v3346_v28  ;;  %v15611_v28 = vld [vmem:[%s19097_s4 + $0x248] sm:$0xff]   ;;  %v15614_v35 = vld [vmem:[%s19097_s4 + $0x230] sm:$0xff]  }
 0x5e8   : > { %v3380_v30 = vpack.c.bf16 %v14540_v16, %v14539_v45  ;;  %14565 = vmatprep.subr.bf16.mxu1 %v15612_v14  ;;  %v15618_v45 = vld [vmem:[%s19096_s3 + $0x148] sm:$0xff]   ;;  %v15616_v16 = vld [vmem:[%s19097_s4 + $0x238] sm:$0xff]  }
 0x5e9   : > { %v3365_v52 = vpop.f32.mrf.mxu0 }
 0x5ea   : > { %v3379_v49 = vpack.c.bf16 %v3365_v52, %v3362_v48  ;;  %14510 = vmatmul.mubr.msk.bf16.vlgmr.msra.gmra.mxu1 %vm668_vm0, %v15605_v0  ;;  %14541 = vmatprep.subr.bf16.mxu0 %v3380_v30  ;;  %v15623_v48 = vld [vmem:[%s19096_s3 + $0x170] sm:$0xff]   ;;  %v15626_v0 = vld [vmem:[%s19096_s3 + $0x168] sm:$0xff]   ;;  %v15627_v52 = vld [vmem:[%s19096_s3 + $0x160] sm:$0xff]  }
 0x5eb   : > { %14542 = vmatpush3.bf16.msra.mxu0 %v3380_v30  ;;  %14513 = vmatprep.mubr.msk.bf16.mxu1 %vm668_vm0, %v15606_v29  ;;  %v15617_v29 = vld [vmem:[%s19097_s4 + $0x258] sm:$0xff]   ;;  %v15620_v30 = vld [vmem:[%s19097_s4 + $0x260] sm:$0xff]  }
 0x5ec   : > { %14543 = vmatprep.subr.bf16.mxu0 %v3379_v49  ;;  %14566 = vmatpush3.bf16.msra.mxu1 %v15612_v14  ;;  %v15615_v14 = vld [vmem:[%s19097_s4 + $0x250] sm:$0xff]  }
 0x5ed   : > { %14567 = vmatprep.subr.bf16.mxu1 %v15613_v18 }
 0x5ef   : > { %14544 = vmatpush3.bf16.msra.mxu0 %v3379_v49  ;;  %v15624_v49 = vld [vmem:[%s19097_s4 + $0x270] sm:$0xff]  }
 0x5f0   : > { %14545 = vmatprep.subr.bf16.mxu0 %v3378_v17  ;;  %14568 = vmatpush3.bf16.msra.mxu1 %v15613_v18  ;;  %v15621_v18 = vld [vmem:[%s19097_s4 + $0x268] sm:$0xff]  }
 0x5f1   : > { %14569 = vmatprep.subr.bf16.mxu1 %v15618_v45 }
 0x5f2   : > { %14514 = vmatmul.mubr.msk.bf16.gmra.mxu1 %vm668_vm0, %v15607_v36  ;;  %v15633_v36 = vld [vmem:[%s19097_s4 + $0x2c0] sm:$0xff]  }
 0x5f3   : > { %14546 = vmatpush3.bf16.msra.mxu0 %v3378_v17  ;;  %14517 = vmatprep.mubr.msk.bf16.mxu1 %vm668_vm0, %v15608_v12  ;;  %v15628_v17 = vld [vmem:[%s19097_s4 + $0x280] sm:$0xff]  }
 0x5f4   : > { %14547 = vmatprep.subr.bf16.mxu0 %v3377_v56  ;;  %14570 = vmatpush3.bf16.msra.mxu1 %v15618_v45  ;;  %v15625_v45 = vld [vmem:[%s19097_s4 + $0x278] sm:$0xff]  }
 0x5f5   : > { %14571 = vmatprep.subr.bf16.mxu1 %v15619_v57 }
 0x5f7   : > { %14548 = vmatpush3.bf16.msra.mxu0 %v3377_v56 }
 0x5f8   : > { %14572 = vmatpush3.bf16.msra.mxu1 %v15619_v57  ;;  %14605 = vmatprep.subr.bf16.mxu0 %v15622_v37 }
 0x5fa   : > { %14518 = vmatmul.mubr.msk.bf16.gmra.mxu1 %vm668_vm0, %v15610_v34  ;;  %14550 = vmatmul.mubr.msk.bf16.vlgmr.msra.gmra.mxu0 %vm668_vm0, %v15611_v28 }
 0x5fb   : > { %14521 = vmatprep.mubr.msk.bf16.mxu1 %vm668_vm0, %v15614_v35  ;;  %14553 = vmatprep.mubr.msk.bf16.mxu0 %vm668_vm0, %v15615_v14 }
 0x5fc   : > { %14606 = vmatpush3.bf16.msra.mxu0 %v15622_v37 }
 0x5fd   : > { %14607 = vmatprep.subr.bf16.mxu0 %v15623_v48 }
 0x600   : > { %14608 = vmatpush3.bf16.msra.mxu0 %v15623_v48 }
 0x601   : > { %14609 = vmatprep.subr.bf16.mxu0 %v15626_v0 }
 0x602   : > { %14522 = vmatmul.mubr.msk.bf16.gmra.mxu1 %vm668_vm0, %v15616_v16  ;;  %14554 = vmatmul.mubr.msk.bf16.gmra.mxu0 %vm668_vm0, %v15617_v29 }
 0x603   : > { %14573 = vmatprep.mubr.msk.bf16.mxu1 %vm668_vm0, %v16197_v9  ;;  %14557 = vmatprep.mubr.msk.bf16.mxu0 %vm668_vm0, %v15620_v30 }
 0x604   : > { %14610 = vmatpush3.bf16.msra.mxu0 %v15626_v0 }
 0x605   : > { %14611 = vmatprep.subr.bf16.mxu0 %v15627_v52 }
 0x608   : > { %14612 = vmatpush3.bf16.msra.mxu0 %v15627_v52 }
 0x60a   : > { %14558 = vmatmul.mubr.msk.bf16.gmra.mxu0 %vm668_vm0, %v15621_v18  ;;  %14574 = vmatmul.mubr.msk.bf16.vlgmr.msra.gmra.mxu1 %vm668_vm0, %v16199_v11 }
 0x60b   : > { %14577 = vmatprep.mubr.msk.bf16.mxu1 %vm668_vm0, %v16208_v24  ;;  %14561 = vmatprep.mubr.msk.bf16.mxu0 %vm668_vm0, %v15624_v49 }
 0x612   : > { %14562 = vmatmul.mubr.msk.bf16.gmra.mxu0 %vm668_vm0, %v15625_v45  ;;  %14578 = vmatmul.mubr.msk.bf16.gmra.mxu1 %vm668_vm0, %v16210_v25 }
 0x613   : > { %14613 = vmatprep.mubr.msk.bf16.mxu0 %vm668_vm0, %v16197_v9  ;;  %14589 = vmatprep.mubr.msk.bf16.mxu1 %vm668_vm0, %v15628_v17 }
 0x61a   : > { %14614 = vmatmul.mubr.msk.bf16.vlgmr.msra.gmra.mxu0 %vm668_vm0, %v16199_v11 }
 0x61b   : > { %14617 = vmatprep.mubr.msk.bf16.mxu0 %vm668_vm0, %v16208_v24 }
 0x622   : > { %14618 = vmatmul.mubr.msk.bf16.gmra.mxu0 %vm668_vm0, %v16210_v25 }
 0x623   : > { %14629 = vmatprep.mubr.msk.bf16.mxu0 %vm668_vm0, %v15633_v36 }
 0x6aa   : > { %v14511_v12 = vpop.f32.mrf.mxu1 }
 0x6ab   : > { %v3265_v57 = vadd.f32 %v14511_v12, %v16806_v39 }
 0x6ac   : > { %v3200_v56 = vpop.f32.mrf.mxu1 }
 0x6ad   : > { %v3263_v37 = vadd.f32 %v3200_v56, %v16809_v3 }
 0x6ae   : > { %v14512_v34 = vpop.f32.mrf.mxu1 }
 0x6af   : > { %v3266_v28 = vadd.f32 %v14512_v34, %v16812_v63 }
 0x6b0   : > { %v16954_v35 = vpop.f32.mrf.mxu1 }
 0x6b2   : > { %v14515_v14 = vpop.f32.mrf.mxu1 }
 0x6b3   : > { %v3269_v48 = vadd.f32 %v14515_v14, %v16819_v59 }
 0x6b4   : > { %v3216_v0 = vpop.f32.mrf.mxu1 }
 0x6b5   : > { %v3267_v16 = vadd.f32 %v3216_v0, %v16822_v47 }
 0x6b6   : > { %v14516_v29 = vpop.f32.mrf.mxu1 }
 0x6b7   : > { %v3270_v30 = vadd.f32 %v14516_v29, %v16825_v4 }
 0x6b8   : > { %v16959_v52 = vpop.f32.mrf.mxu1 }
 0x6ba   : > { %v14519_v39 = vpop.f32.mrf.mxu1  ;;  %v14551_v18 = vpop.f32.mrf.mxu0 }
 0x6bb   : > { %v3273_v3 = vadd.f32 %v14519_v39, %v16831_v31  ;;  %v16962_v49 = vadd.f32 %v14551_v18, %v3265_v57 }
 0x6bc   : > { %v3232_v63 = vpop.f32.mrf.mxu1  ;;  %v3496_v45 = vpop.f32.mrf.mxu0 }
 0x6bd   : > { %v3271_v17 = vadd.f32 %v3232_v63, %v16833_v32  ;;  %v16965_v36 = vadd.f32 %v3496_v45, %v3263_v37 }
 0x6be   : > { %v14520_v59 = vpop.f32.mrf.mxu1  ;;  %v14552_v12 = vpop.f32.mrf.mxu0 }
 0x6bf   : > { %v3274_v47 = vadd.f32 %v14520_v59, %v16835_v13  ;;  %v16968_v56 = vadd.f32 %v14552_v12, %v3266_v28 }
 0x6c0   : > { %v16970_v4 = vpop.f32.mrf.mxu1  ;;  %v16972_v34 = vpop.f32.mrf.mxu0 }
 0x6c1   : > { %19117 = vst [vmem:[#allocation11_spill] sm:$0xff] %v16970_v4 }
 0x6c2   : > { %v14523_v14 = vpop.f32.mrf.mxu1  ;;  %v14555_v31 = vpop.f32.mrf.mxu0 }
 0x6c3   : > { %v3277_v57 = vadd.f32 %v14523_v14, %v16839_v38  ;;  %v16975_v0 = vadd.f32 %v14555_v31, %v3269_v48 }
 0x6c4   : > { %v3248_v29 = vpop.f32.mrf.mxu1  ;;  %v3512_v32 = vpop.f32.mrf.mxu0 }
 0x6c5   : > { %v3275_v37 = vadd.f32 %v3248_v29, %v16841_v54  ;;  %v16978_v39 = vadd.f32 %v3512_v32, %v3267_v16 }
 0x6c6   : > { %v14524_v18 = vpop.f32.mrf.mxu1  ;;  %v14556_v13 = vpop.f32.mrf.mxu0 }
 0x6c7   : > { %v3278_v28 = vadd.f32 %v14524_v18, %v16843_v1  ;;  %v16981_v63 = vadd.f32 %v14556_v13, %v3270_v30 }
 0x6c8   : > { %v16983_v45 = vpop.f32.mrf.mxu1  ;;  %v16985_v59 = vpop.f32.mrf.mxu0 }
 0x6c9   : > { %19118 = vst [vmem:[#allocation12_spill] sm:$0xff] %v16983_v45  ;;  %19119 = vst [vmem:[#allocation13_spill] sm:$0xff] %v16985_v59 }
 0x6ca   : > { %v14559_v12 = vpop.f32.mrf.mxu0  ;;  %v14575_v38 = vpop.f32.mrf.mxu1 }
 0x6cb   : > { %v16987_v48 = vadd.f32 %v14559_v12, %v3273_v3 }
 0x6cc   : > { %v3528_v14 = vpop.f32.mrf.mxu0  ;;  %v3642_v31 = vpop.f32.mrf.mxu1 }
 0x6cd   : > { %v16989_v20 = vadd.f32 %v3528_v14, %v3271_v17 }
 0x6ce   : > { %v14560_v54 = vpop.f32.mrf.mxu0  ;;  %v14576_v16 = vpop.f32.mrf.mxu1 }
 0x6cf   : > { %v16991_v29 = vadd.f32 %v14560_v54, %v3274_v47 }
 0x6d0   : > { %v16993_v32 = vpop.f32.mrf.mxu0  ;;  %v3645_v1 = vpop.f32.mrf.mxu1 }
 0x6d1   : > { %19120 = vst [vmem:[#allocation14_spill] sm:$0xff] %v16993_v32 }
 0x6d2   : > { %v14563_v30 = vpop.f32.mrf.mxu0  ;;  %v14579_v18 = vpop.f32.mrf.mxu1 }
 0x6d3   : > { %v16995_v13 = vadd.f32 %v14563_v30, %v3277_v57  ;;  %v3674_v57 = vpack.c.bf16 %v14576_v16, %v14575_v38  ;;  %v15630_v38 = vld [vmem:[%s19097_s4 + $0x290] sm:$0xff]  }
 0x6d4   : > { %v3544_v45 = vpop.f32.mrf.mxu0  ;;  %v3658_v4 = vpop.f32.mrf.mxu1 }
 0x6d5   : > { %v16997_v21 = vadd.f32 %v3544_v45, %v3275_v37  ;;  %v3673_v45 = vpack.c.bf16 %v3645_v1, %v3642_v31  ;;  %v15637_v1 = vld [vmem:[%s19096_s3 + $0x190] sm:$0xff]  }
 0x6d6   : > { %v14564_v3 = vpop.f32.mrf.mxu0  ;;  %v14580_v12 = vpop.f32.mrf.mxu1 }
 0x6d7   : > { %v16999_v27 = vadd.f32 %v14564_v3, %v3278_v28  ;;  %v3676_v17 = vpack.c.bf16 %v14580_v12, %v14579_v18  ;;  %v15636_v28 = vld [vmem:[%s19096_s3 + $0x198] sm:$0xff]  }
 0x6d8   : > { %v17001_v14 = vpop.f32.mrf.mxu0  ;;  %v3661_v47 = vpop.f32.mrf.mxu1 }
 0x6d9   : > { %19121 = vst [vmem:[#allocation15_spill] sm:$0xff] %v17001_v14  ;;  %v3675_v54 = vpack.c.bf16 %v3661_v47, %v3658_v4  ;;  %14581 = vmatprep.subr.bf16.mxu1 %v3676_v17  ;;  %v15629_v4 = vld [vmem:[%s19097_s4 + $0x288] sm:$0xff]   ;;  %v15631_v47 = vld [vmem:[%s19097_s4 + $0x298] sm:$0xff]  }
 0x6da   : > { %14582 = vmatpush3.bf16.msra.mxu1 %v3676_v17  ;;  %v14615_v32 = vpop.f32.mrf.mxu0 }
 0x6db   : > { %14583 = vmatprep.subr.bf16.mxu1 %v3675_v54 }
 0x6dc   : > { %v3938_v44 = vpop.f32.mrf.mxu0 }
 0x6de   : > { %14584 = vmatpush3.bf16.msra.mxu1 %v3675_v54  ;;  %v14616_v30 = vpop.f32.mrf.mxu0  ;;  %v15632_v54 = vld [vmem:[%s19097_s4 + $0x2a0] sm:$0xff]  }
 0x6df   : > { %14585 = vmatprep.subr.bf16.mxu1 %v3674_v57  ;;  %v3970_v17 = vpack.c.bf16 %v14616_v30, %v14615_v32  ;;  %v15646_v32 = vld [vmem:[%s19096_s3 + $0x1b8] sm:$0xff]   ;;  %v15634_v30 = vld [vmem:[%s19097_s4 + $0x2a8] sm:$0xff]  }
 0x6e0   : > { %v3941_v37 = vpop.f32.mrf.mxu0 }
 0x6e2   : > { %14586 = vmatpush3.bf16.msra.mxu1 %v3674_v57  ;;  %v14619_v61 = vpop.f32.mrf.mxu0  ;;  %v15643_v57 = vld [vmem:[%s19096_s3 + $0x180] sm:$0xff]  }
 0x6e3   : > { %14587 = vmatprep.subr.bf16.mxu1 %v3673_v45 }
 0x6e4   : > { %v3954_v18 = vpop.f32.mrf.mxu0 }
 0x6e6   : > { %14588 = vmatpush3.bf16.msra.mxu1 %v3673_v45  ;;  %v14620_v3 = vpop.f32.mrf.mxu0  ;;  %v3969_v45 = vpack.c.bf16 %v3941_v37, %v3938_v44  ;;  %v15635_v44 = vld [vmem:[%s19097_s4 + $0x2c8] sm:$0xff]   ;;  %v15638_v37 = vld [vmem:[%s19097_s4 + $0x2b0] sm:$0xff]  }
 0x6e7   : > { %v3972_v16 = vpack.c.bf16 %v14620_v3, %v14619_v61  ;;  %14645 = vmatprep.subr.bf16.mxu1 %v15636_v28  ;;  %v15642_v61 = vld [vmem:[%s19096_s3 + $0x188] sm:$0xff]   ;;  %v15640_v3 = vld [vmem:[%s19097_s4 + $0x2b8] sm:$0xff]  }
 0x6e8   : > { %v3957_v31 = vpop.f32.mrf.mxu0 }
 0x6e9   : > { %v3971_v12 = vpack.c.bf16 %v3957_v31, %v3954_v18  ;;  %14590 = vmatmul.mubr.msk.bf16.vlgmr.msra.gmra.mxu1 %vm668_vm0, %v15629_v4  ;;  %14621 = vmatprep.subr.bf16.mxu0 %v3972_v16  ;;  %v15647_v18 = vld [vmem:[%s19096_s3 + $0x1b0] sm:$0xff]   ;;  %v15650_v4 = vld [vmem:[%s19096_s3 + $0x1a8] sm:$0xff]   ;;  %v15651_v31 = vld [vmem:[%s19096_s3 + $0x1a0] sm:$0xff]  }
 0x6ea   : > { %14622 = vmatpush3.bf16.msra.mxu0 %v3972_v16  ;;  %14593 = vmatprep.mubr.msk.bf16.mxu1 %vm668_vm0, %v15630_v38  ;;  %v15641_v38 = vld [vmem:[%s19097_s4 + $0x2d8] sm:$0xff]   ;;  %v15644_v16 = vld [vmem:[%s19097_s4 + $0x2e0] sm:$0xff]  }
 0x6eb   : > { %14623 = vmatprep.subr.bf16.mxu0 %v3971_v12  ;;  %14646 = vmatpush3.bf16.msra.mxu1 %v15636_v28  ;;  %v15639_v28 = vld [vmem:[%s19097_s4 + $0x2d0] sm:$0xff]  }
 0x6ec   : > { %14647 = vmatprep.subr.bf16.mxu1 %v15637_v1 }
 0x6ee   : > { %14624 = vmatpush3.bf16.msra.mxu0 %v3971_v12  ;;  %v15648_v12 = vld [vmem:[%s19097_s4 + $0x2f0] sm:$0xff]  }
 0x6ef   : > { %14625 = vmatprep.subr.bf16.mxu0 %v3970_v17  ;;  %14648 = vmatpush3.bf16.msra.mxu1 %v15637_v1  ;;  %v15645_v1 = vld [vmem:[%s19097_s4 + $0x2e8] sm:$0xff]  }
 0x6f0   : > { %14649 = vmatprep.subr.bf16.mxu1 %v15642_v61 }
 0x6f1   : > { %14594 = vmatmul.mubr.msk.bf16.gmra.mxu1 %vm668_vm0, %v15631_v47  ;;  %v15657_v47 = vld [vmem:[%s19097_s4 + $0x340] sm:$0xff]  }
 0x6f2   : > { %14626 = vmatpush3.bf16.msra.mxu0 %v3970_v17  ;;  %14597 = vmatprep.mubr.msk.bf16.mxu1 %vm668_vm0, %v15632_v54  ;;  %v15652_v17 = vld [vmem:[%s19097_s4 + $0x300] sm:$0xff]  }
 0x6f3   : > { %14627 = vmatprep.subr.bf16.mxu0 %v3969_v45  ;;  %14650 = vmatpush3.bf16.msra.mxu1 %v15642_v61  ;;  %v15649_v61 = vld [vmem:[%s19097_s4 + $0x2f8] sm:$0xff]  }
 0x6f4   : > { %14651 = vmatprep.subr.bf16.mxu1 %v15643_v57 }
 0x6f6   : > { %14628 = vmatpush3.bf16.msra.mxu0 %v3969_v45 }
 0x6f7   : > { %14652 = vmatpush3.bf16.msra.mxu1 %v15643_v57  ;;  %14685 = vmatprep.subr.bf16.mxu0 %v15646_v32 }
 0x6f9   : > { %14598 = vmatmul.mubr.msk.bf16.gmra.mxu1 %vm668_vm0, %v15634_v30  ;;  %14630 = vmatmul.mubr.msk.bf16.vlgmr.msra.gmra.mxu0 %vm668_vm0, %v15635_v44 }
 0x6fa   : > { %14601 = vmatprep.mubr.msk.bf16.mxu1 %vm668_vm0, %v15638_v37  ;;  %14633 = vmatprep.mubr.msk.bf16.mxu0 %vm668_vm0, %v15639_v28 }
 0x6fb   : > { %14686 = vmatpush3.bf16.msra.mxu0 %v15646_v32 }
 0x6fc   : > { %14687 = vmatprep.subr.bf16.mxu0 %v15647_v18 }
 0x6ff   : > { %14688 = vmatpush3.bf16.msra.mxu0 %v15647_v18 }
 0x700   : > { %14689 = vmatprep.subr.bf16.mxu0 %v15650_v4 }
 0x701   : > { %14602 = vmatmul.mubr.msk.bf16.gmra.mxu1 %vm668_vm0, %v15640_v3  ;;  %14634 = vmatmul.mubr.msk.bf16.gmra.mxu0 %vm668_vm0, %v15641_v38 }
 0x702   : > { %14653 = vmatprep.mubr.msk.bf16.mxu1 %vm668_vm0, %v16197_v9  ;;  %14637 = vmatprep.mubr.msk.bf16.mxu0 %vm668_vm0, %v15644_v16 }
 0x703   : > { %14690 = vmatpush3.bf16.msra.mxu0 %v15650_v4 }
 0x704   : > { %14691 = vmatprep.subr.bf16.mxu0 %v15651_v31 }
 0x707   : > { %14692 = vmatpush3.bf16.msra.mxu0 %v15651_v31 }
 0x709   : > { %14638 = vmatmul.mubr.msk.bf16.gmra.mxu0 %vm668_vm0, %v15645_v1  ;;  %14654 = vmatmul.mubr.msk.bf16.vlgmr.msra.gmra.mxu1 %vm668_vm0, %v16199_v11 }
 0x70a   : > { %14657 = vmatprep.mubr.msk.bf16.mxu1 %vm668_vm0, %v16208_v24  ;;  %14641 = vmatprep.mubr.msk.bf16.mxu0 %vm668_vm0, %v15648_v12 }
 0x711   : > { %14642 = vmatmul.mubr.msk.bf16.gmra.mxu0 %vm668_vm0, %v15649_v61  ;;  %14658 = vmatmul.mubr.msk.bf16.gmra.mxu1 %vm668_vm0, %v16210_v25 }
 0x712   : > { %14693 = vmatprep.mubr.msk.bf16.mxu0 %vm668_vm0, %v16197_v9  ;;  %14669 = vmatprep.mubr.msk.bf16.mxu1 %vm668_vm0, %v15652_v17 }
 0x719   : > { %14694 = vmatmul.mubr.msk.bf16.vlgmr.msra.gmra.mxu0 %vm668_vm0, %v16199_v11 }
 0x71a   : > { %14697 = vmatprep.mubr.msk.bf16.mxu0 %vm668_vm0, %v16208_v24 }
 0x721   : > { %14698 = vmatmul.mubr.msk.bf16.gmra.mxu0 %vm668_vm0, %v16210_v25 }
 0x722   : > { %14709 = vmatprep.mubr.msk.bf16.mxu0 %vm668_vm0, %v15657_v47 }
 0x7a9   : > { %v14591_v54 = vpop.f32.mrf.mxu1 }
 0x7aa   : > { %v3857_v57 = vadd.f32 %v14591_v54, %v16962_v49 }
 0x7ab   : > { %v3792_v45 = vpop.f32.mrf.mxu1 }
 0x7ac   : > { %v3855_v32 = vadd.f32 %v3792_v45, %v16965_v36 }
 0x7ad   : > { %v14592_v30 = vpop.f32.mrf.mxu1 }
 0x7ae   : > { %v3858_v44 = vadd.f32 %v14592_v30, %v16968_v56 }
 0x7af   : > { %v17110_v37 = vpop.f32.mrf.mxu1 }
 0x7b1   : > { %v14595_v28 = vpop.f32.mrf.mxu1 }
 0x7b2   : > { %v3861_v18 = vadd.f32 %v14595_v28, %v16975_v0 }
 0x7b3   : > { %v3808_v4 = vpop.f32.mrf.mxu1 }
 0x7b4   : > { %v3859_v3 = vadd.f32 %v3808_v4, %v16978_v39 }
 0x7b5   : > { %v14596_v38 = vpop.f32.mrf.mxu1 }
 0x7b6   : > { %v3862_v16 = vadd.f32 %v14596_v38, %v16981_v63 }
 0x7b7   : > { %v17115_v31 = vpop.f32.mrf.mxu1 }
 0x7b8   : > { %19122 = vst [vmem:[#allocation16_spill] sm:$0xff] %v17115_v31 }
 0x7b9   : > { %v14599_v49 = vpop.f32.mrf.mxu1  ;;  %v14631_v1 = vpop.f32.mrf.mxu0 }
 0x7ba   : > { %v3865_v36 = vadd.f32 %v14599_v49, %v16987_v48  ;;  %v17118_v12 = vadd.f32 %v14631_v1, %v3857_v57 }
 0x7bb   : > { %v3824_v56 = vpop.f32.mrf.mxu1  ;;  %v4088_v61 = vpop.f32.mrf.mxu0 }
 0x7bc   : > { %v3863_v17 = vadd.f32 %v3824_v56, %v16989_v20  ;;  %v17121_v47 = vadd.f32 %v4088_v61, %v3855_v32 }
 0x7bd   : > { %v14600_v0 = vpop.f32.mrf.mxu1  ;;  %v14632_v54 = vpop.f32.mrf.mxu0 }
 0x7be   : > { %v3866_v39 = vadd.f32 %v14600_v0, %v16991_v29  ;;  %v17124_v45 = vadd.f32 %v14632_v54, %v3858_v44 }
 0x7bf   : > { %v17126_v63 = vpop.f32.mrf.mxu1  ;;  %v17128_v30 = vpop.f32.mrf.mxu0 }
 0x7c0   : > { %19123 = vst [vmem:[#allocation17_spill] sm:$0xff] %v17126_v63 }
 0x7c1   : > { %v14603_v28 = vpop.f32.mrf.mxu1  ;;  %v14635_v48 = vpop.f32.mrf.mxu0 }
 0x7c2   : > { %v3869_v57 = vadd.f32 %v14603_v28, %v16995_v13  ;;  %v17131_v4 = vadd.f32 %v14635_v48, %v3861_v18 }
 0x7c3   : > { %v3840_v38 = vpop.f32.mrf.mxu1  ;;  %v4104_v20 = vpop.f32.mrf.mxu0 }
 0x7c4   : > { %v3867_v32 = vadd.f32 %v3840_v38, %v16997_v21  ;;  %v17134_v49 = vadd.f32 %v4104_v20, %v3859_v3 }
 0x7c5   : > { %v14604_v1 = vpop.f32.mrf.mxu1  ;;  %v14636_v29 = vpop.f32.mrf.mxu0 }
 0x7c6   : > { %v3870_v44 = vadd.f32 %v14604_v1, %v16999_v27  ;;  %v17137_v56 = vadd.f32 %v14636_v29, %v3862_v16 }
 0x7c7   : > { %v17139_v61 = vpop.f32.mrf.mxu1  ;;  %v17141_v0 = vpop.f32.mrf.mxu0 }
 0x7c8   : > { %19124 = vst [vmem:[#allocation18_spill] sm:$0xff] %v17139_v61  ;;  %19125 = vst [vmem:[#allocation19_spill] sm:$0xff] %v17141_v0 }
 0x7c9   : > { %v14639_v54 = vpop.f32.mrf.mxu0  ;;  %v14655_v13 = vpop.f32.mrf.mxu1 }
 0x7ca   : > { %v17143_v18 = vadd.f32 %v14639_v54, %v3865_v36 }
 0x7cb   : > { %v4120_v28 = vpop.f32.mrf.mxu0  ;;  %v4234_v48 = vpop.f32.mrf.mxu1 }
 0x7cc   : > { %v17145_v14 = vadd.f32 %v4120_v28, %v3863_v17 }
 0x7cd   : > { %v14640_v21 = vpop.f32.mrf.mxu0  ;;  %v14656_v3 = vpop.f32.mrf.mxu1 }
 0x7ce   : > { %v17147_v38 = vadd.f32 %v14640_v21, %v3866_v39 }
 0x7cf   : > { %v17149_v20 = vpop.f32.mrf.mxu0  ;;  %v4237_v27 = vpop.f32.mrf.mxu1 }
 0x7d0   : > { %19126 = vst [vmem:[#allocation20_spill] sm:$0xff] %v17149_v20 }
 0x7d1   : > { %v14643_v16 = vpop.f32.mrf.mxu0  ;;  %v14659_v1 = vpop.f32.mrf.mxu1 }
 0x7d2   : > { %v17151_v29 = vadd.f32 %v14643_v16, %v3869_v57  ;;  %v4266_v57 = vpack.c.bf16 %v14656_v3, %v14655_v13  ;;  %v15654_v13 = vld [vmem:[%s19097_s4 + $0x310] sm:$0xff]  }
 0x7d3   : > { %v4136_v61 = vpop.f32.mrf.mxu0  ;;  %v4250_v63 = vpop.f32.mrf.mxu1 }
 0x7d4   : > { %v17153_v0 = vadd.f32 %v4136_v61, %v3867_v32  ;;  %v4265_v61 = vpack.c.bf16 %v4237_v27, %v4234_v48  ;;  %v15661_v27 = vld [vmem:[%s19096_s3 + $0x1d0] sm:$0xff]  }
 0x7d5   : > { %v14644_v36 = vpop.f32.mrf.mxu0  ;;  %v14660_v54 = vpop.f32.mrf.mxu1 }
 0x7d6   : > { %v17155_v31 = vadd.f32 %v14644_v36, %v3870_v44  ;;  %v4268_v17 = vpack.c.bf16 %v14660_v54, %v14659_v1  ;;  %v15660_v44 = vld [vmem:[%s19096_s3 + $0x1d8] sm:$0xff]  }
 0x7d7   : > { %v17157_v28 = vpop.f32.mrf.mxu0  ;;  %v4253_v39 = vpop.f32.mrf.mxu1 }
 0x7d8   : > { %19127 = vst [vmem:[#allocation21_spill] sm:$0xff] %v17157_v28  ;;  %v4267_v21 = vpack.c.bf16 %v4253_v39, %v4250_v63  ;;  %14661 = vmatprep.subr.bf16.mxu1 %v4268_v17  ;;  %v15653_v63 = vld [vmem:[%s19097_s4 + $0x308] sm:$0xff]   ;;  %v15655_v39 = vld [vmem:[%s19097_s4 + $0x318] sm:$0xff]  }
 0x7d9   : > { %14662 = vmatpush3.bf16.msra.mxu1 %v4268_v17  ;;  %v14695_v20 = vpop.f32.mrf.mxu0 }
 0x7da   : > { %14663 = vmatprep.subr.bf16.mxu1 %v4267_v21 }
 0x7db   : > { %v4530_v59 = vpop.f32.mrf.mxu0 }
 0x7dd   : > { %14664 = vmatpush3.bf16.msra.mxu1 %v4267_v21  ;;  %v14696_v16 = vpop.f32.mrf.mxu0  ;;  %v15656_v21 = vld [vmem:[%s19097_s4 + $0x320] sm:$0xff]  }
 0x7de   : > { %14665 = vmatprep.subr.bf16.mxu1 %v4266_v57  ;;  %v4562_v17 = vpack.c.bf16 %v14696_v16, %v14695_v20  ;;  %v15670_v20 = vld [vmem:[%s19096_s3 + $0x1f8] sm:$0xff]   ;;  %v15658_v16 = vld [vmem:[%s19097_s4 + $0x328] sm:$0xff]  }
 0x7df   : > { %v4533_v32 = vpop.f32.mrf.mxu0 }
 0x7e1   : > { %14666 = vmatpush3.bf16.msra.mxu1 %v4266_v57  ;;  %v14699_v2 = vpop.f32.mrf.mxu0  ;;  %v15667_v57 = vld [vmem:[%s19096_s3 + $0x1c0] sm:$0xff]  }
 0x7e2   : > { %14667 = vmatprep.subr.bf16.mxu1 %v4265_v61 }
 0x7e3   : > { %v4546_v1 = vpop.f32.mrf.mxu0 }
 0x7e5   : > { %14668 = vmatpush3.bf16.msra.mxu1 %v4265_v61  ;;  %v14700_v36 = vpop.f32.mrf.mxu0  ;;  %v4561_v61 = vpack.c.bf16 %v4533_v32, %v4530_v59  ;;  %v15659_v59 = vld [vmem:[%s19097_s4 + $0x348] sm:$0xff]   ;;  %v15662_v32 = vld [vmem:[%s19097_s4 + $0x330] sm:$0xff]  }
 0x7e6   : > { %v4564_v3 = vpack.c.bf16 %v14700_v36, %v14699_v2  ;;  %14725 = vmatprep.subr.bf16.mxu1 %v15660_v44  ;;  %v15666_v2 = vld [vmem:[%s19096_s3 + $0x1c8] sm:$0xff]   ;;  %v15664_v36 = vld [vmem:[%s19097_s4 + $0x338] sm:$0xff]  }
 0x7e7   : > { %v4549_v48 = vpop.f32.mrf.mxu0 }
 0x7e8   : > { %v4563_v54 = vpack.c.bf16 %v4549_v48, %v4546_v1  ;;  %14670 = vmatmul.mubr.msk.bf16.vlgmr.msra.gmra.mxu1 %vm668_vm0, %v15653_v63  ;;  %14701 = vmatprep.subr.bf16.mxu0 %v4564_v3  ;;  %v15671_v1 = vld [vmem:[%s19096_s3 + $0x1f0] sm:$0xff]   ;;  %v15674_v63 = vld [vmem:[%s19096_s3 + $0x1e8] sm:$0xff]   ;;  %v15675_v48 = vld [vmem:[%s19096_s3 + $0x1e0] sm:$0xff]  }
 0x7e9   : > { %14702 = vmatpush3.bf16.msra.mxu0 %v4564_v3  ;;  %14673 = vmatprep.mubr.msk.bf16.mxu1 %vm668_vm0, %v15654_v13  ;;  %v15665_v13 = vld [vmem:[%s19097_s4 + $0x358] sm:$0xff]   ;;  %v15668_v3 = vld [vmem:[%s19097_s4 + $0x360] sm:$0xff]  }
 0x7ea   : > { %14703 = vmatprep.subr.bf16.mxu0 %v4563_v54  ;;  %14726 = vmatpush3.bf16.msra.mxu1 %v15660_v44  ;;  %v15663_v44 = vld [vmem:[%s19097_s4 + $0x350] sm:$0xff]  }
 0x7eb   : > { %14727 = vmatprep.subr.bf16.mxu1 %v15661_v27 }
 0x7ed   : > { %14704 = vmatpush3.bf16.msra.mxu0 %v4563_v54  ;;  %v15672_v54 = vld [vmem:[%s19097_s4 + $0x370] sm:$0xff]  }
 0x7ee   : > { %14705 = vmatprep.subr.bf16.mxu0 %v4562_v17  ;;  %14728 = vmatpush3.bf16.msra.mxu1 %v15661_v27  ;;  %v15669_v27 = vld [vmem:[%s19097_s4 + $0x368] sm:$0xff]  }
 0x7ef   : > { %14729 = vmatprep.subr.bf16.mxu1 %v15666_v2 }
 0x7f0   : > { %14674 = vmatmul.mubr.msk.bf16.gmra.mxu1 %vm668_vm0, %v15655_v39  ;;  %v15681_v39 = vld [vmem:[%s19097_s4 + $0x3c0] sm:$0xff]  }
 0x7f1   : > { %14706 = vmatpush3.bf16.msra.mxu0 %v4562_v17  ;;  %14677 = vmatprep.mubr.msk.bf16.mxu1 %vm668_vm0, %v15656_v21  ;;  %v15676_v17 = vld [vmem:[%s19097_s4 + $0x380] sm:$0xff]  }
 0x7f2   : > { %14707 = vmatprep.subr.bf16.mxu0 %v4561_v61  ;;  %14730 = vmatpush3.bf16.msra.mxu1 %v15666_v2  ;;  %v15673_v2 = vld [vmem:[%s19097_s4 + $0x378] sm:$0xff]  }
 0x7f3   : > { %14731 = vmatprep.subr.bf16.mxu1 %v15667_v57 }
 0x7f5   : > { %14708 = vmatpush3.bf16.msra.mxu0 %v4561_v61 }
 0x7f6   : > { %14732 = vmatpush3.bf16.msra.mxu1 %v15667_v57  ;;  %14765 = vmatprep.subr.bf16.mxu0 %v15670_v20 }
 0x7f8   : > { %14678 = vmatmul.mubr.msk.bf16.gmra.mxu1 %vm668_vm0, %v15658_v16  ;;  %14710 = vmatmul.mubr.msk.bf16.vlgmr.msra.gmra.mxu0 %vm668_vm0, %v15659_v59 }
 0x7f9   : > { %14681 = vmatprep.mubr.msk.bf16.mxu1 %vm668_vm0, %v15662_v32  ;;  %14713 = vmatprep.mubr.msk.bf16.mxu0 %vm668_vm0, %v15663_v44 }
 0x7fa   : > { %14766 = vmatpush3.bf16.msra.mxu0 %v15670_v20 }
 0x7fb   : > { %14767 = vmatprep.subr.bf16.mxu0 %v15671_v1 }
 0x7fe   : > { %14768 = vmatpush3.bf16.msra.mxu0 %v15671_v1 }
 0x7ff   : > { %14769 = vmatprep.subr.bf16.mxu0 %v15674_v63 }
 0x800   : > { %14682 = vmatmul.mubr.msk.bf16.gmra.mxu1 %vm668_vm0, %v15664_v36  ;;  %14714 = vmatmul.mubr.msk.bf16.gmra.mxu0 %vm668_vm0, %v15665_v13 }
 0x801   : > { %14733 = vmatprep.mubr.msk.bf16.mxu1 %vm668_vm0, %v16197_v9  ;;  %14717 = vmatprep.mubr.msk.bf16.mxu0 %vm668_vm0, %v15668_v3 }
 0x802   : > { %14770 = vmatpush3.bf16.msra.mxu0 %v15674_v63 }
 0x803   : > { %14771 = vmatprep.subr.bf16.mxu0 %v15675_v48 }
 0x806   : > { %14772 = vmatpush3.bf16.msra.mxu0 %v15675_v48 }
 0x808   : > { %14718 = vmatmul.mubr.msk.bf16.gmra.mxu0 %vm668_vm0, %v15669_v27  ;;  %14734 = vmatmul.mubr.msk.bf16.vlgmr.msra.gmra.mxu1 %vm668_vm0, %v16199_v11 }
 0x809   : > { %14737 = vmatprep.mubr.msk.bf16.mxu1 %vm668_vm0, %v16208_v24  ;;  %14721 = vmatprep.mubr.msk.bf16.mxu0 %vm668_vm0, %v15672_v54 }
 0x810   : > { %14722 = vmatmul.mubr.msk.bf16.gmra.mxu0 %vm668_vm0, %v15673_v2  ;;  %14738 = vmatmul.mubr.msk.bf16.gmra.mxu1 %vm668_vm0, %v16210_v25 }
 0x811   : > { %14773 = vmatprep.mubr.msk.bf16.mxu0 %vm668_vm0, %v16197_v9  ;;  %14749 = vmatprep.mubr.msk.bf16.mxu1 %vm668_vm0, %v15676_v17 }
 0x818   : > { %14774 = vmatmul.mubr.msk.bf16.vlgmr.msra.gmra.mxu0 %vm668_vm0, %v16199_v11 }
 0x819   : > { %14777 = vmatprep.mubr.msk.bf16.mxu0 %vm668_vm0, %v16208_v24 }
 0x820   : > { %14778 = vmatmul.mubr.msk.bf16.gmra.mxu0 %vm668_vm0, %v16210_v25 }
 0x821   : > { %14789 = vmatprep.mubr.msk.bf16.mxu0 %vm668_vm0, %v15681_v39 }
 0x8a8   : > { %v14671_v9 = vpop.f32.mrf.mxu1 }
 0x8a9   : > { %v4449_v11 = vadd.f32 %v14671_v9, %v17118_v12 }
 0x8aa   : > { %v4384_v21 = vpop.f32.mrf.mxu1 }
 0x8ab   : > { %v4447_v24 = vadd.f32 %v4384_v21, %v17121_v47 }
 0x8ac   : > { %v14672_v57 = vpop.f32.mrf.mxu1 }
 0x8ad   : > { %v4450_v25 = vadd.f32 %v14672_v57, %v17124_v45 }
 0x8ae   : > { %v17266_v61 = vpop.f32.mrf.mxu1 }
 0x8b0   : > { %v14675_v20 = vpop.f32.mrf.mxu1 }
 0x8b1   : > { %v4453_v16 = vadd.f32 %v14675_v20, %v17131_v4 }
 0x8b2   : > { %v4400_v59 = vpop.f32.mrf.mxu1 }
 0x8b3   : > { %v4451_v32 = vadd.f32 %v4400_v59, %v17134_v49 }
 0x8b4   : > { %v14676_v44 = vpop.f32.mrf.mxu1 }
 0x8b5   : > { %v4454_v1 = vadd.f32 %v14676_v44, %v17137_v56 }
 0x8b6   : > { %v17271_v63 = vpop.f32.mrf.mxu1 }
 0x8b8   : > { %v14679_v12 = vpop.f32.mrf.mxu1  ;;  %v14711_v36 = vpop.f32.mrf.mxu0 }
 0x8b9   : > { %v4457_v47 = vadd.f32 %v14679_v12, %v17143_v18  ;;  %v17274_v13 = vadd.f32 %v14711_v36, %v4449_v11 }
 0x8ba   : > { %v4416_v45 = vpop.f32.mrf.mxu1  ;;  %v4680_v3 = vpop.f32.mrf.mxu0 }
 0x8bb   : > { %v4455_v48 = vadd.f32 %v4416_v45, %v17145_v14  ;;  %v17277_v27 = vadd.f32 %v4680_v3, %v4447_v24 }
 0x8bc   : > { %v14680_v4 = vpop.f32.mrf.mxu1  ;;  %v14712_v54 = vpop.f32.mrf.mxu0 }
 0x8bd   : > { %v4458_v49 = vadd.f32 %v14680_v4, %v17147_v38  ;;  %v17280_v2 = vadd.f32 %v14712_v54, %v4450_v25 }
 0x8be   : > { %v17282_v56 = vpop.f32.mrf.mxu1  ;;  %v17284_v17 = vpop.f32.mrf.mxu0 }
 0x8c0   : > { %v14683_v39 = vpop.f32.mrf.mxu1  ;;  %v14715_v18 = vpop.f32.mrf.mxu0 }
 0x8c1   : > { %v4461_v9 = vadd.f32 %v14683_v39, %v17151_v29  ;;  %v17287_v11 = vadd.f32 %v14715_v18, %v4453_v16 }
 0x8c2   : > { %v4432_v21 = vpop.f32.mrf.mxu1  ;;  %v4696_v14 = vpop.f32.mrf.mxu0 }
 0x8c3   : > { %v4459_v24 = vadd.f32 %v4432_v21, %v17153_v0  ;;  %v17290_v57 = vadd.f32 %v4696_v14, %v4451_v32 }
 0x8c4   : > { %v14684_v20 = vpop.f32.mrf.mxu1  ;;  %v14716_v38 = vpop.f32.mrf.mxu0 }
 0x8c5   : > { %v4462_v25 = vadd.f32 %v14684_v20, %v17155_v31  ;;  %v17293_v59 = vadd.f32 %v14716_v38, %v4454_v1 }
 0x8c6   : > { %v17295_v44 = vpop.f32.mrf.mxu1  ;;  %v17297_v12 = vpop.f32.mrf.mxu0 }
 0x8c7   : > { %19128 = vst [vmem:[#allocation22_spill] sm:$0xff] %v17295_v44 }
 0x8c8   : > { %v14719_v36 = vpop.f32.mrf.mxu0  ;;  %v14735_v29 = vpop.f32.mrf.mxu1 }
 0x8c9   : > { %v17299_v16 = vadd.f32 %v14719_v36, %v4457_v47 }
 0x8ca   : > { %v4712_v45 = vpop.f32.mrf.mxu0  ;;  %v4826_v3 = vpop.f32.mrf.mxu1 }
 0x8cb   : > { %v17301_v4 = vadd.f32 %v4712_v45, %v4455_v48 }
 0x8cc   : > { %v14720_v0 = vpop.f32.mrf.mxu0  ;;  %v14736_v32 = vpop.f32.mrf.mxu1 }
 0x8cd   : > { %v17303_v54 = vadd.f32 %v14720_v0, %v4458_v49 }
 0x8ce   : > { %v17305_v39 = vpop.f32.mrf.mxu0  ;;  %v4829_v31 = vpop.f32.mrf.mxu1 }
 0x8cf   : > { %19129 = vst [vmem:[#allocation23_spill] sm:$0xff] %v17303_v54 }
 0x8d0   : > { %v14723_v1 = vpop.f32.mrf.mxu0  ;;  %v14739_v18 = vpop.f32.mrf.mxu1 }
 0x8d1   : > { %v17307_v21 = vadd.f32 %v14723_v1, %v4461_v9  ;;  %v4858_v9 = vpack.c.bf16 %v14736_v32, %v14735_v29 }
 0x8d2   : > { %v4728_v14 = vpop.f32.mrf.mxu0  ;;  %v4842_v20 = vpop.f32.mrf.mxu1 }
 0x8d3   : > { %v17309_v38 = vadd.f32 %v4728_v14, %v4459_v24  ;;  %v4857_v14 = vpack.c.bf16 %v4829_v31, %v4826_v3  ;;  %v15679_v31 = vld [vmem:[%s19097_s4 + $0x398] sm:$0xff]  }
 0x8d4   : > { %v14724_v47 = vpop.f32.mrf.mxu0  ;;  %v14740_v36 = vpop.f32.mrf.mxu1 }
 0x8d5   : > { %19130 = vst [vmem:[#allocation24_spill] sm:$0xff] %v17309_v38  ;;  %v17311_v44 = vadd.f32 %v14724_v47, %v4462_v25  ;;  %v4860_v48 = vpack.c.bf16 %v14740_v36, %v14739_v18  ;;  %v15677_v18 = vld [vmem:[%s19097_s4 + $0x388] sm:$0xff]   ;;  %v15678_v47 = vld [vmem:[%s19097_s4 + $0x390] sm:$0xff]  }
 0x8d6   : > { %v17313_v45 = vpop.f32.mrf.mxu0  ;;  %v4845_v49 = vpop.f32.mrf.mxu1 }
 0x8d7   : > { %v4859_v0 = vpack.c.bf16 %v4845_v49, %v4842_v20  ;;  %14741 = vmatprep.subr.bf16.mxu1 %v4860_v48  ;;  %v15683_v49 = vld [vmem:[%s19097_s4 + $0x3c8] sm:$0xff]  }
 0x8d8   : > { %14742 = vmatpush3.bf16.msra.mxu1 %v4860_v48  ;;  %v14775_v28 = vpop.f32.mrf.mxu0  ;;  %v15680_v48 = vld [vmem:[%s19097_s4 + $0x3a0] sm:$0xff]  }
 0x8d9   : > { %14743 = vmatprep.subr.bf16.mxu1 %v4859_v0 }
 0x8da   : > { %v5122_v54 = vpop.f32.mrf.mxu0 }
 0x8dc   : > { %14744 = vmatpush3.bf16.msra.mxu1 %v4859_v0  ;;  %v14776_v1 = vpop.f32.mrf.mxu0  ;;  %v15684_v0 = vld [vmem:[%s19097_s4 + $0x3b0] sm:$0xff]  }
 0x8dd   : > { %14745 = vmatprep.subr.bf16.mxu1 %v4858_v9  ;;  %v5154_v3 = vpack.c.bf16 %v14776_v1, %v14775_v28  ;;  %v15682_v28 = vld [vmem:[%s19097_s4 + $0x3a8] sm:$0xff]   ;;  %v15687_v1 = vld [vmem:[%s19097_s4 + $0x3d8] sm:$0xff]  }
 0x8de   : > { %v5125_v24 = vpop.f32.mrf.mxu0 }
 0x8e0   : > { %14746 = vmatpush3.bf16.msra.mxu1 %v4858_v9  ;;  %v14779_v38 = vpop.f32.mrf.mxu0  ;;  %v15686_v9 = vld [vmem:[%s19097_s4 + $0x3b8] sm:$0xff]  }
 0x8e1   : > { %14747 = vmatprep.subr.bf16.mxu1 %v4857_v14 }
 0x8e2   : > { %v5138_v25 = vpop.f32.mrf.mxu0 }
 0x8e4   : > { %14748 = vmatpush3.bf16.msra.mxu1 %v4857_v14  ;;  %v14780_v20 = vpop.f32.mrf.mxu0  ;;  %v15689_v14 = vld [vmem:[%s19097_s4 + $0x3e8] sm:$0xff]  }
 0x8e5   : > { %v5156_v29 = vpack.c.bf16 %v14780_v20, %v14779_v38  ;;  %v5153_v38 = vpack.c.bf16 %v5125_v24, %v5122_v54  ;;  %v15685_v54 = vld [vmem:[%s19097_s4 + $0x3d0] sm:$0xff]   ;;  %v15688_v24 = vld [vmem:[%s19097_s4 + $0x3e0] sm:$0xff]   ;;  %v15692_v20 = vld [vmem:[%s19099_s6 + $0x8] sm:$0xff]  }
 0x8e6   : > { %v5141_v32 = vpop.f32.mrf.mxu0 }
 0x8e7   : > { %v5155_v36 = vpack.c.bf16 %v5141_v32, %v5138_v25  ;;  %14750 = vmatmul.mubr.msk.bf16.vlgmr.msra.gmra.mxu1 %vm668_vm0, %v15677_v18  ;;  %14781 = vmatprep.subr.bf16.mxu0 %v5156_v29  ;;  %v15690_v25 = vld [vmem:[%s19097_s4 + $0x3f0] sm:$0xff]   ;;  %v15691_v18 = vld [vmem:[%s19097_s4 + $0x3f8] sm:$0xff]  }
 0x8e8   : > { %14782 = vmatpush3.bf16.msra.mxu0 %v5156_v29  ;;  %14753 = vmatprep.mubr.msk.bf16.mxu1 %vm668_vm0, %v15678_v47  ;;  %v15693_v47 = vld [vmem:[%s19099_s6] sm:$0xff]   ;;  %v1148_v29 = vadd.f32 %v16339_v19, %v16349_v33 }
 0x8e9   : > { %14783 = vmatprep.subr.bf16.mxu0 %v5155_v36  ;;  %14805 = vmatprep.subr.bf16.mxu1 %v15693_v47 }
 0x8ea   : > { %14806 = vmatpush3.bf16.msra.mxu1 %v15693_v47  ;;  %v1488_v32 = vadd.f32 %v16486_v15, %v1148_v29 }
 0x8ec   : > { %14784 = vmatpush3.bf16.msra.mxu0 %v5155_v36  ;;  %v1784_v36 = vadd.f32 %v16504_v40, %v1488_v32 }
 0x8ed   : > { %14785 = vmatprep.subr.bf16.mxu0 %v5154_v3 }
 0x8ef   : > { %14754 = vmatmul.mubr.msk.bf16.gmra.mxu1 %vm668_vm0, %v15679_v31  ;;  %v5370_v31 = vpop.permute.xlu0 %5369 }
 0x8f0   : > { %14786 = vmatpush3.bf16.msra.mxu0 %v5154_v3  ;;  %14757 = vmatprep.mubr.msk.bf16.mxu1 %vm668_vm0, %v15680_v48  ;;  %v2080_v48 = vadd.f32 %v16642_v50, %v1784_v36  ;;  %v19131_v36 = vld [vmem:[#allocation5_spill] sm:$0xff] }
 0x8f1   : > { %14787 = vmatprep.subr.bf16.mxu0 %v5153_v38 }
 0x8f3   : > { %v5380_v40 = vpop.permute.xlu0 %5379 }
 0x8f4   : > { %14788 = vmatpush3.bf16.msra.mxu0 %v5153_v38  ;;  %v1164_v38 = vadd.f32 %v16341_v23, %v16357_v42 }
 0x8f5   : > { %14823 = vmatprep.subr.bf16.mxu0 %v15692_v20 }
 0x8f7   : > { %14758 = vmatmul.mubr.msk.bf16.gmra.mxu1 %vm668_vm0, %v15682_v28  ;;  %14790 = vmatmul.mubr.msk.bf16.vlgmr.msra.gmra.mxu0 %vm668_vm0, %v15683_v49  ;;  %v17384_v49 = vpop.permute.xlu1 %5374 }
 0x8f8   : > { %14761 = vmatprep.mubr.msk.bf16.mxu1 %vm668_vm0, %v15684_v0  ;;  %14793 = vmatprep.mubr.msk.bf16.mxu0 %vm668_vm0, %v15685_v54  ;;  %v2376_v0 = vadd.f32 %v16660_v22, %v2080_v48  ;;  %v1492_v54 = vadd.f32 %v16491_v26, %v1164_v38  ;;  %v1180_v22 = vadd.f32 %v16359_v43, %v16367_v51  ;;  %v19132_v38 = vld [vmem:[#allocation13_spill] sm:$0xff] }
 0x8f9   : > { %14824 = vmatpush3.bf16.msra.mxu0 %v15692_v20 }
 0x8fa   : > { %v2672_v19 = vadd.f32 %v16798_v53, %v2376_v0  ;;  %v1788_v33 = vadd.f32 %v16517_v62, %v1492_v54  ;;  %v1496_v62 = vadd.f32 %v16502_v41, %v1180_v22 }
 0x8fb   : > { %v5385_v23 = vpop.permute.xlu1 %5384 }
 0x8fc   : > { %v2084_v50 = vadd.f32 %v16647_v5, %v1788_v33  ;;  %v1792_v20 = vadd.f32 %v16525_v8, %v1496_v62  ;;  %v19135_v33 = vld [vmem:[#allocation16_spill] sm:$0xff]  ;;  %v19137_v62 = vld [vmem:[#allocation9_spill] sm:$0xff] }
 0x8fe   : > { %v2380_v26 = vadd.f32 %v16673_v46, %v2084_v50  ;;  %v2088_v41 = vadd.f32 %v16658_v58, %v1792_v20 }
 0x8ff   : > { %14762 = vmatmul.mubr.msk.bf16.gmra.mxu1 %vm668_vm0, %v15686_v9  ;;  %14794 = vmatmul.mubr.msk.bf16.gmra.mxu0 %vm668_vm0, %v15687_v1  ;;  %v2968_v1 = vadd.f32 %v16816_v55, %v2672_v19  ;;  %v17399_v55 = vpop.permute.xlu0 %5389  ;;  %v17404_v43 = vpop.permute.xlu1 %5394 }
 0x900   : > { %14797 = vmatprep.mubr.msk.bf16.mxu0 %vm668_vm0, %v15688_v24  ;;  %v2384_v48 = vadd.f32 %v19131_v36, %v2088_v41  ;;  %v19139_v41 = vld [vmem:[#allocation4_spill] sm:$0xff] }
 0x901   : > { %v3264_v42 = vadd.f32 %v16954_v35, %v2968_v1 }
 0x903   : > { %v3560_v53 = vadd.f32 %v16972_v34, %v3264_v42  ;;  %v5400_v58 = vpop.permute.xlu0 %5399 }
 0x905   : > { %v3856_v5 = vadd.f32 %v17110_v37, %v3560_v53 }
 0x907   : > { %14798 = vmatmul.mubr.msk.bf16.gmra.mxu0 %vm668_vm0, %v15689_v14  ;;  %v4152_v51 = vadd.f32 %v17128_v30, %v3856_v5  ;;  %v19138_v5 = vld [vmem:[#allocation19_spill] sm:$0xff] }
 0x908   : > { %14801 = vmatprep.mubr.msk.bf16.mxu0 %vm668_vm0, %v15690_v25  ;;  %v2676_v25 = vadd.f32 %v16803_v7, %v2380_v26  ;;  %v19136_v26 = vld [vmem:[#allocation3_spill] sm:$0xff] }
 0x909   : > { %v4448_v32 = vadd.f32 %v17266_v61, %v4152_v51  ;;  %v19133_v61 = vld [vmem:[#allocation2_spill] sm:$0xff] }
 0x90a   : > { %v2972_v35 = vadd.f32 %v16829_v10, %v2676_v25  ;;  %v1196_v10 = vadd.f32 %v16481_v6, %v16375_v60  ;;  %v5405_v6 = vpop.permute.xlu1 %5404 }
 0x90c   : > { %v3268_v7 = vadd.f32 %v16959_v52, %v2972_v35  ;;  %v4744_v52 = vadd.f32 %v17284_v17, %v4448_v32  ;;  %v1500_v19 = vadd.f32 %v19133_v61, %v1196_v10 }
 0x90e   : > { %v3564_v30 = vadd.f32 %v19132_v38, %v3268_v7  ;;  %v1796_v53 = vadd.f32 %v19136_v26, %v1500_v19  ;;  %v19141_v38 = vld [vmem:[#allocation6_spill] sm:$0xff]  ;;  %v19146_v26 = vld [vmem:[#allocation20_spill] sm:$0xff] }
 0x90f   : > { %14802 = vmatmul.mubr.msk.bf16.gmra.mxu0 %vm668_vm0, %v15691_v18 }
 0x910   : > { %v3860_v1 = vadd.f32 %v19135_v33, %v3564_v30  ;;  %v2092_v7 = vadd.f32 %v19139_v41, %v1796_v53  ;;  %v19148_v41 = vld [vmem:[#allocation15_spill] sm:$0xff] }
 0x912   : > { %v4156_v17 = vadd.f32 %v19138_v5, %v3860_v1  ;;  %v2388_v30 = vadd.f32 %v19141_v38, %v2092_v7 }
 0x9a7   : > { %v14751_v3 = vpop.f32.mrf.mxu1 }
 0x9a8   : > { %v5041_v46 = vadd.f32 %v14751_v3, %v17274_v13 }
 0x9a9   : > { %v4976_v28 = vpop.f32.mrf.mxu1 }
 0x9aa   : > { %v5039_v37 = vadd.f32 %v4976_v28, %v17277_v27  ;;  %v19134_v27 = vld [vmem:[#allocation7_spill] sm:$0xff] }
 0x9ab   : > { %v14752_v9 = vpop.f32.mrf.mxu1  ;;  %v2680_v28 = vadd.f32 %v19134_v27, %v2384_v48 }
 0x9ac   : > { %v5042_v3 = vadd.f32 %v14752_v9, %v17280_v2 }
 0x9ad   : > { %v4979_v15 = vpop.f32.mrf.mxu1  ;;  %v2976_v25 = vadd.f32 %v19137_v62, %v2680_v28  ;;  %v19144_v28 = vld [vmem:[#allocation17_spill] sm:$0xff] }
 0x9ae   : > { %v5040_v50 = vadd.f32 %v4979_v15, %v4744_v52  ;;  %v4452_v15 = vadd.f32 %v17271_v63, %v4156_v17 }
 0x9af   : > { %v14755_v24 = vpop.f32.mrf.mxu1 }
 0x9b0   : > { %v5045_v9 = vadd.f32 %v14755_v24, %v17287_v11  ;;  %v19142_v11 = vld [vmem:[#allocation14_spill] sm:$0xff]  ;;  %v4748_v24 = vadd.f32 %v17297_v12, %v4452_v15 }
 0x9b1   : > { %v4992_v14 = vpop.f32.mrf.mxu1 }
 0x9b3   : > { %v14756_v18 = vpop.f32.mrf.mxu1 }
 0x9b4   : > { %v5046_v63 = vadd.f32 %v14756_v18, %v17293_v59 }
 0x9b5   : > { %v4995_v47 = vpop.f32.mrf.mxu1 }
 0x9b6   : > { %v5044_v12 = vadd.f32 %v4995_v47, %v4748_v24  ;;  %v19147_v47 = vld [vmem:[#allocation12_spill] sm:$0xff] }
 0x9b7   : > { %v14759_v34 = vpop.f32.mrf.mxu1  ;;  %v14791_v29 = vpop.f32.mrf.mxu0 }
 0x9b8   : > { %v5337_v8 = vadd.f32 %v14791_v29, %v5041_v46  ;;  %v19140_v29 = vld [vmem:[#allocation11_spill] sm:$0xff]  ;;  %v5049_v18 = vadd.f32 %v14759_v34, %v17299_v16 }
 0x9b9   : > { %v17416_v0 = vpop.f32.mrf.mxu1  ;;  %v5272_v13 = vpop.f32.mrf.mxu0  ;;  %v3272_v32 = vadd.f32 %v19140_v29, %v2976_v25  ;;  %v19149_v29 = vld [vmem:[#allocation23_spill] sm:$0xff] }
 0x9ba   : > { %v5335_v54 = vadd.f32 %v5272_v13, %v5039_v37  ;;  %v5449_v42 = vadd.f32 %v5380_v40, %v5337_v8  ;;  %v17430_v37 = vpop.permute.xlu0 %5409  ;;  %v5047_v16 = vadd.f32 %v17416_v0, %v17301_v4 }
 0x9bb   : > { %v14792_v60 = vpop.f32.mrf.mxu0  ;;  %v14760_v20 = vpop.f32.mrf.mxu1 }
 0x9bc   : > { %v5338_v22 = vadd.f32 %v14792_v60, %v5042_v3  ;;  %v5447_v35 = vadd.f32 %v5370_v31, %v5335_v54  ;;  %v5465_v8 = vmax.f32 %v5449_v42, 0.0  ;;  %v3568_v31 = vadd.f32 %v19142_v11, %v3272_v32  ;;  %v17437_v3 = vpop.permute.xlu1 %5414  ;;  %v19145_v42 = vld [vmem:[#allocation10_spill] sm:$0xff] }
 0x9bd   : > { %v5275_v2 = vpop.f32.mrf.mxu0  ;;  %v5011_v13 = vpop.f32.mrf.mxu1  ;;  %v5050_v32 = vadd.f32 %v14760_v20, %v19149_v29 }
 0x9be   : > { %v5450_v51 = vadd.f32 %v5385_v23, %v5338_v22  ;;  %v5336_v46 = vadd.f32 %v5275_v2, %v5040_v50  ;;  %v5043_v23 = vadd.f32 %v4992_v14, %v17290_v57  ;;  %v5463_v54 = vmax.f32 %v5447_v35, 0.0  ;;  %v5420_v25 = vpop.permute.xlu0 %5419 }
 0x9bf   : > { %v14795_v40 = vpop.f32.mrf.mxu0  ;;  %v3864_v33 = vadd.f32 %v19144_v28, %v3568_v31  ;;  %v14763_v53 = vpop.f32.mrf.mxu1 }
 0x9c0   : > { %v5466_v10 = vmax.f32 %v5450_v51, 0.0  ;;  %v5448_v36 = vadd.f32 %v17384_v49, %v5336_v46  ;;  %v5341_v48 = vadd.f32 %v14795_v40, %v5045_v9  ;;  %v19143_v49 = vld [vmem:[#allocation8_spill] sm:$0xff]  ;;  %v5053_v20 = vadd.f32 %v14763_v53, %v17307_v21 }
 0x9c1   : > { %v5288_v52 = vpop.f32.mrf.mxu0  ;;  %v2684_v27 = vadd.f32 %v19143_v49, %v2388_v30  ;;  %v4160_v59 = vadd.f32 %v19146_v26, %v3864_v33  ;;  %v5024_v4 = vpop.f32.mrf.mxu1  ;;  %v19153_v33 = vld [vmem:[#allocation24_spill] sm:$0xff] }
 0x9c2   : > { %v17440_v61 = vpack.c.bf16 %v5466_v10, %v5465_v8  ;;  %v5464_v19 = vmax.f32 %v5448_v36, 0.0  ;;  %v5339_v1 = vadd.f32 %v5288_v52, %v5043_v23  ;;  %v5453_v57 = vadd.f32 %v5400_v58, %v5341_v48  ;;  %v19150_v36 = vld [vmem:[#allocation18_spill] sm:$0xff]  ;;  %v5430_v30 = vpop.permute.xlu0 %5429  ;;  %v19151_v23 = vld [vmem:[#allocation21_spill] sm:$0xff] }
 0x9c3   : > { %v14796_v60 = vpop.f32.mrf.mxu0  ;;  %v2980_v22 = vadd.f32 %v19145_v42, %v2684_v27  ;;  %v4456_v9 = vadd.f32 %v17282_v56, %v4160_v59  ;;  %v14764_v52 = vpop.f32.mrf.mxu1  ;;  %v19152_v27 = vld [vmem:[#allocation22_spill] sm:$0xff] }
 0x9c4   : > { %v17444_v50 = vpack.c.bf16 %v5464_v19, %v5463_v54  ;;  %v5342_v14 = vadd.f32 %v14796_v60, %v5046_v63  ;;  %v5451_v5 = vadd.f32 %v17399_v55, %v5339_v1  ;;  %v5425_v55 = vpop.permute.xlu1 %5424  ;;  %v5051_v1 = vadd.f32 %v5024_v4, %v19153_v33 }
 0x9c5   : > { %v5291_v62 = vpop.f32.mrf.mxu0  ;;  %v3276_v58 = vadd.f32 %v19147_v47, %v2980_v22  ;;  %v4752_v56 = vadd.f32 %v17305_v39, %v4456_v9  ;;  %v5054_v42 = vadd.f32 %v14764_v52, %v17311_v44  ;;  %v5027_v22 = vpop.f32.mrf.mxu1 }
 0x9c6   : > { %v5454_v17 = vadd.f32 %v5405_v6, %v5342_v14  ;;  %v5340_v2 = vadd.f32 %v5291_v62, %v5044_v12  ;;  %14807 = vmatprep.mubr.msk.bf16.mxu1 %vm5495_vm1, %v17444_v50  ;;  %14825 = vmatprep.mubr.msk.bf16.mxu0 %vm5495_vm1, %v17444_v50  ;;  %v5469_v6 = vmax.f32 %v5453_v57, 0.0  ;;  %v5467_v15 = vmax.f32 %v5451_v5, 0.0 }
 0x9c7   : > { %v14799_v34 = vpop.f32.mrf.mxu0  ;;  %14808 = vmatmul.mubr.msk.bf16.vlgmr.msra.gmra.mxu1 %vm5495_vm1, %v17440_v61  ;;  %14826 = vmatmul.mubr.msk.bf16.vlgmr.msra.gmra.mxu0 %vm5495_vm1, %v17440_v61  ;;  %v3572_v7 = vadd.f32 %v19148_v41, %v3276_v58  ;;  %v5048_v11 = vadd.f32 %v5011_v13, %v4752_v56  ;;  %v15695_v56 = vld [vmem:[%s19100_s7] sm:$0xff]  }
 0x9c8   : > { %v5470_v35 = vmax.f32 %v5454_v17, 0.0  ;;  %v5452_v51 = vadd.f32 %v17404_v43, %v5340_v2  ;;  %v5345_v46 = vadd.f32 %v14799_v34, %v5049_v18  ;;  %v5435_v13 = vpop.permute.xlu1 %5434 }
 0x9c9   : > { %v5304_v0 = vpop.f32.mrf.mxu0  ;;  %v3868_v48 = vadd.f32 %v19150_v36, %v3572_v7  ;;  %v15694_v7 = vld [vmem:[%s19100_s7 + $0x20] sm:$0xff]  }
 0x9ca   : > { %v17466_v40 = vpack.c.bf16 %v5470_v35, %v5469_v6  ;;  %v5468_v8 = vmax.f32 %v5452_v51, 0.0  ;;  %v5343_v10 = vadd.f32 %v5304_v0, %v5047_v16  ;;  %v5457_v31 = vadd.f32 %v5420_v25, %v5345_v46  ;;  %v5440_v25 = vpop.permute.xlu0 %5439 }
 0x9cb   : > { %v14800_v38 = vpop.f32.mrf.mxu0  ;;  %v4164_v39 = vadd.f32 %v19151_v23, %v3868_v48 }
 0x9cc   : > { %v17469_v43 = vpack.c.bf16 %v5468_v8, %v5467_v15  ;;  %v5346_v24 = vadd.f32 %v14800_v38, %v5050_v32  ;;  %v5455_v54 = vadd.f32 %v17430_v37, %v5343_v10  ;;  %v5473_v21 = vmax.f32 %v5457_v31, 0.0 }
 0x9cd   : > { %v5307_v63 = vpop.f32.mrf.mxu0  ;;  %v4460_v28 = vadd.f32 %v19152_v27, %v4164_v39 }
 0x9ce   : > { %v5458_v19 = vadd.f32 %v5425_v55, %v5346_v24  ;;  %v5344_v49 = vadd.f32 %v5307_v63, %v5048_v11  ;;  %14811 = vmatprep.mubr.msk.bf16.mxu1 %vm5495_vm1, %v17469_v43  ;;  %14829 = vmatprep.mubr.msk.bf16.mxu0 %vm5495_vm1, %v17469_v43  ;;  %v5471_v59 = vmax.f32 %v5455_v54, 0.0 }
 0x9cf   : > { %v14803_v60 = vpop.f32.mrf.mxu0  ;;  %14812 = vmatmul.mubr.msk.bf16.gmra.mxu1 %vm5495_vm1, %v17466_v40  ;;  %14830 = vmatmul.mubr.msk.bf16.gmra.mxu0 %vm5495_vm1, %v17466_v40  ;;  %v4756_v14 = vadd.f32 %v17313_v45, %v4460_v28 }
 0x9d0   : > { %v5474_v37 = vmax.f32 %v5458_v19, 0.0  ;;  %v5456_v12 = vadd.f32 %v17437_v3, %v5344_v49  ;;  %v5349_v57 = vadd.f32 %v14803_v60, %v5053_v20  ;;  %v5445_v3 = vpop.permute.xlu1 %5444 }
 0x9d1   : > { %v5320_v26 = vpop.f32.mrf.mxu0  ;;  %v5052_v17 = vadd.f32 %v5027_v22, %v4756_v14 }
 0x9d2   : > { %v17487_v18 = vpack.c.bf16 %v5474_v37, %v5473_v21  ;;  %v5472_v53 = vmax.f32 %v5456_v12, 0.0  ;;  %v5347_v62 = vadd.f32 %v5320_v26, %v5051_v1  ;;  %v5461_v47 = vadd.f32 %v5440_v25, %v5349_v57 }
 0x9d3   : > { %v14804_v5 = vpop.f32.mrf.mxu0 }
 0x9d4   : > { %v17489_v2 = vpack.c.bf16 %v5472_v53, %v5471_v59  ;;  %v5350_v58 = vadd.f32 %v14804_v5, %v5054_v42  ;;  %v5459_v16 = vadd.f32 %v5430_v30, %v5347_v62  ;;  %v5477_v44 = vmax.f32 %v5461_v47, 0.0 }
 0x9d5   : > { %v5323_v9 = vpop.f32.mrf.mxu0 }
 0x9d6   : > { %v5462_v45 = vadd.f32 %v5445_v3, %v5350_v58  ;;  %v5348_v34 = vadd.f32 %v5323_v9, %v5052_v17  ;;  %14815 = vmatprep.mubr.msk.bf16.mxu1 %vm5495_vm1, %v17489_v2  ;;  %14833 = vmatprep.mubr.msk.bf16.mxu0 %vm5495_vm1, %v17489_v2  ;;  %v5475_v35 = vmax.f32 %v5459_v16, 0.0 }
 0x9d7   : > { %14816 = vmatmul.mubr.msk.bf16.gmra.mxu1 %vm5495_vm1, %v17487_v18  ;;  %14834 = vmatmul.mubr.msk.bf16.gmra.mxu0 %vm5495_vm1, %v17487_v18 }
 0x9d8   : > { %v5478_v55 = vmax.f32 %v5462_v45, 0.0  ;;  %v5460_v6 = vadd.f32 %v5435_v13, %v5348_v34  ;;  %v15702_v34 = vld [vmem:[%s19099_s6 + $0x10] sm:$0xff]  }
 0x9da   : > { %v17499_v51 = vpack.c.bf16 %v5478_v55, %v5477_v44  ;;  %v5476_v46 = vmax.f32 %v5460_v6, 0.0  ;;  %v15703_v44 = vld [vmem:[%s19099_s6 + $0x18] sm:$0xff]   ;;  %v15696_v55 = vld [vmem:[%s19100_s7 + $0x28] sm:$0xff]  }
 0x9db   : > { %v15697_v6 = vld [vmem:[%s19100_s7 + $0x8] sm:$0xff]  }
 0x9dc   : > { %v17501_v41 = vpack.c.bf16 %v5476_v46, %v5475_v35  ;;  %v15698_v35 = vld [vmem:[%s19100_s7 + $0x30] sm:$0xff]  }
 0x9dd   : > { %v15699_v46 = vld [vmem:[%s19100_s7 + $0x10] sm:$0xff]  }
 0x9de   : > { %14819 = vmatprep.mubr.msk.bf16.mxu1 %vm5495_vm1, %v17501_v41  ;;  %14837 = vmatprep.mubr.msk.bf16.mxu0 %vm5495_vm1, %v17501_v41 }
 0x9df   : > { %14820 = vmatmul.mubr.msk.bf16.gmra.mxu1 %vm5495_vm1, %v17499_v51  ;;  %14838 = vmatmul.mubr.msk.bf16.gmra.mxu0 %vm5495_vm1, %v17499_v51 }
 0x9e0   : > { %14857 = vmatprep.mubr.bf16.mxu1 %v15694_v7  ;;  %14881 = vmatprep.mubr.bf16.mxu0 %v15695_v56  ;;  %v15700_v7 = vld [vmem:[%s19100_s7 + $0x38] sm:$0xff]  }
 0x9e1   : > { %v15701_v56 = vld [vmem:[%s19100_s7 + $0x18] sm:$0xff]  }
 0xa87   : > { %v17517_v29 = vpop.f32.mrf.mxu1  ;;  %v17519_v32 = vpop.f32.mrf.mxu0 }
 0xa89   : > { %v17521_v4 = vpop.f32.mrf.mxu1  ;;  %v17523_v0 = vpop.f32.mrf.mxu0 }
 0xa8b   : > { %v14810_v15 = vpop.f32.mrf.mxu1  ;;  %v14828_v8 = vpop.f32.mrf.mxu0 }
 0xa8c   : > { %v5618_v3 = vpack.c.bf16 %v14810_v15, %v17517_v29  ;;  %v5740_v9 = vpack.c.bf16 %v14828_v8, %v17519_v32  ;;  %v15704_v29 = vld [vmem:[%s19100_s7 + $0x40] sm:$0xff]  }
 0xa8d   : > { %v17525_v10 = vpop.f32.mrf.mxu1  ;;  %v17527_v36 = vpop.f32.mrf.mxu0  ;;  %v15705_v32 = vld [vmem:[%s19100_s7 + $0x60] sm:$0xff]  }
 0xa8e   : > { %v5617_v16 = vpack.c.bf16 %v17525_v10, %v17521_v4  ;;  %v5739_v45 = vpack.c.bf16 %v17527_v36, %v17523_v0 }
 0xa8f   : > { %v14813_v48 = vpop.f32.mrf.mxu1  ;;  %v14831_v38 = vpop.f32.mrf.mxu0 }
 0xa91   : > { %v5570_v30 = vpop.f32.mrf.mxu1  ;;  %v5692_v11 = vpop.f32.mrf.mxu0 }
 0xa93   : > { %v14814_v31 = vpop.f32.mrf.mxu1  ;;  %v14832_v24 = vpop.f32.mrf.mxu0 }
 0xa94   : > { %v5620_v5 = vpack.c.bf16 %v14814_v31, %v14813_v48  ;;  %v5742_v17 = vpack.c.bf16 %v14832_v24, %v14831_v38 }
 0xa95   : > { %v5573_v23 = vpop.f32.mrf.mxu1  ;;  %v5695_v39 = vpop.f32.mrf.mxu0 }
 0xa96   : > { %v5619_v47 = vpack.c.bf16 %v5573_v23, %v5570_v30  ;;  %v5741_v58 = vpack.c.bf16 %v5695_v39, %v5692_v11 }
 0xa97   : > { %v14817_v20 = vpop.f32.mrf.mxu1  ;;  %v14835_v52 = vpop.f32.mrf.mxu0 }
 0xa99   : > { %v5586_v63 = vpop.f32.mrf.mxu1  ;;  %v5708_v54 = vpop.f32.mrf.mxu0 }
 0xa9b   : > { %v14818_v19 = vpop.f32.mrf.mxu1  ;;  %v14836_v49 = vpop.f32.mrf.mxu0 }
 0xa9c   : > { %v5622_v59 = vpack.c.bf16 %v14818_v19, %v14817_v20  ;;  %v5744_v53 = vpack.c.bf16 %v14836_v49, %v14835_v52 }
 0xa9d   : > { %v5589_v13 = vpop.f32.mrf.mxu1  ;;  %v5711_v27 = vpop.f32.mrf.mxu0 }
 0xa9e   : > { %v5621_v62 = vpack.c.bf16 %v5589_v13, %v5586_v63  ;;  %v5743_v25 = vpack.c.bf16 %v5711_v27, %v5708_v54 }
 0xa9f   : > { %v14821_v28 = vpop.f32.mrf.mxu1  ;;  %v14839_v33 = vpop.f32.mrf.mxu0 }
 0xaa1   : > { %v5602_v1 = vpop.f32.mrf.mxu1  ;;  %v5724_v60 = vpop.f32.mrf.mxu0 }
 0xaa3   : > { %v14822_v21 = vpop.f32.mrf.mxu1  ;;  %v14840_v37 = vpop.f32.mrf.mxu0 }
 0xaa4   : > { %v5624_v12 = vpack.c.bf16 %v14822_v21, %v14821_v28  ;;  %v5746_v57 = vpack.c.bf16 %v14840_v37, %v14839_v33 }
 0xaa5   : > { %v5605_v14 = vpop.f32.mrf.mxu1  ;;  %v5727_v42 = vpop.f32.mrf.mxu0 }
 0xaa6   : > { %v5623_v22 = vpack.c.bf16 %v5605_v14, %v5602_v1  ;;  %v5745_v26 = vpack.c.bf16 %v5727_v42, %v5724_v60  ;;  %14841 = vmatprep.subr.bf16.mxu1 %v5746_v57  ;;  %14865 = vmatprep.subr.bf16.mxu0 %v5624_v12 }
 0xaa7   : > { %14842 = vmatpush3.bf16.msra.mxu1 %v5746_v57  ;;  %14866 = vmatpush3.bf16.msra.mxu0 %v5624_v12 }
 0xaa8   : > { %14843 = vmatprep.subr.bf16.mxu1 %v5745_v26  ;;  %14867 = vmatprep.subr.bf16.mxu0 %v5623_v22 }
 0xaab   : > { %14844 = vmatpush3.bf16.msra.mxu1 %v5745_v26  ;;  %14868 = vmatpush3.bf16.msra.mxu0 %v5623_v22 }
 0xaac   : > { %14845 = vmatprep.subr.bf16.mxu1 %v5744_v53  ;;  %14869 = vmatprep.subr.bf16.mxu0 %v5622_v59 }
 0xaaf   : > { %14846 = vmatpush3.bf16.msra.mxu1 %v5744_v53  ;;  %14870 = vmatpush3.bf16.msra.mxu0 %v5622_v59 }
 0xab0   : > { %14847 = vmatprep.subr.bf16.mxu1 %v5743_v25  ;;  %14871 = vmatprep.subr.bf16.mxu0 %v5621_v62 }
 0xab3   : > { %14848 = vmatpush3.bf16.msra.mxu1 %v5743_v25  ;;  %14872 = vmatpush3.bf16.msra.mxu0 %v5621_v62 }
 0xab4   : > { %14849 = vmatprep.subr.bf16.mxu1 %v5742_v17  ;;  %14873 = vmatprep.subr.bf16.mxu0 %v5620_v5 }
 0xab7   : > { %14850 = vmatpush3.bf16.msra.mxu1 %v5742_v17  ;;  %14874 = vmatpush3.bf16.msra.mxu0 %v5620_v5 }
 0xab8   : > { %14851 = vmatprep.subr.bf16.mxu1 %v5741_v58  ;;  %14875 = vmatprep.subr.bf16.mxu0 %v5619_v47 }
 0xabb   : > { %14852 = vmatpush3.bf16.msra.mxu1 %v5741_v58  ;;  %14876 = vmatpush3.bf16.msra.mxu0 %v5619_v47 }
 0xabc   : > { %14853 = vmatprep.subr.bf16.mxu1 %v5740_v9  ;;  %14877 = vmatprep.subr.bf16.mxu0 %v5618_v3 }
 0xabf   : > { %14854 = vmatpush3.bf16.msra.mxu1 %v5740_v9  ;;  %14878 = vmatpush3.bf16.msra.mxu0 %v5618_v3 }
 0xac0   : > { %14855 = vmatprep.subr.bf16.mxu1 %v5739_v45  ;;  %14879 = vmatprep.subr.bf16.mxu0 %v5617_v16 }
 0xac3   : > { %14856 = vmatpush3.bf16.msra.mxu1 %v5739_v45  ;;  %14880 = vmatpush3.bf16.msra.mxu0 %v5617_v16 }
 0xac4   : > { %14889 = vmatprep.subr.bf16.mxu1 %v15702_v34  ;;  %14931 = vmatprep.subr.bf16.mxu0 %v15703_v44 }
 0xac6   : > { %14858 = vmatmul.mubr.bf16.vlgmr.msra.gmra.mxu1 %v15696_v55  ;;  %14882 = vmatmul.mubr.bf16.vlgmr.msra.gmra.mxu0 %v15697_v6 }
 0xac7   : > { %14861 = vmatprep.mubr.bf16.mxu1 %v15698_v35  ;;  %14885 = vmatprep.mubr.bf16.mxu0 %v15699_v46 }
 0xac8   : > { %14890 = vmatpush3.bf16.msra.mxu1 %v15702_v34  ;;  %14932 = vmatpush3.bf16.msra.mxu0 %v15703_v44 }
 0xace   : > { %14862 = vmatmul.mubr.bf16.gmra.mxu1 %v15700_v7  ;;  %14886 = vmatmul.mubr.bf16.gmra.mxu0 %v15701_v56 }
 0xacf   : > { %14891 = vmatprep.mubr.msk.bf16.mxu1 %vm5495_vm1, %v17444_v50  ;;  %14933 = vmatprep.mubr.msk.bf16.mxu0 %vm5495_vm1, %v17444_v50 }
 0xad6   : > { %14892 = vmatmul.mubr.msk.bf16.vlgmr.msra.gmra.mxu1 %vm5495_vm1, %v17440_v61  ;;  %14934 = vmatmul.mubr.msk.bf16.vlgmr.msra.gmra.mxu0 %vm5495_vm1, %v17440_v61 }
 0xad7   : > { %14895 = vmatprep.mubr.msk.bf16.mxu1 %vm5495_vm1, %v17469_v43  ;;  %14937 = vmatprep.mubr.msk.bf16.mxu0 %vm5495_vm1, %v17469_v43 }
 0xade   : > { %14896 = vmatmul.mubr.msk.bf16.gmra.mxu1 %vm5495_vm1, %v17466_v40  ;;  %14938 = vmatmul.mubr.msk.bf16.gmra.mxu0 %vm5495_vm1, %v17466_v40 }
 0xadf   : > { %14899 = vmatprep.mubr.msk.bf16.mxu1 %vm5495_vm1, %v17489_v2  ;;  %14941 = vmatprep.mubr.msk.bf16.mxu0 %vm5495_vm1, %v17489_v2 }
 0xae6   : > { %14900 = vmatmul.mubr.msk.bf16.gmra.mxu1 %vm5495_vm1, %v17487_v18  ;;  %14942 = vmatmul.mubr.msk.bf16.gmra.mxu0 %vm5495_vm1, %v17487_v18 }
 0xae7   : > { %14903 = vmatprep.mubr.msk.bf16.mxu1 %vm5495_vm1, %v17501_v41  ;;  %14945 = vmatprep.mubr.msk.bf16.mxu0 %vm5495_vm1, %v17501_v41 }
 0xaee   : > { %14904 = vmatmul.mubr.msk.bf16.gmra.mxu1 %vm5495_vm1, %v17499_v51  ;;  %14946 = vmatmul.mubr.msk.bf16.gmra.mxu0 %vm5495_vm1, %v17499_v51 }
 0xaef   : > { %14923 = vmatprep.mubr.bf16.mxu1 %v15704_v29  ;;  %14965 = vmatprep.mubr.bf16.mxu0 %v15705_v32 }
 0xb86   : > { %v14859_v4 = vpop.f32.mrf.mxu1  ;;  %v14883_v0 = vpop.f32.mrf.mxu0 }
 0xb87   : > { %v17597_v15 = vadd.f32 %v14883_v0, %v14859_v4 }
 0xb88   : > { %v5814_v8 = vpop.f32.mrf.mxu1  ;;  %v5903_v10 = vpop.f32.mrf.mxu0 }
 0xb89   : > { %v17599_v36 = vadd.f32 %v5903_v10, %v5814_v8 }
 0xb8a   : > { %v14860_v48 = vpop.f32.mrf.mxu1  ;;  %v14884_v38 = vpop.f32.mrf.mxu0 }
 0xb8b   : > { %v17601_v30 = vadd.f32 %v14884_v38, %v14860_v48 }
 0xb8c   : > { %v17603_v11 = vpop.f32.mrf.mxu1  ;;  %v17605_v31 = vpop.f32.mrf.mxu0 }
 0xb8e   : > { %v14863_v24 = vpop.f32.mrf.mxu1  ;;  %v14887_v23 = vpop.f32.mrf.mxu0 }
 0xb8f   : > { %v17607_v39 = vadd.f32 %v14887_v23, %v14863_v24 }
 0xb90   : > { %v5830_v20 = vpop.f32.mrf.mxu1  ;;  %v5919_v52 = vpop.f32.mrf.mxu0 }
 0xb91   : > { %v17609_v63 = vadd.f32 %v5919_v52, %v5830_v20 }
 0xb92   : > { %v14864_v54 = vpop.f32.mrf.mxu1  ;;  %v14888_v19 = vpop.f32.mrf.mxu0 }
 0xb93   : > { %v17611_v49 = vadd.f32 %v14888_v19, %v14864_v54 }
 0xb94   : > { %v17613_v13 = vpop.f32.mrf.mxu1  ;;  %v17615_v27 = vpop.f32.mrf.mxu0 }
 0xb96   : > { %v17617_v28 = vpop.f32.mrf.mxu1  ;;  %v17619_v33 = vpop.f32.mrf.mxu0 }
 0xb98   : > { %v17621_v1 = vpop.f32.mrf.mxu1  ;;  %v17623_v60 = vpop.f32.mrf.mxu0 }
 0xb9a   : > { %v14894_v21 = vpop.f32.mrf.mxu1  ;;  %v14936_v37 = vpop.f32.mrf.mxu0 }
 0xb9b   : > { %v6041_v54 = vpack.c.bf16 %v14894_v21, %v17617_v28  ;;  %v6261_v19 = vpack.c.bf16 %v14936_v37, %v17619_v33  ;;  %v15712_v28 = vld [vmem:[%s19099_s6 + $0x20] sm:$0xff]   ;;  %v15713_v33 = vld [vmem:[%s19099_s6 + $0x28] sm:$0xff]   ;;  %v15709_v37 = vld [vmem:[%s19100_s7 + $0x70] sm:$0xff]  }
 0xb9c   : > { %v17625_v12 = vpop.f32.mrf.mxu1  ;;  %v17627_v57 = vpop.f32.mrf.mxu0  ;;  %v15706_v21 = vld [vmem:[%s19100_s7 + $0x48] sm:$0xff]  }
 0xb9e   : > { %v14897_v14 = vpop.f32.mrf.mxu1  ;;  %v14939_v42 = vpop.f32.mrf.mxu0 }
 0xba0   : > { %v5993_v22 = vpop.f32.mrf.mxu1  ;;  %v6213_v26 = vpop.f32.mrf.mxu0 }
 0xba2   : > { %v14898_v59 = vpop.f32.mrf.mxu1  ;;  %v14940_v53 = vpop.f32.mrf.mxu0 }
 0xba3   : > { %v6043_v24 = vpack.c.bf16 %v14898_v59, %v14897_v14  ;;  %v6263_v23 = vpack.c.bf16 %v14940_v53, %v14939_v42  ;;  %v6040_v14 = vpack.c.bf16 %v17625_v12, %v17621_v1  ;;  %v6260_v42 = vpack.c.bf16 %v17627_v57, %v17623_v60  ;;  %v15707_v1 = vld [vmem:[%s19100_s7 + $0x68] sm:$0xff]   ;;  %v15708_v60 = vld [vmem:[%s19100_s7 + $0x50] sm:$0xff]   ;;  %v15710_v12 = vld [vmem:[%s19100_s7 + $0x58] sm:$0xff]  }
 0xba4   : > { %v5996_v62 = vpop.f32.mrf.mxu1  ;;  %v6216_v25 = vpop.f32.mrf.mxu0  ;;  %v15711_v57 = vld [vmem:[%s19100_s7 + $0x78] sm:$0xff]  }
 0xba5   : > { %v6042_v20 = vpack.c.bf16 %v5996_v62, %v5993_v22  ;;  %v6262_v52 = vpack.c.bf16 %v6216_v25, %v6213_v26  ;;  %v15714_v22 = vld [vmem:[%s19100_s7 + $0x80] sm:$0xff]  }
 0xba6   : > { %v14901_v5 = vpop.f32.mrf.mxu1  ;;  %v14943_v17 = vpop.f32.mrf.mxu0  ;;  %v15715_v26 = vld [vmem:[%s19100_s7 + $0xa0] sm:$0xff]  }
 0xba8   : > { %v6009_v47 = vpop.f32.mrf.mxu1  ;;  %v6229_v58 = vpop.f32.mrf.mxu0 }
 0xbaa   : > { %v14902_v3 = vpop.f32.mrf.mxu1  ;;  %v14944_v9 = vpop.f32.mrf.mxu0 }
 0xbab   : > { %v6045_v8 = vpack.c.bf16 %v14902_v3, %v14901_v5  ;;  %v6265_v10 = vpack.c.bf16 %v14944_v9, %v14943_v17 }
 0xbac   : > { %v6012_v16 = vpop.f32.mrf.mxu1  ;;  %v6232_v45 = vpop.f32.mrf.mxu0 }
 0xbad   : > { %v6044_v48 = vpack.c.bf16 %v6012_v16, %v6009_v47  ;;  %v6264_v38 = vpack.c.bf16 %v6232_v45, %v6229_v58 }
 0xbae   : > { %v14905_v34 = vpop.f32.mrf.mxu1  ;;  %v14947_v44 = vpop.f32.mrf.mxu0 }
 0xbb0   : > { %v6025_v55 = vpop.f32.mrf.mxu1  ;;  %v6245_v6 = vpop.f32.mrf.mxu0 }
 0xbb2   : > { %v14906_v35 = vpop.f32.mrf.mxu1  ;;  %v14948_v46 = vpop.f32.mrf.mxu0 }
 0xbb3   : > { %v6047_v7 = vpack.c.bf16 %v14906_v35, %v14905_v34  ;;  %v6267_v56 = vpack.c.bf16 %v14948_v46, %v14947_v44 }
 0xbb4   : > { %v6028_v29 = vpop.f32.mrf.mxu1  ;;  %v6248_v32 = vpop.f32.mrf.mxu0 }
 0xbb5   : > { %v6046_v4 = vpack.c.bf16 %v6028_v29, %v6025_v55  ;;  %v6266_v0 = vpack.c.bf16 %v6248_v32, %v6245_v6  ;;  %14907 = vmatprep.subr.bf16.mxu1 %v6047_v7  ;;  %14949 = vmatprep.subr.bf16.mxu0 %v6267_v56 }
 0xbb6   : > { %14908 = vmatpush3.bf16.msra.mxu1 %v6047_v7  ;;  %14950 = vmatpush3.bf16.msra.mxu0 %v6267_v56 }
 0xbb7   : > { %14909 = vmatprep.subr.bf16.mxu1 %v6046_v4  ;;  %14951 = vmatprep.subr.bf16.mxu0 %v6266_v0 }
 0xbba   : > { %14910 = vmatpush3.bf16.msra.mxu1 %v6046_v4  ;;  %14952 = vmatpush3.bf16.msra.mxu0 %v6266_v0 }
 0xbbb   : > { %14911 = vmatprep.subr.bf16.mxu1 %v6045_v8  ;;  %14953 = vmatprep.subr.bf16.mxu0 %v6265_v10 }
 0xbbe   : > { %14912 = vmatpush3.bf16.msra.mxu1 %v6045_v8  ;;  %14954 = vmatpush3.bf16.msra.mxu0 %v6265_v10 }
 0xbbf   : > { %14913 = vmatprep.subr.bf16.mxu1 %v6044_v48  ;;  %14955 = vmatprep.subr.bf16.mxu0 %v6264_v38 }
 0xbc2   : > { %14914 = vmatpush3.bf16.msra.mxu1 %v6044_v48  ;;  %14956 = vmatpush3.bf16.msra.mxu0 %v6264_v38 }
 0xbc3   : > { %14915 = vmatprep.subr.bf16.mxu1 %v6043_v24  ;;  %14957 = vmatprep.subr.bf16.mxu0 %v6263_v23 }
 0xbc6   : > { %14916 = vmatpush3.bf16.msra.mxu1 %v6043_v24  ;;  %14958 = vmatpush3.bf16.msra.mxu0 %v6263_v23 }
 0xbc7   : > { %14917 = vmatprep.subr.bf16.mxu1 %v6042_v20  ;;  %14959 = vmatprep.subr.bf16.mxu0 %v6262_v52 }
 0xbca   : > { %14918 = vmatpush3.bf16.msra.mxu1 %v6042_v20  ;;  %14960 = vmatpush3.bf16.msra.mxu0 %v6262_v52 }
 0xbcb   : > { %14919 = vmatprep.subr.bf16.mxu1 %v6041_v54  ;;  %14961 = vmatprep.subr.bf16.mxu0 %v6261_v19 }
 0xbce   : > { %14920 = vmatpush3.bf16.msra.mxu1 %v6041_v54  ;;  %14962 = vmatpush3.bf16.msra.mxu0 %v6261_v19 }
 0xbcf   : > { %14921 = vmatprep.subr.bf16.mxu1 %v6040_v14  ;;  %14963 = vmatprep.subr.bf16.mxu0 %v6260_v42 }
 0xbd2   : > { %14922 = vmatpush3.bf16.msra.mxu1 %v6040_v14  ;;  %14964 = vmatpush3.bf16.msra.mxu0 %v6260_v42 }
 0xbd3   : > { %14973 = vmatprep.subr.bf16.mxu1 %v15712_v28  ;;  %15015 = vmatprep.subr.bf16.mxu0 %v15713_v33 }
 0xbd5   : > { %14924 = vmatmul.mubr.bf16.vlgmr.msra.gmra.mxu1 %v15706_v21  ;;  %14966 = vmatmul.mubr.bf16.vlgmr.msra.gmra.mxu0 %v15707_v1 }
 0xbd6   : > { %14927 = vmatprep.mubr.bf16.mxu1 %v15708_v60  ;;  %14969 = vmatprep.mubr.bf16.mxu0 %v15709_v37 }
 0xbd7   : > { %14974 = vmatpush3.bf16.msra.mxu1 %v15712_v28  ;;  %15016 = vmatpush3.bf16.msra.mxu0 %v15713_v33 }
 0xbdd   : > { %14928 = vmatmul.mubr.bf16.gmra.mxu1 %v15710_v12  ;;  %14970 = vmatmul.mubr.bf16.gmra.mxu0 %v15711_v57 }
 0xbde   : > { %14975 = vmatprep.mubr.msk.bf16.mxu1 %vm5495_vm1, %v17444_v50  ;;  %15017 = vmatprep.mubr.msk.bf16.mxu0 %vm5495_vm1, %v17444_v50 }
 0xbe5   : > { %14976 = vmatmul.mubr.msk.bf16.vlgmr.msra.gmra.mxu1 %vm5495_vm1, %v17440_v61  ;;  %15018 = vmatmul.mubr.msk.bf16.vlgmr.msra.gmra.mxu0 %vm5495_vm1, %v17440_v61 }
 0xbe6   : > { %14979 = vmatprep.mubr.msk.bf16.mxu1 %vm5495_vm1, %v17469_v43  ;;  %15021 = vmatprep.mubr.msk.bf16.mxu0 %vm5495_vm1, %v17469_v43 }
 0xbed   : > { %14980 = vmatmul.mubr.msk.bf16.gmra.mxu1 %vm5495_vm1, %v17466_v40  ;;  %15022 = vmatmul.mubr.msk.bf16.gmra.mxu0 %vm5495_vm1, %v17466_v40 }
 0xbee   : > { %14983 = vmatprep.mubr.msk.bf16.mxu1 %vm5495_vm1, %v17489_v2  ;;  %15025 = vmatprep.mubr.msk.bf16.mxu0 %vm5495_vm1, %v17489_v2 }
 0xbf5   : > { %14984 = vmatmul.mubr.msk.bf16.gmra.mxu1 %vm5495_vm1, %v17487_v18  ;;  %15026 = vmatmul.mubr.msk.bf16.gmra.mxu0 %vm5495_vm1, %v17487_v18 }
 0xbf6   : > { %14987 = vmatprep.mubr.msk.bf16.mxu1 %vm5495_vm1, %v17501_v41  ;;  %15029 = vmatprep.mubr.msk.bf16.mxu0 %vm5495_vm1, %v17501_v41 }
 0xbfd   : > { %14988 = vmatmul.mubr.msk.bf16.gmra.mxu1 %vm5495_vm1, %v17499_v51  ;;  %15030 = vmatmul.mubr.msk.bf16.gmra.mxu0 %vm5495_vm1, %v17499_v51 }
 0xbfe   : > { %15007 = vmatprep.mubr.bf16.mxu1 %v15714_v22  ;;  %15049 = vmatprep.mubr.bf16.mxu0 %v15715_v26 }
 0xc95   : > { %v14925_v59 = vpop.f32.mrf.mxu1  ;;  %v14967_v53 = vpop.f32.mrf.mxu0 }
 0xc96   : > { %v6148_v62 = vadd.f32 %v14925_v59, %v17597_v15 }
 0xc97   : > { %v6115_v25 = vpop.f32.mrf.mxu1  ;;  %v6335_v5 = vpop.f32.mrf.mxu0 }
 0xc98   : > { %v17698_v17 = vadd.f32 %v14967_v53, %v6148_v62  ;;  %v6146_v47 = vadd.f32 %v6115_v25, %v17599_v36 }
 0xc99   : > { %v14926_v58 = vpop.f32.mrf.mxu1  ;;  %v14968_v3 = vpop.f32.mrf.mxu0 }
 0xc9a   : > { %v17701_v9 = vadd.f32 %v6335_v5, %v6146_v47  ;;  %v6149_v16 = vadd.f32 %v14926_v58, %v17601_v30 }
 0xc9b   : > { %v17704_v45 = vpop.f32.mrf.mxu1  ;;  %v17706_v34 = vpop.f32.mrf.mxu0 }
 0xc9c   : > { %v17708_v44 = vadd.f32 %v14968_v3, %v6149_v16 }
 0xc9d   : > { %v14929_v55 = vpop.f32.mrf.mxu1  ;;  %v14971_v15 = vpop.f32.mrf.mxu0 }
 0xc9e   : > { %v6152_v6 = vadd.f32 %v14929_v55, %v17607_v39 }
 0xc9f   : > { %v6131_v35 = vpop.f32.mrf.mxu1  ;;  %v6351_v46 = vpop.f32.mrf.mxu0 }
 0xca0   : > { %v17711_v7 = vadd.f32 %v14971_v15, %v6152_v6  ;;  %v6150_v36 = vadd.f32 %v6131_v35, %v17609_v63 }
 0xca1   : > { %v14930_v56 = vpop.f32.mrf.mxu1  ;;  %v14972_v29 = vpop.f32.mrf.mxu0 }
 0xca2   : > { %v17714_v32 = vadd.f32 %v6351_v46, %v6150_v36  ;;  %v6153_v30 = vadd.f32 %v14930_v56, %v17611_v49 }
 0xca3   : > { %v17717_v4 = vpop.f32.mrf.mxu1  ;;  %v17719_v0 = vpop.f32.mrf.mxu0 }
 0xca4   : > { %v17721_v8 = vadd.f32 %v14972_v29, %v6153_v30 }
 0xca5   : > { %v17723_v10 = vpop.f32.mrf.mxu1  ;;  %v17725_v39 = vpop.f32.mrf.mxu0 }
 0xca7   : > { %v17727_v48 = vpop.f32.mrf.mxu1  ;;  %v17729_v38 = vpop.f32.mrf.mxu0 }
 0xca9   : > { %v14978_v63 = vpop.f32.mrf.mxu1  ;;  %v15020_v24 = vpop.f32.mrf.mxu0 }
 0xcab   : > { %v17731_v23 = vpop.f32.mrf.mxu1  ;;  %v17733_v20 = vpop.f32.mrf.mxu0 }
 0xcad   : > { %v14981_v49 = vpop.f32.mrf.mxu1  ;;  %v15023_v52 = vpop.f32.mrf.mxu0 }
 0xcaf   : > { %v6433_v54 = vpop.f32.mrf.mxu1  ;;  %v6653_v19 = vpop.f32.mrf.mxu0 }
 0xcb1   : > { %v14982_v14 = vpop.f32.mrf.mxu1  ;;  %v15024_v42 = vpop.f32.mrf.mxu0 }
 0xcb2   : > { %v6483_v29 = vpack.c.bf16 %v14982_v14, %v14981_v49  ;;  %v6703_v30 = vpack.c.bf16 %v15024_v42, %v15023_v52  ;;  %v6480_v49 = vpack.c.bf16 %v17731_v23, %v17727_v48  ;;  %v6700_v52 = vpack.c.bf16 %v17733_v20, %v17729_v38  ;;  %v15717_v48 = vld [vmem:[%s19100_s7 + $0xa8] sm:$0xff]   ;;  %v15718_v38 = vld [vmem:[%s19100_s7 + $0x90] sm:$0xff]   ;;  %v15720_v23 = vld [vmem:[%s19100_s7 + $0x98] sm:$0xff]  }
 0xcb3   : > { %v6436_v28 = vpop.f32.mrf.mxu1  ;;  %v6656_v33 = vpop.f32.mrf.mxu0  ;;  %v15721_v20 = vld [vmem:[%s19100_s7 + $0xb8] sm:$0xff]  }
 0xcb5   : > { %v14985_v21 = vpop.f32.mrf.mxu1  ;;  %v15027_v1 = vpop.f32.mrf.mxu0 }
 0xcb7   : > { %v6449_v60 = vpop.f32.mrf.mxu1  ;;  %v6669_v37 = vpop.f32.mrf.mxu0 }
 0xcb9   : > { %v14986_v12 = vpop.f32.mrf.mxu1  ;;  %v15028_v57 = vpop.f32.mrf.mxu0 }
 0xcba   : > { %v6485_v35 = vpack.c.bf16 %v14986_v12, %v14985_v21  ;;  %v6705_v46 = vpack.c.bf16 %v15028_v57, %v15027_v1  ;;  %v6481_v21 = vpack.c.bf16 %v14978_v63, %v17723_v10  ;;  %v6701_v1 = vpack.c.bf16 %v15020_v24, %v17725_v39  ;;  %v15722_v10 = vld [vmem:[%s19099_s6 + $0x30] sm:$0xff]   ;;  %v15723_v39 = vld [vmem:[%s19099_s6 + $0x38] sm:$0xff]   ;;  %v15716_v63 = vld [vmem:[%s19100_s7 + $0x88] sm:$0xff]  }
 0xcbb   : > { %v6452_v22 = vpop.f32.mrf.mxu1  ;;  %v6672_v26 = vpop.f32.mrf.mxu0  ;;  %v15719_v24 = vld [vmem:[%s19100_s7 + $0xb0] sm:$0xff]  }
 0xcbc   : > { %v6484_v36 = vpack.c.bf16 %v6452_v22, %v6449_v60  ;;  %v6704_v56 = vpack.c.bf16 %v6672_v26, %v6669_v37 }
 0xcbd   : > { %v14989_v59 = vpop.f32.mrf.mxu1  ;;  %v15031_v53 = vpop.f32.mrf.mxu0 }
 0xcbf   : > { %v6465_v62 = vpop.f32.mrf.mxu1  ;;  %v6685_v25 = vpop.f32.mrf.mxu0 }
 0xcc1   : > { %v14990_v5 = vpop.f32.mrf.mxu1  ;;  %v15032_v47 = vpop.f32.mrf.mxu0 }
 0xcc2   : > { %v6487_v58 = vpack.c.bf16 %v14990_v5, %v14989_v59  ;;  %v6707_v3 = vpack.c.bf16 %v15032_v47, %v15031_v53  ;;  %v6482_v59 = vpack.c.bf16 %v6436_v28, %v6433_v54  ;;  %v6702_v53 = vpack.c.bf16 %v6656_v33, %v6653_v19  ;;  %v15724_v54 = vld [vmem:[%s19100_s7 + $0xc0] sm:$0xff]  }
 0xcc3   : > { %v6468_v16 = vpop.f32.mrf.mxu1  ;;  %v6688_v55 = vpop.f32.mrf.mxu0  ;;  %v15725_v19 = vld [vmem:[%s19100_s7 + $0xe0] sm:$0xff]  }
 0xcc4   : > { %v6486_v15 = vpack.c.bf16 %v6468_v16, %v6465_v62  ;;  %v6706_v6 = vpack.c.bf16 %v6688_v55, %v6685_v25  ;;  %14991 = vmatprep.subr.bf16.mxu1 %v6487_v58  ;;  %15033 = vmatprep.subr.bf16.mxu0 %v6707_v3 }
 0xcc5   : > { %14992 = vmatpush3.bf16.msra.mxu1 %v6487_v58  ;;  %15034 = vmatpush3.bf16.msra.mxu0 %v6707_v3 }
 0xcc6   : > { %14993 = vmatprep.subr.bf16.mxu1 %v6486_v15  ;;  %15035 = vmatprep.subr.bf16.mxu0 %v6706_v6 }
 0xcc9   : > { %14994 = vmatpush3.bf16.msra.mxu1 %v6486_v15  ;;  %15036 = vmatpush3.bf16.msra.mxu0 %v6706_v6 }
 0xcca   : > { %14995 = vmatprep.subr.bf16.mxu1 %v6485_v35  ;;  %15037 = vmatprep.subr.bf16.mxu0 %v6705_v46 }
 0xccd   : > { %14996 = vmatpush3.bf16.msra.mxu1 %v6485_v35  ;;  %15038 = vmatpush3.bf16.msra.mxu0 %v6705_v46 }
 0xcce   : > { %14997 = vmatprep.subr.bf16.mxu1 %v6484_v36  ;;  %15039 = vmatprep.subr.bf16.mxu0 %v6704_v56 }
 0xcd1   : > { %14998 = vmatpush3.bf16.msra.mxu1 %v6484_v36  ;;  %15040 = vmatpush3.bf16.msra.mxu0 %v6704_v56 }
 0xcd2   : > { %14999 = vmatprep.subr.bf16.mxu1 %v6483_v29  ;;  %15041 = vmatprep.subr.bf16.mxu0 %v6703_v30 }
 0xcd5   : > { %15000 = vmatpush3.bf16.msra.mxu1 %v6483_v29  ;;  %15042 = vmatpush3.bf16.msra.mxu0 %v6703_v30 }
 0xcd6   : > { %15001 = vmatprep.subr.bf16.mxu1 %v6482_v59  ;;  %15043 = vmatprep.subr.bf16.mxu0 %v6702_v53 }
 0xcd9   : > { %15002 = vmatpush3.bf16.msra.mxu1 %v6482_v59  ;;  %15044 = vmatpush3.bf16.msra.mxu0 %v6702_v53 }
 0xcda   : > { %15003 = vmatprep.subr.bf16.mxu1 %v6481_v21  ;;  %15045 = vmatprep.subr.bf16.mxu0 %v6701_v1 }
 0xcdd   : > { %15004 = vmatpush3.bf16.msra.mxu1 %v6481_v21  ;;  %15046 = vmatpush3.bf16.msra.mxu0 %v6701_v1 }
 0xcde   : > { %15005 = vmatprep.subr.bf16.mxu1 %v6480_v49  ;;  %15047 = vmatprep.subr.bf16.mxu0 %v6700_v52 }
 0xce1   : > { %15006 = vmatpush3.bf16.msra.mxu1 %v6480_v49  ;;  %15048 = vmatpush3.bf16.msra.mxu0 %v6700_v52 }
 0xce2   : > { %15057 = vmatprep.subr.bf16.mxu1 %v15722_v10  ;;  %15099 = vmatprep.subr.bf16.mxu0 %v15723_v39 }
 0xce4   : > { %15008 = vmatmul.mubr.bf16.vlgmr.msra.gmra.mxu1 %v15716_v63  ;;  %15050 = vmatmul.mubr.bf16.vlgmr.msra.gmra.mxu0 %v15717_v48 }
 0xce5   : > { %15011 = vmatprep.mubr.bf16.mxu1 %v15718_v38  ;;  %15053 = vmatprep.mubr.bf16.mxu0 %v15719_v24 }
 0xce6   : > { %15058 = vmatpush3.bf16.msra.mxu1 %v15722_v10  ;;  %15100 = vmatpush3.bf16.msra.mxu0 %v15723_v39 }
 0xcec   : > { %15012 = vmatmul.mubr.bf16.gmra.mxu1 %v15720_v23  ;;  %15054 = vmatmul.mubr.bf16.gmra.mxu0 %v15721_v20 }
 0xced   : > { %15059 = vmatprep.mubr.msk.bf16.mxu1 %vm5495_vm1, %v17444_v50  ;;  %15101 = vmatprep.mubr.msk.bf16.mxu0 %vm5495_vm1, %v17444_v50 }
 0xcf4   : > { %15060 = vmatmul.mubr.msk.bf16.vlgmr.msra.gmra.mxu1 %vm5495_vm1, %v17440_v61  ;;  %15102 = vmatmul.mubr.msk.bf16.vlgmr.msra.gmra.mxu0 %vm5495_vm1, %v17440_v61 }
 0xcf5   : > { %15063 = vmatprep.mubr.msk.bf16.mxu1 %vm5495_vm1, %v17469_v43  ;;  %15105 = vmatprep.mubr.msk.bf16.mxu0 %vm5495_vm1, %v17469_v43 }
 0xcfc   : > { %15064 = vmatmul.mubr.msk.bf16.gmra.mxu1 %vm5495_vm1, %v17466_v40  ;;  %15106 = vmatmul.mubr.msk.bf16.gmra.mxu0 %vm5495_vm1, %v17466_v40 }
 0xcfd   : > { %15067 = vmatprep.mubr.msk.bf16.mxu1 %vm5495_vm1, %v17489_v2  ;;  %15109 = vmatprep.mubr.msk.bf16.mxu0 %vm5495_vm1, %v17489_v2 }
 0xd04   : > { %15068 = vmatmul.mubr.msk.bf16.gmra.mxu1 %vm5495_vm1, %v17487_v18  ;;  %15110 = vmatmul.mubr.msk.bf16.gmra.mxu0 %vm5495_vm1, %v17487_v18 }
 0xd05   : > { %15071 = vmatprep.mubr.msk.bf16.mxu1 %vm5495_vm1, %v17501_v41  ;;  %15113 = vmatprep.mubr.msk.bf16.mxu0 %vm5495_vm1, %v17501_v41 }
 0xd0c   : > { %15072 = vmatmul.mubr.msk.bf16.gmra.mxu1 %vm5495_vm1, %v17499_v51  ;;  %15114 = vmatmul.mubr.msk.bf16.gmra.mxu0 %vm5495_vm1, %v17499_v51 }
 0xd0d   : > { %15091 = vmatprep.mubr.bf16.mxu1 %v15724_v54  ;;  %15133 = vmatprep.mubr.bf16.mxu0 %v15725_v19 }
 0xda4   : > { %v15009_v14 = vpop.f32.mrf.mxu1  ;;  %v15051_v42 = vpop.f32.mrf.mxu0 }
 0xda5   : > { %v6588_v28 = vadd.f32 %v15009_v14, %v17698_v17 }
 0xda6   : > { %v6555_v33 = vpop.f32.mrf.mxu1  ;;  %v6775_v60 = vpop.f32.mrf.mxu0 }
 0xda7   : > { %v17804_v37 = vadd.f32 %v15051_v42, %v6588_v28  ;;  %v6586_v12 = vadd.f32 %v6555_v33, %v17701_v9 }
 0xda8   : > { %v15010_v57 = vpop.f32.mrf.mxu1  ;;  %v15052_v22 = vpop.f32.mrf.mxu0 }
 0xda9   : > { %v17807_v26 = vadd.f32 %v6775_v60, %v6586_v12  ;;  %v6589_v62 = vadd.f32 %v15010_v57, %v17708_v44 }
 0xdaa   : > { %v17810_v25 = vpop.f32.mrf.mxu1  ;;  %v17812_v5 = vpop.f32.mrf.mxu0 }
 0xdab   : > { %v17814_v47 = vadd.f32 %v15052_v22, %v6589_v62 }
 0xdac   : > { %v15013_v58 = vpop.f32.mrf.mxu1  ;;  %v15055_v17 = vpop.f32.mrf.mxu0 }
 0xdad   : > { %v6592_v3 = vadd.f32 %v15013_v58, %v17711_v7 }
 0xdae   : > { %v6571_v16 = vpop.f32.mrf.mxu1  ;;  %v6791_v55 = vpop.f32.mrf.mxu0 }
 0xdaf   : > { %v17817_v15 = vadd.f32 %v15055_v17, %v6592_v3  ;;  %v6590_v9 = vadd.f32 %v6571_v16, %v17714_v32 }
 0xdb0   : > { %v15014_v6 = vpop.f32.mrf.mxu1  ;;  %v15056_v35 = vpop.f32.mrf.mxu0 }
 0xdb1   : > { %v17820_v46 = vadd.f32 %v6791_v55, %v6590_v9  ;;  %v6593_v44 = vadd.f32 %v15014_v6, %v17721_v8 }
 0xdb2   : > { %v17823_v36 = vpop.f32.mrf.mxu1  ;;  %v17825_v56 = vpop.f32.mrf.mxu0 }
 0xdb3   : > { %19154 = vst [vmem:[#allocation5_spill] sm:$0xff] %v17823_v36  ;;  %19155 = vst [vmem:[#allocation13_spill] sm:$0xff] %v17825_v56  ;;  %v17827_v29 = vadd.f32 %v15056_v35, %v6593_v44 }
 0xdb4   : > { %v17829_v30 = vpop.f32.mrf.mxu1  ;;  %v17831_v7 = vpop.f32.mrf.mxu0 }
 0xdb6   : > { %v17833_v59 = vpop.f32.mrf.mxu1  ;;  %v17835_v53 = vpop.f32.mrf.mxu0 }
 0xdb8   : > { %v15062_v32 = vpop.f32.mrf.mxu1  ;;  %v15104_v21 = vpop.f32.mrf.mxu0 }
 0xdba   : > { %v17837_v1 = vpop.f32.mrf.mxu1  ;;  %v17839_v49 = vpop.f32.mrf.mxu0 }
 0xdbc   : > { %v15065_v8 = vpop.f32.mrf.mxu1  ;;  %v15107_v52 = vpop.f32.mrf.mxu0 }
 0xdbe   : > { %v6873_v10 = vpop.f32.mrf.mxu1  ;;  %v7093_v39 = vpop.f32.mrf.mxu0 }
 0xdc0   : > { %v15066_v63 = vpop.f32.mrf.mxu1  ;;  %v15108_v48 = vpop.f32.mrf.mxu0 }
 0xdc2   : > { %v6876_v38 = vpop.f32.mrf.mxu1  ;;  %v7096_v24 = vpop.f32.mrf.mxu0 }
 0xdc4   : > { %v15069_v23 = vpop.f32.mrf.mxu1  ;;  %v15111_v20 = vpop.f32.mrf.mxu0 }
 0xdc6   : > { %v6889_v54 = vpop.f32.mrf.mxu1  ;;  %v7109_v19 = vpop.f32.mrf.mxu0 }
 0xdc8   : > { %v15070_v14 = vpop.f32.mrf.mxu1  ;;  %v15112_v42 = vpop.f32.mrf.mxu0 }
 0xdc9   : > { %v6925_v35 = vpack.c.bf16 %v15070_v14, %v15069_v23  ;;  %v7145_v44 = vpack.c.bf16 %v15112_v42, %v15111_v20  ;;  %v6921_v23 = vpack.c.bf16 %v15062_v32, %v17829_v30  ;;  %v7141_v20 = vpack.c.bf16 %v15104_v21, %v17831_v7  ;;  %v15732_v30 = vld [vmem:[%s19099_s6 + $0x40] sm:$0xff]   ;;  %v15733_v7 = vld [vmem:[%s19099_s6 + $0x48] sm:$0xff]   ;;  %v15729_v21 = vld [vmem:[%s19100_s7 + $0xf0] sm:$0xff]  }
 0xdca   : > { %v6892_v28 = vpop.f32.mrf.mxu1  ;;  %v7112_v33 = vpop.f32.mrf.mxu0  ;;  %v15726_v32 = vld [vmem:[%s19100_s7 + $0xc8] sm:$0xff]  }
 0xdcb   : > { %v6924_v56 = vpack.c.bf16 %v6892_v28, %v6889_v54  ;;  %v7144_v36 = vpack.c.bf16 %v7112_v33, %v7109_v19 }
 0xdcc   : > { %v15073_v60 = vpop.f32.mrf.mxu1  ;;  %v15115_v12 = vpop.f32.mrf.mxu0 }
 0xdce   : > { %v6905_v57 = vpop.f32.mrf.mxu1  ;;  %v7125_v22 = vpop.f32.mrf.mxu0 }
 0xdd0   : > { %v15074_v62 = vpop.f32.mrf.mxu1  ;;  %v15116_v58 = vpop.f32.mrf.mxu0 }
 0xdd1   : > { %v6927_v17 = vpack.c.bf16 %v15074_v62, %v15073_v60  ;;  %v7147_v3 = vpack.c.bf16 %v15116_v58, %v15115_v12  ;;  %v6923_v60 = vpack.c.bf16 %v15066_v63, %v15065_v8  ;;  %v7143_v12 = vpack.c.bf16 %v15108_v48, %v15107_v52  ;;  %v15734_v8 = vld [vmem:[%s19100_s7 + $0x100] sm:$0xff]  }
 0xdd2   : > { %v6908_v16 = vpop.f32.mrf.mxu1  ;;  %v7128_v55 = vpop.f32.mrf.mxu0  ;;  %v15735_v52 = vld [vmem:[%s19100_s7 + $0x120] sm:$0xff]  }
 0xdd3   : > { %v6926_v9 = vpack.c.bf16 %v6908_v16, %v6905_v57  ;;  %v7146_v6 = vpack.c.bf16 %v7128_v55, %v7125_v22  ;;  %15075 = vmatprep.subr.bf16.mxu1 %v6927_v17  ;;  %15117 = vmatprep.subr.bf16.mxu0 %v7147_v3  ;;  %v6922_v57 = vpack.c.bf16 %v6876_v38, %v6873_v10 }
 0xdd4   : > { %15076 = vmatpush3.bf16.msra.mxu1 %v6927_v17  ;;  %15118 = vmatpush3.bf16.msra.mxu0 %v7147_v3  ;;  %v7142_v22 = vpack.c.bf16 %v7096_v24, %v7093_v39 }
 0xdd5   : > { %15077 = vmatprep.subr.bf16.mxu1 %v6926_v9  ;;  %15119 = vmatprep.subr.bf16.mxu0 %v7146_v6 }
 0xdd8   : > { %15078 = vmatpush3.bf16.msra.mxu1 %v6926_v9  ;;  %15120 = vmatpush3.bf16.msra.mxu0 %v7146_v6 }
 0xdd9   : > { %15079 = vmatprep.subr.bf16.mxu1 %v6925_v35  ;;  %15121 = vmatprep.subr.bf16.mxu0 %v7145_v44 }
 0xddc   : > { %15080 = vmatpush3.bf16.msra.mxu1 %v6925_v35  ;;  %15122 = vmatpush3.bf16.msra.mxu0 %v7145_v44 }
 0xddd   : > { %15081 = vmatprep.subr.bf16.mxu1 %v6924_v56  ;;  %15123 = vmatprep.subr.bf16.mxu0 %v7144_v36 }
 0xde0   : > { %15082 = vmatpush3.bf16.msra.mxu1 %v6924_v56  ;;  %15124 = vmatpush3.bf16.msra.mxu0 %v7144_v36  ;;  %v6920_v56 = vpack.c.bf16 %v17837_v1, %v17833_v59  ;;  %v7140_v36 = vpack.c.bf16 %v17839_v49, %v17835_v53  ;;  %v15727_v59 = vld [vmem:[%s19100_s7 + $0xe8] sm:$0xff]   ;;  %v15728_v53 = vld [vmem:[%s19100_s7 + $0xd0] sm:$0xff]   ;;  %v15730_v1 = vld [vmem:[%s19100_s7 + $0xd8] sm:$0xff]  }
 0xde1   : > { %15083 = vmatprep.subr.bf16.mxu1 %v6923_v60  ;;  %15125 = vmatprep.subr.bf16.mxu0 %v7143_v12  ;;  %v15731_v49 = vld [vmem:[%s19100_s7 + $0xf8] sm:$0xff]  }
 0xde4   : > { %15084 = vmatpush3.bf16.msra.mxu1 %v6923_v60  ;;  %15126 = vmatpush3.bf16.msra.mxu0 %v7143_v12 }
 0xde5   : > { %15085 = vmatprep.subr.bf16.mxu1 %v6922_v57  ;;  %15127 = vmatprep.subr.bf16.mxu0 %v7142_v22 }
 0xde8   : > { %15086 = vmatpush3.bf16.msra.mxu1 %v6922_v57  ;;  %15128 = vmatpush3.bf16.msra.mxu0 %v7142_v22 }
 0xde9   : > { %15087 = vmatprep.subr.bf16.mxu1 %v6921_v23  ;;  %15129 = vmatprep.subr.bf16.mxu0 %v7141_v20 }
 0xdec   : > { %15088 = vmatpush3.bf16.msra.mxu1 %v6921_v23  ;;  %15130 = vmatpush3.bf16.msra.mxu0 %v7141_v20 }
 0xded   : > { %15089 = vmatprep.subr.bf16.mxu1 %v6920_v56  ;;  %15131 = vmatprep.subr.bf16.mxu0 %v7140_v36 }
 0xdf0   : > { %15090 = vmatpush3.bf16.msra.mxu1 %v6920_v56  ;;  %15132 = vmatpush3.bf16.msra.mxu0 %v7140_v36 }
 0xdf1   : > { %15141 = vmatprep.subr.bf16.mxu1 %v15732_v30  ;;  %15183 = vmatprep.subr.bf16.mxu0 %v15733_v7 }
 0xdf3   : > { %15092 = vmatmul.mubr.bf16.vlgmr.msra.gmra.mxu1 %v15726_v32  ;;  %15134 = vmatmul.mubr.bf16.vlgmr.msra.gmra.mxu0 %v15727_v59 }
 0xdf4   : > { %15095 = vmatprep.mubr.bf16.mxu1 %v15728_v53  ;;  %15137 = vmatprep.mubr.bf16.mxu0 %v15729_v21 }
 0xdf5   : > { %15142 = vmatpush3.bf16.msra.mxu1 %v15732_v30  ;;  %15184 = vmatpush3.bf16.msra.mxu0 %v15733_v7 }
 0xdfb   : > { %15096 = vmatmul.mubr.bf16.gmra.mxu1 %v15730_v1  ;;  %15138 = vmatmul.mubr.bf16.gmra.mxu0 %v15731_v49 }
 0xdfc   : > { %15143 = vmatprep.mubr.msk.bf16.mxu1 %vm5495_vm1, %v17444_v50  ;;  %15185 = vmatprep.mubr.msk.bf16.mxu0 %vm5495_vm1, %v17444_v50 }
 0xe03   : > { %15144 = vmatmul.mubr.msk.bf16.vlgmr.msra.gmra.mxu1 %vm5495_vm1, %v17440_v61  ;;  %15186 = vmatmul.mubr.msk.bf16.vlgmr.msra.gmra.mxu0 %vm5495_vm1, %v17440_v61 }
 0xe04   : > { %15147 = vmatprep.mubr.msk.bf16.mxu1 %vm5495_vm1, %v17469_v43  ;;  %15189 = vmatprep.mubr.msk.bf16.mxu0 %vm5495_vm1, %v17469_v43 }
 0xe0b   : > { %15148 = vmatmul.mubr.msk.bf16.gmra.mxu1 %vm5495_vm1, %v17466_v40  ;;  %15190 = vmatmul.mubr.msk.bf16.gmra.mxu0 %vm5495_vm1, %v17466_v40 }
 0xe0c   : > { %15151 = vmatprep.mubr.msk.bf16.mxu1 %vm5495_vm1, %v17489_v2  ;;  %15193 = vmatprep.mubr.msk.bf16.mxu0 %vm5495_vm1, %v17489_v2 }
 0xe13   : > { %15152 = vmatmul.mubr.msk.bf16.gmra.mxu1 %vm5495_vm1, %v17487_v18  ;;  %15194 = vmatmul.mubr.msk.bf16.gmra.mxu0 %vm5495_vm1, %v17487_v18 }
 0xe14   : > { %15155 = vmatprep.mubr.msk.bf16.mxu1 %vm5495_vm1, %v17501_v41  ;;  %15197 = vmatprep.mubr.msk.bf16.mxu0 %vm5495_vm1, %v17501_v41 }
 0xe1b   : > { %15156 = vmatmul.mubr.msk.bf16.gmra.mxu1 %vm5495_vm1, %v17499_v51  ;;  %15198 = vmatmul.mubr.msk.bf16.gmra.mxu0 %vm5495_vm1, %v17499_v51 }
 0xe1c   : > { %15175 = vmatprep.mubr.bf16.mxu1 %v15734_v8  ;;  %15217 = vmatprep.mubr.bf16.mxu0 %v15735_v52 }
 0xeb3   : > { %v15093_v10 = vpop.f32.mrf.mxu1  ;;  %v15135_v39 = vpop.f32.mrf.mxu0 }
 0xeb4   : > { %v7028_v63 = vadd.f32 %v15093_v10, %v17804_v37 }
 0xeb5   : > { %v6995_v48 = vpop.f32.mrf.mxu1  ;;  %v7215_v38 = vpop.f32.mrf.mxu0 }
 0xeb6   : > { %v17910_v24 = vadd.f32 %v15135_v39, %v7028_v63  ;;  %v7026_v54 = vadd.f32 %v6995_v48, %v17807_v26 }
 0xeb7   : > { %v15094_v19 = vpop.f32.mrf.mxu1  ;;  %v15136_v14 = vpop.f32.mrf.mxu0 }
 0xeb8   : > { %v17913_v42 = vadd.f32 %v7215_v38, %v7026_v54  ;;  %v7029_v28 = vadd.f32 %v15094_v19, %v17814_v47 }
 0xeb9   : > { %v17916_v33 = vpop.f32.mrf.mxu1  ;;  %v17918_v62 = vpop.f32.mrf.mxu0 }
 0xeba   : > { %19156 = vst [vmem:[#allocation2_spill] sm:$0xff] %v17916_v33  ;;  %19157 = vst [vmem:[#allocation7_spill] sm:$0xff] %v17918_v62  ;;  %v17920_v58 = vadd.f32 %v15136_v14, %v7029_v28 }
 0xebb   : > { %v15097_v17 = vpop.f32.mrf.mxu1  ;;  %v15139_v37 = vpop.f32.mrf.mxu0 }
 0xebc   : > { %v7032_v3 = vadd.f32 %v15097_v17, %v17817_v15 }
 0xebd   : > { %v7011_v16 = vpop.f32.mrf.mxu1  ;;  %v7231_v55 = vpop.f32.mrf.mxu0 }
 0xebe   : > { %v17923_v9 = vadd.f32 %v15139_v37, %v7032_v3  ;;  %v7030_v26 = vadd.f32 %v7011_v16, %v17820_v46 }
 0xebf   : > { %v15098_v6 = vpop.f32.mrf.mxu1  ;;  %v15140_v35 = vpop.f32.mrf.mxu0 }
 0xec0   : > { %v17926_v44 = vadd.f32 %v7231_v55, %v7030_v26  ;;  %v7033_v47 = vadd.f32 %v15098_v6, %v17827_v29 }
 0xec1   : > { %v17929_v60 = vpop.f32.mrf.mxu1  ;;  %v17931_v12 = vpop.f32.mrf.mxu0 }
 0xec2   : > { %19158 = vst [vmem:[#allocation16_spill] sm:$0xff] %v17929_v60  ;;  %19159 = vst [vmem:[#allocation3_spill] sm:$0xff] %v17931_v12  ;;  %v17933_v57 = vadd.f32 %v15140_v35, %v7033_v47 }
 0xec3   : > { %v17935_v22 = vpop.f32.mrf.mxu1  ;;  %v17937_v15 = vpop.f32.mrf.mxu0 }
 0xec5   : > { %v17939_v23 = vpop.f32.mrf.mxu1  ;;  %v17941_v20 = vpop.f32.mrf.mxu0 }
 0xec7   : > { %v15146_v46 = vpop.f32.mrf.mxu1  ;;  %v15188_v56 = vpop.f32.mrf.mxu0 }
 0xec9   : > { %v17943_v36 = vpop.f32.mrf.mxu1  ;;  %v17945_v30 = vpop.f32.mrf.mxu0 }
 0xecb   : > { %v15149_v29 = vpop.f32.mrf.mxu1  ;;  %v15191_v7 = vpop.f32.mrf.mxu0 }
 0xecd   : > { %v7313_v32 = vpop.f32.mrf.mxu1  ;;  %v7533_v59 = vpop.f32.mrf.mxu0 }
 0xecf   : > { %v15150_v53 = vpop.f32.mrf.mxu1  ;;  %v15192_v21 = vpop.f32.mrf.mxu0 }
 0xed1   : > { %v7316_v1 = vpop.f32.mrf.mxu1  ;;  %v7536_v49 = vpop.f32.mrf.mxu0 }
 0xed3   : > { %v15153_v8 = vpop.f32.mrf.mxu1  ;;  %v15195_v52 = vpop.f32.mrf.mxu0 }
 0xed5   : > { %v7329_v10 = vpop.f32.mrf.mxu1  ;;  %v7549_v39 = vpop.f32.mrf.mxu0 }
 0xed7   : > { %v15154_v63 = vpop.f32.mrf.mxu1  ;;  %v15196_v48 = vpop.f32.mrf.mxu0 }
 0xed8   : > { %v7365_v12 = vpack.c.bf16 %v15154_v63, %v15153_v8  ;;  %v7585_v60 = vpack.c.bf16 %v15196_v48, %v15195_v52  ;;  %v7361_v8 = vpack.c.bf16 %v15146_v46, %v17935_v22  ;;  %v7581_v52 = vpack.c.bf16 %v15188_v56, %v17937_v15  ;;  %v15736_v22 = vld [vmem:[%s19100_s7 + $0x108] sm:$0xff]   ;;  %v15740_v46 = vld [vmem:[%s19100_s7 + $0x118] sm:$0xff]  }
 0xed9   : > { %v7332_v38 = vpop.f32.mrf.mxu1  ;;  %v7552_v54 = vpop.f32.mrf.mxu0  ;;  %v15737_v15 = vld [vmem:[%s19100_s7 + $0x128] sm:$0xff]   ;;  %v15741_v56 = vld [vmem:[%s19100_s7 + $0x138] sm:$0xff]  }
 0xeda   : > { %v7364_v62 = vpack.c.bf16 %v7332_v38, %v7329_v10  ;;  %v7584_v33 = vpack.c.bf16 %v7552_v54, %v7549_v39 }
 0xedb   : > { %v15157_v19 = vpop.f32.mrf.mxu1  ;;  %v15199_v14 = vpop.f32.mrf.mxu0 }
 0xedd   : > { %v7345_v28 = vpop.f32.mrf.mxu1  ;;  %v7565_v17 = vpop.f32.mrf.mxu0 }
 0xedf   : > { %v15158_v37 = vpop.f32.mrf.mxu1  ;;  %v15200_v3 = vpop.f32.mrf.mxu0 }
 0xee0   : > { %v7367_v16 = vpack.c.bf16 %v15158_v37, %v15157_v19  ;;  %v7587_v55 = vpack.c.bf16 %v15200_v3, %v15199_v14  ;;  %v7363_v19 = vpack.c.bf16 %v15150_v53, %v15149_v29  ;;  %v7583_v14 = vpack.c.bf16 %v15192_v21, %v15191_v7 }
 0xee1   : > { %v7348_v26 = vpop.f32.mrf.mxu1  ;;  %v7568_v6 = vpop.f32.mrf.mxu0 }
 0xee2   : > { %v7366_v35 = vpack.c.bf16 %v7348_v26, %v7345_v28  ;;  %v7586_v47 = vpack.c.bf16 %v7568_v6, %v7565_v17  ;;  %15159 = vmatprep.subr.bf16.mxu1 %v7367_v16  ;;  %15201 = vmatprep.subr.bf16.mxu0 %v7587_v55  ;;  %v7362_v28 = vpack.c.bf16 %v7316_v1, %v7313_v32 }
 0xee3   : > { %15160 = vmatpush3.bf16.msra.mxu1 %v7367_v16  ;;  %15202 = vmatpush3.bf16.msra.mxu0 %v7587_v55  ;;  %v7582_v17 = vpack.c.bf16 %v7536_v49, %v7533_v59 }
 0xee4   : > { %15161 = vmatprep.subr.bf16.mxu1 %v7366_v35  ;;  %15203 = vmatprep.subr.bf16.mxu0 %v7586_v47 }
 0xee7   : > { %15162 = vmatpush3.bf16.msra.mxu1 %v7366_v35  ;;  %15204 = vmatpush3.bf16.msra.mxu0 %v7586_v47 }
 0xee8   : > { %15163 = vmatprep.subr.bf16.mxu1 %v7365_v12  ;;  %15205 = vmatprep.subr.bf16.mxu0 %v7585_v60 }
 0xeeb   : > { %15164 = vmatpush3.bf16.msra.mxu1 %v7365_v12  ;;  %15206 = vmatpush3.bf16.msra.mxu0 %v7585_v60  ;;  %v15742_v60 = vld [vmem:[%s19099_s6 + $0x50] sm:$0xff]   ;;  %v15743_v12 = vld [vmem:[%s19099_s6 + $0x58] sm:$0xff]  }
 0xeec   : > { %15165 = vmatprep.subr.bf16.mxu1 %v7364_v62  ;;  %15207 = vmatprep.subr.bf16.mxu0 %v7584_v33 }
 0xeef   : > { %15166 = vmatpush3.bf16.msra.mxu1 %v7364_v62  ;;  %15208 = vmatpush3.bf16.msra.mxu0 %v7584_v33  ;;  %v7360_v62 = vpack.c.bf16 %v17943_v36, %v17939_v23  ;;  %v7580_v33 = vpack.c.bf16 %v17945_v30, %v17941_v20  ;;  %v15738_v23 = vld [vmem:[%s19100_s7 + $0x110] sm:$0xff]   ;;  %v15744_v36 = vld [vmem:[%s19100_s7 + $0x140] sm:$0xff]  }
 0xef0   : > { %15167 = vmatprep.subr.bf16.mxu1 %v7363_v19  ;;  %15209 = vmatprep.subr.bf16.mxu0 %v7583_v14  ;;  %v15739_v20 = vld [vmem:[%s19100_s7 + $0x130] sm:$0xff]   ;;  %v15745_v30 = vld [vmem:[%s19100_s7 + $0x160] sm:$0xff]  }
 0xef3   : > { %15168 = vmatpush3.bf16.msra.mxu1 %v7363_v19  ;;  %15210 = vmatpush3.bf16.msra.mxu0 %v7583_v14 }
 0xef4   : > { %15169 = vmatprep.subr.bf16.mxu1 %v7362_v28  ;;  %15211 = vmatprep.subr.bf16.mxu0 %v7582_v17 }
 0xef7   : > { %15170 = vmatpush3.bf16.msra.mxu1 %v7362_v28  ;;  %15212 = vmatpush3.bf16.msra.mxu0 %v7582_v17 }
 0xef8   : > { %15171 = vmatprep.subr.bf16.mxu1 %v7361_v8  ;;  %15213 = vmatprep.subr.bf16.mxu0 %v7581_v52 }
 0xefb   : > { %15172 = vmatpush3.bf16.msra.mxu1 %v7361_v8  ;;  %15214 = vmatpush3.bf16.msra.mxu0 %v7581_v52 }
 0xefc   : > { %15173 = vmatprep.subr.bf16.mxu1 %v7360_v62  ;;  %15215 = vmatprep.subr.bf16.mxu0 %v7580_v33 }
 0xeff   : > { %15174 = vmatpush3.bf16.msra.mxu1 %v7360_v62  ;;  %15216 = vmatpush3.bf16.msra.mxu0 %v7580_v33 }
 0xf00   : > { %15225 = vmatprep.subr.bf16.mxu1 %v15742_v60  ;;  %15267 = vmatprep.subr.bf16.mxu0 %v15743_v12 }
 0xf02   : > { %15176 = vmatmul.mubr.bf16.vlgmr.msra.gmra.mxu1 %v15736_v22  ;;  %15218 = vmatmul.mubr.bf16.vlgmr.msra.gmra.mxu0 %v15737_v15 }
 0xf03   : > { %15179 = vmatprep.mubr.bf16.mxu1 %v15738_v23  ;;  %15221 = vmatprep.mubr.bf16.mxu0 %v15739_v20 }
 0xf04   : > { %15226 = vmatpush3.bf16.msra.mxu1 %v15742_v60  ;;  %15268 = vmatpush3.bf16.msra.mxu0 %v15743_v12 }
 0xf0a   : > { %15180 = vmatmul.mubr.bf16.gmra.mxu1 %v15740_v46  ;;  %15222 = vmatmul.mubr.bf16.gmra.mxu0 %v15741_v56 }
 0xf0b   : > { %15227 = vmatprep.mubr.msk.bf16.mxu1 %vm5495_vm1, %v17444_v50  ;;  %15269 = vmatprep.mubr.msk.bf16.mxu0 %vm5495_vm1, %v17444_v50 }
 0xf12   : > { %15228 = vmatmul.mubr.msk.bf16.vlgmr.msra.gmra.mxu1 %vm5495_vm1, %v17440_v61  ;;  %15270 = vmatmul.mubr.msk.bf16.vlgmr.msra.gmra.mxu0 %vm5495_vm1, %v17440_v61 }
 0xf13   : > { %15231 = vmatprep.mubr.msk.bf16.mxu1 %vm5495_vm1, %v17469_v43  ;;  %15273 = vmatprep.mubr.msk.bf16.mxu0 %vm5495_vm1, %v17469_v43 }
 0xf1a   : > { %15232 = vmatmul.mubr.msk.bf16.gmra.mxu1 %vm5495_vm1, %v17466_v40  ;;  %15274 = vmatmul.mubr.msk.bf16.gmra.mxu0 %vm5495_vm1, %v17466_v40 }
 0xf1b   : > { %15235 = vmatprep.mubr.msk.bf16.mxu1 %vm5495_vm1, %v17489_v2  ;;  %15277 = vmatprep.mubr.msk.bf16.mxu0 %vm5495_vm1, %v17489_v2 }
 0xf22   : > { %15236 = vmatmul.mubr.msk.bf16.gmra.mxu1 %vm5495_vm1, %v17487_v18  ;;  %15278 = vmatmul.mubr.msk.bf16.gmra.mxu0 %vm5495_vm1, %v17487_v18 }
 0xf23   : > { %15239 = vmatprep.mubr.msk.bf16.mxu1 %vm5495_vm1, %v17501_v41  ;;  %15281 = vmatprep.mubr.msk.bf16.mxu0 %vm5495_vm1, %v17501_v41 }
 0xf2a   : > { %15240 = vmatmul.mubr.msk.bf16.gmra.mxu1 %vm5495_vm1, %v17499_v51  ;;  %15282 = vmatmul.mubr.msk.bf16.gmra.mxu0 %vm5495_vm1, %v17499_v51 }
 0xf2b   : > { %15259 = vmatprep.mubr.bf16.mxu1 %v15744_v36  ;;  %15301 = vmatprep.mubr.bf16.mxu0 %v15745_v30 }
 0xfc2   : > { %v15177_v29 = vpop.f32.mrf.mxu1  ;;  %v15219_v7 = vpop.f32.mrf.mxu0 }
 0xfc3   : > { %v7468_v32 = vadd.f32 %v15177_v29, %v17910_v24 }
 0xfc4   : > { %v7435_v59 = vpop.f32.mrf.mxu1  ;;  %v7655_v53 = vpop.f32.mrf.mxu0 }
 0xfc5   : > { %v18016_v21 = vadd.f32 %v15219_v7, %v7468_v32  ;;  %v7466_v1 = vadd.f32 %v7435_v59, %v17913_v42 }
 0xfc6   : > { %v15178_v49 = vpop.f32.mrf.mxu1  ;;  %v15220_v10 = vpop.f32.mrf.mxu0 }
 0xfc7   : > { %v18019_v39 = vadd.f32 %v7655_v53, %v7466_v1  ;;  %v7469_v63 = vadd.f32 %v15178_v49, %v17920_v58 }
 0xfc8   : > { %v18022_v48 = vpop.f32.mrf.mxu1  ;;  %v18024_v38 = vpop.f32.mrf.mxu0 }
 0xfc9   : > { %19160 = vst [vmem:[#allocation9_spill] sm:$0xff] %v18022_v48  ;;  %19161 = vst [vmem:[#allocation19_spill] sm:$0xff] %v18024_v38  ;;  %v18026_v54 = vadd.f32 %v15220_v10, %v7469_v63 }
 0xfca   : > { %v15181_v37 = vpop.f32.mrf.mxu1  ;;  %v15223_v24 = vpop.f32.mrf.mxu0 }
 0xfcb   : > { %v7472_v3 = vadd.f32 %v15181_v37, %v17923_v9 }
 0xfcc   : > { %v7451_v16 = vpop.f32.mrf.mxu1  ;;  %v7671_v55 = vpop.f32.mrf.mxu0 }
 0xfcd   : > { %v18029_v26 = vadd.f32 %v15223_v24, %v7472_v3  ;;  %v7470_v42 = vadd.f32 %v7451_v16, %v17926_v44 }
 0xfce   : > { %v15182_v6 = vpop.f32.mrf.mxu1  ;;  %v15224_v35 = vpop.f32.mrf.mxu0 }
 0xfcf   : > { %v18032_v47 = vadd.f32 %v7671_v55, %v7470_v42  ;;  %v7473_v58 = vadd.f32 %v15182_v6, %v17933_v57 }
 0xfd0   : > { %v18035_v19 = vpop.f32.mrf.mxu1  ;;  %v18037_v14 = vpop.f32.mrf.mxu0 }
 0xfd1   : > { %19162 = vst [vmem:[#allocation4_spill] sm:$0xff] %v18035_v19  ;;  %19163 = vst [vmem:[#allocation11_spill] sm:$0xff] %v18037_v14  ;;  %v18039_v28 = vadd.f32 %v15224_v35, %v7473_v58 }
 0xfd2   : > { %v18041_v17 = vpop.f32.mrf.mxu1  ;;  %v18043_v9 = vpop.f32.mrf.mxu0 }
 0xfd4   : > { %v18045_v8 = vpop.f32.mrf.mxu1  ;;  %v18047_v52 = vpop.f32.mrf.mxu0 }
 0xfd6   : > { %v15230_v44 = vpop.f32.mrf.mxu1  ;;  %v15272_v62 = vpop.f32.mrf.mxu0 }
 0xfd8   : > { %v18049_v33 = vpop.f32.mrf.mxu1  ;;  %v18051_v60 = vpop.f32.mrf.mxu0 }
 0xfda   : > { %v15233_v57 = vpop.f32.mrf.mxu1  ;;  %v15275_v12 = vpop.f32.mrf.mxu0 }
 0xfdc   : > { %v7753_v22 = vpop.f32.mrf.mxu1  ;;  %v7973_v15 = vpop.f32.mrf.mxu0 }
 0xfde   : > { %v15234_v23 = vpop.f32.mrf.mxu1  ;;  %v15276_v20 = vpop.f32.mrf.mxu0 }
 0xfe0   : > { %v7756_v46 = vpop.f32.mrf.mxu1  ;;  %v7976_v56 = vpop.f32.mrf.mxu0 }
 0xfe2   : > { %v15237_v36 = vpop.f32.mrf.mxu1  ;;  %v15279_v30 = vpop.f32.mrf.mxu0 }
 0xfe4   : > { %v7769_v29 = vpop.f32.mrf.mxu1  ;;  %v7989_v7 = vpop.f32.mrf.mxu0 }
 0xfe6   : > { %v15238_v32 = vpop.f32.mrf.mxu1  ;;  %v15280_v59 = vpop.f32.mrf.mxu0 }
 0xfe7   : > { %v7805_v14 = vpack.c.bf16 %v15238_v32, %v15237_v36  ;;  %v8025_v19 = vpack.c.bf16 %v15280_v59, %v15279_v30  ;;  %v7801_v36 = vpack.c.bf16 %v15230_v44, %v18041_v17  ;;  %v8021_v30 = vpack.c.bf16 %v15272_v62, %v18043_v9  ;;  %v15746_v17 = vld [vmem:[%s19100_s7 + $0x148] sm:$0xff]   ;;  %v15750_v44 = vld [vmem:[%s19100_s7 + $0x158] sm:$0xff]  }
 0xfe8   : > { %v7772_v53 = vpop.f32.mrf.mxu1  ;;  %v7992_v1 = vpop.f32.mrf.mxu0  ;;  %v15747_v9 = vld [vmem:[%s19100_s7 + $0x168] sm:$0xff]   ;;  %v15751_v62 = vld [vmem:[%s19100_s7 + $0x178] sm:$0xff]  }
 0xfe9   : > { %v7804_v38 = vpack.c.bf16 %v7772_v53, %v7769_v29  ;;  %v8024_v48 = vpack.c.bf16 %v7992_v1, %v7989_v7 }
 0xfea   : > { %v15241_v49 = vpop.f32.mrf.mxu1  ;;  %v15283_v10 = vpop.f32.mrf.mxu0 }
 0xfec   : > { %v7785_v63 = vpop.f32.mrf.mxu1  ;;  %v8005_v37 = vpop.f32.mrf.mxu0 }
 0xfee   : > { %v15242_v24 = vpop.f32.mrf.mxu1  ;;  %v15284_v3 = vpop.f32.mrf.mxu0 }
 0xfef   : > { %v7807_v16 = vpack.c.bf16 %v15242_v24, %v15241_v49  ;;  %v8027_v55 = vpack.c.bf16 %v15284_v3, %v15283_v10  ;;  %v7803_v49 = vpack.c.bf16 %v15234_v23, %v15233_v57  ;;  %v8023_v10 = vpack.c.bf16 %v15276_v20, %v15275_v12 }
 0xff0   : > { %v7788_v42 = vpop.f32.mrf.mxu1  ;;  %v8008_v6 = vpop.f32.mrf.mxu0 }
 0xff1   : > { %v7806_v35 = vpack.c.bf16 %v7788_v42, %v7785_v63  ;;  %v8026_v58 = vpack.c.bf16 %v8008_v6, %v8005_v37  ;;  %15243 = vmatprep.subr.bf16.mxu1 %v7807_v16  ;;  %15285 = vmatprep.subr.bf16.mxu0 %v8027_v55  ;;  %v7802_v63 = vpack.c.bf16 %v7756_v46, %v7753_v22 }
 0xff2   : > { %15244 = vmatpush3.bf16.msra.mxu1 %v7807_v16  ;;  %15286 = vmatpush3.bf16.msra.mxu0 %v8027_v55  ;;  %v8022_v37 = vpack.c.bf16 %v7976_v56, %v7973_v15 }
 0xff3   : > { %15245 = vmatprep.subr.bf16.mxu1 %v7806_v35  ;;  %15287 = vmatprep.subr.bf16.mxu0 %v8026_v58 }
 0xff6   : > { %15246 = vmatpush3.bf16.msra.mxu1 %v7806_v35  ;;  %15288 = vmatpush3.bf16.msra.mxu0 %v8026_v58 }
 0xff7   : > { %15247 = vmatprep.subr.bf16.mxu1 %v7805_v14  ;;  %15289 = vmatprep.subr.bf16.mxu0 %v8025_v19 }
 0xffa   : > { %15248 = vmatpush3.bf16.msra.mxu1 %v7805_v14  ;;  %15290 = vmatpush3.bf16.msra.mxu0 %v8025_v19  ;;  %v15752_v19 = vld [vmem:[%s19099_s6 + $0x60] sm:$0xff]   ;;  %v15753_v14 = vld [vmem:[%s19099_s6 + $0x68] sm:$0xff]  }
 0xffb   : > { %15249 = vmatprep.subr.bf16.mxu1 %v7804_v38  ;;  %15291 = vmatprep.subr.bf16.mxu0 %v8024_v48 }
 0xffe   : > { %15250 = vmatpush3.bf16.msra.mxu1 %v7804_v38  ;;  %15292 = vmatpush3.bf16.msra.mxu0 %v8024_v48  ;;  %v7800_v38 = vpack.c.bf16 %v18049_v33, %v18045_v8  ;;  %v8020_v48 = vpack.c.bf16 %v18051_v60, %v18047_v52  ;;  %v15748_v8 = vld [vmem:[%s19100_s7 + $0x150] sm:$0xff]   ;;  %v15754_v33 = vld [vmem:[%s19100_s7 + $0x180] sm:$0xff]  }
 0xfff   : > { %15251 = vmatprep.subr.bf16.mxu1 %v7803_v49  ;;  %15293 = vmatprep.subr.bf16.mxu0 %v8023_v10  ;;  %v15749_v52 = vld [vmem:[%s19100_s7 + $0x170] sm:$0xff]   ;;  %v15755_v60 = vld [vmem:[%s19100_s7 + $0x1a0] sm:$0xff]  }
0x1002   : > { %15252 = vmatpush3.bf16.msra.mxu1 %v7803_v49  ;;  %15294 = vmatpush3.bf16.msra.mxu0 %v8023_v10 }
0x1003   : > { %15253 = vmatprep.subr.bf16.mxu1 %v7802_v63  ;;  %15295 = vmatprep.subr.bf16.mxu0 %v8022_v37 }
0x1006   : > { %15254 = vmatpush3.bf16.msra.mxu1 %v7802_v63  ;;  %15296 = vmatpush3.bf16.msra.mxu0 %v8022_v37 }
0x1007   : > { %15255 = vmatprep.subr.bf16.mxu1 %v7801_v36  ;;  %15297 = vmatprep.subr.bf16.mxu0 %v8021_v30 }
0x100a   : > { %15256 = vmatpush3.bf16.msra.mxu1 %v7801_v36  ;;  %15298 = vmatpush3.bf16.msra.mxu0 %v8021_v30 }
0x100b   : > { %15257 = vmatprep.subr.bf16.mxu1 %v7800_v38  ;;  %15299 = vmatprep.subr.bf16.mxu0 %v8020_v48 }
0x100e   : > { %15258 = vmatpush3.bf16.msra.mxu1 %v7800_v38  ;;  %15300 = vmatpush3.bf16.msra.mxu0 %v8020_v48 }
0x100f   : > { %15309 = vmatprep.subr.bf16.mxu1 %v15752_v19  ;;  %15351 = vmatprep.subr.bf16.mxu0 %v15753_v14 }
0x1011   : > { %15260 = vmatmul.mubr.bf16.vlgmr.msra.gmra.mxu1 %v15746_v17  ;;  %15302 = vmatmul.mubr.bf16.vlgmr.msra.gmra.mxu0 %v15747_v9 }
0x1012   : > { %15263 = vmatprep.mubr.bf16.mxu1 %v15748_v8  ;;  %15305 = vmatprep.mubr.bf16.mxu0 %v15749_v52 }
0x1013   : > { %15310 = vmatpush3.bf16.msra.mxu1 %v15752_v19  ;;  %15352 = vmatpush3.bf16.msra.mxu0 %v15753_v14 }
0x1019   : > { %15264 = vmatmul.mubr.bf16.gmra.mxu1 %v15750_v44  ;;  %15306 = vmatmul.mubr.bf16.gmra.mxu0 %v15751_v62 }
0x101a   : > { %15311 = vmatprep.mubr.msk.bf16.mxu1 %vm5495_vm1, %v17444_v50  ;;  %15353 = vmatprep.mubr.msk.bf16.mxu0 %vm5495_vm1, %v17444_v50 }
0x1021   : > { %15312 = vmatmul.mubr.msk.bf16.vlgmr.msra.gmra.mxu1 %vm5495_vm1, %v17440_v61  ;;  %15354 = vmatmul.mubr.msk.bf16.vlgmr.msra.gmra.mxu0 %vm5495_vm1, %v17440_v61 }
0x1022   : > { %15315 = vmatprep.mubr.msk.bf16.mxu1 %vm5495_vm1, %v17469_v43  ;;  %15357 = vmatprep.mubr.msk.bf16.mxu0 %vm5495_vm1, %v17469_v43 }
0x1029   : > { %15316 = vmatmul.mubr.msk.bf16.gmra.mxu1 %vm5495_vm1, %v17466_v40  ;;  %15358 = vmatmul.mubr.msk.bf16.gmra.mxu0 %vm5495_vm1, %v17466_v40 }
0x102a   : > { %15319 = vmatprep.mubr.msk.bf16.mxu1 %vm5495_vm1, %v17489_v2  ;;  %15361 = vmatprep.mubr.msk.bf16.mxu0 %vm5495_vm1, %v17489_v2 }
0x1031   : > { %15320 = vmatmul.mubr.msk.bf16.gmra.mxu1 %vm5495_vm1, %v17487_v18  ;;  %15362 = vmatmul.mubr.msk.bf16.gmra.mxu0 %vm5495_vm1, %v17487_v18 }
0x1032   : > { %15323 = vmatprep.mubr.msk.bf16.mxu1 %vm5495_vm1, %v17501_v41  ;;  %15365 = vmatprep.mubr.msk.bf16.mxu0 %vm5495_vm1, %v17501_v41 }
0x1039   : > { %15324 = vmatmul.mubr.msk.bf16.gmra.mxu1 %vm5495_vm1, %v17499_v51  ;;  %15366 = vmatmul.mubr.msk.bf16.gmra.mxu0 %vm5495_vm1, %v17499_v51 }
0x103a   : > { %15343 = vmatprep.mubr.bf16.mxu1 %v15754_v33  ;;  %15385 = vmatprep.mubr.bf16.mxu0 %v15755_v60 }
0x10d1   : > { %v15261_v57 = vpop.f32.mrf.mxu1  ;;  %v15303_v12 = vpop.f32.mrf.mxu0 }
0x10d2   : > { %v7908_v22 = vadd.f32 %v15261_v57, %v18016_v21 }
0x10d3   : > { %v7875_v15 = vpop.f32.mrf.mxu1  ;;  %v8095_v23 = vpop.f32.mrf.mxu0 }
0x10d4   : > { %v18122_v20 = vadd.f32 %v15303_v12, %v7908_v22  ;;  %v7906_v46 = vadd.f32 %v7875_v15, %v18019_v39 }
0x10d5   : > { %v15262_v56 = vpop.f32.mrf.mxu1  ;;  %v15304_v29 = vpop.f32.mrf.mxu0 }
0x10d6   : > { %v18125_v7 = vadd.f32 %v8095_v23, %v7906_v46  ;;  %v7909_v32 = vadd.f32 %v15262_v56, %v18026_v54 }
0x10d7   : > { %v18128_v59 = vpop.f32.mrf.mxu1  ;;  %v18130_v53 = vpop.f32.mrf.mxu0 }
0x10d8   : > { %19164 = vst [vmem:[#allocation6_spill] sm:$0xff] %v18128_v59  ;;  %19165 = vst [vmem:[#allocation14_spill] sm:$0xff] %v18130_v53  ;;  %v18132_v1 = vadd.f32 %v15304_v29, %v7909_v32 }
0x10d9   : > { %v15265_v24 = vpop.f32.mrf.mxu1  ;;  %v15307_v21 = vpop.f32.mrf.mxu0 }
0x10da   : > { %v7912_v3 = vadd.f32 %v15265_v24, %v18029_v26 }
0x10db   : > { %v7891_v16 = vpop.f32.mrf.mxu1  ;;  %v8111_v55 = vpop.f32.mrf.mxu0 }
0x10dc   : > { %v18135_v42 = vadd.f32 %v15307_v21, %v7912_v3  ;;  %v7910_v39 = vadd.f32 %v7891_v16, %v18032_v47 }
0x10dd   : > { %v15266_v6 = vpop.f32.mrf.mxu1  ;;  %v15308_v35 = vpop.f32.mrf.mxu0 }
0x10de   : > { %v18138_v58 = vadd.f32 %v8111_v55, %v7910_v39  ;;  %v7913_v54 = vadd.f32 %v15266_v6, %v18039_v28 }
0x10df   : > { %v18141_v49 = vpop.f32.mrf.mxu1  ;;  %v18143_v10 = vpop.f32.mrf.mxu0 }
0x10e0   : > { %19166 = vst [vmem:[#allocation8_spill] sm:$0xff] %v18141_v49  ;;  %19167 = vst [vmem:[#allocation17_spill] sm:$0xff] %v18143_v10  ;;  %v18145_v63 = vadd.f32 %v15308_v35, %v7913_v54 }
0x10e1   : > { %v18147_v37 = vpop.f32.mrf.mxu1  ;;  %v18149_v26 = vpop.f32.mrf.mxu0 }
0x10e3   : > { %v18151_v36 = vpop.f32.mrf.mxu1  ;;  %v18153_v30 = vpop.f32.mrf.mxu0 }
0x10e5   : > { %v15314_v47 = vpop.f32.mrf.mxu1  ;;  %v15356_v38 = vpop.f32.mrf.mxu0 }
0x10e7   : > { %v18155_v48 = vpop.f32.mrf.mxu1  ;;  %v18157_v19 = vpop.f32.mrf.mxu0 }
0x10e9   : > { %v15317_v28 = vpop.f32.mrf.mxu1  ;;  %v15359_v14 = vpop.f32.mrf.mxu0 }
0x10eb   : > { %v8193_v17 = vpop.f32.mrf.mxu1  ;;  %v8413_v9 = vpop.f32.mrf.mxu0 }
0x10ed   : > { %v15318_v8 = vpop.f32.mrf.mxu1  ;;  %v15360_v52 = vpop.f32.mrf.mxu0 }
0x10ef   : > { %v8196_v44 = vpop.f32.mrf.mxu1  ;;  %v8416_v62 = vpop.f32.mrf.mxu0 }
0x10f1   : > { %v15321_v33 = vpop.f32.mrf.mxu1  ;;  %v15363_v60 = vpop.f32.mrf.mxu0 }
0x10f3   : > { %v8209_v57 = vpop.f32.mrf.mxu1  ;;  %v8429_v12 = vpop.f32.mrf.mxu0 }
0x10f5   : > { %v15322_v22 = vpop.f32.mrf.mxu1  ;;  %v15364_v15 = vpop.f32.mrf.mxu0 }
0x10f6   : > { %v8245_v10 = vpack.c.bf16 %v15322_v22, %v15321_v33  ;;  %v8465_v49 = vpack.c.bf16 %v15364_v15, %v15363_v60  ;;  %v8241_v33 = vpack.c.bf16 %v15314_v47, %v18147_v37  ;;  %v8461_v60 = vpack.c.bf16 %v15356_v38, %v18149_v26  ;;  %v15756_v37 = vld [vmem:[%s19100_s7 + $0x188] sm:$0xff]   ;;  %v15760_v47 = vld [vmem:[%s19100_s7 + $0x198] sm:$0xff]  }
0x10f7   : > { %v8212_v23 = vpop.f32.mrf.mxu1  ;;  %v8432_v46 = vpop.f32.mrf.mxu0  ;;  %v15757_v26 = vld [vmem:[%s19100_s7 + $0x1a8] sm:$0xff]   ;;  %v15761_v38 = vld [vmem:[%s19100_s7 + $0x1b8] sm:$0xff]  }
0x10f8   : > { %v8244_v53 = vpack.c.bf16 %v8212_v23, %v8209_v57  ;;  %v8464_v59 = vpack.c.bf16 %v8432_v46, %v8429_v12 }
0x10f9   : > { %v15325_v56 = vpop.f32.mrf.mxu1  ;;  %v15367_v29 = vpop.f32.mrf.mxu0 }
0x10fb   : > { %v8225_v32 = vpop.f32.mrf.mxu1  ;;  %v8445_v24 = vpop.f32.mrf.mxu0 }
0x10fd   : > { %v15326_v21 = vpop.f32.mrf.mxu1  ;;  %v15368_v3 = vpop.f32.mrf.mxu0 }
0x10fe   : > { %v8247_v16 = vpack.c.bf16 %v15326_v21, %v15325_v56  ;;  %v8467_v55 = vpack.c.bf16 %v15368_v3, %v15367_v29  ;;  %v8243_v56 = vpack.c.bf16 %v15318_v8, %v15317_v28  ;;  %v8463_v29 = vpack.c.bf16 %v15360_v52, %v15359_v14 }
0x10ff   : > { %v8228_v39 = vpop.f32.mrf.mxu1  ;;  %v8448_v6 = vpop.f32.mrf.mxu0 }
0x1100   : > { %v8246_v35 = vpack.c.bf16 %v8228_v39, %v8225_v32  ;;  %v8466_v54 = vpack.c.bf16 %v8448_v6, %v8445_v24  ;;  %15327 = vmatprep.subr.bf16.mxu1 %v8247_v16  ;;  %15369 = vmatprep.subr.bf16.mxu0 %v8467_v55  ;;  %v8242_v32 = vpack.c.bf16 %v8196_v44, %v8193_v17 }
0x1101   : > { %15328 = vmatpush3.bf16.msra.mxu1 %v8247_v16  ;;  %15370 = vmatpush3.bf16.msra.mxu0 %v8467_v55  ;;  %v8462_v24 = vpack.c.bf16 %v8416_v62, %v8413_v9 }
0x1102   : > { %15329 = vmatprep.subr.bf16.mxu1 %v8246_v35  ;;  %15371 = vmatprep.subr.bf16.mxu0 %v8466_v54 }
0x1105   : > { %15330 = vmatpush3.bf16.msra.mxu1 %v8246_v35  ;;  %15372 = vmatpush3.bf16.msra.mxu0 %v8466_v54 }
0x1106   : > { %15331 = vmatprep.subr.bf16.mxu1 %v8245_v10  ;;  %15373 = vmatprep.subr.bf16.mxu0 %v8465_v49 }
0x1109   : > { %15332 = vmatpush3.bf16.msra.mxu1 %v8245_v10  ;;  %15374 = vmatpush3.bf16.msra.mxu0 %v8465_v49  ;;  %v15762_v49 = vld [vmem:[%s19099_s6 + $0x70] sm:$0xff]   ;;  %v15763_v10 = vld [vmem:[%s19099_s6 + $0x78] sm:$0xff]  }
0x110a   : > { %15333 = vmatprep.subr.bf16.mxu1 %v8244_v53  ;;  %15375 = vmatprep.subr.bf16.mxu0 %v8464_v59 }
0x110d   : > { %15334 = vmatpush3.bf16.msra.mxu1 %v8244_v53  ;;  %15376 = vmatpush3.bf16.msra.mxu0 %v8464_v59  ;;  %v8240_v53 = vpack.c.bf16 %v18155_v48, %v18151_v36  ;;  %v8460_v59 = vpack.c.bf16 %v18157_v19, %v18153_v30  ;;  %v15758_v36 = vld [vmem:[%s19100_s7 + $0x190] sm:$0xff]  }
0x110e   : > { %15335 = vmatprep.subr.bf16.mxu1 %v8243_v56  ;;  %15377 = vmatprep.subr.bf16.mxu0 %v8463_v29  ;;  %v15759_v30 = vld [vmem:[%s19100_s7 + $0x1b0] sm:$0xff]  }
0x1111   : > { %15336 = vmatpush3.bf16.msra.mxu1 %v8243_v56  ;;  %15378 = vmatpush3.bf16.msra.mxu0 %v8463_v29 }
0x1112   : > { %15337 = vmatprep.subr.bf16.mxu1 %v8242_v32  ;;  %15379 = vmatprep.subr.bf16.mxu0 %v8462_v24 }
0x1115   : > { %15338 = vmatpush3.bf16.msra.mxu1 %v8242_v32  ;;  %15380 = vmatpush3.bf16.msra.mxu0 %v8462_v24 }
0x1116   : > { %15339 = vmatprep.subr.bf16.mxu1 %v8241_v33  ;;  %15381 = vmatprep.subr.bf16.mxu0 %v8461_v60 }
0x1119   : > { %15340 = vmatpush3.bf16.msra.mxu1 %v8241_v33  ;;  %15382 = vmatpush3.bf16.msra.mxu0 %v8461_v60 }
0x111a   : > { %15341 = vmatprep.subr.bf16.mxu1 %v8240_v53  ;;  %15383 = vmatprep.subr.bf16.mxu0 %v8460_v59 }
0x111d   : > { %15342 = vmatpush3.bf16.msra.mxu1 %v8240_v53  ;;  %15384 = vmatpush3.bf16.msra.mxu0 %v8460_v59 }
0x111e   : > { %15393 = vmatprep.subr.bf16.mxu1 %v15762_v49  ;;  %15435 = vmatprep.subr.bf16.mxu0 %v15763_v10 }
0x1120   : > { %15344 = vmatmul.mubr.bf16.vlgmr.msra.gmra.mxu1 %v15756_v37  ;;  %15386 = vmatmul.mubr.bf16.vlgmr.msra.gmra.mxu0 %v15757_v26 }
0x1121   : > { %15347 = vmatprep.mubr.bf16.mxu1 %v15758_v36  ;;  %15389 = vmatprep.mubr.bf16.mxu0 %v15759_v30 }
0x1122   : > { %15394 = vmatpush3.bf16.msra.mxu1 %v15762_v49  ;;  %15436 = vmatpush3.bf16.msra.mxu0 %v15763_v10 }
0x1128   : > { %15348 = vmatmul.mubr.bf16.gmra.mxu1 %v15760_v47  ;;  %15390 = vmatmul.mubr.bf16.gmra.mxu0 %v15761_v38 }
0x1129   : > { %15395 = vmatprep.mubr.msk.bf16.mxu1 %vm5495_vm1, %v17444_v50  ;;  %15437 = vmatprep.mubr.msk.bf16.mxu0 %vm5495_vm1, %v17444_v50  ;;  %v15765_v50 = vld [vmem:[%s19100_s7 + $0x1e0] sm:$0xff]  }
0x1130   : > { %15396 = vmatmul.mubr.msk.bf16.vlgmr.msra.gmra.mxu1 %vm5495_vm1, %v17440_v61  ;;  %15438 = vmatmul.mubr.msk.bf16.vlgmr.msra.gmra.mxu0 %vm5495_vm1, %v17440_v61  ;;  %v15764_v61 = vld [vmem:[%s19100_s7 + $0x1c0] sm:$0xff]  }
0x1131   : > { %15399 = vmatprep.mubr.msk.bf16.mxu1 %vm5495_vm1, %v17469_v43  ;;  %15441 = vmatprep.mubr.msk.bf16.mxu0 %vm5495_vm1, %v17469_v43 }
0x1138   : > { %15400 = vmatmul.mubr.msk.bf16.gmra.mxu1 %vm5495_vm1, %v17466_v40  ;;  %15442 = vmatmul.mubr.msk.bf16.gmra.mxu0 %vm5495_vm1, %v17466_v40 }
0x1139   : > { %15403 = vmatprep.mubr.msk.bf16.mxu1 %vm5495_vm1, %v17489_v2  ;;  %15445 = vmatprep.mubr.msk.bf16.mxu0 %vm5495_vm1, %v17489_v2 }
0x1140   : > { %15404 = vmatmul.mubr.msk.bf16.gmra.mxu1 %vm5495_vm1, %v17487_v18  ;;  %15446 = vmatmul.mubr.msk.bf16.gmra.mxu0 %vm5495_vm1, %v17487_v18 }
0x1141   : > { %15407 = vmatprep.mubr.msk.bf16.mxu1 %vm5495_vm1, %v17501_v41  ;;  %15449 = vmatprep.mubr.msk.bf16.mxu0 %vm5495_vm1, %v17501_v41 }
0x1148   : > { %15408 = vmatmul.mubr.msk.bf16.gmra.mxu1 %vm5495_vm1, %v17499_v51  ;;  %15450 = vmatmul.mubr.msk.bf16.gmra.mxu0 %vm5495_vm1, %v17499_v51 }
0x1149   : > { %15427 = vmatprep.mubr.bf16.mxu1 %v15764_v61  ;;  %15469 = vmatprep.mubr.bf16.mxu0 %v15765_v50 }
0x11e0   : > { %v15345_v40 = vpop.f32.mrf.mxu1  ;;  %v15387_v43 = vpop.f32.mrf.mxu0 }
0x11e1   : > { %v8348_v18 = vadd.f32 %v15345_v40, %v18122_v20 }
0x11e2   : > { %v8315_v2 = vpop.f32.mrf.mxu1  ;;  %v8535_v41 = vpop.f32.mrf.mxu0 }
0x11e3   : > { %v18228_v48 = vadd.f32 %v15387_v43, %v8348_v18  ;;  %v8346_v51 = vadd.f32 %v8315_v2, %v18125_v7 }
0x11e4   : > { %v15346_v19 = vpop.f32.mrf.mxu1  ;;  %v15388_v28 = vpop.f32.mrf.mxu0 }
0x11e5   : > { %v18231_v14 = vadd.f32 %v8535_v41, %v8346_v51  ;;  %v8349_v17 = vadd.f32 %v15346_v19, %v18132_v1 }
0x11e6   : > { %v18234_v9 = vpop.f32.mrf.mxu1  ;;  %v18236_v8 = vpop.f32.mrf.mxu0 }
0x11e7   : > { %v18238_v52 = vadd.f32 %v15388_v28, %v8349_v17 }
0x11e8   : > { %v15349_v44 = vpop.f32.mrf.mxu1  ;;  %v15391_v20 = vpop.f32.mrf.mxu0 }
0x11e9   : > { %v8352_v62 = vadd.f32 %v15349_v44, %v18135_v42 }
0x11ea   : > { %v8331_v57 = vpop.f32.mrf.mxu1  ;;  %v8551_v12 = vpop.f32.mrf.mxu0 }
0x11eb   : > { %v18241_v22 = vadd.f32 %v15391_v20, %v8352_v62  ;;  %v8350_v7 = vadd.f32 %v8331_v57, %v18138_v58 }
0x11ec   : > { %v15350_v15 = vpop.f32.mrf.mxu1  ;;  %v15392_v23 = vpop.f32.mrf.mxu0 }
0x11ed   : > { %v18244_v46 = vadd.f32 %v8551_v12, %v8350_v7  ;;  %v8353_v1 = vadd.f32 %v15350_v15, %v18145_v63 }
0x11ee   : > { %v18247_v21 = vpop.f32.mrf.mxu1  ;;  %v18249_v3 = vpop.f32.mrf.mxu0 }
0x11ef   : > { %v18251_v16 = vadd.f32 %v15392_v23, %v8353_v1 }
0x11f0   : > { %v18253_v55 = vpop.f32.mrf.mxu1  ;;  %v18255_v42 = vpop.f32.mrf.mxu0 }
0x11f2   : > { %v18257_v39 = vpop.f32.mrf.mxu1  ;;  %v18259_v6 = vpop.f32.mrf.mxu0 }
0x11f4   : > { %v15398_v58 = vpop.f32.mrf.mxu1  ;;  %v15440_v35 = vpop.f32.mrf.mxu0 }
0x11f6   : > { %v18261_v54 = vpop.f32.mrf.mxu1  ;;  %v18263_v56 = vpop.f32.mrf.mxu0 }
0x11f8   : > { %v15401_v63 = vpop.f32.mrf.mxu1  ;;  %v15443_v29 = vpop.f32.mrf.mxu0 }
0x11fa   : > { %v8633_v32 = vpop.f32.mrf.mxu1  ;;  %v8853_v24 = vpop.f32.mrf.mxu0 }
0x11fc   : > { %v15402_v33 = vpop.f32.mrf.mxu1  ;;  %v15444_v60 = vpop.f32.mrf.mxu0 }
0x11fd   : > { %v8683_v7 = vpack.c.bf16 %v15402_v33, %v15401_v63  ;;  %v8903_v15 = vpack.c.bf16 %v15444_v60, %v15443_v29  ;;  %v8680_v63 = vpack.c.bf16 %v18261_v54, %v18257_v39  ;;  %v8900_v29 = vpack.c.bf16 %v18263_v56, %v18259_v6  ;;  %v15768_v39 = vld [vmem:[%s19100_s7 + $0x1d0] sm:$0xff]   ;;  %v15780_v60 = vld [vmem:[%s19102_s9 + $0x24] ss:$8 sps:$4 sm:$0xff]  }
0x11fe   : > { %v8636_v53 = vpop.f32.mrf.mxu1  ;;  %v8856_v59 = vpop.f32.mrf.mxu0  ;;  %v15770_v6 = vld [vmem:[%s19100_s7 + $0x1f0] sm:$0xff]   ;;  %v19168_v54 = vmov 0  }
0x11ff   : > { %v8682_v23 = vpack.c.bf16 %v8636_v53, %v8633_v32  ;;  %v8902_v1 = vpack.c.bf16 %v8856_v59, %v8853_v24  ;;  %v15774_v56 = vld [vmem:[%s19102_s9 + $0x34] ss:$8 sps:$4 sm:$0xff]   ;;  %v15772_v24 = vld [vmem:[%s19102_s9 + $0x30] ss:$8 sps:$4 sm:$0xff]   ;;  %v15783_v53 = vld [vmem:[%s19102_s9 + $0x64] ss:$8 sps:$4 sm:$0xff]  }
0x1200   : > { %v15405_v49 = vpop.f32.mrf.mxu1  ;;  %v15447_v10 = vpop.f32.mrf.mxu0  ;;  %v15777_v32 = vld [vmem:[%s19102_s9 + $0x74] ss:$8 sps:$4 sm:$0xff]   ;;  %v15775_v33 = vld [vmem:[%s19102_s9 + $0x70] ss:$8 sps:$4 sm:$0xff]   ;;  %v15778_v59 = vld [vmem:[%s19102_s9 + $0x20] ss:$8 sps:$4 sm:$0xff]  }
0x1202   : > { %v8649_v37 = vpop.f32.mrf.mxu1  ;;  %v8869_v26 = vpop.f32.mrf.mxu0 }
0x1204   : > { %v15406_v36 = vpop.f32.mrf.mxu1  ;;  %v15448_v30 = vpop.f32.mrf.mxu0 }
0x1205   : > { %v8685_v20 = vpack.c.bf16 %v15406_v36, %v15405_v49  ;;  %v8905_v62 = vpack.c.bf16 %v15448_v30, %v15447_v10  ;;  %v8681_v49 = vpack.c.bf16 %v15398_v58, %v18253_v55  ;;  %v8901_v10 = vpack.c.bf16 %v15440_v35, %v18255_v42  ;;  %v15766_v55 = vld [vmem:[%s19100_s7 + $0x1c8] sm:$0xff]   ;;  %v15769_v58 = vld [vmem:[%s19100_s7 + $0x1d8] sm:$0xff]  }
0x1206   : > { %v8652_v47 = vpop.f32.mrf.mxu1  ;;  %v8872_v38 = vpop.f32.mrf.mxu0  ;;  %v15767_v42 = vld [vmem:[%s19100_s7 + $0x1e8] sm:$0xff]   ;;  %v15771_v35 = vld [vmem:[%s19100_s7 + $0x1f8] sm:$0xff]  }
0x1207   : > { %v8684_v57 = vpack.c.bf16 %v8652_v47, %v8649_v37  ;;  %v8904_v12 = vpack.c.bf16 %v8872_v38, %v8869_v26  ;;  %v15781_v37 = vld [vmem:[%s19102_s9 + $0x60] ss:$8 sps:$4 sm:$0xff]   ;;  %v15786_v26 = vld [vmem:[%s19102_s9 + $0x14] ss:$8 sps:$4 sm:$0xff]   ;;  %v15784_v30 = vld [vmem:[%s19102_s9 + $0x10] ss:$8 sps:$4 sm:$0xff]  }
0x1208   : > { %v15409_v61 = vpop.f32.mrf.mxu1  ;;  %v15451_v50 = vpop.f32.mrf.mxu0  ;;  %v15789_v36 = vld [vmem:[%s19102_s9 + $0x54] ss:$8 sps:$4 sm:$0xff]   ;;  %v15787_v47 = vld [vmem:[%s19102_s9 + $0x50] ss:$8 sps:$4 sm:$0xff]   ;;  %v15792_v38 = vld [vmem:[%s19102_s9 + $0x4] ss:$8 sps:$4 sm:$0xff]  }
0x120a   : > { %v8665_v40 = vpop.f32.mrf.mxu1  ;;  %v8885_v43 = vpop.f32.mrf.mxu0 }
0x120c   : > { %v15410_v18 = vpop.f32.mrf.mxu1  ;;  %v15452_v2 = vpop.f32.mrf.mxu0 }
0x120d   : > { %v8687_v41 = vpack.c.bf16 %v15410_v18, %v15409_v61  ;;  %v8907_v51 = vpack.c.bf16 %v15452_v2, %v15451_v50  ;;  %v15795_v61 = vld [vmem:[%s19102_s9 + $0x44] ss:$8 sps:$4 sm:$0xff]   ;;  %v15790_v50 = vld [vmem:[%s19102_s9] ss:$8 sps:$4 sm:$0xff]   ;;  %v5907_v18 = vadd.f32 %v17605_v31, %v17603_v11 }
0x120e   : > { %v8668_v19 = vpop.f32.mrf.mxu1  ;;  %v8888_v28 = vpop.f32.mrf.mxu0  ;;  %v19171_v11 = vld [vmem:[#allocation7_spill] sm:$0xff] }
0x120f   : > { %v8686_v17 = vpack.c.bf16 %v8668_v19, %v8665_v40  ;;  %v8906_v44 = vpack.c.bf16 %v8888_v28, %v8885_v43  ;;  %15411 = vmatprep.subr.bf16.mxu1 %v8687_v41  ;;  %15453 = vmatprep.subr.bf16.mxu0 %v8907_v51  ;;  %v15793_v40 = vld [vmem:[%s19102_s9 + $0x40] ss:$8 sps:$4 sm:$0xff]   ;;  %v15798_v43 = vld [vmem:[%s19102_s9 + $0xb4] ss:$8 sps:$4 sm:$0xff]   ;;  %v6147_v2 = vadd.f32 %v17704_v45, %v5907_v18 }
0x1210   : > { %15412 = vmatpush3.bf16.msra.mxu1 %v8687_v41  ;;  %15454 = vmatpush3.bf16.msra.mxu0 %v8907_v51  ;;  %v5923_v51 = vadd.f32 %v17615_v27, %v17613_v13  ;;  %v19172_v45 = vld [vmem:[#allocation13_spill] sm:$0xff]  ;;  %v19175_v27 = vld [vmem:[#allocation19_spill] sm:$0xff] }
0x1211   : > { %15413 = vmatprep.subr.bf16.mxu1 %v8686_v17  ;;  %15455 = vmatprep.subr.bf16.mxu0 %v8906_v44  ;;  %v6367_v41 = vadd.f32 %v17706_v34, %v6147_v2  ;;  %v19173_v34 = vld [vmem:[#allocation9_spill] sm:$0xff] }
0x1212   : > { %v6151_v28 = vadd.f32 %v17717_v4, %v5923_v51 }
0x1213   : > { %v6587_v19 = vadd.f32 %v17810_v25, %v6367_v41 }
0x1214   : > { %15414 = vmatpush3.bf16.msra.mxu1 %v8686_v17  ;;  %15456 = vmatpush3.bf16.msra.mxu0 %v8906_v44  ;;  %v6371_v44 = vadd.f32 %v17719_v0, %v6151_v28  ;;  %v19178_v0 = vld [vmem:[#allocation4_spill] sm:$0xff] }
0x1215   : > { %15415 = vmatprep.subr.bf16.mxu1 %v8685_v20  ;;  %15457 = vmatprep.subr.bf16.mxu0 %v8905_v62  ;;  %v6807_v17 = vadd.f32 %v17812_v5, %v6587_v19  ;;  %v19177_v5 = vld [vmem:[#allocation6_spill] sm:$0xff] }
0x1218   : > { %15416 = vmatpush3.bf16.msra.mxu1 %v8685_v20  ;;  %15458 = vmatpush3.bf16.msra.mxu0 %v8905_v62  ;;  %v19169_v20 = vld [vmem:[#allocation2_spill] sm:$0xff] }
0x1219   : > { %15417 = vmatprep.subr.bf16.mxu1 %v8684_v57  ;;  %15459 = vmatprep.subr.bf16.mxu0 %v8904_v12  ;;  %v7027_v62 = vadd.f32 %v19169_v20, %v6807_v17 }
0x121b   : > { %v7247_v31 = vadd.f32 %v19171_v11, %v7027_v62 }
0x121c   : > { %15418 = vmatpush3.bf16.msra.mxu1 %v8684_v57  ;;  %15460 = vmatpush3.bf16.msra.mxu0 %v8904_v12  ;;  %v19170_v57 = vld [vmem:[#allocation5_spill] sm:$0xff] }
0x121d   : > { %15419 = vmatprep.subr.bf16.mxu1 %v8683_v7  ;;  %15461 = vmatprep.subr.bf16.mxu0 %v8903_v15  ;;  %v6591_v12 = vadd.f32 %v19170_v57, %v6371_v44 }
0x1220   : > { %15420 = vmatpush3.bf16.msra.mxu1 %v8683_v7  ;;  %15462 = vmatpush3.bf16.msra.mxu0 %v8903_v15  ;;  %v6811_v7 = vadd.f32 %v19172_v45, %v6591_v12  ;;  %v7467_v15 = vadd.f32 %v19173_v34, %v7247_v31 }
0x1221   : > { %15421 = vmatprep.subr.bf16.mxu1 %v8682_v23  ;;  %15463 = vmatprep.subr.bf16.mxu0 %v8902_v1 }
0x1222   : > { %v7687_v25 = vadd.f32 %v19175_v27, %v7467_v15 }
0x1224   : > { %15422 = vmatpush3.bf16.msra.mxu1 %v8682_v23  ;;  %15464 = vmatpush3.bf16.msra.mxu0 %v8902_v1  ;;  %v19174_v23 = vld [vmem:[#allocation16_spill] sm:$0xff]  ;;  %v19176_v1 = vld [vmem:[#allocation3_spill] sm:$0xff] }
0x1225   : > { %15423 = vmatprep.subr.bf16.mxu1 %v8681_v49  ;;  %15465 = vmatprep.subr.bf16.mxu0 %v8901_v10  ;;  %v7031_v13 = vadd.f32 %v19174_v23, %v6811_v7 }
0x1227   : > { %v7251_v4 = vadd.f32 %v19176_v1, %v7031_v13 }
0x1228   : > { %15424 = vmatpush3.bf16.msra.mxu1 %v8681_v49  ;;  %15466 = vmatpush3.bf16.msra.mxu0 %v8901_v10  ;;  %v9025_v49 = vpop.permute.xlu0 %9024  ;;  %v7907_v10 = vadd.f32 %v19177_v5, %v7687_v25 }
0x1229   : > { %15425 = vmatprep.subr.bf16.mxu1 %v8680_v63  ;;  %15467 = vmatprep.subr.bf16.mxu0 %v8900_v29 }
0x122c   : > { %15426 = vmatpush3.bf16.msra.mxu1 %v8680_v63  ;;  %15468 = vmatpush3.bf16.msra.mxu0 %v8900_v29  ;;  %v7471_v63 = vadd.f32 %v19178_v0, %v7251_v4  ;;  %v9030_v29 = vpop.permute.xlu1 %9029 }
0x122d   : > { %9150 = vmatprep.subr.bf16.mxu1 %v15774_v56  ;;  %9281 = vmatprep.subr.bf16.mxu0 %v15777_v32  ;;  %v9035_v56 = vpop.permute.xlu0 %9034 }
0x122f   : > { %15428 = vmatmul.mubr.bf16.vlgmr.msra.gmra.mxu1 %v15766_v55  ;;  %15470 = vmatmul.mubr.bf16.vlgmr.msra.gmra.mxu0 %v15767_v42  ;;  %v19179_v55 = vld [vmem:[#allocation14_spill] sm:$0xff] }
0x1230   : > { %15431 = vmatprep.mubr.bf16.mxu1 %v15768_v39  ;;  %15473 = vmatprep.mubr.bf16.mxu0 %v15770_v6  ;;  %v8127_v42 = vadd.f32 %v19179_v55, %v7907_v10  ;;  %v19180_v39 = vld [vmem:[#allocation11_spill] sm:$0xff]  ;;  %v15796_v10 = vld [vmem:[%s19102_s9 + $0xb0] ss:$8 sps:$4 sm:$0xff]  }
0x1231   : > { %9151 = vmatpush1.bf16.msra.mxu1 %v15772_v24  ;;  %9282 = vmatpush1.bf16.msra.mxu0 %v15775_v33  ;;  %v7691_v6 = vadd.f32 %v19180_v39, %v7471_v63  ;;  %v19181_v33 = vld [vmem:[#allocation8_spill] sm:$0xff]  ;;  %v15801_v63 = vld [vmem:[%s19102_s9 + $0xa4] ss:$8 sps:$4 sm:$0xff]  }
0x1232   : > { %9152 = vmatprep.subr.bf16.mxu1 %v15780_v60  ;;  %9283 = vmatprep.subr.bf16.mxu0 %v15783_v53  ;;  %v8347_v32 = vadd.f32 %v18234_v9, %v8127_v42 }
0x1233   : > { %v7911_v60 = vadd.f32 %v19181_v33, %v7691_v6  ;;  %v15799_v6 = vld [vmem:[%s19102_s9 + $0xa0] ss:$8 sps:$4 sm:$0xff]  }
0x1235   : > { %9153 = vmatpush1.bf16.msra.mxu1 %v15778_v59  ;;  %9284 = vmatpush1.bf16.msra.mxu0 %v15781_v37  ;;  %v9040_v37 = vpop.permute.xlu1 %9039 }
0x1236   : > { %9154 = vmatprep.subr.bf16.mxu1 %v15786_v26  ;;  %9285 = vmatprep.subr.bf16.mxu0 %v15789_v36 }
0x1237   : > { %15432 = vmatmul.mubr.bf16.gmra.mxu1 %v15769_v58  ;;  %15474 = vmatmul.mubr.bf16.gmra.mxu0 %v15771_v35 }
0x1238   : > { %9174 = vmatprep.mubr.bf16.mxu1 %v19168_v54  ;;  %9305 = vmatprep.mubr.bf16.mxu0 %v19168_v54 }
0x1239   : > { %9155 = vmatpush1.bf16.msra.mxu1 %v15784_v30  ;;  %9286 = vmatpush1.bf16.msra.mxu0 %v15787_v47 }
0x123a   : > { %9156 = vmatprep.subr.bf16.mxu1 %v15792_v38  ;;  %9287 = vmatprep.subr.bf16.mxu0 %v15795_v61  ;;  %v8567_v38 = vadd.f32 %v18236_v8, %v8347_v32  ;;  %v15802_v32 = vld [vmem:[%s19102_s9 + $0x90] ss:$8 sps:$4 sm:$0xff]  }
0x123d   : > { %9157 = vmatpush1.bf16.msra.mxu1 %v15790_v50  ;;  %9288 = vmatpush1.bf16.msra.mxu0 %v15793_v40  ;;  %v19182_v40 = vld [vmem:[#allocation17_spill] sm:$0xff] }
0x123e   : > { %9501 = vmatprep.subr.bf16.mxu0 %v15798_v43  ;;  %v8131_v43 = vadd.f32 %v19182_v40, %v7911_v60 }
0x1240   : > { %v8351_v19 = vadd.f32 %v18247_v21, %v8131_v43 }
0x1242   : > { %v8571_v7 = vadd.f32 %v18249_v3, %v8351_v19 }
0x12ef   : > { %v15429_v58 = vpop.f32.mrf.mxu1  ;;  %v15471_v35 = vpop.f32.mrf.mxu0 }
0x12f0   : > { %v8788_v24 = vadd.f32 %v15429_v58, %v18228_v48  ;;  %v9045_v48 = vpop.permute.xlu0 %9044 }
0x12f1   : > { %v8755_v53 = vpop.f32.mrf.mxu1  ;;  %v8975_v59 = vpop.f32.mrf.mxu0 }
0x12f2   : > { %v9008_v26 = vadd.f32 %v15471_v35, %v8788_v24  ;;  %v8786_v36 = vadd.f32 %v8755_v53, %v18231_v14  ;;  %v9050_v14 = vpop.permute.xlu1 %9049  ;;  %v15807_v24 = vld [vmem:[%s19102_s9 + $0x84] ss:$8 sps:$4 sm:$0xff]   ;;  %v15805_v53 = vld [vmem:[%s19102_s9 + $0x80] ss:$8 sps:$4 sm:$0xff]  }
0x12f3   : > { %v15430_v30 = vpop.f32.mrf.mxu1  ;;  %v15472_v47 = vpop.f32.mrf.mxu0 }
0x12f4   : > { %v9006_v61 = vadd.f32 %v8975_v59, %v8786_v36  ;;  %v8789_v50 = vadd.f32 %v15430_v30, %v18238_v52  ;;  %v9064_v2 = vadd.f32 %v9035_v56, %v9008_v26  ;;  %v9055_v25 = vpop.permute.xlu0 %9054 }
0x12f5   : > { %v8758_v9 = vpop.f32.mrf.mxu1  ;;  %v8978_v18 = vpop.f32.mrf.mxu0 }
0x12f6   : > { %v9009_v41 = vadd.f32 %v15472_v47, %v8789_v50  ;;  %v8787_v51 = vadd.f32 %v8758_v9, %v8567_v38  ;;  %v9062_v44 = vadd.f32 %v9025_v49, %v9006_v61  ;;  %v9072_v12 = vmax.f32 %v9064_v2, 0.0  ;;  %v9060_v3 = vpop.permute.xlu1 %9059 }
0x12f7   : > { %v15433_v28 = vpop.f32.mrf.mxu1  ;;  %v15475_v17 = vpop.f32.mrf.mxu0 }
0x12f8   : > { %v9065_v20 = vadd.f32 %v9040_v37, %v9009_v41  ;;  %v9007_v62 = vadd.f32 %v8978_v18, %v8787_v51  ;;  %v8792_v8 = vadd.f32 %v15433_v28, %v18241_v22  ;;  %v9070_v23 = vmax.f32 %v9062_v44, 0.0 }
0x12f9   : > { %v8771_v57 = vpop.f32.mrf.mxu1  ;;  %v8991_v52 = vpop.f32.mrf.mxu0 }
0x12fa   : > { %v9073_v11 = vmax.f32 %v9065_v20, 0.0  ;;  %v9063_v31 = vadd.f32 %v9030_v29, %v9007_v62  ;;  %v9012_v45 = vadd.f32 %v15475_v17, %v8792_v8  ;;  %v8790_v29 = vadd.f32 %v8771_v57, %v18244_v46  ;;  %v15804_v46 = vld [vmem:[%s19102_s9 + $0x94] ss:$8 sps:$4 sm:$0xff]  }
0x12fb   : > { %v15434_v34 = vpop.f32.mrf.mxu1  ;;  %v15476_v15 = vpop.f32.mrf.mxu0 }
0x12fc   : > { %v18374_v21 = vpack.c.bf16 %v9073_v11, %v9072_v12  ;;  %v9071_v13 = vmax.f32 %v9063_v31, 0.0  ;;  %v8793_v27 = vadd.f32 %v15434_v34, %v18251_v16  ;;  %v9068_v22 = vadd.f32 %v9055_v25, %v9012_v45 }
0x12fd   : > { %v8774_v1 = vpop.f32.mrf.mxu1  ;;  %v8994_v0 = vpop.f32.mrf.mxu0  ;;  %v9010_v58 = vadd.f32 %v8991_v52, %v8790_v29 }
0x12fe   : > { %v18377_v4 = vpack.c.bf16 %v9071_v13, %v9070_v23  ;;  %v8791_v49 = vadd.f32 %v8774_v1, %v8571_v7  ;;  %v9013_v5 = vadd.f32 %v15476_v15, %v8793_v27  ;;  %v9076_v55 = vmax.f32 %v9068_v22, 0.0 }
0x12ff   : > { %v9066_v33 = vadd.f32 %v9045_v48, %v9010_v58 }
0x1300   : > { %v9069_v16 = vadd.f32 %v9060_v3, %v9013_v5  ;;  %13134 = vmatmul.mubr.msk.bf16.vlgmr.msra.gmra.mxu1 %vm668_vm0, %v18377_v4  ;;  %13154 = vmatmul.mubr.msk.bf16.vlgmr.msra.gmra.mxu0 %vm668_vm0, %v18377_v4  ;;  %v9011_v39 = vadd.f32 %v8994_v0, %v8791_v49 }
0x1301   : > { %9184 = vmatprep.mubr.bf16.mxu1 %v19168_v54  ;;  %9315 = vmatprep.mubr.bf16.mxu0 %v19168_v54  ;;  %v9074_v59 = vmax.f32 %v9066_v33, 0.0 }
0x1302   : > { %v9077_v42 = vmax.f32 %v9069_v16, 0.0  ;;  %9502 = vmatpush1.bf16.msra.mxu0 %v15796_v10  ;;  %v9067_v56 = vadd.f32 %v9050_v14, %v9011_v39 }
0x1303   : > { %9503 = vmatprep.subr.bf16.mxu0 %v15801_v63 }
0x1304   : > { %v18398_v35 = vpack.c.bf16 %v9077_v42, %v9076_v55  ;;  %v9075_v60 = vmax.f32 %v9067_v56, 0.0 }
0x1306   : > { %9504 = vmatpush1.bf16.msra.mxu0 %v15799_v6  ;;  %v18415_v37 = vpack.c.bf16 %v9075_v60, %v9074_v59  ;;  %v13158_v6 = vld [vmem:[%s19103_s10 + $0x4] sm:$0xf] }
0x1307   : > { %9505 = vmatprep.subr.bf16.mxu0 %v15804_v46 }
0x1308   : > { %13135 = vmatmul.mubr.msk.bf16.gmra.mxu1 %vm668_vm0, %v18374_v21  ;;  %13155 = vmatmul.mubr.msk.bf16.gmra.mxu0 %vm668_vm0, %v18374_v21 }
0x1309   : > { %9194 = vmatprep.mubr.bf16.mxu1 %v19168_v54  ;;  %9325 = vmatprep.mubr.bf16.mxu0 %v19168_v54 }
0x130a   : > { %9506 = vmatpush1.bf16.msra.mxu0 %v15802_v32 }
0x130b   : > { %9507 = vmatprep.subr.bf16.mxu0 %v15807_v24 }
0x130e   : > { %9508 = vmatpush1.bf16.msra.mxu0 %v15805_v53 }
0x1310   : > { %13136 = vmatmul.mubr.msk.bf16.gmra.mxu1 %vm668_vm0, %v18415_v37  ;;  %13156 = vmatmul.mubr.msk.bf16.gmra.mxu0 %vm668_vm0, %v18415_v37 }
0x1311   : > { %9204 = vmatprep.mubr.bf16.mxu1 %v19168_v54  ;;  %9335 = vmatprep.mubr.bf16.mxu0 %v19168_v54 }
0x1318   : > { %13137 = vmatmul.mubr.msk.bf16.gmra.mxu1 %vm668_vm0, %v18398_v35  ;;  %13157 = vmatmul.mubr.msk.bf16.gmra.mxu0 %vm668_vm0, %v18398_v35 }
0x1319   : > { %9525 = vmatprep.mubr.bf16.mxu0 %v19168_v54  ;;  %9391 = vmatprep.mubr.bf16.mxu1 %v19168_v54 }
0x1320   : > { %13177 = vmatmul.mubr.msk.bf16.vlgmr.msra.gmra.mxu0 %vm668_vm0, %v18377_v4 }
0x1321   : > { %9535 = vmatprep.mubr.bf16.mxu0 %v19168_v54 }
0x1328   : > { %13178 = vmatmul.mubr.msk.bf16.gmra.mxu0 %vm668_vm0, %v18374_v21 }
0x1329   : > { %9545 = vmatprep.mubr.bf16.mxu0 %v19168_v54 }
0x1330   : > { %13179 = vmatmul.mubr.msk.bf16.gmra.mxu0 %vm668_vm0, %v18415_v37 }
0x1331   : > { %9555 = vmatprep.mubr.bf16.mxu0 %v19168_v54 }
0x1338   : > { %13180 = vmatmul.mubr.msk.bf16.gmra.mxu0 %vm668_vm0, %v18398_v35 }
0x1339   : > { %9789 = vmatprep.mubr.bf16.mxu0 %v19168_v54 }
0x13c0   : > { %v18441_v26 = vpop.f32.mrf.mxu1  ;;  %v9307_v36 = vpop.f32.mrf.mxu0 }
0x13c2   : > { %v18443_v30 = vpop.f32.mrf.mxu1  ;;  %v9309_v47 = vpop.f32.mrf.mxu0 }
0x13c4   : > { %v18445_v38 = vpop.f32.mrf.mxu1  ;;  %v9311_v61 = vpop.f32.mrf.mxu0 }
0x13c5   : > { %v9346_v16 = vpack.c.bf16 %v9311_v61, %v9307_v36 }
0x13c6   : > { %v18447_v50 = vpop.f32.mrf.mxu1  ;;  %v9313_v40 = vpop.f32.mrf.mxu0 }
0x13c7   : > { %v9347_v0 = vpack.c.bf16 %v9313_v40, %v9309_v47  ;;  %v9216_v47 = vpack.c.bf16 %v18447_v50, %v18443_v30  ;;  %v9215_v40 = vpack.c.bf16 %v18445_v38, %v18441_v26 }
0x13c8   : > { %v18449_v43 = vpop.f32.mrf.mxu1  ;;  %v9317_v9 = vpop.f32.mrf.mxu0 }
0x13ca   : > { %v9188_v18 = vpop.f32.mrf.mxu1  ;;  %v9319_v48 = vpop.f32.mrf.mxu0 }
0x13cc   : > { %v18451_v2 = vpop.f32.mrf.mxu1  ;;  %v9321_v41 = vpop.f32.mrf.mxu0 }
0x13cd   : > { %v9348_v10 = vpack.c.bf16 %v9321_v41, %v9317_v9  ;;  %v9217_v59 = vpack.c.bf16 %v18451_v2, %v18449_v43  ;;  %v15810_v2 = vld [vmem:[%s19102_s9 + $0xf4] ss:$8 sps:$4 sm:$0xff]  }
0x13ce   : > { %v9192_v51 = vpop.f32.mrf.mxu1  ;;  %v9323_v19 = vpop.f32.mrf.mxu0 }
0x13cf   : > { %v9349_v22 = vpack.c.bf16 %v9323_v19, %v9319_v48  ;;  %v9218_v60 = vpack.c.bf16 %v9192_v51, %v9188_v18  ;;  %v9223_v18 = vld [vmem:[%s19103_s10] sm:$0xf] }
0x13d0   : > { %v9196_v28 = vpop.f32.mrf.mxu1  ;;  %v9327_v17 = vpop.f32.mrf.mxu0 }
0x13d2   : > { %v9198_v14 = vpop.f32.mrf.mxu1  ;;  %v9329_v44 = vpop.f32.mrf.mxu0 }
0x13d4   : > { %v9331_v20 = vpop.f32.mrf.mxu0  ;;  %v9200_v62 = vpop.f32.mrf.mxu1 }
0x13d5   : > { %v9350_v25 = vpack.c.bf16 %v9331_v20, %v9327_v17  ;;  %v9219_v24 = vpack.c.bf16 %v9200_v62, %v9196_v28  ;;  %v13181_v28 = vld [vmem:[%s19103_s10 + $0x8] sm:$0xf]  ;;  %v15808_v17 = vld [vmem:[%s19102_s9 + $0xf0] ss:$8 sps:$4 sm:$0xff]   ;;  %v15816_v20 = vld [vmem:[%s19102_s9 + $0xd4] ss:$8 sps:$4 sm:$0xff]  }
0x13d6   : > { %v9333_v8 = vpop.f32.mrf.mxu0  ;;  %v9202_v52 = vpop.f32.mrf.mxu1  ;;  %v15814_v62 = vld [vmem:[%s19102_s9 + $0xd0] ss:$8 sps:$4 sm:$0xff]  }
0x13d7   : > { %v9351_v23 = vpack.c.bf16 %v9333_v8, %v9329_v44  ;;  %v9220_v56 = vpack.c.bf16 %v9202_v52, %v9198_v14  ;;  %v15813_v14 = vld [vmem:[%s19102_s9 + $0xe4] ss:$8 sps:$4 sm:$0xff]   ;;  %v15811_v44 = vld [vmem:[%s19102_s9 + $0xe0] ss:$8 sps:$4 sm:$0xff]  }
0x13d8   : > { %v9337_v57 = vpop.f32.mrf.mxu0  ;;  %v9206_v31 = vpop.f32.mrf.mxu1  ;;  %v15819_v8 = vld [vmem:[%s19102_s9 + $0xc4] ss:$8 sps:$4 sm:$0xff]  }
0x13da   : > { %v9339_v12 = vpop.f32.mrf.mxu0  ;;  %v9208_v13 = vpop.f32.mrf.mxu1 }
0x13dc   : > { %v9341_v11 = vpop.f32.mrf.mxu0  ;;  %v9210_v49 = vpop.f32.mrf.mxu1 }
0x13dd   : > { %v9352_v34 = vpack.c.bf16 %v9341_v11, %v9337_v57  ;;  %v9221_v46 = vpack.c.bf16 %v9210_v49, %v9206_v31  ;;  %v15817_v57 = vld [vmem:[%s19102_s9 + $0xc0] ss:$8 sps:$4 sm:$0xff]  }
0x13de   : > { %v9343_v45 = vpop.f32.mrf.mxu0  ;;  %v9212_v63 = vpop.f32.mrf.mxu1 }
0x13df   : > { %v9353_v7 = vpack.c.bf16 %v9343_v45, %v9339_v12  ;;  %v9222_v42 = vpack.c.bf16 %v9212_v63, %v9208_v13 }
0x13e0   : > { %v18453_v15 = vpop.f32.mrf.mxu0 }
0x13e1   : > { %9367 = vmatprep.subr.bf16.mxu1 %v9353_v7 }
0x13e2   : > { %9368 = vmatpush1.bf16.msra.mxu1 %v9352_v34  ;;  %v18455_v27 = vpop.f32.mrf.mxu0 }
0x13e3   : > { %9369 = vmatprep.subr.bf16.mxu1 %v9351_v23 }
0x13e4   : > { %v18457_v1 = vpop.f32.mrf.mxu0 }
0x13e5   : > { %v9566_v19 = vpack.c.bf16 %v18457_v1, %v18453_v15 }
0x13e6   : > { %9370 = vmatpush1.bf16.msra.mxu1 %v9350_v25  ;;  %v9533_v5 = vpop.f32.mrf.mxu0 }
0x13e7   : > { %9371 = vmatprep.subr.bf16.mxu1 %v9349_v22  ;;  %v9567_v38 = vpack.c.bf16 %v9533_v5, %v18455_v27 }
0x13e8   : > { %v9537_v3 = vpop.f32.mrf.mxu0 }
0x13ea   : > { %9372 = vmatpush1.bf16.msra.mxu1 %v9348_v10  ;;  %v9539_v29 = vpop.f32.mrf.mxu0 }
0x13eb   : > { %9373 = vmatprep.subr.bf16.mxu1 %v9347_v0 }
0x13ec   : > { %v9541_v55 = vpop.f32.mrf.mxu0 }
0x13ed   : > { %v9568_v26 = vpack.c.bf16 %v9541_v55, %v9537_v3 }
0x13ee   : > { %9374 = vmatpush1.bf16.msra.mxu1 %v9346_v16  ;;  %v9543_v39 = vpop.f32.mrf.mxu0 }
0x13ef   : > { %9411 = vmatprep.subr.bf16.mxu1 %v9222_v42  ;;  %v9569_v50 = vpack.c.bf16 %v9543_v39, %v9539_v29 }
0x13f0   : > { %v9547_v58 = vpop.f32.mrf.mxu0 }
0x13f1   : > { %13159 = vmatmul.mubr.msk.bf16.vlgmr.msra.gmra.mxu1 %vm668_vm0, %v13158_v6 }
0x13f2   : > { %9412 = vmatpush1.bf16.msra.mxu1 %v9221_v46  ;;  %v9549_v32 = vpop.f32.mrf.mxu0  ;;  %9435 = vmatprep.mubr.bf16.mxu1 %v19168_v54 }
0x13f3   : > { %9413 = vmatprep.subr.bf16.mxu1 %v9220_v56 }
0x13f4   : > { %v9551_v33 = vpop.f32.mrf.mxu0 }
0x13f5   : > { %v9570_v30 = vpack.c.bf16 %v9551_v33, %v9547_v58 }
0x13f6   : > { %9414 = vmatpush1.bf16.msra.mxu1 %v9219_v24  ;;  %v9553_v53 = vpop.f32.mrf.mxu0 }
0x13f7   : > { %9415 = vmatprep.subr.bf16.mxu1 %v9218_v60  ;;  %v9571_v43 = vpack.c.bf16 %v9553_v53, %v9549_v32 }
0x13f8   : > { %v9557_v36 = vpop.f32.mrf.mxu0 }
0x13fa   : > { %9416 = vmatpush1.bf16.msra.mxu1 %v9217_v59  ;;  %v9559_v61 = vpop.f32.mrf.mxu0 }
0x13fb   : > { %9417 = vmatprep.subr.bf16.mxu1 %v9216_v47 }
0x13fc   : > { %v9561_v9 = vpop.f32.mrf.mxu0 }
0x13fd   : > { %v9572_v51 = vpack.c.bf16 %v9561_v9, %v9557_v36  ;;  %v15822_v9 = vld [vmem:[%s19102_s9 + $0x134] ss:$8 sps:$4 sm:$0xff]  }
0x13fe   : > { %9418 = vmatpush1.bf16.msra.mxu1 %v9215_v40  ;;  %v9563_v48 = vpop.f32.mrf.mxu0 }
0x13ff   : > { %v9573_v41 = vpack.c.bf16 %v9563_v48, %v9559_v61 }
0x1401   : > { %13160 = vmatmul.mubr.msk.bf16.vlgmr.msra.gmra.mxu1 %vm668_vm0, %v9223_v18  ;;  %9587 = vmatprep.subr.bf16.mxu1 %v9573_v41  ;;  %v13203_v18 = vld [vmem:[%s19103_s10 + $0xc] sm:$0xf]  ;;  %v15820_v41 = vld [vmem:[%s19102_s9 + $0x130] ss:$8 sps:$4 sm:$0xff]  }
0x1402   : > { %9588 = vmatpush1.bf16.msra.mxu1 %v9572_v51  ;;  %9611 = vmatprep.mubr.bf16.mxu1 %v19168_v54  ;;  %v15825_v51 = vld [vmem:[%s19102_s9 + $0x124] ss:$8 sps:$4 sm:$0xff]  }
0x1403   : > { %9589 = vmatprep.subr.bf16.mxu1 %v9571_v43  ;;  %v15823_v43 = vld [vmem:[%s19102_s9 + $0x120] ss:$8 sps:$4 sm:$0xff]  }
0x1406   : > { %9590 = vmatpush1.bf16.msra.mxu1 %v9570_v30  ;;  %v15828_v30 = vld [vmem:[%s19102_s9 + $0x114] ss:$8 sps:$4 sm:$0xff]  }
0x1407   : > { %9591 = vmatprep.subr.bf16.mxu1 %v9569_v50  ;;  %v15826_v50 = vld [vmem:[%s19102_s9 + $0x110] ss:$8 sps:$4 sm:$0xff]  }
0x140a   : > { %9592 = vmatpush1.bf16.msra.mxu1 %v9568_v26  ;;  %v15831_v26 = vld [vmem:[%s19102_s9 + $0x104] ss:$8 sps:$4 sm:$0xff]  }
0x140b   : > { %9593 = vmatprep.subr.bf16.mxu1 %v9567_v38  ;;  %v15829_v38 = vld [vmem:[%s19102_s9 + $0x100] ss:$8 sps:$4 sm:$0xff]  }
0x140e   : > { %9594 = vmatpush1.bf16.msra.mxu1 %v9566_v19 }
0x140f   : > { %9679 = vmatprep.subr.bf16.mxu1 %v15810_v2 }
0x1411   : > { %13182 = vmatmul.mubr.msk.bf16.vlgmr.msra.gmra.mxu1 %vm668_vm0, %v13181_v28 }
0x1412   : > { %9680 = vmatpush1.bf16.msra.mxu1 %v15808_v17  ;;  %9703 = vmatprep.mubr.bf16.mxu1 %v19168_v54 }
0x1413   : > { %9681 = vmatprep.subr.bf16.mxu1 %v15813_v14 }
0x1416   : > { %9682 = vmatpush1.bf16.msra.mxu1 %v15811_v44 }
0x1417   : > { %9683 = vmatprep.subr.bf16.mxu1 %v15816_v20 }
0x141a   : > { %9684 = vmatpush1.bf16.msra.mxu1 %v15814_v62 }
0x141b   : > { %9685 = vmatprep.subr.bf16.mxu1 %v15819_v8 }
0x141e   : > { %9686 = vmatpush1.bf16.msra.mxu1 %v15817_v57 }
0x1421   : > { %13199 = vmatmul.mubr.msk.bf16.vlgmr.msra.gmra.mxu1 %vm668_vm0, %v18377_v4 }
0x1422   : > { %9713 = vmatprep.mubr.bf16.mxu1 %v19168_v54 }
0x1429   : > { %13200 = vmatmul.mubr.msk.bf16.gmra.mxu1 %vm668_vm0, %v18374_v21 }
0x142a   : > { %9723 = vmatprep.mubr.bf16.mxu1 %v19168_v54 }
0x1431   : > { %13201 = vmatmul.mubr.msk.bf16.gmra.mxu1 %vm668_vm0, %v18415_v37 }
0x1432   : > { %9733 = vmatprep.mubr.bf16.mxu1 %v19168_v54 }
0x1439   : > { %13202 = vmatmul.mubr.msk.bf16.gmra.mxu1 %vm668_vm0, %v18398_v35 }
0x143a   : > { %9967 = vmatprep.mubr.bf16.mxu1 %v19168_v54 }
0x14b1   : > { %v9393_v52 = vpop.f32.mrf.mxu1 }
0x14b3   : > { %v9395_v12 = vpop.f32.mrf.mxu1 }
0x14b5   : > { %v9397_v11 = vpop.f32.mrf.mxu1 }
0x14b7   : > { %v9398_v31 = vpop.f32.mrf.mxu1 }
0x14c1   : > { %v9437_v45 = vpop.f32.mrf.mxu1 }
0x14c2   : > { %v9438_v7 = vadd.f32 %v9437_v45, %v9393_v52 }
0x14c3   : > { %v9439_v34 = vpop.f32.mrf.mxu1 }
0x14c4   : > { %v9440_v15 = vadd.f32 %v9439_v34, %v9395_v12 }
0x14c5   : > { %v9441_v23 = vpop.f32.mrf.mxu1 }
0x14c7   : > { %v9442_v13 = vpop.f32.mrf.mxu1 }
0x14d1   : > { %v9613_v27 = vpop.f32.mrf.mxu1 }
0x14d2   : > { %v18519_v25 = vadd.f32 %v9613_v27, %v9438_v7 }
0x14d3   : > { %v9615_v1 = vpop.f32.mrf.mxu1 }
0x14d4   : > { %v18521_v22 = vadd.f32 %v9615_v1, %v9440_v15 }
0x14d5   : > { %v9617_v49 = vpop.f32.mrf.mxu1 }
0x14d7   : > { %v9618_v5 = vpop.f32.mrf.mxu1 }
0x14e1   : > { %v9705_v10 = vpop.f32.mrf.mxu1 }
0x14e3   : > { %v9707_v3 = vpop.f32.mrf.mxu1 }
0x14e5   : > { %v9709_v0 = vpop.f32.mrf.mxu1 }
0x14e6   : > { %v9744_v48 = vpack.c.bf16 %v9709_v0, %v9705_v10 }
0x14e7   : > { %v9711_v63 = vpop.f32.mrf.mxu1 }
0x14e8   : > { %v9745_v40 = vpack.c.bf16 %v9711_v63, %v9707_v3  ;;  %v15834_v63 = vld [vmem:[%s19102_s9 + $0x174] ss:$8 sps:$4 sm:$0xff]  }
0x14e9   : > { %v9715_v29 = vpop.f32.mrf.mxu1 }
0x14eb   : > { %v9717_v16 = vpop.f32.mrf.mxu1 }
0x14ed   : > { %v9719_v55 = vpop.f32.mrf.mxu1 }
0x14ee   : > { %v9746_v61 = vpack.c.bf16 %v9719_v55, %v9715_v29  ;;  %v15832_v55 = vld [vmem:[%s19102_s9 + $0x170] ss:$8 sps:$4 sm:$0xff]  }
0x14ef   : > { %v9721_v42 = vpop.f32.mrf.mxu1 }
0x14f0   : > { %v9747_v47 = vpack.c.bf16 %v9721_v42, %v9717_v16  ;;  %v13225_v16 = vld [vmem:[%s19103_s10 + $0x10] sm:$0xf]  ;;  %v15837_v42 = vld [vmem:[%s19102_s9 + $0x164] ss:$8 sps:$4 sm:$0xff]  }
0x14f1   : > { %v9725_v39 = vpop.f32.mrf.mxu1 }
0x14f3   : > { %v9727_v6 = vpop.f32.mrf.mxu1 }
0x14f5   : > { %v9729_v46 = vpop.f32.mrf.mxu1 }
0x14f6   : > { %v9748_v36 = vpack.c.bf16 %v9729_v46, %v9725_v39  ;;  %v15835_v39 = vld [vmem:[%s19102_s9 + $0x160] ss:$8 sps:$4 sm:$0xff]   ;;  %v15838_v46 = vld [vmem:[%s19102_s9 + $0x150] ss:$8 sps:$4 sm:$0xff]  }
0x14f7   : > { %v9731_v58 = vpop.f32.mrf.mxu1 }
0x14f8   : > { %v9749_v59 = vpack.c.bf16 %v9731_v58, %v9727_v6  ;;  %v15840_v6 = vld [vmem:[%s19102_s9 + $0x154] ss:$8 sps:$4 sm:$0xff]   ;;  %v15843_v58 = vld [vmem:[%s19102_s9 + $0x144] ss:$8 sps:$4 sm:$0xff]  }
0x14f9   : > { %v9735_v56 = vpop.f32.mrf.mxu1 }
0x14fb   : > { %v9737_v32 = vpop.f32.mrf.mxu1 }
0x14fd   : > { %v9739_v24 = vpop.f32.mrf.mxu1 }
0x14fe   : > { %v9750_v53 = vpack.c.bf16 %v9739_v24, %v9735_v56  ;;  %v15841_v56 = vld [vmem:[%s19102_s9 + $0x140] ss:$8 sps:$4 sm:$0xff]  }
0x14ff   : > { %v9741_v33 = vpop.f32.mrf.mxu1 }
0x1500   : > { %v9751_v60 = vpack.c.bf16 %v9741_v33, %v9737_v32 }
0x1502   : > { %9765 = vmatprep.subr.bf16.mxu0 %v9751_v60 }
0x1503   : > { %9766 = vmatpush1.bf16.msra.mxu0 %v9750_v53 }
0x1504   : > { %9767 = vmatprep.subr.bf16.mxu0 %v9749_v59 }
0x1507   : > { %9768 = vmatpush1.bf16.msra.mxu0 %v9748_v36 }
0x1508   : > { %9769 = vmatprep.subr.bf16.mxu0 %v9747_v47 }
0x150b   : > { %9770 = vmatpush1.bf16.msra.mxu0 %v9746_v61 }
0x150c   : > { %9771 = vmatprep.subr.bf16.mxu0 %v9745_v40 }
0x150f   : > { %9772 = vmatpush1.bf16.msra.mxu0 %v9744_v48 }
0x1510   : > { %9857 = vmatprep.subr.bf16.mxu0 %v15822_v9 }
0x1512   : > { %13204 = vmatmul.mubr.msk.bf16.vlgmr.msra.gmra.mxu0 %vm668_vm0, %v13203_v18 }
0x1513   : > { %9858 = vmatpush1.bf16.msra.mxu0 %v15820_v41  ;;  %9881 = vmatprep.mubr.bf16.mxu0 %v19168_v54 }
0x1514   : > { %9859 = vmatprep.subr.bf16.mxu0 %v15825_v51 }
0x1517   : > { %9860 = vmatpush1.bf16.msra.mxu0 %v15823_v43 }
0x1518   : > { %9861 = vmatprep.subr.bf16.mxu0 %v15828_v30 }
0x151b   : > { %9862 = vmatpush1.bf16.msra.mxu0 %v15826_v50 }
0x151c   : > { %9863 = vmatprep.subr.bf16.mxu0 %v15831_v26 }
0x151f   : > { %9864 = vmatpush1.bf16.msra.mxu0 %v15829_v38 }
0x1522   : > { %13221 = vmatmul.mubr.msk.bf16.vlgmr.msra.gmra.mxu0 %vm668_vm0, %v18377_v4 }
0x1523   : > { %9891 = vmatprep.mubr.bf16.mxu0 %v19168_v54 }
0x152a   : > { %13222 = vmatmul.mubr.msk.bf16.gmra.mxu0 %vm668_vm0, %v18374_v21 }
0x152b   : > { %9901 = vmatprep.mubr.bf16.mxu0 %v19168_v54 }
0x1532   : > { %13223 = vmatmul.mubr.msk.bf16.gmra.mxu0 %vm668_vm0, %v18415_v37 }
0x1533   : > { %9911 = vmatprep.mubr.bf16.mxu0 %v19168_v54 }
0x153a   : > { %13224 = vmatmul.mubr.msk.bf16.gmra.mxu0 %vm668_vm0, %v18398_v35 }
0x153b   : > { %10145 = vmatprep.mubr.bf16.mxu0 %v19168_v54 }
0x15d2   : > { %v9791_v2 = vpop.f32.mrf.mxu0 }
0x15d3   : > { %v18565_v19 = vadd.f32 %v9791_v2, %v18519_v25 }
0x15d4   : > { %v9793_v28 = vpop.f32.mrf.mxu0 }
0x15d5   : > { %v18568_v17 = vadd.f32 %v9793_v28, %v18521_v22 }
0x15d6   : > { %v9795_v14 = vpop.f32.mrf.mxu0 }
0x15d8   : > { %v9796_v44 = vpop.f32.mrf.mxu0 }
0x15e2   : > { %v9883_v20 = vpop.f32.mrf.mxu0 }
0x15e4   : > { %v9885_v62 = vpop.f32.mrf.mxu0 }
0x15e6   : > { %v9887_v8 = vpop.f32.mrf.mxu0 }
0x15e7   : > { %v9922_v29 = vpack.c.bf16 %v9887_v8, %v9883_v20 }
0x15e8   : > { %v9889_v57 = vpop.f32.mrf.mxu0 }
0x15e9   : > { %v9923_v0 = vpack.c.bf16 %v9889_v57, %v9885_v62  ;;  %v15846_v57 = vld [vmem:[%s19102_s9 + $0x1b4] ss:$8 sps:$4 sm:$0xff]  }
0x15ea   : > { %v9893_v52 = vpop.f32.mrf.mxu0 }
0x15ec   : > { %v9895_v12 = vpop.f32.mrf.mxu0 }
0x15ee   : > { %v9897_v11 = vpop.f32.mrf.mxu0 }
0x15ef   : > { %v9924_v3 = vpack.c.bf16 %v9897_v11, %v9893_v52  ;;  %v15844_v11 = vld [vmem:[%s19102_s9 + $0x1b0] ss:$8 sps:$4 sm:$0xff]  }
0x15f0   : > { %v9899_v31 = vpop.f32.mrf.mxu0 }
0x15f1   : > { %v9925_v10 = vpack.c.bf16 %v9899_v31, %v9895_v12  ;;  %v13247_v12 = vld [vmem:[%s19103_s10 + $0x14] sm:$0xf]  ;;  %v15849_v31 = vld [vmem:[%s19102_s9 + $0x1a4] ss:$8 sps:$4 sm:$0xff]  }
0x15f2   : > { %v9903_v45 = vpop.f32.mrf.mxu0 }
0x15f4   : > { %v9905_v7 = vpop.f32.mrf.mxu0 }
0x15f6   : > { %v9907_v34 = vpop.f32.mrf.mxu0 }
0x15f7   : > { %v9926_v5 = vpack.c.bf16 %v9907_v34, %v9903_v45  ;;  %v15847_v45 = vld [vmem:[%s19102_s9 + $0x1a0] ss:$8 sps:$4 sm:$0xff]   ;;  %v15850_v34 = vld [vmem:[%s19102_s9 + $0x190] ss:$8 sps:$4 sm:$0xff]  }
0x15f8   : > { %v9909_v15 = vpop.f32.mrf.mxu0 }
0x15f9   : > { %v9927_v49 = vpack.c.bf16 %v9909_v15, %v9905_v7  ;;  %v15852_v7 = vld [vmem:[%s19102_s9 + $0x194] ss:$8 sps:$4 sm:$0xff]   ;;  %v15855_v15 = vld [vmem:[%s19102_s9 + $0x184] ss:$8 sps:$4 sm:$0xff]  }
0x15fa   : > { %v9913_v23 = vpop.f32.mrf.mxu0 }
0x15fc   : > { %v9915_v13 = vpop.f32.mrf.mxu0 }
0x15fe   : > { %v9917_v27 = vpop.f32.mrf.mxu0 }
0x15ff   : > { %v9928_v22 = vpack.c.bf16 %v9917_v27, %v9913_v23  ;;  %v15853_v23 = vld [vmem:[%s19102_s9 + $0x180] ss:$8 sps:$4 sm:$0xff]  }
0x1600   : > { %v9919_v25 = vpop.f32.mrf.mxu0 }
0x1601   : > { %v9929_v1 = vpack.c.bf16 %v9919_v25, %v9915_v13 }
0x1603   : > { %9943 = vmatprep.subr.bf16.mxu1 %v9929_v1 }
0x1604   : > { %9944 = vmatpush1.bf16.msra.mxu1 %v9928_v22 }
0x1605   : > { %9945 = vmatprep.subr.bf16.mxu1 %v9927_v49 }
0x1608   : > { %9946 = vmatpush1.bf16.msra.mxu1 %v9926_v5 }
0x1609   : > { %9947 = vmatprep.subr.bf16.mxu1 %v9925_v10 }
0x160c   : > { %9948 = vmatpush1.bf16.msra.mxu1 %v9924_v3 }
0x160d   : > { %9949 = vmatprep.subr.bf16.mxu1 %v9923_v0 }
0x1610   : > { %9950 = vmatpush1.bf16.msra.mxu1 %v9922_v29 }
0x1611   : > { %10035 = vmatprep.subr.bf16.mxu1 %v15834_v63 }
0x1613   : > { %13226 = vmatmul.mubr.msk.bf16.vlgmr.msra.gmra.mxu1 %vm668_vm0, %v13225_v16 }
0x1614   : > { %10036 = vmatpush1.bf16.msra.mxu1 %v15832_v55  ;;  %10059 = vmatprep.mubr.bf16.mxu1 %v19168_v54 }
0x1615   : > { %10037 = vmatprep.subr.bf16.mxu1 %v15837_v42 }
0x1618   : > { %10038 = vmatpush1.bf16.msra.mxu1 %v15835_v39 }
0x1619   : > { %10039 = vmatprep.subr.bf16.mxu1 %v15840_v6 }
0x161c   : > { %10040 = vmatpush1.bf16.msra.mxu1 %v15838_v46 }
0x161d   : > { %10041 = vmatprep.subr.bf16.mxu1 %v15843_v58 }
0x1620   : > { %10042 = vmatpush1.bf16.msra.mxu1 %v15841_v56 }
0x1623   : > { %13243 = vmatmul.mubr.msk.bf16.vlgmr.msra.gmra.mxu1 %vm668_vm0, %v18377_v4 }
0x1624   : > { %10069 = vmatprep.mubr.bf16.mxu1 %v19168_v54 }
0x162b   : > { %13244 = vmatmul.mubr.msk.bf16.gmra.mxu1 %vm668_vm0, %v18374_v21 }
0x162c   : > { %10079 = vmatprep.mubr.bf16.mxu1 %v19168_v54 }
0x1633   : > { %13245 = vmatmul.mubr.msk.bf16.gmra.mxu1 %vm668_vm0, %v18415_v37 }
0x1634   : > { %10089 = vmatprep.mubr.bf16.mxu1 %v19168_v54 }
0x163b   : > { %13246 = vmatmul.mubr.msk.bf16.gmra.mxu1 %vm668_vm0, %v18398_v35 }
0x163c   : > { %10323 = vmatprep.mubr.bf16.mxu1 %v19168_v54 }
0x16d3   : > { %v9969_v32 = vpop.f32.mrf.mxu1 }
0x16d4   : > { %v18612_v24 = vadd.f32 %v9969_v32, %v18565_v19 }
0x16d5   : > { %v9971_v33 = vpop.f32.mrf.mxu1 }
0x16d6   : > { %v18615_v60 = vadd.f32 %v9971_v33, %v18568_v17 }
0x16d7   : > { %v9973_v53 = vpop.f32.mrf.mxu1 }
0x16d9   : > { %v9974_v59 = vpop.f32.mrf.mxu1 }
0x16e3   : > { %v10061_v36 = vpop.f32.mrf.mxu1 }
0x16e5   : > { %v10063_v47 = vpop.f32.mrf.mxu1 }
0x16e7   : > { %v10065_v61 = vpop.f32.mrf.mxu1 }
0x16e8   : > { %v10100_v52 = vpack.c.bf16 %v10065_v61, %v10061_v36 }
0x16e9   : > { %v10067_v40 = vpop.f32.mrf.mxu1 }
0x16ea   : > { %v10101_v8 = vpack.c.bf16 %v10067_v40, %v10063_v47  ;;  %v15858_v40 = vld [vmem:[%s19102_s9 + $0x1f4] ss:$8 sps:$4 sm:$0xff]  }
0x16eb   : > { %v10071_v9 = vpop.f32.mrf.mxu1 }
0x16ed   : > { %v10073_v48 = vpop.f32.mrf.mxu1 }
0x16ef   : > { %v10075_v18 = vpop.f32.mrf.mxu1 }
0x16f0   : > { %v10102_v62 = vpack.c.bf16 %v10075_v18, %v10071_v9  ;;  %v15856_v18 = vld [vmem:[%s19102_s9 + $0x1f0] ss:$8 sps:$4 sm:$0xff]  }
0x16f1   : > { %v10077_v41 = vpop.f32.mrf.mxu1 }
0x16f2   : > { %v10103_v20 = vpack.c.bf16 %v10077_v41, %v10073_v48  ;;  %v13269_v48 = vld [vmem:[%s19103_s10 + $0x18] sm:$0xf]  ;;  %v15861_v41 = vld [vmem:[%s19102_s9 + $0x1e4] ss:$8 sps:$4 sm:$0xff]  }
0x16f3   : > { %v10081_v51 = vpop.f32.mrf.mxu1 }
0x16f5   : > { %v10083_v43 = vpop.f32.mrf.mxu1 }
0x16f7   : > { %v10085_v30 = vpop.f32.mrf.mxu1 }
0x16f8   : > { %v10104_v44 = vpack.c.bf16 %v10085_v30, %v10081_v51  ;;  %v15859_v51 = vld [vmem:[%s19102_s9 + $0x1e0] ss:$8 sps:$4 sm:$0xff]   ;;  %v15862_v30 = vld [vmem:[%s19102_s9 + $0x1d0] ss:$8 sps:$4 sm:$0xff]  }
0x16f9   : > { %v10087_v50 = vpop.f32.mrf.mxu1 }
0x16fa   : > { %v10105_v14 = vpack.c.bf16 %v10087_v50, %v10083_v43  ;;  %v15864_v43 = vld [vmem:[%s19102_s9 + $0x1d4] ss:$8 sps:$4 sm:$0xff]   ;;  %v15867_v50 = vld [vmem:[%s19102_s9 + $0x1c4] ss:$8 sps:$4 sm:$0xff]  }
0x16fb   : > { %v10091_v26 = vpop.f32.mrf.mxu1 }
0x16fd   : > { %v10093_v38 = vpop.f32.mrf.mxu1 }
0x16ff   : > { %v10095_v2 = vpop.f32.mrf.mxu1 }
0x1700   : > { %v10106_v17 = vpack.c.bf16 %v10095_v2, %v10091_v26  ;;  %v15865_v26 = vld [vmem:[%s19102_s9 + $0x1c0] ss:$8 sps:$4 sm:$0xff]  }
0x1701   : > { %v10097_v19 = vpop.f32.mrf.mxu1 }
0x1702   : > { %v10107_v28 = vpack.c.bf16 %v10097_v19, %v10093_v38 }
0x1704   : > { %10121 = vmatprep.subr.bf16.mxu0 %v10107_v28 }
0x1705   : > { %10122 = vmatpush1.bf16.msra.mxu0 %v10106_v17 }
0x1706   : > { %10123 = vmatprep.subr.bf16.mxu0 %v10105_v14 }
0x1709   : > { %10124 = vmatpush1.bf16.msra.mxu0 %v10104_v44 }
0x170a   : > { %10125 = vmatprep.subr.bf16.mxu0 %v10103_v20 }
0x170d   : > { %10126 = vmatpush1.bf16.msra.mxu0 %v10102_v62 }
0x170e   : > { %10127 = vmatprep.subr.bf16.mxu0 %v10101_v8 }
0x1711   : > { %10128 = vmatpush1.bf16.msra.mxu0 %v10100_v52 }
0x1712   : > { %10213 = vmatprep.subr.bf16.mxu0 %v15846_v57 }
0x1714   : > { %13248 = vmatmul.mubr.msk.bf16.vlgmr.msra.gmra.mxu0 %vm668_vm0, %v13247_v12 }
0x1715   : > { %10214 = vmatpush1.bf16.msra.mxu0 %v15844_v11  ;;  %10237 = vmatprep.mubr.bf16.mxu0 %v19168_v54 }
0x1716   : > { %10215 = vmatprep.subr.bf16.mxu0 %v15849_v31 }
0x1719   : > { %10216 = vmatpush1.bf16.msra.mxu0 %v15847_v45 }
0x171a   : > { %10217 = vmatprep.subr.bf16.mxu0 %v15852_v7 }
0x171d   : > { %10218 = vmatpush1.bf16.msra.mxu0 %v15850_v34 }
0x171e   : > { %10219 = vmatprep.subr.bf16.mxu0 %v15855_v15 }
0x1721   : > { %10220 = vmatpush1.bf16.msra.mxu0 %v15853_v23 }
0x1724   : > { %13265 = vmatmul.mubr.msk.bf16.vlgmr.msra.gmra.mxu0 %vm668_vm0, %v18377_v4 }
0x1725   : > { %10247 = vmatprep.mubr.bf16.mxu0 %v19168_v54 }
0x172c   : > { %13266 = vmatmul.mubr.msk.bf16.gmra.mxu0 %vm668_vm0, %v18374_v21 }
0x172d   : > { %10257 = vmatprep.mubr.bf16.mxu0 %v19168_v54 }
0x1734   : > { %13267 = vmatmul.mubr.msk.bf16.gmra.mxu0 %vm668_vm0, %v18415_v37 }
0x1735   : > { %10267 = vmatprep.mubr.bf16.mxu0 %v19168_v54 }
0x173c   : > { %13268 = vmatmul.mubr.msk.bf16.gmra.mxu0 %vm668_vm0, %v18398_v35 }
0x173d   : > { %10501 = vmatprep.mubr.bf16.mxu0 %v19168_v54 }
0x17d4   : > { %v10147_v13 = vpop.f32.mrf.mxu0 }
0x17d5   : > { %v18659_v27 = vadd.f32 %v10147_v13, %v18612_v24 }
0x17d6   : > { %v10149_v25 = vpop.f32.mrf.mxu0 }
0x17d7   : > { %v18662_v1 = vadd.f32 %v10149_v25, %v18615_v60 }
0x17d8   : > { %v10151_v22 = vpop.f32.mrf.mxu0 }
0x17da   : > { %v10152_v49 = vpop.f32.mrf.mxu0 }
0x17e4   : > { %v10239_v5 = vpop.f32.mrf.mxu0 }
0x17e6   : > { %v10241_v10 = vpop.f32.mrf.mxu0 }
0x17e8   : > { %v10243_v3 = vpop.f32.mrf.mxu0 }
0x17e9   : > { %v10278_v9 = vpack.c.bf16 %v10243_v3, %v10239_v5 }
0x17ea   : > { %v10245_v0 = vpop.f32.mrf.mxu0 }
0x17eb   : > { %v10279_v61 = vpack.c.bf16 %v10245_v0, %v10241_v10  ;;  %v15870_v0 = vld [vmem:[%s19102_s9 + $0x234] ss:$8 sps:$4 sm:$0xff]  }
0x17ec   : > { %v10249_v63 = vpop.f32.mrf.mxu0 }
0x17ee   : > { %v10251_v29 = vpop.f32.mrf.mxu0 }
0x17f0   : > { %v10253_v16 = vpop.f32.mrf.mxu0 }
0x17f1   : > { %v10280_v47 = vpack.c.bf16 %v10253_v16, %v10249_v63  ;;  %v15868_v16 = vld [vmem:[%s19102_s9 + $0x230] ss:$8 sps:$4 sm:$0xff]  }
0x17f2   : > { %v10255_v55 = vpop.f32.mrf.mxu0 }
0x17f3   : > { %v10281_v36 = vpack.c.bf16 %v10255_v55, %v10251_v29  ;;  %v13291_v29 = vld [vmem:[%s19103_s10 + $0x1c] sm:$0xf]  ;;  %v15873_v55 = vld [vmem:[%s19102_s9 + $0x224] ss:$8 sps:$4 sm:$0xff]  }
0x17f4   : > { %v10259_v42 = vpop.f32.mrf.mxu0 }
0x17f6   : > { %v10261_v39 = vpop.f32.mrf.mxu0 }
0x17f8   : > { %v10263_v6 = vpop.f32.mrf.mxu0 }
0x17f9   : > { %v10282_v59 = vpack.c.bf16 %v10263_v6, %v10259_v42  ;;  %v15871_v42 = vld [vmem:[%s19102_s9 + $0x220] ss:$8 sps:$4 sm:$0xff]   ;;  %v15874_v6 = vld [vmem:[%s19102_s9 + $0x210] ss:$8 sps:$4 sm:$0xff]  }
0x17fa   : > { %v10265_v46 = vpop.f32.mrf.mxu0 }
0x17fb   : > { %v10283_v53 = vpack.c.bf16 %v10265_v46, %v10261_v39  ;;  %v15876_v39 = vld [vmem:[%s19102_s9 + $0x214] ss:$8 sps:$4 sm:$0xff]   ;;  %v15879_v46 = vld [vmem:[%s19102_s9 + $0x204] ss:$8 sps:$4 sm:$0xff]  }
0x17fc   : > { %v10269_v58 = vpop.f32.mrf.mxu0 }
0x17fe   : > { %v10271_v56 = vpop.f32.mrf.mxu0 }
0x1800   : > { %v10273_v32 = vpop.f32.mrf.mxu0 }
0x1801   : > { %v10284_v60 = vpack.c.bf16 %v10273_v32, %v10269_v58  ;;  %v15877_v58 = vld [vmem:[%s19102_s9 + $0x200] ss:$8 sps:$4 sm:$0xff]  }
0x1802   : > { %v10275_v24 = vpop.f32.mrf.mxu0 }
0x1803   : > { %v10285_v33 = vpack.c.bf16 %v10275_v24, %v10271_v56 }
0x1805   : > { %10299 = vmatprep.subr.bf16.mxu1 %v10285_v33 }
0x1806   : > { %10300 = vmatpush1.bf16.msra.mxu1 %v10284_v60 }
0x1807   : > { %10301 = vmatprep.subr.bf16.mxu1 %v10283_v53 }
0x180a   : > { %10302 = vmatpush1.bf16.msra.mxu1 %v10282_v59 }
0x180b   : > { %10303 = vmatprep.subr.bf16.mxu1 %v10281_v36 }
0x180e   : > { %10304 = vmatpush1.bf16.msra.mxu1 %v10280_v47 }
0x180f   : > { %10305 = vmatprep.subr.bf16.mxu1 %v10279_v61 }
0x1812   : > { %10306 = vmatpush1.bf16.msra.mxu1 %v10278_v9 }
0x1813   : > { %10391 = vmatprep.subr.bf16.mxu1 %v15858_v40 }
0x1815   : > { %13270 = vmatmul.mubr.msk.bf16.vlgmr.msra.gmra.mxu1 %vm668_vm0, %v13269_v48 }
0x1816   : > { %10392 = vmatpush1.bf16.msra.mxu1 %v15856_v18  ;;  %10415 = vmatprep.mubr.bf16.mxu1 %v19168_v54 }
0x1817   : > { %10393 = vmatprep.subr.bf16.mxu1 %v15861_v41 }
0x181a   : > { %10394 = vmatpush1.bf16.msra.mxu1 %v15859_v51 }
0x181b   : > { %10395 = vmatprep.subr.bf16.mxu1 %v15864_v43 }
0x181e   : > { %10396 = vmatpush1.bf16.msra.mxu1 %v15862_v30 }
0x181f   : > { %10397 = vmatprep.subr.bf16.mxu1 %v15867_v50 }
0x1822   : > { %10398 = vmatpush1.bf16.msra.mxu1 %v15865_v26 }
0x1825   : > { %13287 = vmatmul.mubr.msk.bf16.vlgmr.msra.gmra.mxu1 %vm668_vm0, %v18377_v4 }
0x1826   : > { %10425 = vmatprep.mubr.bf16.mxu1 %v19168_v54 }
0x182d   : > { %13288 = vmatmul.mubr.msk.bf16.gmra.mxu1 %vm668_vm0, %v18374_v21 }
0x182e   : > { %10435 = vmatprep.mubr.bf16.mxu1 %v19168_v54 }
0x1835   : > { %13289 = vmatmul.mubr.msk.bf16.gmra.mxu1 %vm668_vm0, %v18415_v37 }
0x1836   : > { %10445 = vmatprep.mubr.bf16.mxu1 %v19168_v54 }
0x183d   : > { %13290 = vmatmul.mubr.msk.bf16.gmra.mxu1 %vm668_vm0, %v18398_v35 }
0x183e   : > { %10679 = vmatprep.mubr.bf16.mxu1 %v19168_v54 }
0x18d5   : > { %v10325_v38 = vpop.f32.mrf.mxu1 }
0x18d6   : > { %v18706_v2 = vadd.f32 %v10325_v38, %v18659_v27 }
0x18d7   : > { %v10327_v19 = vpop.f32.mrf.mxu1 }
0x18d8   : > { %v18709_v28 = vadd.f32 %v10327_v19, %v18662_v1 }
0x18d9   : > { %v10329_v17 = vpop.f32.mrf.mxu1 }
0x18db   : > { %v10330_v14 = vpop.f32.mrf.mxu1 }
0x18e5   : > { %v10417_v44 = vpop.f32.mrf.mxu1 }
0x18e7   : > { %v10419_v20 = vpop.f32.mrf.mxu1 }
0x18e9   : > { %v10421_v62 = vpop.f32.mrf.mxu1 }
0x18ea   : > { %v10456_v63 = vpack.c.bf16 %v10421_v62, %v10417_v44 }
0x18eb   : > { %v10423_v8 = vpop.f32.mrf.mxu1 }
0x18ec   : > { %v10457_v3 = vpack.c.bf16 %v10423_v8, %v10419_v20  ;;  %v15882_v8 = vld [vmem:[%s19102_s9 + $0x274] ss:$8 sps:$4 sm:$0xff]  }
0x18ed   : > { %v10427_v57 = vpop.f32.mrf.mxu1 }
0x18ef   : > { %v10429_v52 = vpop.f32.mrf.mxu1 }
0x18f1   : > { %v10431_v12 = vpop.f32.mrf.mxu1 }
0x18f2   : > { %v10458_v10 = vpack.c.bf16 %v10431_v12, %v10427_v57  ;;  %v15880_v12 = vld [vmem:[%s19102_s9 + $0x270] ss:$8 sps:$4 sm:$0xff]  }
0x18f3   : > { %v10433_v11 = vpop.f32.mrf.mxu1 }
0x18f4   : > { %v10459_v5 = vpack.c.bf16 %v10433_v11, %v10429_v52  ;;  %v13313_v52 = vld [vmem:[%s19103_s10 + $0x20] sm:$0xf]  ;;  %v15885_v11 = vld [vmem:[%s19102_s9 + $0x264] ss:$8 sps:$4 sm:$0xff]  }
0x18f5   : > { %v10437_v31 = vpop.f32.mrf.mxu1 }
0x18f7   : > { %v10439_v45 = vpop.f32.mrf.mxu1 }
0x18f9   : > { %v10441_v7 = vpop.f32.mrf.mxu1 }
0x18fa   : > { %v10460_v49 = vpack.c.bf16 %v10441_v7, %v10437_v31  ;;  %v15883_v31 = vld [vmem:[%s19102_s9 + $0x260] ss:$8 sps:$4 sm:$0xff]   ;;  %v15886_v7 = vld [vmem:[%s19102_s9 + $0x250] ss:$8 sps:$4 sm:$0xff]  }
0x18fb   : > { %v10443_v34 = vpop.f32.mrf.mxu1 }
0x18fc   : > { %v10461_v22 = vpack.c.bf16 %v10443_v34, %v10439_v45  ;;  %v15888_v45 = vld [vmem:[%s19102_s9 + $0x254] ss:$8 sps:$4 sm:$0xff]   ;;  %v15891_v34 = vld [vmem:[%s19102_s9 + $0x244] ss:$8 sps:$4 sm:$0xff]  }
0x18fd   : > { %v10447_v15 = vpop.f32.mrf.mxu1 }
0x18ff   : > { %v10449_v23 = vpop.f32.mrf.mxu1 }
0x1901   : > { %v10451_v13 = vpop.f32.mrf.mxu1 }
0x1902   : > { %v10462_v1 = vpack.c.bf16 %v10451_v13, %v10447_v15  ;;  %v15889_v15 = vld [vmem:[%s19102_s9 + $0x240] ss:$8 sps:$4 sm:$0xff]  }
0x1903   : > { %v10453_v27 = vpop.f32.mrf.mxu1 }
0x1904   : > { %v10463_v25 = vpack.c.bf16 %v10453_v27, %v10449_v23 }
0x1906   : > { %10477 = vmatprep.subr.bf16.mxu0 %v10463_v25 }
0x1907   : > { %10478 = vmatpush1.bf16.msra.mxu0 %v10462_v1 }
0x1908   : > { %10479 = vmatprep.subr.bf16.mxu0 %v10461_v22 }
0x190b   : > { %10480 = vmatpush1.bf16.msra.mxu0 %v10460_v49 }
0x190c   : > { %10481 = vmatprep.subr.bf16.mxu0 %v10459_v5 }
0x190f   : > { %10482 = vmatpush1.bf16.msra.mxu0 %v10458_v10 }
0x1910   : > { %10483 = vmatprep.subr.bf16.mxu0 %v10457_v3 }
0x1913   : > { %10484 = vmatpush1.bf16.msra.mxu0 %v10456_v63 }
0x1914   : > { %10569 = vmatprep.subr.bf16.mxu0 %v15870_v0 }
0x1916   : > { %13292 = vmatmul.mubr.msk.bf16.vlgmr.msra.gmra.mxu0 %vm668_vm0, %v13291_v29 }
0x1917   : > { %10570 = vmatpush1.bf16.msra.mxu0 %v15868_v16  ;;  %10593 = vmatprep.mubr.bf16.mxu0 %v19168_v54 }
0x1918   : > { %10571 = vmatprep.subr.bf16.mxu0 %v15873_v55 }
0x191b   : > { %10572 = vmatpush1.bf16.msra.mxu0 %v15871_v42 }
0x191c   : > { %10573 = vmatprep.subr.bf16.mxu0 %v15876_v39 }
0x191f   : > { %10574 = vmatpush1.bf16.msra.mxu0 %v15874_v6 }
0x1920   : > { %10575 = vmatprep.subr.bf16.mxu0 %v15879_v46 }
0x1923   : > { %10576 = vmatpush1.bf16.msra.mxu0 %v15877_v58 }
0x1926   : > { %13309 = vmatmul.mubr.msk.bf16.vlgmr.msra.gmra.mxu0 %vm668_vm0, %v18377_v4 }
0x1927   : > { %10603 = vmatprep.mubr.bf16.mxu0 %v19168_v54 }
0x192e   : > { %13310 = vmatmul.mubr.msk.bf16.gmra.mxu0 %vm668_vm0, %v18374_v21 }
0x192f   : > { %10613 = vmatprep.mubr.bf16.mxu0 %v19168_v54 }
0x1936   : > { %13311 = vmatmul.mubr.msk.bf16.gmra.mxu0 %vm668_vm0, %v18415_v37 }
0x1937   : > { %10623 = vmatprep.mubr.bf16.mxu0 %v19168_v54 }
0x193e   : > { %13312 = vmatmul.mubr.msk.bf16.gmra.mxu0 %vm668_vm0, %v18398_v35 }
0x193f   : > { %10857 = vmatprep.mubr.bf16.mxu0 %v19168_v54 }
0x19d6   : > { %v10503_v56 = vpop.f32.mrf.mxu0 }
0x19d7   : > { %v18753_v32 = vadd.f32 %v10503_v56, %v18706_v2 }
0x19d8   : > { %v10505_v24 = vpop.f32.mrf.mxu0 }
0x19d9   : > { %v18756_v33 = vadd.f32 %v10505_v24, %v18709_v28 }
0x19da   : > { %v10507_v60 = vpop.f32.mrf.mxu0 }
0x19dc   : > { %v10508_v53 = vpop.f32.mrf.mxu0 }
0x19e6   : > { %v10595_v59 = vpop.f32.mrf.mxu0 }
0x19e8   : > { %v10597_v36 = vpop.f32.mrf.mxu0 }
0x19ea   : > { %v10599_v47 = vpop.f32.mrf.mxu0 }
0x19eb   : > { %v10634_v57 = vpack.c.bf16 %v10599_v47, %v10595_v59 }
0x19ec   : > { %v10601_v61 = vpop.f32.mrf.mxu0 }
0x19ed   : > { %v10635_v62 = vpack.c.bf16 %v10601_v61, %v10597_v36  ;;  %v15894_v61 = vld [vmem:[%s19102_s9 + $0x2b4] ss:$8 sps:$4 sm:$0xff]  }
0x19ee   : > { %v10605_v40 = vpop.f32.mrf.mxu0 }
0x19f0   : > { %v10607_v9 = vpop.f32.mrf.mxu0 }
0x19f2   : > { %v10609_v48 = vpop.f32.mrf.mxu0 }
0x19f3   : > { %v10636_v20 = vpack.c.bf16 %v10609_v48, %v10605_v40  ;;  %v15892_v48 = vld [vmem:[%s19102_s9 + $0x2b0] ss:$8 sps:$4 sm:$0xff]  }
0x19f4   : > { %v10611_v18 = vpop.f32.mrf.mxu0 }
0x19f5   : > { %v10637_v44 = vpack.c.bf16 %v10611_v18, %v10607_v9  ;;  %v13335_v9 = vld [vmem:[%s19103_s10 + $0x24] sm:$0xf] }
0x19f6   : > { %v10615_v41 = vpop.f32.mrf.mxu0  ;;  %v15897_v18 = vld [vmem:[%s19102_s9 + $0x2a4] ss:$8 sps:$4 sm:$0xff]  }
0x19f8   : > { %v10617_v51 = vpop.f32.mrf.mxu0 }
0x19fa   : > { %v10619_v43 = vpop.f32.mrf.mxu0 }
0x19fb   : > { %v10638_v14 = vpack.c.bf16 %v10619_v43, %v10615_v41  ;;  %v15895_v41 = vld [vmem:[%s19102_s9 + $0x2a0] ss:$8 sps:$4 sm:$0xff]   ;;  %v15898_v43 = vld [vmem:[%s19102_s9 + $0x290] ss:$8 sps:$4 sm:$0xff]  }
0x19fc   : > { %v10621_v30 = vpop.f32.mrf.mxu0 }
0x19fd   : > { %v10639_v17 = vpack.c.bf16 %v10621_v30, %v10617_v51  ;;  %v15900_v51 = vld [vmem:[%s19102_s9 + $0x294] ss:$8 sps:$4 sm:$0xff]   ;;  %v15903_v30 = vld [vmem:[%s19102_s9 + $0x284] ss:$8 sps:$4 sm:$0xff]  }
0x19fe   : > { %v10625_v50 = vpop.f32.mrf.mxu0 }
0x1a00   : > { %v10627_v26 = vpop.f32.mrf.mxu0 }
0x1a02   : > { %v10629_v38 = vpop.f32.mrf.mxu0 }
0x1a03   : > { %v10640_v28 = vpack.c.bf16 %v10629_v38, %v10625_v50  ;;  %v15901_v50 = vld [vmem:[%s19102_s9 + $0x280] ss:$8 sps:$4 sm:$0xff]  }
0x1a04   : > { %v10631_v2 = vpop.f32.mrf.mxu0 }
0x1a05   : > { %v10641_v19 = vpack.c.bf16 %v10631_v2, %v10627_v26 }
0x1a07   : > { %10655 = vmatprep.subr.bf16.mxu1 %v10641_v19 }
0x1a08   : > { %10656 = vmatpush1.bf16.msra.mxu1 %v10640_v28 }
0x1a09   : > { %10657 = vmatprep.subr.bf16.mxu1 %v10639_v17 }
0x1a0c   : > { %10658 = vmatpush1.bf16.msra.mxu1 %v10638_v14 }
0x1a0d   : > { %10659 = vmatprep.subr.bf16.mxu1 %v10637_v44 }
0x1a10   : > { %10660 = vmatpush1.bf16.msra.mxu1 %v10636_v20 }
0x1a11   : > { %10661 = vmatprep.subr.bf16.mxu1 %v10635_v62 }
0x1a14   : > { %10662 = vmatpush1.bf16.msra.mxu1 %v10634_v57 }
0x1a15   : > { %10747 = vmatprep.subr.bf16.mxu1 %v15882_v8 }
0x1a17   : > { %13314 = vmatmul.mubr.msk.bf16.vlgmr.msra.gmra.mxu1 %vm668_vm0, %v13313_v52 }
0x1a18   : > { %10748 = vmatpush1.bf16.msra.mxu1 %v15880_v12  ;;  %10771 = vmatprep.mubr.bf16.mxu1 %v19168_v54 }
0x1a19   : > { %10749 = vmatprep.subr.bf16.mxu1 %v15885_v11 }
0x1a1c   : > { %10750 = vmatpush1.bf16.msra.mxu1 %v15883_v31 }
0x1a1d   : > { %10751 = vmatprep.subr.bf16.mxu1 %v15888_v45 }
0x1a20   : > { %10752 = vmatpush1.bf16.msra.mxu1 %v15886_v7 }
0x1a21   : > { %10753 = vmatprep.subr.bf16.mxu1 %v15891_v34 }
0x1a24   : > { %10754 = vmatpush1.bf16.msra.mxu1 %v15889_v15 }
0x1a27   : > { %13331 = vmatmul.mubr.msk.bf16.vlgmr.msra.gmra.mxu1 %vm668_vm0, %v18377_v4 }
0x1a28   : > { %10781 = vmatprep.mubr.bf16.mxu1 %v19168_v54 }
0x1a2f   : > { %13332 = vmatmul.mubr.msk.bf16.gmra.mxu1 %vm668_vm0, %v18374_v21 }
0x1a30   : > { %10791 = vmatprep.mubr.bf16.mxu1 %v19168_v54 }
0x1a37   : > { %13333 = vmatmul.mubr.msk.bf16.gmra.mxu1 %vm668_vm0, %v18415_v37 }
0x1a38   : > { %10801 = vmatprep.mubr.bf16.mxu1 %v19168_v54 }
0x1a3f   : > { %13334 = vmatmul.mubr.msk.bf16.gmra.mxu1 %vm668_vm0, %v18398_v35 }
0x1a40   : > { %11035 = vmatprep.mubr.bf16.mxu1 %v19168_v54 }
0x1ad7   : > { %v10681_v23 = vpop.f32.mrf.mxu1 }
0x1ad8   : > { %v18800_v13 = vadd.f32 %v10681_v23, %v18753_v32 }
0x1ad9   : > { %v10683_v27 = vpop.f32.mrf.mxu1 }
0x1ada   : > { %v18803_v25 = vadd.f32 %v10683_v27, %v18756_v33 }
0x1adb   : > { %v10685_v1 = vpop.f32.mrf.mxu1 }
0x1add   : > { %v10686_v22 = vpop.f32.mrf.mxu1 }
0x1ae7   : > { %v10773_v49 = vpop.f32.mrf.mxu1 }
0x1ae9   : > { %v10775_v5 = vpop.f32.mrf.mxu1 }
0x1aeb   : > { %v10777_v10 = vpop.f32.mrf.mxu1 }
0x1aec   : > { %v10812_v40 = vpack.c.bf16 %v10777_v10, %v10773_v49 }
0x1aed   : > { %v10779_v3 = vpop.f32.mrf.mxu1 }
0x1aee   : > { %v10813_v47 = vpack.c.bf16 %v10779_v3, %v10775_v5  ;;  %v15906_v3 = vld [vmem:[%s19102_s9 + $0x2f4] ss:$8 sps:$4 sm:$0xff]  }
0x1aef   : > { %v10783_v0 = vpop.f32.mrf.mxu1 }
0x1af1   : > { %v10785_v63 = vpop.f32.mrf.mxu1 }
0x1af3   : > { %v10787_v29 = vpop.f32.mrf.mxu1 }
0x1af4   : > { %v10814_v36 = vpack.c.bf16 %v10787_v29, %v10783_v0  ;;  %v15904_v29 = vld [vmem:[%s19102_s9 + $0x2f0] ss:$8 sps:$4 sm:$0xff]  }
0x1af5   : > { %v10789_v16 = vpop.f32.mrf.mxu1 }
0x1af6   : > { %v10815_v59 = vpack.c.bf16 %v10789_v16, %v10785_v63  ;;  %v13357_v63 = vld [vmem:[%s19103_s10 + $0x28] sm:$0xf]  ;;  %v15909_v16 = vld [vmem:[%s19102_s9 + $0x2e4] ss:$8 sps:$4 sm:$0xff]  }
0x1af7   : > { %v10793_v55 = vpop.f32.mrf.mxu1 }
0x1af9   : > { %v10795_v42 = vpop.f32.mrf.mxu1 }
0x1afb   : > { %v10797_v39 = vpop.f32.mrf.mxu1 }
0x1afc   : > { %v10816_v53 = vpack.c.bf16 %v10797_v39, %v10793_v55  ;;  %v15907_v55 = vld [vmem:[%s19102_s9 + $0x2e0] ss:$8 sps:$4 sm:$0xff]   ;;  %v15910_v39 = vld [vmem:[%s19102_s9 + $0x2d0] ss:$8 sps:$4 sm:$0xff]  }
0x1afd   : > { %v10799_v6 = vpop.f32.mrf.mxu1 }
0x1afe   : > { %v10817_v60 = vpack.c.bf16 %v10799_v6, %v10795_v42  ;;  %v15912_v42 = vld [vmem:[%s19102_s9 + $0x2d4] ss:$8 sps:$4 sm:$0xff]   ;;  %v15915_v6 = vld [vmem:[%s19102_s9 + $0x2c4] ss:$8 sps:$4 sm:$0xff]  }
0x1aff   : > { %v10803_v46 = vpop.f32.mrf.mxu1 }
0x1b01   : > { %v10805_v58 = vpop.f32.mrf.mxu1 }
0x1b03   : > { %v10807_v56 = vpop.f32.mrf.mxu1 }
0x1b04   : > { %v10818_v33 = vpack.c.bf16 %v10807_v56, %v10803_v46  ;;  %v15913_v46 = vld [vmem:[%s19102_s9 + $0x2c0] ss:$8 sps:$4 sm:$0xff]  }
0x1b05   : > { %v10809_v32 = vpop.f32.mrf.mxu1 }
0x1b06   : > { %v10819_v24 = vpack.c.bf16 %v10809_v32, %v10805_v58 }
0x1b08   : > { %10833 = vmatprep.subr.bf16.mxu0 %v10819_v24 }
0x1b09   : > { %10834 = vmatpush1.bf16.msra.mxu0 %v10818_v33 }
0x1b0a   : > { %10835 = vmatprep.subr.bf16.mxu0 %v10817_v60 }
0x1b0d   : > { %10836 = vmatpush1.bf16.msra.mxu0 %v10816_v53 }
0x1b0e   : > { %10837 = vmatprep.subr.bf16.mxu0 %v10815_v59 }
0x1b11   : > { %10838 = vmatpush1.bf16.msra.mxu0 %v10814_v36 }
0x1b12   : > { %10839 = vmatprep.subr.bf16.mxu0 %v10813_v47 }
0x1b15   : > { %10840 = vmatpush1.bf16.msra.mxu0 %v10812_v40 }
0x1b16   : > { %10925 = vmatprep.subr.bf16.mxu0 %v15894_v61 }
0x1b18   : > { %13336 = vmatmul.mubr.msk.bf16.vlgmr.msra.gmra.mxu0 %vm668_vm0, %v13335_v9 }
0x1b19   : > { %10926 = vmatpush1.bf16.msra.mxu0 %v15892_v48  ;;  %10949 = vmatprep.mubr.bf16.mxu0 %v19168_v54 }
0x1b1a   : > { %10927 = vmatprep.subr.bf16.mxu0 %v15897_v18 }
0x1b1d   : > { %10928 = vmatpush1.bf16.msra.mxu0 %v15895_v41 }
0x1b1e   : > { %10929 = vmatprep.subr.bf16.mxu0 %v15900_v51 }
0x1b21   : > { %10930 = vmatpush1.bf16.msra.mxu0 %v15898_v43 }
0x1b22   : > { %10931 = vmatprep.subr.bf16.mxu0 %v15903_v30 }
0x1b25   : > { %10932 = vmatpush1.bf16.msra.mxu0 %v15901_v50 }
0x1b28   : > { %13353 = vmatmul.mubr.msk.bf16.vlgmr.msra.gmra.mxu0 %vm668_vm0, %v18377_v4 }
0x1b29   : > { %10959 = vmatprep.mubr.bf16.mxu0 %v19168_v54 }
0x1b30   : > { %13354 = vmatmul.mubr.msk.bf16.gmra.mxu0 %vm668_vm0, %v18374_v21 }
0x1b31   : > { %10969 = vmatprep.mubr.bf16.mxu0 %v19168_v54 }
0x1b38   : > { %13355 = vmatmul.mubr.msk.bf16.gmra.mxu0 %vm668_vm0, %v18415_v37 }
0x1b39   : > { %10979 = vmatprep.mubr.bf16.mxu0 %v19168_v54 }
0x1b40   : > { %13356 = vmatmul.mubr.msk.bf16.gmra.mxu0 %vm668_vm0, %v18398_v35 }
0x1b41   : > { %11213 = vmatprep.mubr.bf16.mxu0 %v19168_v54 }
0x1bd8   : > { %v10859_v26 = vpop.f32.mrf.mxu0 }
0x1bd9   : > { %v18847_v38 = vadd.f32 %v10859_v26, %v18800_v13 }
0x1bda   : > { %v10861_v2 = vpop.f32.mrf.mxu0 }
0x1bdb   : > { %v18850_v19 = vadd.f32 %v10861_v2, %v18803_v25 }
0x1bdc   : > { %v10863_v28 = vpop.f32.mrf.mxu0 }
0x1bde   : > { %v10864_v17 = vpop.f32.mrf.mxu0 }
0x1be8   : > { %v10951_v14 = vpop.f32.mrf.mxu0 }
0x1bea   : > { %v10953_v44 = vpop.f32.mrf.mxu0 }
0x1bec   : > { %v10955_v20 = vpop.f32.mrf.mxu0 }
0x1bed   : > { %v10990_v0 = vpack.c.bf16 %v10955_v20, %v10951_v14 }
0x1bee   : > { %v10957_v62 = vpop.f32.mrf.mxu0 }
0x1bef   : > { %v10991_v10 = vpack.c.bf16 %v10957_v62, %v10953_v44  ;;  %v15918_v62 = vld [vmem:[%s19102_s9 + $0x334] ss:$8 sps:$4 sm:$0xff]  }
0x1bf0   : > { %v10961_v8 = vpop.f32.mrf.mxu0 }
0x1bf2   : > { %v10963_v57 = vpop.f32.mrf.mxu0 }
0x1bf4   : > { %v10965_v52 = vpop.f32.mrf.mxu0 }
0x1bf5   : > { %v10992_v5 = vpack.c.bf16 %v10965_v52, %v10961_v8  ;;  %v15916_v52 = vld [vmem:[%s19102_s9 + $0x330] ss:$8 sps:$4 sm:$0xff]  }
0x1bf6   : > { %v10967_v12 = vpop.f32.mrf.mxu0 }
0x1bf7   : > { %v10993_v49 = vpack.c.bf16 %v10967_v12, %v10963_v57  ;;  %v13379_v57 = vld [vmem:[%s19103_s10 + $0x2c] sm:$0xf] }
0x1bf8   : > { %v10971_v11 = vpop.f32.mrf.mxu0  ;;  %v15921_v12 = vld [vmem:[%s19102_s9 + $0x324] ss:$8 sps:$4 sm:$0xff]  }
0x1bfa   : > { %v10973_v31 = vpop.f32.mrf.mxu0 }
0x1bfc   : > { %v10975_v45 = vpop.f32.mrf.mxu0 }
0x1bfd   : > { %v10994_v22 = vpack.c.bf16 %v10975_v45, %v10971_v11  ;;  %v15919_v11 = vld [vmem:[%s19102_s9 + $0x320] ss:$8 sps:$4 sm:$0xff]   ;;  %v15922_v45 = vld [vmem:[%s19102_s9 + $0x310] ss:$8 sps:$4 sm:$0xff]  }
0x1bfe   : > { %v10977_v7 = vpop.f32.mrf.mxu0 }
0x1bff   : > { %v10995_v1 = vpack.c.bf16 %v10977_v7, %v10973_v31  ;;  %v15924_v31 = vld [vmem:[%s19102_s9 + $0x314] ss:$8 sps:$4 sm:$0xff]   ;;  %v15927_v7 = vld [vmem:[%s19102_s9 + $0x304] ss:$8 sps:$4 sm:$0xff]  }
0x1c00   : > { %v10981_v34 = vpop.f32.mrf.mxu0 }
0x1c02   : > { %v10983_v15 = vpop.f32.mrf.mxu0 }
0x1c04   : > { %v10985_v23 = vpop.f32.mrf.mxu0 }
0x1c05   : > { %v10996_v25 = vpack.c.bf16 %v10985_v23, %v10981_v34  ;;  %v15925_v34 = vld [vmem:[%s19102_s9 + $0x300] ss:$8 sps:$4 sm:$0xff]  }
0x1c06   : > { %v10987_v13 = vpop.f32.mrf.mxu0 }
0x1c07   : > { %v10997_v27 = vpack.c.bf16 %v10987_v13, %v10983_v15 }
0x1c09   : > { %11011 = vmatprep.subr.bf16.mxu1 %v10997_v27 }
0x1c0a   : > { %11012 = vmatpush1.bf16.msra.mxu1 %v10996_v25 }
0x1c0b   : > { %11013 = vmatprep.subr.bf16.mxu1 %v10995_v1 }
0x1c0e   : > { %11014 = vmatpush1.bf16.msra.mxu1 %v10994_v22 }
0x1c0f   : > { %11015 = vmatprep.subr.bf16.mxu1 %v10993_v49 }
0x1c12   : > { %11016 = vmatpush1.bf16.msra.mxu1 %v10992_v5 }
0x1c13   : > { %11017 = vmatprep.subr.bf16.mxu1 %v10991_v10 }
0x1c16   : > { %11018 = vmatpush1.bf16.msra.mxu1 %v10990_v0 }
0x1c17   : > { %11103 = vmatprep.subr.bf16.mxu1 %v15906_v3 }
0x1c19   : > { %13358 = vmatmul.mubr.msk.bf16.vlgmr.msra.gmra.mxu1 %vm668_vm0, %v13357_v63 }
0x1c1a   : > { %11104 = vmatpush1.bf16.msra.mxu1 %v15904_v29  ;;  %11127 = vmatprep.mubr.bf16.mxu1 %v19168_v54 }
0x1c1b   : > { %11105 = vmatprep.subr.bf16.mxu1 %v15909_v16 }
0x1c1e   : > { %11106 = vmatpush1.bf16.msra.mxu1 %v15907_v55 }
0x1c1f   : > { %11107 = vmatprep.subr.bf16.mxu1 %v15912_v42 }
0x1c22   : > { %11108 = vmatpush1.bf16.msra.mxu1 %v15910_v39 }
0x1c23   : > { %11109 = vmatprep.subr.bf16.mxu1 %v15915_v6 }
0x1c26   : > { %11110 = vmatpush1.bf16.msra.mxu1 %v15913_v46 }
0x1c29   : > { %13375 = vmatmul.mubr.msk.bf16.vlgmr.msra.gmra.mxu1 %vm668_vm0, %v18377_v4 }
0x1c2a   : > { %11137 = vmatprep.mubr.bf16.mxu1 %v19168_v54 }
0x1c31   : > { %13376 = vmatmul.mubr.msk.bf16.gmra.mxu1 %vm668_vm0, %v18374_v21 }
0x1c32   : > { %11147 = vmatprep.mubr.bf16.mxu1 %v19168_v54 }
0x1c39   : > { %13377 = vmatmul.mubr.msk.bf16.gmra.mxu1 %vm668_vm0, %v18415_v37 }
0x1c3a   : > { %11157 = vmatprep.mubr.bf16.mxu1 %v19168_v54 }
0x1c41   : > { %13378 = vmatmul.mubr.msk.bf16.gmra.mxu1 %vm668_vm0, %v18398_v35 }
0x1c42   : > { %11391 = vmatprep.mubr.bf16.mxu1 %v19168_v54 }
0x1cd9   : > { %v11037_v58 = vpop.f32.mrf.mxu1 }
0x1cda   : > { %v18894_v56 = vadd.f32 %v11037_v58, %v18847_v38 }
0x1cdb   : > { %v11039_v32 = vpop.f32.mrf.mxu1 }
0x1cdc   : > { %v18897_v24 = vadd.f32 %v11039_v32, %v18850_v19 }
0x1cdd   : > { %v11041_v33 = vpop.f32.mrf.mxu1 }
0x1cdf   : > { %v11042_v60 = vpop.f32.mrf.mxu1 }
0x1ce9   : > { %v11129_v53 = vpop.f32.mrf.mxu1 }
0x1ceb   : > { %v11131_v59 = vpop.f32.mrf.mxu1 }
0x1ced   : > { %v11133_v36 = vpop.f32.mrf.mxu1 }
0x1cee   : > { %v11168_v8 = vpack.c.bf16 %v11133_v36, %v11129_v53 }
0x1cef   : > { %v11135_v47 = vpop.f32.mrf.mxu1 }
0x1cf0   : > { %v11169_v20 = vpack.c.bf16 %v11135_v47, %v11131_v59  ;;  %v15930_v47 = vld [vmem:[%s19102_s9 + $0x374] ss:$8 sps:$4 sm:$0xff]  }
0x1cf1   : > { %v11139_v61 = vpop.f32.mrf.mxu1 }
0x1cf3   : > { %v11141_v40 = vpop.f32.mrf.mxu1 }
0x1cf5   : > { %v11143_v9 = vpop.f32.mrf.mxu1 }
0x1cf6   : > { %v11170_v44 = vpack.c.bf16 %v11143_v9, %v11139_v61  ;;  %v15928_v9 = vld [vmem:[%s19102_s9 + $0x370] ss:$8 sps:$4 sm:$0xff]  }
0x1cf7   : > { %v11145_v48 = vpop.f32.mrf.mxu1 }
0x1cf8   : > { %v11171_v14 = vpack.c.bf16 %v11145_v48, %v11141_v40  ;;  %v13401_v40 = vld [vmem:[%s19103_s10 + $0x30] sm:$0xf]  ;;  %v15933_v48 = vld [vmem:[%s19102_s9 + $0x364] ss:$8 sps:$4 sm:$0xff]  }
0x1cf9   : > { %v11149_v18 = vpop.f32.mrf.mxu1 }
0x1cfb   : > { %v11151_v41 = vpop.f32.mrf.mxu1 }
0x1cfd   : > { %v11153_v51 = vpop.f32.mrf.mxu1 }
0x1cfe   : > { %v11172_v17 = vpack.c.bf16 %v11153_v51, %v11149_v18  ;;  %v15931_v18 = vld [vmem:[%s19102_s9 + $0x360] ss:$8 sps:$4 sm:$0xff]   ;;  %v15934_v51 = vld [vmem:[%s19102_s9 + $0x350] ss:$8 sps:$4 sm:$0xff]  }
0x1cff   : > { %v11155_v43 = vpop.f32.mrf.mxu1 }
0x1d00   : > { %v11173_v28 = vpack.c.bf16 %v11155_v43, %v11151_v41  ;;  %v15936_v41 = vld [vmem:[%s19102_s9 + $0x354] ss:$8 sps:$4 sm:$0xff]   ;;  %v15939_v43 = vld [vmem:[%s19102_s9 + $0x344] ss:$8 sps:$4 sm:$0xff]  }
0x1d01   : > { %v11159_v30 = vpop.f32.mrf.mxu1 }
0x1d03   : > { %v11161_v50 = vpop.f32.mrf.mxu1 }
0x1d05   : > { %v11163_v26 = vpop.f32.mrf.mxu1 }
0x1d06   : > { %v11174_v19 = vpack.c.bf16 %v11163_v26, %v11159_v30  ;;  %v15937_v30 = vld [vmem:[%s19102_s9 + $0x340] ss:$8 sps:$4 sm:$0xff]  }
0x1d07   : > { %v11165_v38 = vpop.f32.mrf.mxu1 }
0x1d08   : > { %v11175_v2 = vpack.c.bf16 %v11165_v38, %v11161_v50 }
0x1d0a   : > { %11189 = vmatprep.subr.bf16.mxu0 %v11175_v2 }
0x1d0b   : > { %11190 = vmatpush1.bf16.msra.mxu0 %v11174_v19 }
0x1d0c   : > { %11191 = vmatprep.subr.bf16.mxu0 %v11173_v28 }
0x1d0f   : > { %11192 = vmatpush1.bf16.msra.mxu0 %v11172_v17 }
0x1d10   : > { %11193 = vmatprep.subr.bf16.mxu0 %v11171_v14 }
0x1d13   : > { %11194 = vmatpush1.bf16.msra.mxu0 %v11170_v44 }
0x1d14   : > { %11195 = vmatprep.subr.bf16.mxu0 %v11169_v20 }
0x1d17   : > { %11196 = vmatpush1.bf16.msra.mxu0 %v11168_v8 }
0x1d18   : > { %11281 = vmatprep.subr.bf16.mxu0 %v15918_v62 }
0x1d1a   : > { %13380 = vmatmul.mubr.msk.bf16.vlgmr.msra.gmra.mxu0 %vm668_vm0, %v13379_v57 }
0x1d1b   : > { %11282 = vmatpush1.bf16.msra.mxu0 %v15916_v52  ;;  %11305 = vmatprep.mubr.bf16.mxu0 %v19168_v54 }
0x1d1c   : > { %11283 = vmatprep.subr.bf16.mxu0 %v15921_v12 }
0x1d1f   : > { %11284 = vmatpush1.bf16.msra.mxu0 %v15919_v11 }
0x1d20   : > { %11285 = vmatprep.subr.bf16.mxu0 %v15924_v31 }
0x1d23   : > { %11286 = vmatpush1.bf16.msra.mxu0 %v15922_v45 }
0x1d24   : > { %11287 = vmatprep.subr.bf16.mxu0 %v15927_v7 }
0x1d27   : > { %11288 = vmatpush1.bf16.msra.mxu0 %v15925_v34 }
0x1d2a   : > { %13397 = vmatmul.mubr.msk.bf16.vlgmr.msra.gmra.mxu0 %vm668_vm0, %v18377_v4 }
0x1d2b   : > { %11315 = vmatprep.mubr.bf16.mxu0 %v19168_v54 }
0x1d32   : > { %13398 = vmatmul.mubr.msk.bf16.gmra.mxu0 %vm668_vm0, %v18374_v21 }
0x1d33   : > { %11325 = vmatprep.mubr.bf16.mxu0 %v19168_v54 }
0x1d3a   : > { %13399 = vmatmul.mubr.msk.bf16.gmra.mxu0 %vm668_vm0, %v18415_v37 }
0x1d3b   : > { %11335 = vmatprep.mubr.bf16.mxu0 %v19168_v54 }
0x1d42   : > { %13400 = vmatmul.mubr.msk.bf16.gmra.mxu0 %vm668_vm0, %v18398_v35 }
0x1d43   : > { %11569 = vmatprep.mubr.bf16.mxu0 %v19168_v54 }
0x1dda   : > { %v11215_v15 = vpop.f32.mrf.mxu0 }
0x1ddb   : > { %v18941_v23 = vadd.f32 %v11215_v15, %v18894_v56 }
0x1ddc   : > { %v11217_v13 = vpop.f32.mrf.mxu0 }
0x1ddd   : > { %v18944_v27 = vadd.f32 %v11217_v13, %v18897_v24 }
0x1dde   : > { %v11219_v25 = vpop.f32.mrf.mxu0 }
0x1de0   : > { %v11220_v1 = vpop.f32.mrf.mxu0 }
0x1dea   : > { %v11307_v22 = vpop.f32.mrf.mxu0 }
0x1dec   : > { %v11309_v49 = vpop.f32.mrf.mxu0 }
0x1dee   : > { %v11311_v5 = vpop.f32.mrf.mxu0 }
0x1def   : > { %v11346_v61 = vpack.c.bf16 %v11311_v5, %v11307_v22 }
0x1df0   : > { %v11313_v10 = vpop.f32.mrf.mxu0 }
0x1df1   : > { %v11347_v36 = vpack.c.bf16 %v11313_v10, %v11309_v49  ;;  %v15942_v10 = vld [vmem:[%s19102_s9 + $0x3b4] ss:$8 sps:$4 sm:$0xff]  }
0x1df2   : > { %v11317_v3 = vpop.f32.mrf.mxu0 }
0x1df4   : > { %v11319_v0 = vpop.f32.mrf.mxu0 }
0x1df6   : > { %v11321_v63 = vpop.f32.mrf.mxu0 }
0x1df7   : > { %v11348_v59 = vpack.c.bf16 %v11321_v63, %v11317_v3  ;;  %v15940_v63 = vld [vmem:[%s19102_s9 + $0x3b0] ss:$8 sps:$4 sm:$0xff]  }
0x1df8   : > { %v11323_v29 = vpop.f32.mrf.mxu0 }
0x1df9   : > { %v11349_v53 = vpack.c.bf16 %v11323_v29, %v11319_v0  ;;  %v13423_v0 = vld [vmem:[%s19103_s10 + $0x34] sm:$0xf]  ;;  %v15945_v29 = vld [vmem:[%s19102_s9 + $0x3a4] ss:$8 sps:$4 sm:$0xff]  }
0x1dfa   : > { %v11327_v16 = vpop.f32.mrf.mxu0 }
0x1dfc   : > { %v11329_v55 = vpop.f32.mrf.mxu0 }
0x1dfe   : > { %v11331_v42 = vpop.f32.mrf.mxu0 }
0x1dff   : > { %v11350_v60 = vpack.c.bf16 %v11331_v42, %v11327_v16  ;;  %v15943_v16 = vld [vmem:[%s19102_s9 + $0x3a0] ss:$8 sps:$4 sm:$0xff]   ;;  %v15946_v42 = vld [vmem:[%s19102_s9 + $0x390] ss:$8 sps:$4 sm:$0xff]  }
0x1e00   : > { %v11333_v39 = vpop.f32.mrf.mxu0 }
0x1e01   : > { %v11351_v33 = vpack.c.bf16 %v11333_v39, %v11329_v55  ;;  %v15948_v55 = vld [vmem:[%s19102_s9 + $0x394] ss:$8 sps:$4 sm:$0xff]   ;;  %v15951_v39 = vld [vmem:[%s19102_s9 + $0x384] ss:$8 sps:$4 sm:$0xff]  }
0x1e02   : > { %v11337_v6 = vpop.f32.mrf.mxu0 }
0x1e04   : > { %v11339_v46 = vpop.f32.mrf.mxu0 }
0x1e06   : > { %v11341_v58 = vpop.f32.mrf.mxu0 }
0x1e07   : > { %v11352_v24 = vpack.c.bf16 %v11341_v58, %v11337_v6  ;;  %v15949_v6 = vld [vmem:[%s19102_s9 + $0x380] ss:$8 sps:$4 sm:$0xff]  }
0x1e08   : > { %v11343_v56 = vpop.f32.mrf.mxu0 }
0x1e09   : > { %v11353_v32 = vpack.c.bf16 %v11343_v56, %v11339_v46 }
0x1e0b   : > { %11367 = vmatprep.subr.bf16.mxu1 %v11353_v32 }
0x1e0c   : > { %11368 = vmatpush1.bf16.msra.mxu1 %v11352_v24 }
0x1e0d   : > { %11369 = vmatprep.subr.bf16.mxu1 %v11351_v33 }
0x1e10   : > { %11370 = vmatpush1.bf16.msra.mxu1 %v11350_v60 }
0x1e11   : > { %11371 = vmatprep.subr.bf16.mxu1 %v11349_v53 }
0x1e14   : > { %11372 = vmatpush1.bf16.msra.mxu1 %v11348_v59 }
0x1e15   : > { %11373 = vmatprep.subr.bf16.mxu1 %v11347_v36 }
0x1e18   : > { %11374 = vmatpush1.bf16.msra.mxu1 %v11346_v61 }
0x1e19   : > { %11459 = vmatprep.subr.bf16.mxu1 %v15930_v47 }
0x1e1b   : > { %13402 = vmatmul.mubr.msk.bf16.vlgmr.msra.gmra.mxu1 %vm668_vm0, %v13401_v40 }
0x1e1c   : > { %11460 = vmatpush1.bf16.msra.mxu1 %v15928_v9  ;;  %11483 = vmatprep.mubr.bf16.mxu1 %v19168_v54 }
0x1e1d   : > { %11461 = vmatprep.subr.bf16.mxu1 %v15933_v48 }
0x1e20   : > { %11462 = vmatpush1.bf16.msra.mxu1 %v15931_v18 }
0x1e21   : > { %11463 = vmatprep.subr.bf16.mxu1 %v15936_v41 }
0x1e24   : > { %11464 = vmatpush1.bf16.msra.mxu1 %v15934_v51 }
0x1e25   : > { %11465 = vmatprep.subr.bf16.mxu1 %v15939_v43 }
0x1e28   : > { %11466 = vmatpush1.bf16.msra.mxu1 %v15937_v30 }
0x1e2b   : > { %13419 = vmatmul.mubr.msk.bf16.vlgmr.msra.gmra.mxu1 %vm668_vm0, %v18377_v4 }
0x1e2c   : > { %11493 = vmatprep.mubr.bf16.mxu1 %v19168_v54 }
0x1e33   : > { %13420 = vmatmul.mubr.msk.bf16.gmra.mxu1 %vm668_vm0, %v18374_v21 }
0x1e34   : > { %11503 = vmatprep.mubr.bf16.mxu1 %v19168_v54 }
0x1e3b   : > { %13421 = vmatmul.mubr.msk.bf16.gmra.mxu1 %vm668_vm0, %v18415_v37 }
0x1e3c   : > { %11513 = vmatprep.mubr.bf16.mxu1 %v19168_v54 }
0x1e43   : > { %13422 = vmatmul.mubr.msk.bf16.gmra.mxu1 %vm668_vm0, %v18398_v35 }
0x1e44   : > { %11747 = vmatprep.mubr.bf16.mxu1 %v19168_v54 }
0x1edb   : > { %v11393_v50 = vpop.f32.mrf.mxu1 }
0x1edc   : > { %v18988_v26 = vadd.f32 %v11393_v50, %v18941_v23 }
0x1edd   : > { %v11395_v38 = vpop.f32.mrf.mxu1 }
0x1ede   : > { %v18991_v2 = vadd.f32 %v11395_v38, %v18944_v27 }
0x1edf   : > { %v11397_v19 = vpop.f32.mrf.mxu1 }
0x1ee1   : > { %v11398_v28 = vpop.f32.mrf.mxu1 }
0x1eeb   : > { %v11485_v17 = vpop.f32.mrf.mxu1 }
0x1eed   : > { %v11487_v14 = vpop.f32.mrf.mxu1 }
0x1eef   : > { %v11489_v44 = vpop.f32.mrf.mxu1 }
0x1ef0   : > { %v11524_v3 = vpack.c.bf16 %v11489_v44, %v11485_v17 }
0x1ef1   : > { %v11491_v20 = vpop.f32.mrf.mxu1 }
0x1ef2   : > { %v11525_v5 = vpack.c.bf16 %v11491_v20, %v11487_v14  ;;  %v15954_v20 = vld [vmem:[%s19102_s9 + $0x3f4] ss:$8 sps:$4 sm:$0xff]  }
0x1ef3   : > { %v11495_v62 = vpop.f32.mrf.mxu1 }
0x1ef5   : > { %v11497_v8 = vpop.f32.mrf.mxu1 }
0x1ef7   : > { %v11499_v57 = vpop.f32.mrf.mxu1 }
0x1ef8   : > { %v11526_v49 = vpack.c.bf16 %v11499_v57, %v11495_v62  ;;  %v15952_v57 = vld [vmem:[%s19102_s9 + $0x3f0] ss:$8 sps:$4 sm:$0xff]  }
0x1ef9   : > { %v11501_v52 = vpop.f32.mrf.mxu1 }
0x1efa   : > { %v11527_v22 = vpack.c.bf16 %v11501_v52, %v11497_v8  ;;  %v13445_v8 = vld [vmem:[%s19103_s10 + $0x38] sm:$0xf]  ;;  %v15957_v52 = vld [vmem:[%s19102_s9 + $0x3e4] ss:$8 sps:$4 sm:$0xff]  }
0x1efb   : > { %v11505_v12 = vpop.f32.mrf.mxu1 }
0x1efd   : > { %v11507_v11 = vpop.f32.mrf.mxu1 }
0x1eff   : > { %v11509_v31 = vpop.f32.mrf.mxu1 }
0x1f00   : > { %v11528_v1 = vpack.c.bf16 %v11509_v31, %v11505_v12  ;;  %v15955_v12 = vld [vmem:[%s19102_s9 + $0x3e0] ss:$8 sps:$4 sm:$0xff]   ;;  %v15958_v31 = vld [vmem:[%s19102_s9 + $0x3d0] ss:$8 sps:$4 sm:$0xff]  }
0x1f01   : > { %v11511_v45 = vpop.f32.mrf.mxu1 }
0x1f02   : > { %v11529_v25 = vpack.c.bf16 %v11511_v45, %v11507_v11  ;;  %v15960_v11 = vld [vmem:[%s19102_s9 + $0x3d4] ss:$8 sps:$4 sm:$0xff]   ;;  %v15963_v45 = vld [vmem:[%s19102_s9 + $0x3c4] ss:$8 sps:$4 sm:$0xff]  }
0x1f03   : > { %v11515_v7 = vpop.f32.mrf.mxu1 }
0x1f05   : > { %v11517_v34 = vpop.f32.mrf.mxu1 }
0x1f07   : > { %v11519_v15 = vpop.f32.mrf.mxu1 }
0x1f08   : > { %v11530_v27 = vpack.c.bf16 %v11519_v15, %v11515_v7  ;;  %v15961_v7 = vld [vmem:[%s19102_s9 + $0x3c0] ss:$8 sps:$4 sm:$0xff]  }
0x1f09   : > { %v11521_v23 = vpop.f32.mrf.mxu1 }
0x1f0a   : > { %v11531_v13 = vpack.c.bf16 %v11521_v23, %v11517_v34 }
0x1f0c   : > { %11545 = vmatprep.subr.bf16.mxu0 %v11531_v13 }
0x1f0d   : > { %11546 = vmatpush1.bf16.msra.mxu0 %v11530_v27 }
0x1f0e   : > { %11547 = vmatprep.subr.bf16.mxu0 %v11529_v25 }
0x1f11   : > { %11548 = vmatpush1.bf16.msra.mxu0 %v11528_v1 }
0x1f12   : > { %11549 = vmatprep.subr.bf16.mxu0 %v11527_v22 }
0x1f15   : > { %11550 = vmatpush1.bf16.msra.mxu0 %v11526_v49 }
0x1f16   : > { %11551 = vmatprep.subr.bf16.mxu0 %v11525_v5 }
0x1f19   : > { %11552 = vmatpush1.bf16.msra.mxu0 %v11524_v3 }
0x1f1a   : > { %11637 = vmatprep.subr.bf16.mxu0 %v15942_v10 }
0x1f1c   : > { %13424 = vmatmul.mubr.msk.bf16.vlgmr.msra.gmra.mxu0 %vm668_vm0, %v13423_v0 }
0x1f1d   : > { %11638 = vmatpush1.bf16.msra.mxu0 %v15940_v63  ;;  %11661 = vmatprep.mubr.bf16.mxu0 %v19168_v54 }
0x1f1e   : > { %11639 = vmatprep.subr.bf16.mxu0 %v15945_v29 }
0x1f21   : > { %11640 = vmatpush1.bf16.msra.mxu0 %v15943_v16 }
0x1f22   : > { %11641 = vmatprep.subr.bf16.mxu0 %v15948_v55 }
0x1f25   : > { %11642 = vmatpush1.bf16.msra.mxu0 %v15946_v42 }
0x1f26   : > { %11643 = vmatprep.subr.bf16.mxu0 %v15951_v39 }
0x1f29   : > { %11644 = vmatpush1.bf16.msra.mxu0 %v15949_v6 }
0x1f2c   : > { %13441 = vmatmul.mubr.msk.bf16.vlgmr.msra.gmra.mxu0 %vm668_vm0, %v18377_v4 }
0x1f2d   : > { %11671 = vmatprep.mubr.bf16.mxu0 %v19168_v54 }
0x1f34   : > { %13442 = vmatmul.mubr.msk.bf16.gmra.mxu0 %vm668_vm0, %v18374_v21 }
0x1f35   : > { %11681 = vmatprep.mubr.bf16.mxu0 %v19168_v54 }
0x1f3c   : > { %13443 = vmatmul.mubr.msk.bf16.gmra.mxu0 %vm668_vm0, %v18415_v37 }
0x1f3d   : > { %11691 = vmatprep.mubr.bf16.mxu0 %v19168_v54 }
0x1f44   : > { %13444 = vmatmul.mubr.msk.bf16.gmra.mxu0 %vm668_vm0, %v18398_v35 }
0x1f45   : > { %11925 = vmatprep.mubr.bf16.mxu0 %v19168_v54 }
0x1fdc   : > { %v11571_v46 = vpop.f32.mrf.mxu0 }
0x1fdd   : > { %v19035_v58 = vadd.f32 %v11571_v46, %v18988_v26 }
0x1fde   : > { %v11573_v56 = vpop.f32.mrf.mxu0 }
0x1fdf   : > { %v19038_v32 = vadd.f32 %v11573_v56, %v18991_v2 }
0x1fe0   : > { %v11575_v24 = vpop.f32.mrf.mxu0 }
0x1fe2   : > { %v11576_v33 = vpop.f32.mrf.mxu0 }
0x1fe3   : > { %v13467_v33 = vld [vmem:[%s19103_s10 + $0x3c] sm:$0xf] }
0x1fec   : > { %v11663_v60 = vpop.f32.mrf.mxu0 }
0x1fee   : > { %v11665_v53 = vpop.f32.mrf.mxu0 }
0x1ff0   : > { %v11667_v59 = vpop.f32.mrf.mxu0 }
0x1ff1   : > { %v11702_v62 = vpack.c.bf16 %v11667_v59, %v11663_v60  ;;  %v11940_v59 = vpop.permute.xlu0 %11939 }
0x1ff2   : > { %v11669_v36 = vpop.f32.mrf.mxu0 }
0x1ff3   : > { %v11703_v44 = vpack.c.bf16 %v11669_v36, %v11665_v53 }
0x1ff4   : > { %v11673_v47 = vpop.f32.mrf.mxu0 }
0x1ff6   : > { %v11675_v61 = vpop.f32.mrf.mxu0 }
0x1ff8   : > { %v11677_v40 = vpop.f32.mrf.mxu0 }
0x1ff9   : > { %v11704_v14 = vpack.c.bf16 %v11677_v40, %v11673_v47 }
0x1ffa   : > { %v11679_v9 = vpop.f32.mrf.mxu0 }
0x1ffb   : > { %v11705_v17 = vpack.c.bf16 %v11679_v9, %v11675_v61 }
0x1ffc   : > { %v11683_v48 = vpop.f32.mrf.mxu0 }
0x1ffe   : > { %v11685_v18 = vpop.f32.mrf.mxu0 }
0x2000   : > { %v11687_v41 = vpop.f32.mrf.mxu0 }
0x2001   : > { %v11706_v28 = vpack.c.bf16 %v11687_v41, %v11683_v48 }
0x2002   : > { %v11689_v51 = vpop.f32.mrf.mxu0 }
0x2003   : > { %v11707_v19 = vpack.c.bf16 %v11689_v51, %v11685_v18 }
0x2004   : > { %v11693_v43 = vpop.f32.mrf.mxu0 }
0x2006   : > { %v11695_v30 = vpop.f32.mrf.mxu0 }
0x2008   : > { %v11697_v50 = vpop.f32.mrf.mxu0 }
0x2009   : > { %v11708_v2 = vpack.c.bf16 %v11697_v50, %v11693_v43 }
0x200a   : > { %v11699_v26 = vpop.f32.mrf.mxu0 }
0x200b   : > { %v11709_v38 = vpack.c.bf16 %v11699_v26, %v11695_v30 }
0x200d   : > { %11723 = vmatprep.subr.bf16.mxu1 %v11709_v38 }
0x200e   : > { %11724 = vmatpush1.bf16.msra.mxu1 %v11708_v2 }
0x200f   : > { %11725 = vmatprep.subr.bf16.mxu1 %v11707_v19 }
0x2012   : > { %11726 = vmatpush1.bf16.msra.mxu1 %v11706_v28 }
0x2013   : > { %11727 = vmatprep.subr.bf16.mxu1 %v11705_v17 }
0x2016   : > { %11728 = vmatpush1.bf16.msra.mxu1 %v11704_v14 }
0x2017   : > { %11729 = vmatprep.subr.bf16.mxu1 %v11703_v44 }
0x201a   : > { %11730 = vmatpush1.bf16.msra.mxu1 %v11702_v62 }
0x201b   : > { %11815 = vmatprep.subr.bf16.mxu1 %v15954_v20 }
0x201d   : > { %13446 = vmatmul.mubr.msk.bf16.vlgmr.msra.gmra.mxu1 %vm668_vm0, %v13445_v8 }
0x201e   : > { %11816 = vmatpush1.bf16.msra.mxu1 %v15952_v57  ;;  %11839 = vmatprep.mubr.bf16.mxu1 %v19168_v54 }
0x201f   : > { %11817 = vmatprep.subr.bf16.mxu1 %v15957_v52 }
0x2022   : > { %11818 = vmatpush1.bf16.msra.mxu1 %v15955_v12 }
0x2023   : > { %11819 = vmatprep.subr.bf16.mxu1 %v15960_v11 }
0x2026   : > { %11820 = vmatpush1.bf16.msra.mxu1 %v15958_v31 }
0x2027   : > { %11821 = vmatprep.subr.bf16.mxu1 %v15963_v45 }
0x202a   : > { %11822 = vmatpush1.bf16.msra.mxu1 %v15961_v7 }
0x202d   : > { %13463 = vmatmul.mubr.msk.bf16.vlgmr.msra.gmra.mxu1 %vm668_vm0, %v18377_v4 }
0x202e   : > { %11849 = vmatprep.mubr.bf16.mxu1 %v19168_v54 }
0x2035   : > { %13464 = vmatmul.mubr.msk.bf16.gmra.mxu1 %vm668_vm0, %v18374_v21 }
0x2036   : > { %11859 = vmatprep.mubr.bf16.mxu1 %v19168_v54 }
0x203d   : > { %13465 = vmatmul.mubr.msk.bf16.gmra.mxu1 %vm668_vm0, %v18415_v37 }
0x203e   : > { %11869 = vmatprep.mubr.bf16.mxu1 %v19168_v54 }
0x2045   : > { %13466 = vmatmul.mubr.msk.bf16.gmra.mxu1 %vm668_vm0, %v18398_v35 }
0x20dd   : > { %v11749_v34 = vpop.f32.mrf.mxu1 }
0x20de   : > { %v11756_v15 = vadd.f32 %v11749_v34, %v19035_v58 }
0x20df   : > { %v11751_v23 = vpop.f32.mrf.mxu1 }
0x20e0   : > { %v11757_v4 = vadd.f32 %v11751_v23, %v19038_v32 }
0x20e1   : > { %v11753_v13 = vpop.f32.mrf.mxu1 }
0x20e3   : > { %v11754_v27 = vpop.f32.mrf.mxu1 }
0x20ed   : > { %v11841_v25 = vpop.f32.mrf.mxu1 }
0x20ef   : > { %v11843_v21 = vpop.f32.mrf.mxu1 }
0x20f1   : > { %v11845_v1 = vpop.f32.mrf.mxu1 }
0x20f2   : > { %v11880_v24 = vpack.c.bf16 %v11845_v1, %v11841_v25 }
0x20f3   : > { %v11847_v22 = vpop.f32.mrf.mxu1 }
0x20f4   : > { %v11881_v32 = vpack.c.bf16 %v11847_v22, %v11843_v21 }
0x20f5   : > { %v11851_v49 = vpop.f32.mrf.mxu1 }
0x20f7   : > { %v11853_v5 = vpop.f32.mrf.mxu1 }
0x20f9   : > { %v11855_v37 = vpop.f32.mrf.mxu1 }
0x20fa   : > { %v11882_v56 = vpack.c.bf16 %v11855_v37, %v11851_v49 }
0x20fb   : > { %v11857_v10 = vpop.f32.mrf.mxu1 }
0x20fc   : > { %v11883_v58 = vpack.c.bf16 %v11857_v10, %v11853_v5 }
0x20fd   : > { %v11861_v54 = vpop.f32.mrf.mxu1 }
0x20ff   : > { %v11863_v3 = vpop.f32.mrf.mxu1 }
0x2101   : > { %v11865_v0 = vpop.f32.mrf.mxu1 }
0x2102   : > { %v11884_v46 = vpack.c.bf16 %v11865_v0, %v11861_v54 }
0x2103   : > { %v11867_v35 = vpop.f32.mrf.mxu1 }
0x2104   : > { %v11885_v6 = vpack.c.bf16 %v11867_v35, %v11863_v3 }
0x2105   : > { %v11871_v63 = vpop.f32.mrf.mxu1 }
0x2107   : > { %v11873_v29 = vpop.f32.mrf.mxu1 }
0x2109   : > { %v11875_v16 = vpop.f32.mrf.mxu1 }
0x210a   : > { %v11886_v39 = vpack.c.bf16 %v11875_v16, %v11871_v63 }
0x210b   : > { %v11877_v55 = vpop.f32.mrf.mxu1 }
0x210c   : > { %v11887_v42 = vpack.c.bf16 %v11877_v55, %v11873_v29 }
0x210e   : > { %11901 = vmatprep.subr.bf16.mxu0 %v11887_v42 }
0x210f   : > { %11902 = vmatpush1.bf16.msra.mxu0 %v11886_v39 }
0x2110   : > { %11903 = vmatprep.subr.bf16.mxu0 %v11885_v6 }
0x2113   : > { %11904 = vmatpush1.bf16.msra.mxu0 %v11884_v46 }
0x2114   : > { %11905 = vmatprep.subr.bf16.mxu0 %v11883_v58 }
0x2117   : > { %11906 = vmatpush1.bf16.msra.mxu0 %v11882_v56 }
0x2118   : > { %11907 = vmatprep.subr.bf16.mxu0 %v11881_v32 }
0x211b   : > { %11908 = vmatpush1.bf16.msra.mxu0 %v11880_v24 }
0x211e   : > { %13468 = vmatmul.mubr.msk.bf16.vlgmr.msra.gmra.mxu0 %vm668_vm0, %v13467_v33 }
0x21de   : > { %v11927_v60 = vpop.f32.mrf.mxu0 }
0x21df   : > { %v11934_v53 = vadd.f32 %v11927_v60, %v11756_v15 }
0x21e0   : > { %v11929_v36 = vpop.f32.mrf.mxu0 }
0x21e1   : > { %v11942_v47 = vadd.f32 %v11940_v59, %v11934_v53  ;;  %v11935_v61 = vadd.f32 %v11929_v36, %v11757_v4 }
0x21e2   : > { %v11931_v40 = vpop.f32.mrf.mxu0 }
0x21e3   : > { %15964 = vtanh.f32 %v11942_v47  ;;  %v11943_v9 = vadd.f32 %v11940_v59, %v11935_v61 }
0x21e4   : > { %v11932_v48 = vpop.f32.mrf.mxu0 }
0x21e5   : > { %15966 = vtanh.f32 %v11943_v9 }
0x21f0   : > { %v15965_v18 = vpop.eup %15964 }
0x21f1   : > { %11946 = vst [vmem:[%s413_s25] sm:$0xff] %v15965_v18 }
0x21f2   : > { %v15967_v41 = vpop.eup %15966 }
0x21f3   : > { %11947 = vst [vmem:[%s413_s25 + $0x8] sm:$0xff] %v15967_v41 }
0x21f4 PF: > { %s22_s21 = sadd.s32 1, %s15974_s21  }
0x21f5   : > { %p19_p4 = scmp.ge.s32.totalorder %s22_s21, 4  }
0x21f7   :  { %21 = sbr.rel (!%p19_p4) target bundleno = 1 (0x1), region = 188 }

</bundles_post_ra>
